<compile_context>
chip_gen: v5e
topology: v5e:2x2
jax: 0.10.0
libtpu: 0.0.40
codegen_flags: <defaults>
</compile_context>

<pallas_src>
import functools

import jax
import jax.numpy as jnp
from jax.experimental import pallas as pl
from jax.experimental.pallas import tpu as pltpu

EPS = 1e-5  # PyTorch BatchNorm2d default


def basic_block_kernel(x_ref, w1_ref, w2_ref, b_ref, out_ref, y_ref, *, H, W, SH):
    # x_ref  : (1, ROWS, Cp) bf16  zero-padded input, flattened over (H+2, W+2)
    # w*_ref : (3, 3*Cp, Cp) bf16  per-dh weights, dw-major along K, BN scale folded
    # b_ref  : (2, Cp) f32         row0 = BN1 folded bias, row1 = BN2 folded bias
    # out_ref: (1, H*Wp, Cp) bf16  flattened over (H, Wp); cols [W, Wp) are junk
    # y_ref  : (ROWS, Cp) bf16     padded conv1-output scratch (same layout as x)
    ROWS, Cp = y_ref.shape
    Wp = W + 2
    M = SH * Wp                    # rows of one strip's flat coordinate space
    n_strips = H // SH

    xr = x_ref.at[0]               # (ROWS, Cp) view, no load
    orf = out_ref.at[0]            # (H*Wp, Cp) view

    # Zero only the halo rows of y_ref that conv2 reads and that the strip
    # stores below do not cover: [0, Wp+1) (top pad row + left pad of row 1)
    # and [(H+1)*Wp+1, ROWS) (tail of bottom pad row + slop rows).
    y_ref[0:Wp + 1, :] = jnp.zeros((Wp + 1, Cp), dtype=y_ref.dtype)
    tail0 = (H + 1) * Wp + 1
    y_ref[tail0:ROWS, :] = jnp.zeros((ROWS - tail0, Cp), dtype=y_ref.dtype)

    b1 = b_ref[0:1, :]
    b2 = b_ref[1:2, :]
    # Mask of real image columns inside one flattened strip (hoisted out of loops).
    col = jax.lax.broadcasted_iota(jnp.int32, (M, 1), 0) % Wp
    valid = col < W

    def conv3x3(src, w_ref, q0):
        # out[q] = sum_dh  [src[q+dh*Wp+0] | src[q+dh*Wp+1] | src[q+dh*Wp+2]] @ w[dh]
        # 3 matmuls with K = 3*Cp, f32 accumulation (chained adds -> MRB-friendly).
        acc = jnp.zeros((M, Cp), dtype=jnp.float32)
        for dh in range(3):
            base = q0 + dh * Wp
            lhs = jnp.concatenate(
                [src[base + dw:base + dw + M, :] for dw in range(3)], axis=-1)
            acc = acc + jnp.dot(lhs, w_ref[dh], preferred_element_type=jnp.float32)
        return acc

    # ---- conv1 -> BN1 bias -> ReLU, stored into padded bf16 scratch.  The
    #      junk columns are masked to zero because they land exactly on the
    #      left/right halo positions of y_ref that conv2 needs to see as zero.
    for s in range(n_strips):
        q0 = s * M
        y1 = jnp.maximum(conv3x3(xr, w1_ref, q0) + b1, 0.0)
        y1 = jnp.where(valid, y1, 0.0).astype(y_ref.dtype)
        y_ref[q0 + Wp + 1:q0 + Wp + 1 + M, :] = y1     # contiguous lane-dense store

    # ---- conv2 -> BN2 bias -> +identity -> ReLU -> bf16 output (flat layout).
    for s in range(n_strips):
        q0 = s * M
        acc2 = conv3x3(y_ref, w2_ref, q0) + b2
        ident = xr[q0 + Wp + 1:q0 + Wp + 1 + M, :].astype(jnp.float32)
        orf[q0:q0 + M, :] = jnp.maximum(acc2 + ident, 0.0).astype(out_ref.dtype)


def _fold_conv_bn(w_oihw, bn, c_pad, eps=EPS):
    """PyTorch (Cout,Cin,KH,KW) weight + BN params -> (3, 3*Cp, Cp) bf16 with the
    BN scale folded in (K axis is dw-major, then Cin), plus folded f32 bias (Cp,)."""
    gamma, beta, mean, var = bn
    scale = gamma / jnp.sqrt(var + eps)
    bias = beta - mean * scale
    c_out, c_in = w_oihw.shape[0], w_oihw.shape[1]
    w = jnp.transpose(w_oihw, (2, 3, 1, 0))              # (KH, KW, Cin, Cout)
    w = w * scale[None, None, None, :]                   # fold BN scale into Cout
    w = jnp.pad(w, ((0, 0), (0, 0), (0, c_pad - c_in), (0, c_pad - c_out)))
    w = w.reshape(3, 3 * c_pad, c_pad)                   # (dh, dw*Cp + cin, cout)
    bias = jnp.pad(bias, (0, c_pad - c_out))
    return w.astype(jnp.bfloat16), bias.astype(jnp.float32)


def basic_block(x_nchw, w1_oihw, w2_oihw, bn1, bn2):
    """x_nchw: (N, C, H, W) float32, like PyTorch. Returns (N, C, H, W) float32."""
    N, C, H, W = x_nchw.shape
    Cp = ((C + 127) // 128) * 128                        # lane-dense channels
    Hp, Wp = H + 2, W + 2
    ROWS = ((Hp * Wp + 2 + 7) // 8) * 8                  # +2 slop for the last tap

    # Strip height: largest divisor of H whose f32 accumulator stays <= 64 KiB.
    SH = 1
    for cand in (16, 8, 4, 2):
        if H % cand == 0 and cand * Wp * Cp * 4 <= 64 * 1024:
            SH = cand
            break

    # Zero-pad spatially + channel-pad + flatten in the wrapper (XLA ops), so the
    # kernel never builds/zeroes an input halo.
    x = jnp.transpose(x_nchw, (0, 2, 3, 1))              # NHWC
    x = jnp.pad(x, ((0, 0), (1, 1), (1, 1), (0, Cp - C)))
    x = x.reshape(N, Hp * Wp, Cp)
    x = jnp.pad(x, ((0, 0), (0, ROWS - Hp * Wp), (0, 0))).astype(jnp.bfloat16)

    w1, b1 = _fold_conv_bn(w1_oihw, bn1, Cp)
    w2, b2 = _fold_conv_bn(w2_oihw, bn2, Cp)
    biases = jnp.stack([b1, b2], axis=0)                 # (2, Cp) f32

    kernel = functools.partial(basic_block_kernel, H=H, W=W, SH=SH)

    flops = int(N) * 2 * 2 * 9 * H * W * Cp * Cp
    bytes_accessed = int(N * ROWS * Cp * 2 + 2 * 9 * Cp * Cp * 2
                         + 2 * Cp * 4 + N * H * Wp * Cp * 2)

    out_flat = pl.pallas_call(
        kernel,
        out_shape=jax.ShapeDtypeStruct((N, H * Wp, Cp), jnp.bfloat16),
        grid_spec=pltpu.PrefetchScalarGridSpec(
            num_scalar_prefetch=0,
            grid=(N,),
            in_specs=[
                pl.BlockSpec((1, ROWS, Cp), lambda n: (n, 0, 0)),
                pl.BlockSpec((3, 3 * Cp, Cp), lambda n: (0, 0, 0)),
                pl.BlockSpec((3, 3 * Cp, Cp), lambda n: (0, 0, 0)),
                pl.BlockSpec((2, Cp), lambda n: (0, 0)),
            ],
            out_specs=pl.BlockSpec((1, H * Wp, Cp), lambda n: (n, 0, 0)),
            scratch_shapes=[pltpu.VMEM((ROWS, Cp), jnp.bfloat16)],
        ),
        compiler_params=pltpu.CompilerParams(
            dimension_semantics=("parallel",)),
        cost_estimate=pl.CostEstimate(flops=flops, transcendentals=0,
                                      bytes_accessed=bytes_accessed),
    )(x, w1, w2, biases)

    out = out_flat.reshape(N, H, Wp, Cp)[:, :, :W, :C]   # drop junk cols / pad chans
    return jnp.transpose(out, (0, 3, 1, 2)).astype(jnp.float32)


def basic_block_reference(x_nchw, w1, w2, bn1, bn2):
    """Pure-JAX f32 reference with identical semantics (sanity check)."""
    def conv(x, w):
        return jax.lax.conv_general_dilated(
            x, w, window_strides=(1, 1), padding=((1, 1), (1, 1)),
            dimension_numbers=("NCHW", "OIHW", "NCHW"))

    def bn(x, p):
        gamma, beta, mean, var = (a.reshape(1, -1, 1, 1) for a in p)
        return (x - mean) / jnp.sqrt(var + EPS) * gamma + beta

    out = jax.nn.relu(bn(conv(x_nchw, w1), bn1))
    out = bn(conv(out, w2), bn2)
    return jax.nn.relu(out + x_nchw)


if __name__ == "__main__":
    N, C, H, W = 2, 8, 16, 16  # in_channels == out_channels (stride=1, no downsample)

    key = jax.random.PRNGKey(0)
    ks = jax.random.split(key, 11)

    x = jax.random.normal(ks[0], (N, C, H, W), dtype=jnp.float32)

    # Conv weights in PyTorch layout (Cout, Cin, KH, KW), bias=False.
    w1 = 0.1 * jax.random.normal(ks[1], (C, C, 3, 3), dtype=jnp.float32)
    w2 = 0.1 * jax.random.normal(ks[2], (C, C, 3, 3), dtype=jnp.float32)

    # BatchNorm params: (gamma, beta, running_mean, running_var)
    bn1 = (1.0 + 0.1 * jax.random.normal(ks[3], (C,), dtype=jnp.float32),
           0.1 * jax.random.normal(ks[4], (C,), dtype=jnp.float32),
           0.1 * jax.random.normal(ks[5], (C,), dtype=jnp.float32),
           1.0 + 0.1 * jnp.abs(jax.random.normal(ks[6], (C,), dtype=jnp.float32)))
    bn2 = (1.0 + 0.1 * jax.random.normal(ks[7], (C,), dtype=jnp.float32),
           0.1 * jax.random.normal(ks[8], (C,), dtype=jnp.float32),
           0.1 * jax.random.normal(ks[9], (C,), dtype=jnp.float32),
           1.0 + 0.1 * jnp.abs(jax.random.normal(ks[10], (C,), dtype=jnp.float32)))

    out = basic_block(x, w1, w2, bn1, bn2)
    out = jax.block_until_ready(out)

    ref = jax.block_until_ready(basic_block_reference(x, w1, w2, bn1, bn2))
    assert out.shape == (N, C, H, W)
    # bf16 MXU operands, bf16 intermediate + bf16 output -> bf16-level tolerance.
    assert jnp.allclose(out, ref, rtol=5e-2, atol=5e-2), \
        f"max abs err = {jnp.max(jnp.abs(out - ref))}"

    print("KERNEL_OK")
</pallas_src>

<mosaic_0001>
module attributes {stable_mosaic.version = 11 : i64} {
  func.func @basic_block_kernel(%arg0: i32, %arg1: memref<1x328x128xbf16, #tpu.memory_space<vmem>>, %arg2: memref<3x384x128xbf16, #tpu.memory_space<vmem>>, %arg3: memref<3x384x128xbf16, #tpu.memory_space<vmem>>, %arg4: memref<2x128xf32, #tpu.memory_space<vmem>>, %arg5: memref<1x288x128xbf16, #tpu.memory_space<vmem>>, %arg6: memref<328x128xbf16, #tpu.memory_space<vmem>>) attributes {dimension_semantics = [#tpu.dimension_semantics<parallel>], iteration_bounds = array<i64: 2>, scalar_prefetch = 0 : i64, scratch_operands = 1 : i64, tpu.core_type = #tpu.core_type<tc>, window_params = [{transform_indices = @transform_0, window_bounds = array<i64: 1, 328, 128>}, {pipeline_mode = #tpu.pipeline_mode<synchronous>, transform_indices = @transform_1, window_bounds = array<i64: 3, 384, 128>}, {pipeline_mode = #tpu.pipeline_mode<synchronous>, transform_indices = @transform_2, window_bounds = array<i64: 3, 384, 128>}, {pipeline_mode = #tpu.pipeline_mode<synchronous>, transform_indices = @transform_3, window_bounds = array<i64: 2, 128>}, {transform_indices = @transform_4, window_bounds = array<i64: 1, 288, 128>}]} {
    %cst = arith.constant 0.000000e+00 : bf16
    %0 = vector.broadcast %cst : bf16 to vector<19x128xbf16>
    %c0 = arith.constant 0 : index
    %c0_0 = arith.constant 0 : index
    %1 = vector.load %arg6[%c0, %c0_0] : memref<328x128xbf16, #tpu.memory_space<vmem>>, vector<19x128xbf16>
    tpu.vector_store %arg6[%c0, %c0_0], %0 {strides = array<i32>} : memref<328x128xbf16, #tpu.memory_space<vmem>>, vector<19x128xbf16>,
    %cst_1 = arith.constant 0.000000e+00 : bf16
    %2 = vector.broadcast %cst_1 : bf16 to vector<21x128xbf16>
    %c307 = arith.constant 307 : index
    %c0_2 = arith.constant 0 : index
    %3 = vector.load %arg6[%c307, %c0_2] : memref<328x128xbf16, #tpu.memory_space<vmem>>, vector<21x128xbf16>
    tpu.vector_store %arg6[%c307, %c0_2], %2 {strides = array<i32>} : memref<328x128xbf16, #tpu.memory_space<vmem>>, vector<21x128xbf16>,
    %c0_3 = arith.constant 0 : index
    %c0_4 = arith.constant 0 : index
    %4 = vector.load %arg4[%c0_3, %c0_4] : memref<2x128xf32, #tpu.memory_space<vmem>>, vector<1x128xf32>
    %c1 = arith.constant 1 : index
    %c0_5 = arith.constant 0 : index
    %5 = vector.load %arg4[%c1, %c0_5] : memref<2x128xf32, #tpu.memory_space<vmem>>, vector<1x128xf32>
    %6 = tpu.iota {dimensions = array<i32: 0>} : vector<72x1xi32>
    %c18_i32 = arith.constant 18 : i32
    %c0_i32 = arith.constant 0 : i32
    %7 = arith.cmpi eq, %c18_i32, %c0_i32 : i32
    %c1_i32 = arith.constant 1 : i32
    %8 = arith.select %7, %c1_i32, %c18_i32 : i32
    %9 = vector.broadcast %8 : i32 to vector<72x1xi32>
    %10 = arith.remsi %6, %9 : vector<72x1xi32>
    %c0_i32_6 = arith.constant 0 : i32
    %11 = vector.broadcast %c0_i32_6 : i32 to vector<72x1xi32>
    %12 = arith.cmpi ne, %10, %11 : vector<72x1xi32>
    %c0_i32_7 = arith.constant 0 : i32
    %13 = vector.broadcast %c0_i32_7 : i32 to vector<72x1xi32>
    %14 = arith.cmpi slt, %10, %13 : vector<72x1xi32>
    %c0_i32_8 = arith.constant 0 : i32
    %15 = arith.cmpi slt, %8, %c0_i32_8 : i32
    %16 = vector.broadcast %15 : i1 to vector<72x1xi1>
    %17 = vector.broadcast %16 : vector<72x1xi1> to vector<72x1xi1>
    %18 = arith.xori %14, %17 : vector<72x1xi1>
    %19 = arith.andi %18, %12 : vector<72x1xi1>
    %20 = vector.broadcast %8 : i32 to vector<72x1xi32>
    %21 = arith.addi %10, %20 : vector<72x1xi32>
    %22 = arith.select %19, %21, %10 : vector<72x1xi1>, vector<72x1xi32>
    %c16_i32 = arith.constant 16 : i32
    %23 = vector.broadcast %c16_i32 : i32 to vector<72x1xi32>
    %24 = arith.cmpi slt, %22, %23 : vector<72x1xi32>
    %cst_9 = arith.constant 0.000000e+00 : f32
    %25 = vector.broadcast %cst_9 : f32 to vector<72x128xf32>
    %c0_i32_10 = arith.constant 0 : i32
    %c0_i32_11 = arith.constant 0 : i32
    %c0_i32_12 = arith.constant 0 : i32
    %26 = tpu.memref_slice %arg1[%c0_i32_10, %c0_i32_11, %c0_i32_12] : memref<1x328x128xbf16, #tpu.memory_space<vmem>> -> memref<1x328x128xbf16, #tpu.memory_space<vmem>>
    %27 = tpu.memref_squeeze %26 : memref<1x328x128xbf16, #tpu.memory_space<vmem>> -> memref<328x128xbf16, #tpu.memory_space<vmem>>
    %c0_13 = arith.constant 0 : index
    %c0_14 = arith.constant 0 : index
    %28 = vector.load %27[%c0_13, %c0_14] : memref<328x128xbf16, #tpu.memory_space<vmem>>, vector<72x128xbf16>
    %c0_i32_15 = arith.constant 0 : i32
    %c0_i32_16 = arith.constant 0 : i32
    %c0_i32_17 = arith.constant 0 : i32
    %29 = tpu.memref_slice %arg1[%c0_i32_15, %c0_i32_16, %c0_i32_17] : memref<1x328x128xbf16, #tpu.memory_space<vmem>> -> memref<1x328x128xbf16, #tpu.memory_space<vmem>>
    %30 = tpu.memref_squeeze %29 : memref<1x328x128xbf16, #tpu.memory_space<vmem>> -> memref<328x128xbf16, #tpu.memory_space<vmem>>
    %c1_18 = arith.constant 1 : index
    %c0_19 = arith.constant 0 : index
    %31 = vector.load %30[%c1_18, %c0_19] : memref<328x128xbf16, #tpu.memory_space<vmem>>, vector<72x128xbf16>
    %c0_i32_20 = arith.constant 0 : i32
    %c0_i32_21 = arith.constant 0 : i32
    %c0_i32_22 = arith.constant 0 : i32
    %32 = tpu.memref_slice %arg1[%c0_i32_20, %c0_i32_21, %c0_i32_22] : memref<1x328x128xbf16, #tpu.memory_space<vmem>> -> memref<1x328x128xbf16, #tpu.memory_space<vmem>>
    %33 = tpu.memref_squeeze %32 : memref<1x328x128xbf16, #tpu.memory_space<vmem>> -> memref<328x128xbf16, #tpu.memory_space<vmem>>
    %c2 = arith.constant 2 : index
    %c0_23 = arith.constant 0 : index
    %34 = vector.load %33[%c2, %c0_23] : memref<328x128xbf16, #tpu.memory_space<vmem>>, vector<72x128xbf16>
    %35 = tpu.concatenate %28, %31, %34 in 1 : vector<72x128xbf16>, vector<72x128xbf16>, vector<72x128xbf16> -> vector<72x384xbf16>
    %c0_24 = arith.constant 0 : index
    %c0_25 = arith.constant 0 : index
    %c0_26 = arith.constant 0 : index
    %36 = vector.load %arg2[%c0_24, %c0_25, %c0_26] : memref<3x384x128xbf16, #tpu.memory_space<vmem>>, vector<1x384x128xbf16>
    %37 = vector.shape_cast %36 : vector<1x384x128xbf16> to vector<384x128xbf16>
    %cst_27 = arith.constant dense<0.000000e+00> : vector<72x128xf32>
    %38 = tpu.matmul %35, %37, %cst_27 {dimension_numbers = #tpu.dot_dimension_numbers<[1], [0], [0], [1], [0, 0, 1, 1], [], []>} : vector<72x384xbf16>, vector<384x128xbf16>, vector<72x128xf32> -> vector<72x128xf32>
    %39 = arith.addf %25, %38 : vector<72x128xf32>
    %c0_i32_28 = arith.constant 0 : i32
    %c0_i32_29 = arith.constant 0 : i32
    %c0_i32_30 = arith.constant 0 : i32
    %40 = tpu.memref_slice %arg1[%c0_i32_28, %c0_i32_29, %c0_i32_30] : memref<1x328x128xbf16, #tpu.memory_space<vmem>> -> memref<1x328x128xbf16, #tpu.memory_space<vmem>>
    %41 = tpu.memref_squeeze %40 : memref<1x328x128xbf16, #tpu.memory_space<vmem>> -> memref<328x128xbf16, #tpu.memory_space<vmem>>
    %c18 = arith.constant 18 : index
    %c0_31 = arith.constant 0 : index
    %42 = vector.load %41[%c18, %c0_31] : memref<328x128xbf16, #tpu.memory_space<vmem>>, vector<72x128xbf16>
    %c0_i32_32 = arith.constant 0 : i32
    %c0_i32_33 = arith.constant 0 : i32
    %c0_i32_34 = arith.constant 0 : i32
    %43 = tpu.memref_slice %arg1[%c0_i32_32, %c0_i32_33, %c0_i32_34] : memref<1x328x128xbf16, #tpu.memory_space<vmem>> -> memref<1x328x128xbf16, #tpu.memory_space<vmem>>
    %44 = tpu.memref_squeeze %43 : memref<1x328x128xbf16, #tpu.memory_space<vmem>> -> memref<328x128xbf16, #tpu.memory_space<vmem>>
    %c19 = arith.constant 19 : index
    %c0_35 = arith.constant 0 : index
    %45 = vector.load %44[%c19, %c0_35] : memref<328x128xbf16, #tpu.memory_space<vmem>>, vector<72x128xbf16>
    %c0_i32_36 = arith.constant 0 : i32
    %c0_i32_37 = arith.constant 0 : i32
    %c0_i32_38 = arith.constant 0 : i32
    %46 = tpu.memref_slice %arg1[%c0_i32_36, %c0_i32_37, %c0_i32_38] : memref<1x328x128xbf16, #tpu.memory_space<vmem>> -> memref<1x328x128xbf16, #tpu.memory_space<vmem>>
    %47 = tpu.memref_squeeze %46 : memref<1x328x128xbf16, #tpu.memory_space<vmem>> -> memref<328x128xbf16, #tpu.memory_space<vmem>>
    %c20 = arith.constant 20 : index
    %c0_39 = arith.constant 0 : index
    %48 = vector.load %47[%c20, %c0_39] : memref<328x128xbf16, #tpu.memory_space<vmem>>, vector<72x128xbf16>
    %49 = tpu.concatenate %42, %45, %48 in 1 : vector<72x128xbf16>, vector<72x128xbf16>, vector<72x128xbf16> -> vector<72x384xbf16>
    %c1_40 = arith.constant 1 : index
    %c0_41 = arith.constant 0 : index
    %c0_42 = arith.constant 0 : index
    %50 = vector.load %arg2[%c1_40, %c0_41, %c0_42] : memref<3x384x128xbf16, #tpu.memory_space<vmem>>, vector<1x384x128xbf16>
    %51 = vector.shape_cast %50 : vector<1x384x128xbf16> to vector<384x128xbf16>
    %cst_43 = arith.constant dense<0.000000e+00> : vector<72x128xf32>
    %52 = tpu.matmul %49, %51, %cst_43 {dimension_numbers = #tpu.dot_dimension_numbers<[1], [0], [0], [1], [0, 0, 1, 1], [], []>} : vector<72x384xbf16>, vector<384x128xbf16>, vector<72x128xf32> -> vector<72x128xf32>
    %53 = arith.addf %39, %52 : vector<72x128xf32>
    %c0_i32_44 = arith.constant 0 : i32
    %c0_i32_45 = arith.constant 0 : i32
    %c0_i32_46 = arith.constant 0 : i32
    %54 = tpu.memref_slice %arg1[%c0_i32_44, %c0_i32_45, %c0_i32_46] : memref<1x328x128xbf16, #tpu.memory_space<vmem>> -> memref<1x328x128xbf16, #tpu.memory_space<vmem>>
    %55 = tpu.memref_squeeze %54 : memref<1x328x128xbf16, #tpu.memory_space<vmem>> -> memref<328x128xbf16, #tpu.memory_space<vmem>>
    %c36 = arith.constant 36 : index
    %c0_47 = arith.constant 0 : index
    %56 = vector.load %55[%c36, %c0_47] : memref<328x128xbf16, #tpu.memory_space<vmem>>, vector<72x128xbf16>
    %c0_i32_48 = arith.constant 0 : i32
    %c0_i32_49 = arith.constant 0 : i32
    %c0_i32_50 = arith.constant 0 : i32
    %57 = tpu.memref_slice %arg1[%c0_i32_48, %c0_i32_49, %c0_i32_50] : memref<1x328x128xbf16, #tpu.memory_space<vmem>> -> memref<1x328x128xbf16, #tpu.memory_space<vmem>>
    %58 = tpu.memref_squeeze %57 : memref<1x328x128xbf16, #tpu.memory_space<vmem>> -> memref<328x128xbf16, #tpu.memory_space<vmem>>
    %c37 = arith.constant 37 : index
    %c0_51 = arith.constant 0 : index
    %59 = vector.load %58[%c37, %c0_51] : memref<328x128xbf16, #tpu.memory_space<vmem>>, vector<72x128xbf16>
    %c0_i32_52 = arith.constant 0 : i32
    %c0_i32_53 = arith.constant 0 : i32
    %c0_i32_54 = arith.constant 0 : i32
    %60 = tpu.memref_slice %arg1[%c0_i32_52, %c0_i32_53, %c0_i32_54] : memref<1x328x128xbf16, #tpu.memory_space<vmem>> -> memref<1x328x128xbf16, #tpu.memory_space<vmem>>
    %61 = tpu.memref_squeeze %60 : memref<1x328x128xbf16, #tpu.memory_space<vmem>> -> memref<328x128xbf16, #tpu.memory_space<vmem>>
    %c38 = arith.constant 38 : index
    %c0_55 = arith.constant 0 : index
    %62 = vector.load %61[%c38, %c0_55] : memref<328x128xbf16, #tpu.memory_space<vmem>>, vector<72x128xbf16>
    %63 = tpu.concatenate %56, %59, %62 in 1 : vector<72x128xbf16>, vector<72x128xbf16>, vector<72x128xbf16> -> vector<72x384xbf16>
    %c2_56 = arith.constant 2 : index
    %c0_57 = arith.constant 0 : index
    %c0_58 = arith.constant 0 : index
    %64 = vector.load %arg2[%c2_56, %c0_57, %c0_58] : memref<3x384x128xbf16, #tpu.memory_space<vmem>>, vector<1x384x128xbf16>
    %65 = vector.shape_cast %64 : vector<1x384x128xbf16> to vector<384x128xbf16>
    %cst_59 = arith.constant dense<0.000000e+00> : vector<72x128xf32>
    %66 = tpu.matmul %63, %65, %cst_59 {dimension_numbers = #tpu.dot_dimension_numbers<[1], [0], [0], [1], [0, 0, 1, 1], [], []>} : vector<72x384xbf16>, vector<384x128xbf16>, vector<72x128xf32> -> vector<72x128xf32>
    %67 = arith.addf %53, %66 : vector<72x128xf32>
    %68 = vector.broadcast %4 : vector<1x128xf32> to vector<72x128xf32>
    %69 = arith.addf %67, %68 : vector<72x128xf32>
    %cst_60 = arith.constant 0.000000e+00 : f32
    %70 = vector.broadcast %cst_60 : f32 to vector<72x128xf32>
    %71 = arith.maximumf %69, %70 : vector<72x128xf32>
    %cst_61 = arith.constant 0.000000e+00 : f32
    %72 = vector.shape_cast %24 : vector<72x1xi1> to vector<72x1xi1>
    %73 = vector.broadcast %72 : vector<72x1xi1> to vector<72x128xi1>
    %74 = vector.broadcast %cst_61 : f32 to vector<72x128xf32>
    %75 = arith.select %73, %71, %74 : vector<72x128xi1>, vector<72x128xf32>
    %76 = arith.truncf %75 : vector<72x128xf32> to vector<72x128xbf16>
    %c19_62 = arith.constant 19 : index
    %c0_63 = arith.constant 0 : index
    %77 = vector.load %arg6[%c19_62, %c0_63] : memref<328x128xbf16, #tpu.memory_space<vmem>>, vector<72x128xbf16>
    tpu.vector_store %arg6[%c19_62, %c0_63], %76 {strides = array<i32>} : memref<328x128xbf16, #tpu.memory_space<vmem>>, vector<72x128xbf16>,
    %cst_64 = arith.constant 0.000000e+00 : f32
    %78 = vector.broadcast %cst_64 : f32 to vector<72x128xf32>
    %c0_i32_65 = arith.constant 0 : i32
    %c0_i32_66 = arith.constant 0 : i32
    %c0_i32_67 = arith.constant 0 : i32
    %79 = tpu.memref_slice %arg1[%c0_i32_65, %c0_i32_66, %c0_i32_67] : memref<1x328x128xbf16, #tpu.memory_space<vmem>> -> memref<1x328x128xbf16, #tpu.memory_space<vmem>>
    %80 = tpu.memref_squeeze %79 : memref<1x328x128xbf16, #tpu.memory_space<vmem>> -> memref<328x128xbf16, #tpu.memory_space<vmem>>
    %c72 = arith.constant 72 : index
    %c0_68 = arith.constant 0 : index
    %81 = vector.load %80[%c72, %c0_68] : memref<328x128xbf16, #tpu.memory_space<vmem>>, vector<72x128xbf16>
    %c0_i32_69 = arith.constant 0 : i32
    %c0_i32_70 = arith.constant 0 : i32
    %c0_i32_71 = arith.constant 0 : i32
    %82 = tpu.memref_slice %arg1[%c0_i32_69, %c0_i32_70, %c0_i32_71] : memref<1x328x128xbf16, #tpu.memory_space<vmem>> -> memref<1x328x128xbf16, #tpu.memory_space<vmem>>
    %83 = tpu.memref_squeeze %82 : memref<1x328x128xbf16, #tpu.memory_space<vmem>> -> memref<328x128xbf16, #tpu.memory_space<vmem>>
    %c73 = arith.constant 73 : index
    %c0_72 = arith.constant 0 : index
    %84 = vector.load %83[%c73, %c0_72] : memref<328x128xbf16, #tpu.memory_space<vmem>>, vector<72x128xbf16>
    %c0_i32_73 = arith.constant 0 : i32
    %c0_i32_74 = arith.constant 0 : i32
    %c0_i32_75 = arith.constant 0 : i32
    %85 = tpu.memref_slice %arg1[%c0_i32_73, %c0_i32_74, %c0_i32_75] : memref<1x328x128xbf16, #tpu.memory_space<vmem>> -> memref<1x328x128xbf16, #tpu.memory_space<vmem>>
    %86 = tpu.memref_squeeze %85 : memref<1x328x128xbf16, #tpu.memory_space<vmem>> -> memref<328x128xbf16, #tpu.memory_space<vmem>>
    %c74 = arith.constant 74 : index
    %c0_76 = arith.constant 0 : index
    %87 = vector.load %86[%c74, %c0_76] : memref<328x128xbf16, #tpu.memory_space<vmem>>, vector<72x128xbf16>
    %88 = tpu.concatenate %81, %84, %87 in 1 : vector<72x128xbf16>, vector<72x128xbf16>, vector<72x128xbf16> -> vector<72x384xbf16>
    %c0_77 = arith.constant 0 : index
    %c0_78 = arith.constant 0 : index
    %c0_79 = arith.constant 0 : index
    %89 = vector.load %arg2[%c0_77, %c0_78, %c0_79] : memref<3x384x128xbf16, #tpu.memory_space<vmem>>, vector<1x384x128xbf16>
    %90 = vector.shape_cast %89 : vector<1x384x128xbf16> to vector<384x128xbf16>
    %cst_80 = arith.constant dense<0.000000e+00> : vector<72x128xf32>
    %91 = tpu.matmul %88, %90, %cst_80 {dimension_numbers = #tpu.dot_dimension_numbers<[1], [0], [0], [1], [0, 0, 1, 1], [], []>} : vector<72x384xbf16>, vector<384x128xbf16>, vector<72x128xf32> -> vector<72x128xf32>
    %92 = arith.addf %78, %91 : vector<72x128xf32>
    %c0_i32_81 = arith.constant 0 : i32
    %c0_i32_82 = arith.constant 0 : i32
    %c0_i32_83 = arith.constant 0 : i32
    %93 = tpu.memref_slice %arg1[%c0_i32_81, %c0_i32_82, %c0_i32_83] : memref<1x328x128xbf16, #tpu.memory_space<vmem>> -> memref<1x328x128xbf16, #tpu.memory_space<vmem>>
    %94 = tpu.memref_squeeze %93 : memref<1x328x128xbf16, #tpu.memory_space<vmem>> -> memref<328x128xbf16, #tpu.memory_space<vmem>>
    %c90 = arith.constant 90 : index
    %c0_84 = arith.constant 0 : index
    %95 = vector.load %94[%c90, %c0_84] : memref<328x128xbf16, #tpu.memory_space<vmem>>, vector<72x128xbf16>
    %c0_i32_85 = arith.constant 0 : i32
    %c0_i32_86 = arith.constant 0 : i32
    %c0_i32_87 = arith.constant 0 : i32
    %96 = tpu.memref_slice %arg1[%c0_i32_85, %c0_i32_86, %c0_i32_87] : memref<1x328x128xbf16, #tpu.memory_space<vmem>> -> memref<1x328x128xbf16, #tpu.memory_space<vmem>>
    %97 = tpu.memref_squeeze %96 : memref<1x328x128xbf16, #tpu.memory_space<vmem>> -> memref<328x128xbf16, #tpu.memory_space<vmem>>
    %c91 = arith.constant 91 : index
    %c0_88 = arith.constant 0 : index
    %98 = vector.load %97[%c91, %c0_88] : memref<328x128xbf16, #tpu.memory_space<vmem>>, vector<72x128xbf16>
    %c0_i32_89 = arith.constant 0 : i32
    %c0_i32_90 = arith.constant 0 : i32
    %c0_i32_91 = arith.constant 0 : i32
    %99 = tpu.memref_slice %arg1[%c0_i32_89, %c0_i32_90, %c0_i32_91] : memref<1x328x128xbf16, #tpu.memory_space<vmem>> -> memref<1x328x128xbf16, #tpu.memory_space<vmem>>
    %100 = tpu.memref_squeeze %99 : memref<1x328x128xbf16, #tpu.memory_space<vmem>> -> memref<328x128xbf16, #tpu.memory_space<vmem>>
    %c92 = arith.constant 92 : index
    %c0_92 = arith.constant 0 : index
    %101 = vector.load %100[%c92, %c0_92] : memref<328x128xbf16, #tpu.memory_space<vmem>>, vector<72x128xbf16>
    %102 = tpu.concatenate %95, %98, %101 in 1 : vector<72x128xbf16>, vector<72x128xbf16>, vector<72x128xbf16> -> vector<72x384xbf16>
    %c1_93 = arith.constant 1 : index
    %c0_94 = arith.constant 0 : index
    %c0_95 = arith.constant 0 : index
    %103 = vector.load %arg2[%c1_93, %c0_94, %c0_95] : memref<3x384x128xbf16, #tpu.memory_space<vmem>>, vector<1x384x128xbf16>
    %104 = vector.shape_cast %103 : vector<1x384x128xbf16> to vector<384x128xbf16>
    %cst_96 = arith.constant dense<0.000000e+00> : vector<72x128xf32>
    %105 = tpu.matmul %102, %104, %cst_96 {dimension_numbers = #tpu.dot_dimension_numbers<[1], [0], [0], [1], [0, 0, 1, 1], [], []>} : vector<72x384xbf16>, vector<384x128xbf16>, vector<72x128xf32> -> vector<72x128xf32>
    %106 = arith.addf %92, %105 : vector<72x128xf32>
    %c0_i32_97 = arith.constant 0 : i32
    %c0_i32_98 = arith.constant 0 : i32
    %c0_i32_99 = arith.constant 0 : i32
    %107 = tpu.memref_slice %arg1[%c0_i32_97, %c0_i32_98, %c0_i32_99] : memref<1x328x128xbf16, #tpu.memory_space<vmem>> -> memref<1x328x128xbf16, #tpu.memory_space<vmem>>
    %108 = tpu.memref_squeeze %107 : memref<1x328x128xbf16, #tpu.memory_space<vmem>> -> memref<328x128xbf16, #tpu.memory_space<vmem>>
    %c108 = arith.constant 108 : index
    %c0_100 = arith.constant 0 : index
    %109 = vector.load %108[%c108, %c0_100] : memref<328x128xbf16, #tpu.memory_space<vmem>>, vector<72x128xbf16>
    %c0_i32_101 = arith.constant 0 : i32
    %c0_i32_102 = arith.constant 0 : i32
    %c0_i32_103 = arith.constant 0 : i32
    %110 = tpu.memref_slice %arg1[%c0_i32_101, %c0_i32_102, %c0_i32_103] : memref<1x328x128xbf16, #tpu.memory_space<vmem>> -> memref<1x328x128xbf16, #tpu.memory_space<vmem>>
    %111 = tpu.memref_squeeze %110 : memref<1x328x128xbf16, #tpu.memory_space<vmem>> -> memref<328x128xbf16, #tpu.memory_space<vmem>>
    %c109 = arith.constant 109 : index
    %c0_104 = arith.constant 0 : index
    %112 = vector.load %111[%c109, %c0_104] : memref<328x128xbf16, #tpu.memory_space<vmem>>, vector<72x128xbf16>
    %c0_i32_105 = arith.constant 0 : i32
    %c0_i32_106 = arith.constant 0 : i32
    %c0_i32_107 = arith.constant 0 : i32
    %113 = tpu.memref_slice %arg1[%c0_i32_105, %c0_i32_106, %c0_i32_107] : memref<1x328x128xbf16, #tpu.memory_space<vmem>> -> memref<1x328x128xbf16, #tpu.memory_space<vmem>>
    %114 = tpu.memref_squeeze %113 : memref<1x328x128xbf16, #tpu.memory_space<vmem>> -> memref<328x128xbf16, #tpu.memory_space<vmem>>
    %c110 = arith.constant 110 : index
    %c0_108 = arith.constant 0 : index
    %115 = vector.load %114[%c110, %c0_108] : memref<328x128xbf16, #tpu.memory_space<vmem>>, vector<72x128xbf16>
    %116 = tpu.concatenate %109, %112, %115 in 1 : vector<72x128xbf16>, vector<72x128xbf16>, vector<72x128xbf16> -> vector<72x384xbf16>
    %c2_109 = arith.constant 2 : index
    %c0_110 = arith.constant 0 : index
    %c0_111 = arith.constant 0 : index
    %117 = vector.load %arg2[%c2_109, %c0_110, %c0_111] : memref<3x384x128xbf16, #tpu.memory_space<vmem>>, vector<1x384x128xbf16>
    %118 = vector.shape_cast %117 : vector<1x384x128xbf16> to vector<384x128xbf16>
    %cst_112 = arith.constant dense<0.000000e+00> : vector<72x128xf32>
    %119 = tpu.matmul %116, %118, %cst_112 {dimension_numbers = #tpu.dot_dimension_numbers<[1], [0], [0], [1], [0, 0, 1, 1], [], []>} : vector<72x384xbf16>, vector<384x128xbf16>, vector<72x128xf32> -> vector<72x128xf32>
    %120 = arith.addf %106, %119 : vector<72x128xf32>
    %121 = vector.broadcast %4 : vector<1x128xf32> to vector<72x128xf32>
    %122 = arith.addf %120, %121 : vector<72x128xf32>
    %cst_113 = arith.constant 0.000000e+00 : f32
    %123 = vector.broadcast %cst_113 : f32 to vector<72x128xf32>
    %124 = arith.maximumf %122, %123 : vector<72x128xf32>
    %cst_114 = arith.constant 0.000000e+00 : f32
    %125 = vector.shape_cast %24 : vector<72x1xi1> to vector<72x1xi1>
    %126 = vector.broadcast %125 : vector<72x1xi1> to vector<72x128xi1>
    %127 = vector.broadcast %cst_114 : f32 to vector<72x128xf32>
    %128 = arith.select %126, %124, %127 : vector<72x128xi1>, vector<72x128xf32>
    %129 = arith.truncf %128 : vector<72x128xf32> to vector<72x128xbf16>
    %c91_115 = arith.constant 91 : index
    %c0_116 = arith.constant 0 : index
    %130 = vector.load %arg6[%c91_115, %c0_116] : memref<328x128xbf16, #tpu.memory_space<vmem>>, vector<72x128xbf16>
    tpu.vector_store %arg6[%c91_115, %c0_116], %129 {strides = array<i32>} : memref<328x128xbf16, #tpu.memory_space<vmem>>, vector<72x128xbf16>,
    %cst_117 = arith.constant 0.000000e+00 : f32
    %131 = vector.broadcast %cst_117 : f32 to vector<72x128xf32>
    %c0_i32_118 = arith.constant 0 : i32
    %c0_i32_119 = arith.constant 0 : i32
    %c0_i32_120 = arith.constant 0 : i32
    %132 = tpu.memref_slice %arg1[%c0_i32_118, %c0_i32_119, %c0_i32_120] : memref<1x328x128xbf16, #tpu.memory_space<vmem>> -> memref<1x328x128xbf16, #tpu.memory_space<vmem>>
    %133 = tpu.memref_squeeze %132 : memref<1x328x128xbf16, #tpu.memory_space<vmem>> -> memref<328x128xbf16, #tpu.memory_space<vmem>>
    %c144 = arith.constant 144 : index
    %c0_121 = arith.constant 0 : index
    %134 = vector.load %133[%c144, %c0_121] : memref<328x128xbf16, #tpu.memory_space<vmem>>, vector<72x128xbf16>
    %c0_i32_122 = arith.constant 0 : i32
    %c0_i32_123 = arith.constant 0 : i32
    %c0_i32_124 = arith.constant 0 : i32
    %135 = tpu.memref_slice %arg1[%c0_i32_122, %c0_i32_123, %c0_i32_124] : memref<1x328x128xbf16, #tpu.memory_space<vmem>> -> memref<1x328x128xbf16, #tpu.memory_space<vmem>>
    %136 = tpu.memref_squeeze %135 : memref<1x328x128xbf16, #tpu.memory_space<vmem>> -> memref<328x128xbf16, #tpu.memory_space<vmem>>
    %c145 = arith.constant 145 : index
    %c0_125 = arith.constant 0 : index
    %137 = vector.load %136[%c145, %c0_125] : memref<328x128xbf16, #tpu.memory_space<vmem>>, vector<72x128xbf16>
    %c0_i32_126 = arith.constant 0 : i32
    %c0_i32_127 = arith.constant 0 : i32
    %c0_i32_128 = arith.constant 0 : i32
    %138 = tpu.memref_slice %arg1[%c0_i32_126, %c0_i32_127, %c0_i32_128] : memref<1x328x128xbf16, #tpu.memory_space<vmem>> -> memref<1x328x128xbf16, #tpu.memory_space<vmem>>
    %139 = tpu.memref_squeeze %138 : memref<1x328x128xbf16, #tpu.memory_space<vmem>> -> memref<328x128xbf16, #tpu.memory_space<vmem>>
    %c146 = arith.constant 146 : index
    %c0_129 = arith.constant 0 : index
    %140 = vector.load %139[%c146, %c0_129] : memref<328x128xbf16, #tpu.memory_space<vmem>>, vector<72x128xbf16>
    %141 = tpu.concatenate %134, %137, %140 in 1 : vector<72x128xbf16>, vector<72x128xbf16>, vector<72x128xbf16> -> vector<72x384xbf16>
    %c0_130 = arith.constant 0 : index
    %c0_131 = arith.constant 0 : index
    %c0_132 = arith.constant 0 : index
    %142 = vector.load %arg2[%c0_130, %c0_131, %c0_132] : memref<3x384x128xbf16, #tpu.memory_space<vmem>>, vector<1x384x128xbf16>
    %143 = vector.shape_cast %142 : vector<1x384x128xbf16> to vector<384x128xbf16>
    %cst_133 = arith.constant dense<0.000000e+00> : vector<72x128xf32>
    %144 = tpu.matmul %141, %143, %cst_133 {dimension_numbers = #tpu.dot_dimension_numbers<[1], [0], [0], [1], [0, 0, 1, 1], [], []>} : vector<72x384xbf16>, vector<384x128xbf16>, vector<72x128xf32> -> vector<72x128xf32>
    %145 = arith.addf %131, %144 : vector<72x128xf32>
    %c0_i32_134 = arith.constant 0 : i32
    %c0_i32_135 = arith.constant 0 : i32
    %c0_i32_136 = arith.constant 0 : i32
    %146 = tpu.memref_slice %arg1[%c0_i32_134, %c0_i32_135, %c0_i32_136] : memref<1x328x128xbf16, #tpu.memory_space<vmem>> -> memref<1x328x128xbf16, #tpu.memory_space<vmem>>
    %147 = tpu.memref_squeeze %146 : memref<1x328x128xbf16, #tpu.memory_space<vmem>> -> memref<328x128xbf16, #tpu.memory_space<vmem>>
    %c162 = arith.constant 162 : index
    %c0_137 = arith.constant 0 : index
    %148 = vector.load %147[%c162, %c0_137] : memref<328x128xbf16, #tpu.memory_space<vmem>>, vector<72x128xbf16>
    %c0_i32_138 = arith.constant 0 : i32
    %c0_i32_139 = arith.constant 0 : i32
    %c0_i32_140 = arith.constant 0 : i32
    %149 = tpu.memref_slice %arg1[%c0_i32_138, %c0_i32_139, %c0_i32_140] : memref<1x328x128xbf16, #tpu.memory_space<vmem>> -> memref<1x328x128xbf16, #tpu.memory_space<vmem>>
    %150 = tpu.memref_squeeze %149 : memref<1x328x128xbf16, #tpu.memory_space<vmem>> -> memref<328x128xbf16, #tpu.memory_space<vmem>>
    %c163 = arith.constant 163 : index
    %c0_141 = arith.constant 0 : index
    %151 = vector.load %150[%c163, %c0_141] : memref<328x128xbf16, #tpu.memory_space<vmem>>, vector<72x128xbf16>
    %c0_i32_142 = arith.constant 0 : i32
    %c0_i32_143 = arith.constant 0 : i32
    %c0_i32_144 = arith.constant 0 : i32
    %152 = tpu.memref_slice %arg1[%c0_i32_142, %c0_i32_143, %c0_i32_144] : memref<1x328x128xbf16, #tpu.memory_space<vmem>> -> memref<1x328x128xbf16, #tpu.memory_space<vmem>>
    %153 = tpu.memref_squeeze %152 : memref<1x328x128xbf16, #tpu.memory_space<vmem>> -> memref<328x128xbf16, #tpu.memory_space<vmem>>
    %c164 = arith.constant 164 : index
    %c0_145 = arith.constant 0 : index
    %154 = vector.load %153[%c164, %c0_145] : memref<328x128xbf16, #tpu.memory_space<vmem>>, vector<72x128xbf16>
    %155 = tpu.concatenate %148, %151, %154 in 1 : vector<72x128xbf16>, vector<72x128xbf16>, vector<72x128xbf16> -> vector<72x384xbf16>
    %c1_146 = arith.constant 1 : index
    %c0_147 = arith.constant 0 : index
    %c0_148 = arith.constant 0 : index
    %156 = vector.load %arg2[%c1_146, %c0_147, %c0_148] : memref<3x384x128xbf16, #tpu.memory_space<vmem>>, vector<1x384x128xbf16>
    %157 = vector.shape_cast %156 : vector<1x384x128xbf16> to vector<384x128xbf16>
    %cst_149 = arith.constant dense<0.000000e+00> : vector<72x128xf32>
    %158 = tpu.matmul %155, %157, %cst_149 {dimension_numbers = #tpu.dot_dimension_numbers<[1], [0], [0], [1], [0, 0, 1, 1], [], []>} : vector<72x384xbf16>, vector<384x128xbf16>, vector<72x128xf32> -> vector<72x128xf32>
    %159 = arith.addf %145, %158 : vector<72x128xf32>
    %c0_i32_150 = arith.constant 0 : i32
    %c0_i32_151 = arith.constant 0 : i32
    %c0_i32_152 = arith.constant 0 : i32
    %160 = tpu.memref_slice %arg1[%c0_i32_150, %c0_i32_151, %c0_i32_152] : memref<1x328x128xbf16, #tpu.memory_space<vmem>> -> memref<1x328x128xbf16, #tpu.memory_space<vmem>>
    %161 = tpu.memref_squeeze %160 : memref<1x328x128xbf16, #tpu.memory_space<vmem>> -> memref<328x128xbf16, #tpu.memory_space<vmem>>
    %c180 = arith.constant 180 : index
    %c0_153 = arith.constant 0 : index
    %162 = vector.load %161[%c180, %c0_153] : memref<328x128xbf16, #tpu.memory_space<vmem>>, vector<72x128xbf16>
    %c0_i32_154 = arith.constant 0 : i32
    %c0_i32_155 = arith.constant 0 : i32
    %c0_i32_156 = arith.constant 0 : i32
    %163 = tpu.memref_slice %arg1[%c0_i32_154, %c0_i32_155, %c0_i32_156] : memref<1x328x128xbf16, #tpu.memory_space<vmem>> -> memref<1x328x128xbf16, #tpu.memory_space<vmem>>
    %164 = tpu.memref_squeeze %163 : memref<1x328x128xbf16, #tpu.memory_space<vmem>> -> memref<328x128xbf16, #tpu.memory_space<vmem>>
    %c181 = arith.constant 181 : index
    %c0_157 = arith.constant 0 : index
    %165 = vector.load %164[%c181, %c0_157] : memref<328x128xbf16, #tpu.memory_space<vmem>>, vector<72x128xbf16>
    %c0_i32_158 = arith.constant 0 : i32
    %c0_i32_159 = arith.constant 0 : i32
    %c0_i32_160 = arith.constant 0 : i32
    %166 = tpu.memref_slice %arg1[%c0_i32_158, %c0_i32_159, %c0_i32_160] : memref<1x328x128xbf16, #tpu.memory_space<vmem>> -> memref<1x328x128xbf16, #tpu.memory_space<vmem>>
    %167 = tpu.memref_squeeze %166 : memref<1x328x128xbf16, #tpu.memory_space<vmem>> -> memref<328x128xbf16, #tpu.memory_space<vmem>>
    %c182 = arith.constant 182 : index
    %c0_161 = arith.constant 0 : index
    %168 = vector.load %167[%c182, %c0_161] : memref<328x128xbf16, #tpu.memory_space<vmem>>, vector<72x128xbf16>
    %169 = tpu.concatenate %162, %165, %168 in 1 : vector<72x128xbf16>, vector<72x128xbf16>, vector<72x128xbf16> -> vector<72x384xbf16>
    %c2_162 = arith.constant 2 : index
    %c0_163 = arith.constant 0 : index
    %c0_164 = arith.constant 0 : index
    %170 = vector.load %arg2[%c2_162, %c0_163, %c0_164] : memref<3x384x128xbf16, #tpu.memory_space<vmem>>, vector<1x384x128xbf16>
    %171 = vector.shape_cast %170 : vector<1x384x128xbf16> to vector<384x128xbf16>
    %cst_165 = arith.constant dense<0.000000e+00> : vector<72x128xf32>
    %172 = tpu.matmul %169, %171, %cst_165 {dimension_numbers = #tpu.dot_dimension_numbers<[1], [0], [0], [1], [0, 0, 1, 1], [], []>} : vector<72x384xbf16>, vector<384x128xbf16>, vector<72x128xf32> -> vector<72x128xf32>
    %173 = arith.addf %159, %172 : vector<72x128xf32>
    %174 = vector.broadcast %4 : vector<1x128xf32> to vector<72x128xf32>
    %175 = arith.addf %173, %174 : vector<72x128xf32>
    %cst_166 = arith.constant 0.000000e+00 : f32
    %176 = vector.broadcast %cst_166 : f32 to vector<72x128xf32>
    %177 = arith.maximumf %175, %176 : vector<72x128xf32>
    %cst_167 = arith.constant 0.000000e+00 : f32
    %178 = vector.shape_cast %24 : vector<72x1xi1> to vector<72x1xi1>
    %179 = vector.broadcast %178 : vector<72x1xi1> to vector<72x128xi1>
    %180 = vector.broadcast %cst_167 : f32 to vector<72x128xf32>
    %181 = arith.select %179, %177, %180 : vector<72x128xi1>, vector<72x128xf32>
    %182 = arith.truncf %181 : vector<72x128xf32> to vector<72x128xbf16>
    %c163_168 = arith.constant 163 : index
    %c0_169 = arith.constant 0 : index
    %183 = vector.load %arg6[%c163_168, %c0_169] : memref<328x128xbf16, #tpu.memory_space<vmem>>, vector<72x128xbf16>
    tpu.vector_store %arg6[%c163_168, %c0_169], %182 {strides = array<i32>} : memref<328x128xbf16, #tpu.memory_space<vmem>>, vector<72x128xbf16>,
    %cst_170 = arith.constant 0.000000e+00 : f32
    %184 = vector.broadcast %cst_170 : f32 to vector<72x128xf32>
    %c0_i32_171 = arith.constant 0 : i32
    %c0_i32_172 = arith.constant 0 : i32
    %c0_i32_173 = arith.constant 0 : i32
    %185 = tpu.memref_slice %arg1[%c0_i32_171, %c0_i32_172, %c0_i32_173] : memref<1x328x128xbf16, #tpu.memory_space<vmem>> -> memref<1x328x128xbf16, #tpu.memory_space<vmem>>
    %186 = tpu.memref_squeeze %185 : memref<1x328x128xbf16, #tpu.memory_space<vmem>> -> memref<328x128xbf16, #tpu.memory_space<vmem>>
    %c216 = arith.constant 216 : index
    %c0_174 = arith.constant 0 : index
    %187 = vector.load %186[%c216, %c0_174] : memref<328x128xbf16, #tpu.memory_space<vmem>>, vector<72x128xbf16>
    %c0_i32_175 = arith.constant 0 : i32
    %c0_i32_176 = arith.constant 0 : i32
    %c0_i32_177 = arith.constant 0 : i32
    %188 = tpu.memref_slice %arg1[%c0_i32_175, %c0_i32_176, %c0_i32_177] : memref<1x328x128xbf16, #tpu.memory_space<vmem>> -> memref<1x328x128xbf16, #tpu.memory_space<vmem>>
    %189 = tpu.memref_squeeze %188 : memref<1x328x128xbf16, #tpu.memory_space<vmem>> -> memref<328x128xbf16, #tpu.memory_space<vmem>>
    %c217 = arith.constant 217 : index
    %c0_178 = arith.constant 0 : index
    %190 = vector.load %189[%c217, %c0_178] : memref<328x128xbf16, #tpu.memory_space<vmem>>, vector<72x128xbf16>
    %c0_i32_179 = arith.constant 0 : i32
    %c0_i32_180 = arith.constant 0 : i32
    %c0_i32_181 = arith.constant 0 : i32
    %191 = tpu.memref_slice %arg1[%c0_i32_179, %c0_i32_180, %c0_i32_181] : memref<1x328x128xbf16, #tpu.memory_space<vmem>> -> memref<1x328x128xbf16, #tpu.memory_space<vmem>>
    %192 = tpu.memref_squeeze %191 : memref<1x328x128xbf16, #tpu.memory_space<vmem>> -> memref<328x128xbf16, #tpu.memory_space<vmem>>
    %c218 = arith.constant 218 : index
    %c0_182 = arith.constant 0 : index
    %193 = vector.load %192[%c218, %c0_182] : memref<328x128xbf16, #tpu.memory_space<vmem>>, vector<72x128xbf16>
    %194 = tpu.concatenate %187, %190, %193 in 1 : vector<72x128xbf16>, vector<72x128xbf16>, vector<72x128xbf16> -> vector<72x384xbf16>
    %c0_183 = arith.constant 0 : index
    %c0_184 = arith.constant 0 : index
    %c0_185 = arith.constant 0 : index
    %195 = vector.load %arg2[%c0_183, %c0_184, %c0_185] : memref<3x384x128xbf16, #tpu.memory_space<vmem>>, vector<1x384x128xbf16>
    %196 = vector.shape_cast %195 : vector<1x384x128xbf16> to vector<384x128xbf16>
    %cst_186 = arith.constant dense<0.000000e+00> : vector<72x128xf32>
    %197 = tpu.matmul %194, %196, %cst_186 {dimension_numbers = #tpu.dot_dimension_numbers<[1], [0], [0], [1], [0, 0, 1, 1], [], []>} : vector<72x384xbf16>, vector<384x128xbf16>, vector<72x128xf32> -> vector<72x128xf32>
    %198 = arith.addf %184, %197 : vector<72x128xf32>
    %c0_i32_187 = arith.constant 0 : i32
    %c0_i32_188 = arith.constant 0 : i32
    %c0_i32_189 = arith.constant 0 : i32
    %199 = tpu.memref_slice %arg1[%c0_i32_187, %c0_i32_188, %c0_i32_189] : memref<1x328x128xbf16, #tpu.memory_space<vmem>> -> memref<1x328x128xbf16, #tpu.memory_space<vmem>>
    %200 = tpu.memref_squeeze %199 : memref<1x328x128xbf16, #tpu.memory_space<vmem>> -> memref<328x128xbf16, #tpu.memory_space<vmem>>
    %c234 = arith.constant 234 : index
    %c0_190 = arith.constant 0 : index
    %201 = vector.load %200[%c234, %c0_190] : memref<328x128xbf16, #tpu.memory_space<vmem>>, vector<72x128xbf16>
    %c0_i32_191 = arith.constant 0 : i32
    %c0_i32_192 = arith.constant 0 : i32
    %c0_i32_193 = arith.constant 0 : i32
    %202 = tpu.memref_slice %arg1[%c0_i32_191, %c0_i32_192, %c0_i32_193] : memref<1x328x128xbf16, #tpu.memory_space<vmem>> -> memref<1x328x128xbf16, #tpu.memory_space<vmem>>
    %203 = tpu.memref_squeeze %202 : memref<1x328x128xbf16, #tpu.memory_space<vmem>> -> memref<328x128xbf16, #tpu.memory_space<vmem>>
    %c235 = arith.constant 235 : index
    %c0_194 = arith.constant 0 : index
    %204 = vector.load %203[%c235, %c0_194] : memref<328x128xbf16, #tpu.memory_space<vmem>>, vector<72x128xbf16>
    %c0_i32_195 = arith.constant 0 : i32
    %c0_i32_196 = arith.constant 0 : i32
    %c0_i32_197 = arith.constant 0 : i32
    %205 = tpu.memref_slice %arg1[%c0_i32_195, %c0_i32_196, %c0_i32_197] : memref<1x328x128xbf16, #tpu.memory_space<vmem>> -> memref<1x328x128xbf16, #tpu.memory_space<vmem>>
    %206 = tpu.memref_squeeze %205 : memref<1x328x128xbf16, #tpu.memory_space<vmem>> -> memref<328x128xbf16, #tpu.memory_space<vmem>>
    %c236 = arith.constant 236 : index
    %c0_198 = arith.constant 0 : index
    %207 = vector.load %206[%c236, %c0_198] : memref<328x128xbf16, #tpu.memory_space<vmem>>, vector<72x128xbf16>
    %208 = tpu.concatenate %201, %204, %207 in 1 : vector<72x128xbf16>, vector<72x128xbf16>, vector<72x128xbf16> -> vector<72x384xbf16>
    %c1_199 = arith.constant 1 : index
    %c0_200 = arith.constant 0 : index
    %c0_201 = arith.constant 0 : index
    %209 = vector.load %arg2[%c1_199, %c0_200, %c0_201] : memref<3x384x128xbf16, #tpu.memory_space<vmem>>, vector<1x384x128xbf16>
    %210 = vector.shape_cast %209 : vector<1x384x128xbf16> to vector<384x128xbf16>
    %cst_202 = arith.constant dense<0.000000e+00> : vector<72x128xf32>
    %211 = tpu.matmul %208, %210, %cst_202 {dimension_numbers = #tpu.dot_dimension_numbers<[1], [0], [0], [1], [0, 0, 1, 1], [], []>} : vector<72x384xbf16>, vector<384x128xbf16>, vector<72x128xf32> -> vector<72x128xf32>
    %212 = arith.addf %198, %211 : vector<72x128xf32>
    %c0_i32_203 = arith.constant 0 : i32
    %c0_i32_204 = arith.constant 0 : i32
    %c0_i32_205 = arith.constant 0 : i32
    %213 = tpu.memref_slice %arg1[%c0_i32_203, %c0_i32_204, %c0_i32_205] : memref<1x328x128xbf16, #tpu.memory_space<vmem>> -> memref<1x328x128xbf16, #tpu.memory_space<vmem>>
    %214 = tpu.memref_squeeze %213 : memref<1x328x128xbf16, #tpu.memory_space<vmem>> -> memref<328x128xbf16, #tpu.memory_space<vmem>>
    %c252 = arith.constant 252 : index
    %c0_206 = arith.constant 0 : index
    %215 = vector.load %214[%c252, %c0_206] : memref<328x128xbf16, #tpu.memory_space<vmem>>, vector<72x128xbf16>
    %c0_i32_207 = arith.constant 0 : i32
    %c0_i32_208 = arith.constant 0 : i32
    %c0_i32_209 = arith.constant 0 : i32
    %216 = tpu.memref_slice %arg1[%c0_i32_207, %c0_i32_208, %c0_i32_209] : memref<1x328x128xbf16, #tpu.memory_space<vmem>> -> memref<1x328x128xbf16, #tpu.memory_space<vmem>>
    %217 = tpu.memref_squeeze %216 : memref<1x328x128xbf16, #tpu.memory_space<vmem>> -> memref<328x128xbf16, #tpu.memory_space<vmem>>
    %c253 = arith.constant 253 : index
    %c0_210 = arith.constant 0 : index
    %218 = vector.load %217[%c253, %c0_210] : memref<328x128xbf16, #tpu.memory_space<vmem>>, vector<72x128xbf16>
    %c0_i32_211 = arith.constant 0 : i32
    %c0_i32_212 = arith.constant 0 : i32
    %c0_i32_213 = arith.constant 0 : i32
    %219 = tpu.memref_slice %arg1[%c0_i32_211, %c0_i32_212, %c0_i32_213] : memref<1x328x128xbf16, #tpu.memory_space<vmem>> -> memref<1x328x128xbf16, #tpu.memory_space<vmem>>
    %220 = tpu.memref_squeeze %219 : memref<1x328x128xbf16, #tpu.memory_space<vmem>> -> memref<328x128xbf16, #tpu.memory_space<vmem>>
    %c254 = arith.constant 254 : index
    %c0_214 = arith.constant 0 : index
    %221 = vector.load %220[%c254, %c0_214] : memref<328x128xbf16, #tpu.memory_space<vmem>>, vector<72x128xbf16>
    %222 = tpu.concatenate %215, %218, %221 in 1 : vector<72x128xbf16>, vector<72x128xbf16>, vector<72x128xbf16> -> vector<72x384xbf16>
    %c2_215 = arith.constant 2 : index
    %c0_216 = arith.constant 0 : index
    %c0_217 = arith.constant 0 : index
    %223 = vector.load %arg2[%c2_215, %c0_216, %c0_217] : memref<3x384x128xbf16, #tpu.memory_space<vmem>>, vector<1x384x128xbf16>
    %224 = vector.shape_cast %223 : vector<1x384x128xbf16> to vector<384x128xbf16>
    %cst_218 = arith.constant dense<0.000000e+00> : vector<72x128xf32>
    %225 = tpu.matmul %222, %224, %cst_218 {dimension_numbers = #tpu.dot_dimension_numbers<[1], [0], [0], [1], [0, 0, 1, 1], [], []>} : vector<72x384xbf16>, vector<384x128xbf16>, vector<72x128xf32> -> vector<72x128xf32>
    %226 = arith.addf %212, %225 : vector<72x128xf32>
    %227 = vector.broadcast %4 : vector<1x128xf32> to vector<72x128xf32>
    %228 = arith.addf %226, %227 : vector<72x128xf32>
    %cst_219 = arith.constant 0.000000e+00 : f32
    %229 = vector.broadcast %cst_219 : f32 to vector<72x128xf32>
    %230 = arith.maximumf %228, %229 : vector<72x128xf32>
    %cst_220 = arith.constant 0.000000e+00 : f32
    %231 = vector.shape_cast %24 : vector<72x1xi1> to vector<72x1xi1>
    %232 = vector.broadcast %231 : vector<72x1xi1> to vector<72x128xi1>
    %233 = vector.broadcast %cst_220 : f32 to vector<72x128xf32>
    %234 = arith.select %232, %230, %233 : vector<72x128xi1>, vector<72x128xf32>
    %235 = arith.truncf %234 : vector<72x128xf32> to vector<72x128xbf16>
    %c235_221 = arith.constant 235 : index
    %c0_222 = arith.constant 0 : index
    %236 = vector.load %arg6[%c235_221, %c0_222] : memref<328x128xbf16, #tpu.memory_space<vmem>>, vector<72x128xbf16>
    tpu.vector_store %arg6[%c235_221, %c0_222], %235 {strides = array<i32>} : memref<328x128xbf16, #tpu.memory_space<vmem>>, vector<72x128xbf16>,
    %cst_223 = arith.constant 0.000000e+00 : f32
    %237 = vector.broadcast %cst_223 : f32 to vector<72x128xf32>
    %c0_224 = arith.constant 0 : index
    %c0_225 = arith.constant 0 : index
    %238 = vector.load %arg6[%c0_224, %c0_225] : memref<328x128xbf16, #tpu.memory_space<vmem>>, vector<72x128xbf16>
    %c1_226 = arith.constant 1 : index
    %c0_227 = arith.constant 0 : index
    %239 = vector.load %arg6[%c1_226, %c0_227] : memref<328x128xbf16, #tpu.memory_space<vmem>>, vector<72x128xbf16>
    %c2_228 = arith.constant 2 : index
    %c0_229 = arith.constant 0 : index
    %240 = vector.load %arg6[%c2_228, %c0_229] : memref<328x128xbf16, #tpu.memory_space<vmem>>, vector<72x128xbf16>
    %241 = tpu.concatenate %238, %239, %240 in 1 : vector<72x128xbf16>, vector<72x128xbf16>, vector<72x128xbf16> -> vector<72x384xbf16>
    %c0_230 = arith.constant 0 : index
    %c0_231 = arith.constant 0 : index
    %c0_232 = arith.constant 0 : index
    %242 = vector.load %arg3[%c0_230, %c0_231, %c0_232] : memref<3x384x128xbf16, #tpu.memory_space<vmem>>, vector<1x384x128xbf16>
    %243 = vector.shape_cast %242 : vector<1x384x128xbf16> to vector<384x128xbf16>
    %cst_233 = arith.constant dense<0.000000e+00> : vector<72x128xf32>
    %244 = tpu.matmul %241, %243, %cst_233 {dimension_numbers = #tpu.dot_dimension_numbers<[1], [0], [0], [1], [0, 0, 1, 1], [], []>} : vector<72x384xbf16>, vector<384x128xbf16>, vector<72x128xf32> -> vector<72x128xf32>
    %245 = arith.addf %237, %244 : vector<72x128xf32>
    %c18_234 = arith.constant 18 : index
    %c0_235 = arith.constant 0 : index
    %246 = vector.load %arg6[%c18_234, %c0_235] : memref<328x128xbf16, #tpu.memory_space<vmem>>, vector<72x128xbf16>
    %c19_236 = arith.constant 19 : index
    %c0_237 = arith.constant 0 : index
    %247 = vector.load %arg6[%c19_236, %c0_237] : memref<328x128xbf16, #tpu.memory_space<vmem>>, vector<72x128xbf16>
    %c20_238 = arith.constant 20 : index
    %c0_239 = arith.constant 0 : index
    %248 = vector.load %arg6[%c20_238, %c0_239] : memref<328x128xbf16, #tpu.memory_space<vmem>>, vector<72x128xbf16>
    %249 = tpu.concatenate %246, %247, %248 in 1 : vector<72x128xbf16>, vector<72x128xbf16>, vector<72x128xbf16> -> vector<72x384xbf16>
    %c1_240 = arith.constant 1 : index
    %c0_241 = arith.constant 0 : index
    %c0_242 = arith.constant 0 : index
    %250 = vector.load %arg3[%c1_240, %c0_241, %c0_242] : memref<3x384x128xbf16, #tpu.memory_space<vmem>>, vector<1x384x128xbf16>
    %251 = vector.shape_cast %250 : vector<1x384x128xbf16> to vector<384x128xbf16>
    %cst_243 = arith.constant dense<0.000000e+00> : vector<72x128xf32>
    %252 = tpu.matmul %249, %251, %cst_243 {dimension_numbers = #tpu.dot_dimension_numbers<[1], [0], [0], [1], [0, 0, 1, 1], [], []>} : vector<72x384xbf16>, vector<384x128xbf16>, vector<72x128xf32> -> vector<72x128xf32>
    %253 = arith.addf %245, %252 : vector<72x128xf32>
    %c36_244 = arith.constant 36 : index
    %c0_245 = arith.constant 0 : index
    %254 = vector.load %arg6[%c36_244, %c0_245] : memref<328x128xbf16, #tpu.memory_space<vmem>>, vector<72x128xbf16>
    %c37_246 = arith.constant 37 : index
    %c0_247 = arith.constant 0 : index
    %255 = vector.load %arg6[%c37_246, %c0_247] : memref<328x128xbf16, #tpu.memory_space<vmem>>, vector<72x128xbf16>
    %c38_248 = arith.constant 38 : index
    %c0_249 = arith.constant 0 : index
    %256 = vector.load %arg6[%c38_248, %c0_249] : memref<328x128xbf16, #tpu.memory_space<vmem>>, vector<72x128xbf16>
    %257 = tpu.concatenate %254, %255, %256 in 1 : vector<72x128xbf16>, vector<72x128xbf16>, vector<72x128xbf16> -> vector<72x384xbf16>
    %c2_250 = arith.constant 2 : index
    %c0_251 = arith.constant 0 : index
    %c0_252 = arith.constant 0 : index
    %258 = vector.load %arg3[%c2_250, %c0_251, %c0_252] : memref<3x384x128xbf16, #tpu.memory_space<vmem>>, vector<1x384x128xbf16>
    %259 = vector.shape_cast %258 : vector<1x384x128xbf16> to vector<384x128xbf16>
    %cst_253 = arith.constant dense<0.000000e+00> : vector<72x128xf32>
    %260 = tpu.matmul %257, %259, %cst_253 {dimension_numbers = #tpu.dot_dimension_numbers<[1], [0], [0], [1], [0, 0, 1, 1], [], []>} : vector<72x384xbf16>, vector<384x128xbf16>, vector<72x128xf32> -> vector<72x128xf32>
    %261 = arith.addf %253, %260 : vector<72x128xf32>
    %262 = vector.broadcast %5 : vector<1x128xf32> to vector<72x128xf32>
    %263 = arith.addf %261, %262 : vector<72x128xf32>
    %c0_i32_254 = arith.constant 0 : i32
    %c0_i32_255 = arith.constant 0 : i32
    %c0_i32_256 = arith.constant 0 : i32
    %264 = tpu.memref_slice %arg1[%c0_i32_254, %c0_i32_255, %c0_i32_256] : memref<1x328x128xbf16, #tpu.memory_space<vmem>> -> memref<1x328x128xbf16, #tpu.memory_space<vmem>>
    %265 = tpu.memref_squeeze %264 : memref<1x328x128xbf16, #tpu.memory_space<vmem>> -> memref<328x128xbf16, #tpu.memory_space<vmem>>
    %c19_257 = arith.constant 19 : index
    %c0_258 = arith.constant 0 : index
    %266 = vector.load %265[%c19_257, %c0_258] : memref<328x128xbf16, #tpu.memory_space<vmem>>, vector<72x128xbf16>
    %267 = arith.extf %266 : vector<72x128xbf16> to vector<72x128xf32>
    %268 = arith.addf %263, %267 : vector<72x128xf32>
    %cst_259 = arith.constant 0.000000e+00 : f32
    %269 = vector.broadcast %cst_259 : f32 to vector<72x128xf32>
    %270 = arith.maximumf %268, %269 : vector<72x128xf32>
    %271 = arith.truncf %270 : vector<72x128xf32> to vector<72x128xbf16>
    %c0_i32_260 = arith.constant 0 : i32
    %c0_i32_261 = arith.constant 0 : i32
    %c0_i32_262 = arith.constant 0 : i32
    %272 = tpu.memref_slice %arg5[%c0_i32_260, %c0_i32_261, %c0_i32_262] : memref<1x288x128xbf16, #tpu.memory_space<vmem>> -> memref<1x288x128xbf16, #tpu.memory_space<vmem>>
    %273 = tpu.memref_squeeze %272 : memref<1x288x128xbf16, #tpu.memory_space<vmem>> -> memref<288x128xbf16, #tpu.memory_space<vmem>>
    %c0_263 = arith.constant 0 : index
    %c0_264 = arith.constant 0 : index
    %274 = vector.load %273[%c0_263, %c0_264] : memref<288x128xbf16, #tpu.memory_space<vmem>>, vector<72x128xbf16>
    tpu.vector_store %273[%c0_263, %c0_264], %271 {strides = array<i32>} : memref<288x128xbf16, #tpu.memory_space<vmem>>, vector<72x128xbf16>,
    %cst_265 = arith.constant 0.000000e+00 : f32
    %275 = vector.broadcast %cst_265 : f32 to vector<72x128xf32>
    %c72_266 = arith.constant 72 : index
    %c0_267 = arith.constant 0 : index
    %276 = vector.load %arg6[%c72_266, %c0_267] : memref<328x128xbf16, #tpu.memory_space<vmem>>, vector<72x128xbf16>
    %c73_268 = arith.constant 73 : index
    %c0_269 = arith.constant 0 : index
    %277 = vector.load %arg6[%c73_268, %c0_269] : memref<328x128xbf16, #tpu.memory_space<vmem>>, vector<72x128xbf16>
    %c74_270 = arith.constant 74 : index
    %c0_271 = arith.constant 0 : index
    %278 = vector.load %arg6[%c74_270, %c0_271] : memref<328x128xbf16, #tpu.memory_space<vmem>>, vector<72x128xbf16>
    %279 = tpu.concatenate %276, %277, %278 in 1 : vector<72x128xbf16>, vector<72x128xbf16>, vector<72x128xbf16> -> vector<72x384xbf16>
    %c0_272 = arith.constant 0 : index
    %c0_273 = arith.constant 0 : index
    %c0_274 = arith.constant 0 : index
    %280 = vector.load %arg3[%c0_272, %c0_273, %c0_274] : memref<3x384x128xbf16, #tpu.memory_space<vmem>>, vector<1x384x128xbf16>
    %281 = vector.shape_cast %280 : vector<1x384x128xbf16> to vector<384x128xbf16>
    %cst_275 = arith.constant dense<0.000000e+00> : vector<72x128xf32>
    %282 = tpu.matmul %279, %281, %cst_275 {dimension_numbers = #tpu.dot_dimension_numbers<[1], [0], [0], [1], [0, 0, 1, 1], [], []>} : vector<72x384xbf16>, vector<384x128xbf16>, vector<72x128xf32> -> vector<72x128xf32>
    %283 = arith.addf %275, %282 : vector<72x128xf32>
    %c90_276 = arith.constant 90 : index
    %c0_277 = arith.constant 0 : index
    %284 = vector.load %arg6[%c90_276, %c0_277] : memref<328x128xbf16, #tpu.memory_space<vmem>>, vector<72x128xbf16>
    %c91_278 = arith.constant 91 : index
    %c0_279 = arith.constant 0 : index
    %285 = vector.load %arg6[%c91_278, %c0_279] : memref<328x128xbf16, #tpu.memory_space<vmem>>, vector<72x128xbf16>
    %c92_280 = arith.constant 92 : index
    %c0_281 = arith.constant 0 : index
    %286 = vector.load %arg6[%c92_280, %c0_281] : memref<328x128xbf16, #tpu.memory_space<vmem>>, vector<72x128xbf16>
    %287 = tpu.concatenate %284, %285, %286 in 1 : vector<72x128xbf16>, vector<72x128xbf16>, vector<72x128xbf16> -> vector<72x384xbf16>
    %c1_282 = arith.constant 1 : index
    %c0_283 = arith.constant 0 : index
    %c0_284 = arith.constant 0 : index
    %288 = vector.load %arg3[%c1_282, %c0_283, %c0_284] : memref<3x384x128xbf16, #tpu.memory_space<vmem>>, vector<1x384x128xbf16>
    %289 = vector.shape_cast %288 : vector<1x384x128xbf16> to vector<384x128xbf16>
    %cst_285 = arith.constant dense<0.000000e+00> : vector<72x128xf32>
    %290 = tpu.matmul %287, %289, %cst_285 {dimension_numbers = #tpu.dot_dimension_numbers<[1], [0], [0], [1], [0, 0, 1, 1], [], []>} : vector<72x384xbf16>, vector<384x128xbf16>, vector<72x128xf32> -> vector<72x128xf32>
    %291 = arith.addf %283, %290 : vector<72x128xf32>
    %c108_286 = arith.constant 108 : index
    %c0_287 = arith.constant 0 : index
    %292 = vector.load %arg6[%c108_286, %c0_287] : memref<328x128xbf16, #tpu.memory_space<vmem>>, vector<72x128xbf16>
    %c109_288 = arith.constant 109 : index
    %c0_289 = arith.constant 0 : index
    %293 = vector.load %arg6[%c109_288, %c0_289] : memref<328x128xbf16, #tpu.memory_space<vmem>>, vector<72x128xbf16>
    %c110_290 = arith.constant 110 : index
    %c0_291 = arith.constant 0 : index
    %294 = vector.load %arg6[%c110_290, %c0_291] : memref<328x128xbf16, #tpu.memory_space<vmem>>, vector<72x128xbf16>
    %295 = tpu.concatenate %292, %293, %294 in 1 : vector<72x128xbf16>, vector<72x128xbf16>, vector<72x128xbf16> -> vector<72x384xbf16>
    %c2_292 = arith.constant 2 : index
    %c0_293 = arith.constant 0 : index
    %c0_294 = arith.constant 0 : index
    %296 = vector.load %arg3[%c2_292, %c0_293, %c0_294] : memref<3x384x128xbf16, #tpu.memory_space<vmem>>, vector<1x384x128xbf16>
    %297 = vector.shape_cast %296 : vector<1x384x128xbf16> to vector<384x128xbf16>
    %cst_295 = arith.constant dense<0.000000e+00> : vector<72x128xf32>
    %298 = tpu.matmul %295, %297, %cst_295 {dimension_numbers = #tpu.dot_dimension_numbers<[1], [0], [0], [1], [0, 0, 1, 1], [], []>} : vector<72x384xbf16>, vector<384x128xbf16>, vector<72x128xf32> -> vector<72x128xf32>
    %299 = arith.addf %291, %298 : vector<72x128xf32>
    %300 = vector.broadcast %5 : vector<1x128xf32> to vector<72x128xf32>
    %301 = arith.addf %299, %300 : vector<72x128xf32>
    %c0_i32_296 = arith.constant 0 : i32
    %c0_i32_297 = arith.constant 0 : i32
    %c0_i32_298 = arith.constant 0 : i32
    %302 = tpu.memref_slice %arg1[%c0_i32_296, %c0_i32_297, %c0_i32_298] : memref<1x328x128xbf16, #tpu.memory_space<vmem>> -> memref<1x328x128xbf16, #tpu.memory_space<vmem>>
    %303 = tpu.memref_squeeze %302 : memref<1x328x128xbf16, #tpu.memory_space<vmem>> -> memref<328x128xbf16, #tpu.memory_space<vmem>>
    %c91_299 = arith.constant 91 : index
    %c0_300 = arith.constant 0 : index
    %304 = vector.load %303[%c91_299, %c0_300] : memref<328x128xbf16, #tpu.memory_space<vmem>>, vector<72x128xbf16>
    %305 = arith.extf %304 : vector<72x128xbf16> to vector<72x128xf32>
    %306 = arith.addf %301, %305 : vector<72x128xf32>
    %cst_301 = arith.constant 0.000000e+00 : f32
    %307 = vector.broadcast %cst_301 : f32 to vector<72x128xf32>
    %308 = arith.maximumf %306, %307 : vector<72x128xf32>
    %309 = arith.truncf %308 : vector<72x128xf32> to vector<72x128xbf16>
    %c0_i32_302 = arith.constant 0 : i32
    %c0_i32_303 = arith.constant 0 : i32
    %c0_i32_304 = arith.constant 0 : i32
    %310 = tpu.memref_slice %arg5[%c0_i32_302, %c0_i32_303, %c0_i32_304] : memref<1x288x128xbf16, #tpu.memory_space<vmem>> -> memref<1x288x128xbf16, #tpu.memory_space<vmem>>
    %311 = tpu.memref_squeeze %310 : memref<1x288x128xbf16, #tpu.memory_space<vmem>> -> memref<288x128xbf16, #tpu.memory_space<vmem>>
    %c72_305 = arith.constant 72 : index
    %c0_306 = arith.constant 0 : index
    %312 = vector.load %311[%c72_305, %c0_306] : memref<288x128xbf16, #tpu.memory_space<vmem>>, vector<72x128xbf16>
    tpu.vector_store %311[%c72_305, %c0_306], %309 {strides = array<i32>} : memref<288x128xbf16, #tpu.memory_space<vmem>>, vector<72x128xbf16>,
    %cst_307 = arith.constant 0.000000e+00 : f32
    %313 = vector.broadcast %cst_307 : f32 to vector<72x128xf32>
    %c144_308 = arith.constant 144 : index
    %c0_309 = arith.constant 0 : index
    %314 = vector.load %arg6[%c144_308, %c0_309] : memref<328x128xbf16, #tpu.memory_space<vmem>>, vector<72x128xbf16>
    %c145_310 = arith.constant 145 : index
    %c0_311 = arith.constant 0 : index
    %315 = vector.load %arg6[%c145_310, %c0_311] : memref<328x128xbf16, #tpu.memory_space<vmem>>, vector<72x128xbf16>
    %c146_312 = arith.constant 146 : index
    %c0_313 = arith.constant 0 : index
    %316 = vector.load %arg6[%c146_312, %c0_313] : memref<328x128xbf16, #tpu.memory_space<vmem>>, vector<72x128xbf16>
    %317 = tpu.concatenate %314, %315, %316 in 1 : vector<72x128xbf16>, vector<72x128xbf16>, vector<72x128xbf16> -> vector<72x384xbf16>
    %c0_314 = arith.constant 0 : index
    %c0_315 = arith.constant 0 : index
    %c0_316 = arith.constant 0 : index
    %318 = vector.load %arg3[%c0_314, %c0_315, %c0_316] : memref<3x384x128xbf16, #tpu.memory_space<vmem>>, vector<1x384x128xbf16>
    %319 = vector.shape_cast %318 : vector<1x384x128xbf16> to vector<384x128xbf16>
    %cst_317 = arith.constant dense<0.000000e+00> : vector<72x128xf32>
    %320 = tpu.matmul %317, %319, %cst_317 {dimension_numbers = #tpu.dot_dimension_numbers<[1], [0], [0], [1], [0, 0, 1, 1], [], []>} : vector<72x384xbf16>, vector<384x128xbf16>, vector<72x128xf32> -> vector<72x128xf32>
    %321 = arith.addf %313, %320 : vector<72x128xf32>
    %c162_318 = arith.constant 162 : index
    %c0_319 = arith.constant 0 : index
    %322 = vector.load %arg6[%c162_318, %c0_319] : memref<328x128xbf16, #tpu.memory_space<vmem>>, vector<72x128xbf16>
    %c163_320 = arith.constant 163 : index
    %c0_321 = arith.constant 0 : index
    %323 = vector.load %arg6[%c163_320, %c0_321] : memref<328x128xbf16, #tpu.memory_space<vmem>>, vector<72x128xbf16>
    %c164_322 = arith.constant 164 : index
    %c0_323 = arith.constant 0 : index
    %324 = vector.load %arg6[%c164_322, %c0_323] : memref<328x128xbf16, #tpu.memory_space<vmem>>, vector<72x128xbf16>
    %325 = tpu.concatenate %322, %323, %324 in 1 : vector<72x128xbf16>, vector<72x128xbf16>, vector<72x128xbf16> -> vector<72x384xbf16>
    %c1_324 = arith.constant 1 : index
    %c0_325 = arith.constant 0 : index
    %c0_326 = arith.constant 0 : index
    %326 = vector.load %arg3[%c1_324, %c0_325, %c0_326] : memref<3x384x128xbf16, #tpu.memory_space<vmem>>, vector<1x384x128xbf16>
    %327 = vector.shape_cast %326 : vector<1x384x128xbf16> to vector<384x128xbf16>
    %cst_327 = arith.constant dense<0.000000e+00> : vector<72x128xf32>
    %328 = tpu.matmul %325, %327, %cst_327 {dimension_numbers = #tpu.dot_dimension_numbers<[1], [0], [0], [1], [0, 0, 1, 1], [], []>} : vector<72x384xbf16>, vector<384x128xbf16>, vector<72x128xf32> -> vector<72x128xf32>
    %329 = arith.addf %321, %328 : vector<72x128xf32>
    %c180_328 = arith.constant 180 : index
    %c0_329 = arith.constant 0 : index
    %330 = vector.load %arg6[%c180_328, %c0_329] : memref<328x128xbf16, #tpu.memory_space<vmem>>, vector<72x128xbf16>
    %c181_330 = arith.constant 181 : index
    %c0_331 = arith.constant 0 : index
    %331 = vector.load %arg6[%c181_330, %c0_331] : memref<328x128xbf16, #tpu.memory_space<vmem>>, vector<72x128xbf16>
    %c182_332 = arith.constant 182 : index
    %c0_333 = arith.constant 0 : index
    %332 = vector.load %arg6[%c182_332, %c0_333] : memref<328x128xbf16, #tpu.memory_space<vmem>>, vector<72x128xbf16>
    %333 = tpu.concatenate %330, %331, %332 in 1 : vector<72x128xbf16>, vector<72x128xbf16>, vector<72x128xbf16> -> vector<72x384xbf16>
    %c2_334 = arith.constant 2 : index
    %c0_335 = arith.constant 0 : index
    %c0_336 = arith.constant 0 : index
    %334 = vector.load %arg3[%c2_334, %c0_335, %c0_336] : memref<3x384x128xbf16, #tpu.memory_space<vmem>>, vector<1x384x128xbf16>
    %335 = vector.shape_cast %334 : vector<1x384x128xbf16> to vector<384x128xbf16>
    %cst_337 = arith.constant dense<0.000000e+00> : vector<72x128xf32>
    %336 = tpu.matmul %333, %335, %cst_337 {dimension_numbers = #tpu.dot_dimension_numbers<[1], [0], [0], [1], [0, 0, 1, 1], [], []>} : vector<72x384xbf16>, vector<384x128xbf16>, vector<72x128xf32> -> vector<72x128xf32>
    %337 = arith.addf %329, %336 : vector<72x128xf32>
    %338 = vector.broadcast %5 : vector<1x128xf32> to vector<72x128xf32>
    %339 = arith.addf %337, %338 : vector<72x128xf32>
    %c0_i32_338 = arith.constant 0 : i32
    %c0_i32_339 = arith.constant 0 : i32
    %c0_i32_340 = arith.constant 0 : i32
    %340 = tpu.memref_slice %arg1[%c0_i32_338, %c0_i32_339, %c0_i32_340] : memref<1x328x128xbf16, #tpu.memory_space<vmem>> -> memref<1x328x128xbf16, #tpu.memory_space<vmem>>
    %341 = tpu.memref_squeeze %340 : memref<1x328x128xbf16, #tpu.memory_space<vmem>> -> memref<328x128xbf16, #tpu.memory_space<vmem>>
    %c163_341 = arith.constant 163 : index
    %c0_342 = arith.constant 0 : index
    %342 = vector.load %341[%c163_341, %c0_342] : memref<328x128xbf16, #tpu.memory_space<vmem>>, vector<72x128xbf16>
    %343 = arith.extf %342 : vector<72x128xbf16> to vector<72x128xf32>
    %344 = arith.addf %339, %343 : vector<72x128xf32>
    %cst_343 = arith.constant 0.000000e+00 : f32
    %345 = vector.broadcast %cst_343 : f32 to vector<72x128xf32>
    %346 = arith.maximumf %344, %345 : vector<72x128xf32>
    %347 = arith.truncf %346 : vector<72x128xf32> to vector<72x128xbf16>
    %c0_i32_344 = arith.constant 0 : i32
    %c0_i32_345 = arith.constant 0 : i32
    %c0_i32_346 = arith.constant 0 : i32
    %348 = tpu.memref_slice %arg5[%c0_i32_344, %c0_i32_345, %c0_i32_346] : memref<1x288x128xbf16, #tpu.memory_space<vmem>> -> memref<1x288x128xbf16, #tpu.memory_space<vmem>>
    %349 = tpu.memref_squeeze %348 : memref<1x288x128xbf16, #tpu.memory_space<vmem>> -> memref<288x128xbf16, #tpu.memory_space<vmem>>
    %c144_347 = arith.constant 144 : index
    %c0_348 = arith.constant 0 : index
    %350 = vector.load %349[%c144_347, %c0_348] : memref<288x128xbf16, #tpu.memory_space<vmem>>, vector<72x128xbf16>
    tpu.vector_store %349[%c144_347, %c0_348], %347 {strides = array<i32>} : memref<288x128xbf16, #tpu.memory_space<vmem>>, vector<72x128xbf16>,
    %cst_349 = arith.constant 0.000000e+00 : f32
    %351 = vector.broadcast %cst_349 : f32 to vector<72x128xf32>
    %c216_350 = arith.constant 216 : index
    %c0_351 = arith.constant 0 : index
    %352 = vector.load %arg6[%c216_350, %c0_351] : memref<328x128xbf16, #tpu.memory_space<vmem>>, vector<72x128xbf16>
    %c217_352 = arith.constant 217 : index
    %c0_353 = arith.constant 0 : index
    %353 = vector.load %arg6[%c217_352, %c0_353] : memref<328x128xbf16, #tpu.memory_space<vmem>>, vector<72x128xbf16>
    %c218_354 = arith.constant 218 : index
    %c0_355 = arith.constant 0 : index
    %354 = vector.load %arg6[%c218_354, %c0_355] : memref<328x128xbf16, #tpu.memory_space<vmem>>, vector<72x128xbf16>
    %355 = tpu.concatenate %352, %353, %354 in 1 : vector<72x128xbf16>, vector<72x128xbf16>, vector<72x128xbf16> -> vector<72x384xbf16>
    %c0_356 = arith.constant 0 : index
    %c0_357 = arith.constant 0 : index
    %c0_358 = arith.constant 0 : index
    %356 = vector.load %arg3[%c0_356, %c0_357, %c0_358] : memref<3x384x128xbf16, #tpu.memory_space<vmem>>, vector<1x384x128xbf16>
    %357 = vector.shape_cast %356 : vector<1x384x128xbf16> to vector<384x128xbf16>
    %cst_359 = arith.constant dense<0.000000e+00> : vector<72x128xf32>
    %358 = tpu.matmul %355, %357, %cst_359 {dimension_numbers = #tpu.dot_dimension_numbers<[1], [0], [0], [1], [0, 0, 1, 1], [], []>} : vector<72x384xbf16>, vector<384x128xbf16>, vector<72x128xf32> -> vector<72x128xf32>
    %359 = arith.addf %351, %358 : vector<72x128xf32>
    %c234_360 = arith.constant 234 : index
    %c0_361 = arith.constant 0 : index
    %360 = vector.load %arg6[%c234_360, %c0_361] : memref<328x128xbf16, #tpu.memory_space<vmem>>, vector<72x128xbf16>
    %c235_362 = arith.constant 235 : index
    %c0_363 = arith.constant 0 : index
    %361 = vector.load %arg6[%c235_362, %c0_363] : memref<328x128xbf16, #tpu.memory_space<vmem>>, vector<72x128xbf16>
    %c236_364 = arith.constant 236 : index
    %c0_365 = arith.constant 0 : index
    %362 = vector.load %arg6[%c236_364, %c0_365] : memref<328x128xbf16, #tpu.memory_space<vmem>>, vector<72x128xbf16>
    %363 = tpu.concatenate %360, %361, %362 in 1 : vector<72x128xbf16>, vector<72x128xbf16>, vector<72x128xbf16> -> vector<72x384xbf16>
    %c1_366 = arith.constant 1 : index
    %c0_367 = arith.constant 0 : index
    %c0_368 = arith.constant 0 : index
    %364 = vector.load %arg3[%c1_366, %c0_367, %c0_368] : memref<3x384x128xbf16, #tpu.memory_space<vmem>>, vector<1x384x128xbf16>
    %365 = vector.shape_cast %364 : vector<1x384x128xbf16> to vector<384x128xbf16>
    %cst_369 = arith.constant dense<0.000000e+00> : vector<72x128xf32>
    %366 = tpu.matmul %363, %365, %cst_369 {dimension_numbers = #tpu.dot_dimension_numbers<[1], [0], [0], [1], [0, 0, 1, 1], [], []>} : vector<72x384xbf16>, vector<384x128xbf16>, vector<72x128xf32> -> vector<72x128xf32>
    %367 = arith.addf %359, %366 : vector<72x128xf32>
    %c252_370 = arith.constant 252 : index
    %c0_371 = arith.constant 0 : index
    %368 = vector.load %arg6[%c252_370, %c0_371] : memref<328x128xbf16, #tpu.memory_space<vmem>>, vector<72x128xbf16>
    %c253_372 = arith.constant 253 : index
    %c0_373 = arith.constant 0 : index
    %369 = vector.load %arg6[%c253_372, %c0_373] : memref<328x128xbf16, #tpu.memory_space<vmem>>, vector<72x128xbf16>
    %c254_374 = arith.constant 254 : index
    %c0_375 = arith.constant 0 : index
    %370 = vector.load %arg6[%c254_374, %c0_375] : memref<328x128xbf16, #tpu.memory_space<vmem>>, vector<72x128xbf16>
    %371 = tpu.concatenate %368, %369, %370 in 1 : vector<72x128xbf16>, vector<72x128xbf16>, vector<72x128xbf16> -> vector<72x384xbf16>
    %c2_376 = arith.constant 2 : index
    %c0_377 = arith.constant 0 : index
    %c0_378 = arith.constant 0 : index
    %372 = vector.load %arg3[%c2_376, %c0_377, %c0_378] : memref<3x384x128xbf16, #tpu.memory_space<vmem>>, vector<1x384x128xbf16>
    %373 = vector.shape_cast %372 : vector<1x384x128xbf16> to vector<384x128xbf16>
    %cst_379 = arith.constant dense<0.000000e+00> : vector<72x128xf32>
    %374 = tpu.matmul %371, %373, %cst_379 {dimension_numbers = #tpu.dot_dimension_numbers<[1], [0], [0], [1], [0, 0, 1, 1], [], []>} : vector<72x384xbf16>, vector<384x128xbf16>, vector<72x128xf32> -> vector<72x128xf32>
    %375 = arith.addf %367, %374 : vector<72x128xf32>
    %376 = vector.broadcast %5 : vector<1x128xf32> to vector<72x128xf32>
    %377 = arith.addf %375, %376 : vector<72x128xf32>
    %c0_i32_380 = arith.constant 0 : i32
    %c0_i32_381 = arith.constant 0 : i32
    %c0_i32_382 = arith.constant 0 : i32
    %378 = tpu.memref_slice %arg1[%c0_i32_380, %c0_i32_381, %c0_i32_382] : memref<1x328x128xbf16, #tpu.memory_space<vmem>> -> memref<1x328x128xbf16, #tpu.memory_space<vmem>>
    %379 = tpu.memref_squeeze %378 : memref<1x328x128xbf16, #tpu.memory_space<vmem>> -> memref<328x128xbf16, #tpu.memory_space<vmem>>
    %c235_383 = arith.constant 235 : index
    %c0_384 = arith.constant 0 : index
    %380 = vector.load %379[%c235_383, %c0_384] : memref<328x128xbf16, #tpu.memory_space<vmem>>, vector<72x128xbf16>
    %381 = arith.extf %380 : vector<72x128xbf16> to vector<72x128xf32>
    %382 = arith.addf %377, %381 : vector<72x128xf32>
    %cst_385 = arith.constant 0.000000e+00 : f32
    %383 = vector.broadcast %cst_385 : f32 to vector<72x128xf32>
    %384 = arith.maximumf %382, %383 : vector<72x128xf32>
    %385 = arith.truncf %384 : vector<72x128xf32> to vector<72x128xbf16>
    %c0_i32_386 = arith.constant 0 : i32
    %c0_i32_387 = arith.constant 0 : i32
    %c0_i32_388 = arith.constant 0 : i32
    %386 = tpu.memref_slice %arg5[%c0_i32_386, %c0_i32_387, %c0_i32_388] : memref<1x288x128xbf16, #tpu.memory_space<vmem>> -> memref<1x288x128xbf16, #tpu.memory_space<vmem>>
    %387 = tpu.memref_squeeze %386 : memref<1x288x128xbf16, #tpu.memory_space<vmem>> -> memref<288x128xbf16, #tpu.memory_space<vmem>>
    %c216_389 = arith.constant 216 : index
    %c0_390 = arith.constant 0 : index
    %388 = vector.load %387[%c216_389, %c0_390] : memref<288x128xbf16, #tpu.memory_space<vmem>>, vector<72x128xbf16>
    tpu.vector_store %387[%c216_389, %c0_390], %385 {strides = array<i32>} : memref<288x128xbf16, #tpu.memory_space<vmem>>, vector<72x128xbf16>,
    return
  }
  func.func @transform_0(%arg0: i32) -> (i32, i32, i32) {
    %c0_i32 = arith.constant 0 : i32
    %c0_i32_0 = arith.constant 0 : i32
    %c0_i32_1 = arith.constant 0 : i32
    return %arg0, %c0_i32, %c0_i32_0 : i32, i32, i32
  }
  func.func @transform_1(%arg0: i32) -> (i32, i32, i32) {
    %c0_i32 = arith.constant 0 : i32
    %c0_i32_0 = arith.constant 0 : i32
    %c0_i32_1 = arith.constant 0 : i32
    %c0_i32_2 = arith.constant 0 : i32
    return %c0_i32, %c0_i32_0, %c0_i32_1 : i32, i32, i32
  }
  func.func @transform_2(%arg0: i32) -> (i32, i32, i32) {
    %c0_i32 = arith.constant 0 : i32
    %c0_i32_0 = arith.constant 0 : i32
    %c0_i32_1 = arith.constant 0 : i32
    %c0_i32_2 = arith.constant 0 : i32
    return %c0_i32, %c0_i32_0, %c0_i32_1 : i32, i32, i32
  }
  func.func @transform_3(%arg0: i32) -> (i32, i32) {
    %c0_i32 = arith.constant 0 : i32
    %c0_i32_0 = arith.constant 0 : i32
    %c0_i32_1 = arith.constant 0 : i32
    return %c0_i32, %c0_i32_0 : i32, i32
  }
  func.func @transform_4(%arg0: i32) -> (i32, i32, i32) {
    %c0_i32 = arith.constant 0 : i32
    %c0_i32_0 = arith.constant 0 : i32
    %c0_i32_1 = arith.constant 0 : i32
    return %arg0, %c0_i32, %c0_i32_0 : i32, i32, i32
  }
}

</mosaic_0001>

<bundles_post_ra>
// kernel: tpu_custom_call.1
= control target key start
LH: loop header
LB: loop body
LE: loop exit
PB: predicated region body
PF: predicated region fallthrough
CT: control target
= control target key end

     0   :  { %9 = vsyncpa [#allocation4], 0  ;;  %s18992_s0 = inlined_call_operand.hbm [shape: bf16[2,328,128], index: 0, kind: input, shape index: {}]   ;;  %s18993_s1 = inlined_call_operand.hbm [shape: bf16[3,384,128], index: 1, kind: input, shape index: {}]   ;;  %s18994_s2 = inlined_call_operand.hbm [shape: bf16[3,384,128], index: 2, kind: input, shape index: {}]   ;;  %s18995_s3 = inlined_call_operand.vmem [shape: f32[2,128], index: 3, kind: input, shape index: {}]   ;;  %s18996_s4 = inlined_call_operand.hbm [shape: bf16[2,288,128], index: 4, kind: output, shape index: {}]  }
   0x1   :  { %11 = vsyncpa [#allocation4 + $0x1], 0 }
   0x2   :  { %12 = vsyncpa [#allocation7], 0 }
   0x3   :  { %13 = vsyncpa [#allocation5], 0 }
   0x4   :  { %15 = vsyncpa [#allocation5 + $0x1], 0  ;;  %s15044_s15 = smov 0   ;;  %s15046_s16 = smov 0  }
   0x5   :  { %s15048_s17 = smov 0   ;;  %s15050_s18 = smov 0  }
   0x6 LB: > { %s15065_s19 = sadd.s32 4294967295, %s15010_s18   ;;  %s11397_s20 = sadd.s32 4294967294, %s15010_s18   ;;  %s15010_s18 = sphi %s15050_s18, %s19444_s18   ;;  %s15006_s17 = sphi %s15048_s17, %s19443_s17   ;;  %s15002_s16 = sphi %s15046_s16, %s19442_s16   ;;  %s14998_s15 = sphi %s15044_s15, %s19441_s15  }
   0x7   : > { %p41_p0 = scmp.ne.s32.totalorder %s15002_s16, %s14998_s15  ;;  %p42_p1 = scmp.eq.s32.totalorder %s15065_s19, 0 }
   0x8   : > { %p128_p2 = scmp.eq.s32.totalorder %s15065_s19, 1  ;;  %p134_p3 = scmp.eq.s32.totalorder %s11397_s20, 1 }
   0x9   : > { %p15074_p4 = por %p42_p1, %p41_p0  ;;  %p11398_p5 = scmp.ge.s32.totalorder %s15010_s18, 1 }
   0xa   : > { %p15079_p6 = por %p134_p3, %p41_p0  ;;  %p141_p7 = scmp.lt.s32.totalorder %s15010_s18, 3 }
   0xb   : > { %s152_s25 = sshll.u32 %s18993_s1, 4  ;;  %s15012_s27 = smov [#allocation6]   ;;  %s153_s25 = int_to_ptr.hbm [resolvable:$true] %s152_s25 }
   0xc   : > { %p15087_p8 = pnand %p11398_p5, %p141_p7  ;;  %s154_s28 = sshll.u32 %s15012_s27, 4  ;;  %s155_s28 = int_to_ptr.vmem [resolvable:$true] %s154_s28 }
   0xd   : > { %s166_s5 = sshll.u32 %s18994_s2, 4  ;;  %s18997_s6 = smov 64   ;;  %s167_s5 = int_to_ptr.hbm [resolvable:$true] %s166_s5 }
   0xe   : > { %p14761_p9 = pneg %p15087_p8  ;;  %s18998_s7 = smov 4  }
   0xf   : > { %s15015_s8 = smov [#allocation8]   ;;  %s15106_s10 = sadd.s32 1, %s15010_s18  }
  0x10   : > { %p14762_p10 = pnand %p14761_p9, %p42_p1  ;;  %s168_s9 = sshll.u32 %s15015_s8, 4  ;;  %s169_s9 = int_to_ptr.vmem [resolvable:$true] %s168_s9 }
  0x11   : > { %s28_s11 = sadd.s32 1, %s15006_s17  ;;  %s25_s12 = ssub.s32 %s15010_s18, %s15106_s10 }
  0x12   : > { %14764 = dma.hbm_to_vmem [thread:$0]  (!%p14762_p10), %s153_s25, 9216, %s155_s28, [#allocation7], %s18997_s6, %s18997_s6, %s18998_s7  }
  0x13   : > { %14767 = dma.hbm_to_vmem [thread:$0]  (!%p14762_p10), %s167_s5, 9216, %s169_s9, [#allocation7], %s18997_s6, %s18997_s6, %s18998_s7  }
  0x14   : > { %p35_p12 = scmp.ne.s32.totalorder %s15006_s17, %s15002_s16  ;;  %p26_p13 = scmp.eq.s32.totalorder %s25_s12, 0 }
  0x15   : > { %p36_p0 = scmp.eq.s32.totalorder %s15010_s18, 0  ;;  %p14778_p5 = scmp.lt.s32.totalorder %s15010_s18, 2 }
  0x16   : > { %p15116_p3 = por %p128_p2, %p35_p12  ;;  %s185_s20 = sand.u32 1, %s15006_s17  }
  0x17   : > { %s15122_s14 = scalar_select %p26_p13, %s15006_s17, %s28_s11  }
  0x18   : > { %p37_p7 = por %p36_p0, %p35_p12  ;;  %s14744_s23 = smul.u32 164, %s185_s20 }
  0x19   : > { %s14745_s24 = smul.u32 164, %s15010_s18  ;;  %s186_s9 = scalar_lea.sflag [#allocation4], %s185_s20 }
  0x1a   : > { %p15126_p9 = pnand %p14778_p5, %p37_p7  ;;  %s189_s30 = scalar_lea.vmem [#allocation3], %s14744_s23 }
  0x1b   : > { %s194_s29 = scalar_lea.hbm %s18992_s0, %s14745_s24  ;;  %s197_s5 = sshll.u32 %s189_s30, 4  ;;  %s198_s5 = int_to_ptr.vmem [resolvable:$true] %s197_s5 }
  0x1c   : > { %s195_s8 = sshll.u32 %s194_s29, 4  ;;  %p14914_p10 = pneg %p15126_p9  ;;  %s196_s8 = int_to_ptr.hbm [resolvable:$true] %s195_s8 }
  0x1d   : > { %s14910_s11 = sshra.s32 %s196_s8, 4  ;;  %s14917_s27 = scalar_lea.hbm %s18992_s0, 328  ;;  %s14911_s11 = int_to_ptr.hbm [resolvable:$true] %s14910_s11 }
  0x1e   : > { %s14912_s12 = scalar_lea.hbm %s14911_s11, 164  ;;  %p14918_p0 = scmp.lt.s32.totalorder %s14911_s11, %s18992_s0 }
  0x1f   : > { %p14913_p2 = scmp.ne.s32.totalorder %s14911_s11, %s14912_s12  ;;  %p14919_p5 = scmp.lt.s32.totalorder %s14917_s27, %s14912_s12 }
  0x21   : > { %p14915_p12 = pnand %p14914_p10, %p14913_p2  ;;  %p14920_p7 = por %p14919_p5, %p14918_p0 }
  0x23   : > { %p14916_p13 = pneg %p14915_p12 }
  0x25   : > { %p14921_p11 = pnand %p14920_p7, %p14916_p13 }
  0x27   : > { %14924 = shalt.err (!%p14921_p11)
}
  0x28   : > { %s19115_s20 = smov 4   ;;  %s19116_s23 = smov 64  }
  0x29   : > { %14771 = dma.hbm_to_vmem [thread:$0]  (!%p15126_p9), %s196_s8, 2624, %s198_s5, %s186_s9, %s19116_s23, %s19116_s23, %s19115_s20  }
  0x2a   : > { %209 = sbr.rel (%p15087_p8) target bundleno = 1683 (0x693), region = 36 }
  0x2f   : > { %s15149_s6 = sand.u32 1, %s15002_s16  }
  0x30   : > { %s14746_s7 = smul.u32 164, %s15149_s6  ;;  %s212_s29 = scalar_lea.sflag [#allocation4], %s15149_s6 }
  0x32   : > { %s15153_s30 = scalar_lea.vmem [#allocation3], %s14746_s7 }
  0x33   : > { %14985 = dma.done.wait (%p15074_p4), %s212_s29, 2624  }
  0x34   : > { %14987 = vsyncadd (%p15074_p4), %s212_s29, 4294964672 }
  0x35   : > { %14989 = dma.done.wait (%p42_p1), [#allocation7], 18432  }
  0x36   : > { %14991 = vsyncadd (%p42_p1), [#allocation7], 4294948864  ;;  %v13906_v0 = vld [vmem:[#allocation6 + $0xf8] sm:$0xff]  ;;  %v13905_v4 = vld [vmem:[#allocation6 + $0xf0] sm:$0xff]  ;;  %vm19030_vm0 = vsmask.f32 7424 }
  0x37   : > { %v13914_v1 = vld [vmem:[#allocation6 + $0x138] sm:$0xff]  ;;  %1030 = vmatpush.bf16.msra.mxu0 %v13906_v0  ;;  %v13913_v5 = vld [vmem:[#allocation6 + $0x130] sm:$0xff]  ;;  %v13904_v8 = vld [vmem:[#allocation6 + $0xe8] sm:$0xff]  ;;  %vm685_vm1 = vcmask 1046528   ;;  %vm19060_vm2 = vcmask 1045504   ;;  %vm254_vm5 = vcmask 1041408  }
  0x38   : > { %v13922_v2 = vld [vmem:[#allocation6 + $0x178] sm:$0xff]  ;;  %1063 = vmatpush.bf16.msra.mxu1 %v13914_v1  ;;  %v13921_v6 = vld [vmem:[#allocation6 + $0x170] sm:$0xff]  ;;  %v13912_v9 = vld [vmem:[#allocation6 + $0x128] sm:$0xff]  ;;  %vm255_vm6 = vsmask.f32 1280  ;;  %vm260_vm7 = vcmask 1043457  }
  0x39   : > { %v13882_v3 = vld [vmem:[#allocation6 + $0x38] sm:$0xff]  ;;  %1096 = vmatpush.bf16.msra.mxu2 %v13922_v2  ;;  %v13881_v7 = vld [vmem:[#allocation6 + $0x30] sm:$0xff]  ;;  %v13920_v10 = vld [vmem:[#allocation6 + $0x168] sm:$0xff]  ;;  %vm261_vm9 = vsmask.f32 7942  ;;  %s14747_s24 = smul.u32 144, %s15149_s6 }
  0x3a   : > { %1273 = vmatpush.bf16.msra.mxu3 %v13882_v3  ;;  %v13880_v11 = vld [vmem:[#allocation6 + $0x28] sm:$0xff]  ;;  %v13903_v12 = vld [vmem:[#allocation6 + $0xe0] sm:$0xff]  ;;  %v15172_v20 = vld [vmem:[%s15153_s30 + $0x18] sm:$0xff] }
  0x3b   : > { %1031 = vmatpush.bf16.msra.mxu0 %v13905_v4  ;;  %v13911_v13 = vld [vmem:[#allocation6 + $0x120] sm:$0xff]  ;;  %v15168_v18 = vld [vmem:[%s15153_s30 + $0x10] sm:$0xff]  ;;  %v13902_v24 = vld [vmem:[#allocation6 + $0xd8] sm:$0xff]  ;;  %v662_v32 = vshll.u32 %v15172_v20, 16  ;;  %v15185_v45 = vrot.slane %v15172_v20, 1  ;;  %s18025_s20 = scalar_lea.vmem [#allocation9], %s14747_s24 }
  0x3c   : > { %1064 = vmatpush.bf16.msra.mxu1 %v13913_v5  ;;  %v13919_v14 = vld [vmem:[#allocation6 + $0x160] sm:$0xff]  ;;  %v654_v23 = vshll.u32 %v15168_v18, 16  ;;  %v13910_v25 = vld [vmem:[#allocation6 + $0x118] sm:$0xff]  ;;  %v658_v31 = vshrl.u32 %v15168_v18, 16  ;;  %v13901_v36 = vld [vmem:[#allocation6 + $0xd0] sm:$0xff]  ;;  %v15182_v43 = vrot.slane %v15168_v18, 1 }
  0x3d   : > { %1097 = vmatpush.bf16.msra.mxu2 %v13921_v6  ;;  %v13879_v15 = vld [vmem:[#allocation6 + $0x20] sm:$0xff]  ;;  %v13918_v28 = vld [vmem:[#allocation6 + $0x158] sm:$0xff]  ;;  %v13909_v37 = vld [vmem:[#allocation6 + $0x110] sm:$0xff]  ;;  %v664_v42 = vrot.slane %v662_v32, 1  ;;  %s11302_s8 = sshll.u32 %s18025_s20, 4  ;;  %s14960_s24 = scalar_lea.hbm %s18996_s4, 288  ;;  %s11303_s8 = int_to_ptr.vmem [resolvable:$true] %s11302_s8 }
  0x3e   : > { %1274 = vmatpush.bf16.msra.mxu3 %v13881_v7  ;;  %v15164_v16 = vld [vmem:[%s15153_s30 + $0x8] sm:$0xff]   ;;  %v13878_v29 = vld [vmem:[#allocation6 + $0x18] sm:$0xff]  ;;  %v15176_v30 = vrot.slane %v654_v23, 1  ;;  %v13917_v39 = vld [vmem:[#allocation6 + $0x150] sm:$0xff]  ;;  %v15201_v55 = vsel %vm685_vm1, %v15182_v43, %v15185_v45 }
  0x3f   : > { %1032 = vmatpush.bf16.msra.mxu0 %v13904_v8  ;;  %v14496_v17 = vunpack.c.h.b16 %v15164_v16  ;;  %v748_v19 = vld [vmem:[%s15153_s30 + $0x8] sm:$0xe]  ;;  %v13877_v40 = vld [vmem:[#allocation6 + $0x10] sm:$0xff]  ;;  %v15188_v47 = vld [vmem:[%s15153_s30 + $0x20] sm:$0xff]   ;;  %v856_v1 = vrot.slane %v15201_v55, 1 }
  0x40   : > { %1065 = vmatpush.bf16.msra.mxu1 %v13912_v9  ;;  %v758_v21 = vunpack.c.l.b16 %v748_v19  ;;  %v753_v22 = vld [vmem:[%s15153_s30 + $0x8] sm:$0xc]  ;;  %v660_v41 = vor.u32 %v658_v31, %v15176_v30  ;;  %v13900_v48 = vld [vmem:[#allocation6 + $0xc8] sm:$0xff]  ;;  %v15196_v54 = vunpack.c.l.b16 %v15188_v47  ;;  %v13933_v2 = vld [vmem:[#allocation6 + $0x1b8] sm:$0xff] }
  0x41   : > { %1098 = vmatpush.bf16.msra.mxu2 %v13920_v10  ;;  %v793_v27 = vunpack.c.l.b16 %v753_v22  ;;  %v13908_v49 = vld [vmem:[#allocation6 + $0x108] sm:$0xff]  ;;  %v13899_v57 = vld [vmem:[#allocation6 + $0xc0] sm:$0xff]  ;;  %v13941_v3 = vld [vmem:[#allocation6 + $0x1f8] sm:$0xff]  ;;  %v666_v10 = vshrl.u32 %v15172_v20, 16  ;;  %v15222_v22 = vrot.slane %v15188_v47, 1 }
  0x42   : > { %1275 = vmatpush.bf16.msra.mxu3 %v13880_v11  ;;  %v762_v26 = vpack.c.b16 %v14496_v17, %v758_v21  ;;  %v13916_v50 = vld [vmem:[#allocation6 + $0x148] sm:$0xff]  ;;  %v15191_v52 = vsel %vm19030_vm0, %v660_v41, %v664_v42  ;;  %v13907_v58 = vld [vmem:[#allocation6 + $0x100] sm:$0xff]  ;;  %v13898_v8 = vld [vmem:[#allocation6 + $0xb8] sm:$0xff]  ;;  %v777_v11 = vshll.u32 %v15188_v47, 16 }
  0x43   : > { %1033 = vmatpush.bf16.msra.mxu0 %v13903_v12  ;;  %v794_v35 = vpack.c.b16 %v14496_v17, %v793_v27  ;;  %v13876_v51 = vld [vmem:[#allocation6 + $0x8] sm:$0xff]  ;;  %v853_v61 = vrot.slane %v15191_v52, 1  ;;  %v13915_v62 = vld [vmem:[#allocation6 + $0x140] sm:$0xff]  ;;  %v13890_v9 = vld [vmem:[#allocation6 + $0x78] sm:$0xff]  ;;  %v798_v32 = vsel %vm685_vm1, %v15185_v45, %v15222_v22 }
  0x44   : > { %1066 = vmatpush.bf16.msra.mxu1 %v13911_v13  ;;  %v769_v33 = vshrl.u32 %v762_v26, 16  ;;  %v771_v34 = vshll.u32 %v762_v26, 16  ;;  %v850_v59 = vrot.slane %v762_v26, 1  ;;  %v13875_v63 = vld [vmem:[#allocation6] sm:$0xff]  ;;  %v13932_v12 = vld [vmem:[#allocation6 + $0x1b0] sm:$0xff]  ;;  %v13931_v21 = vld [vmem:[#allocation6 + $0x1a8] sm:$0xff] }
  0x45   : > { %1099 = vmatpush.bf16.msra.mxu2 %v13919_v14  ;;  %v795_v46 = vrot.slane %v794_v35, 1  ;;  %v15214_v7 = vld [vmem:[%s15153_s30] sm:$0xff]   ;;  %v13940_v13 = vld [vmem:[#allocation6 + $0x1f0] sm:$0xff]  ;;  %v15219_v14 = vor.u32 %v666_v10, %v664_v42  ;;  %v13939_v23 = vld [vmem:[#allocation6 + $0x1e8] sm:$0xff] }
  0x46   : > { %1276 = vmatpush.bf16.msra.mxu3 %v13879_v15  ;;  %v773_v38 = vrot.slane %v771_v34, 1  ;;  %v851_v4 = vsel %vm685_vm1, %v850_v59, %v15182_v43  ;;  %v779_v15 = vrot.slane %v777_v11, 1  ;;  %v13897_v17 = vld [vmem:[#allocation6 + $0xb0] sm:$0xff]  ;;  %v13896_v27 = vld [vmem:[#allocation6 + $0xa8] sm:$0xff]  ;;  %v13938_v34 = vld [vmem:[#allocation6 + $0x1e0] sm:$0xff] }
  0x47   : > { %1034 = vmatpush.bf16.msra.mxu0 %v13902_v24  ;;  %v796_v56 = vsel %vm685_vm1, %v795_v46, %v15182_v43  ;;  %v13889_v19 = vld [vmem:[#allocation6 + $0x70] sm:$0xff]  ;;  %v15225_v24 = vld [vmem:[%s15153_s30 + $0x28] sm:$0xf]  ;;  %v13937_v41 = vld [vmem:[#allocation6 + $0x1d8] sm:$0xff]  ;;  %v781_v46 = vshrl.u32 %v15188_v47, 16 }
  0x48   : > { %1067 = vmatpush.bf16.msra.mxu1 %v13910_v25  ;;  %v774_v44 = vor.u32 %v773_v38, %v769_v33  ;;  %v855_v0 = vrot.slane %v796_v56, 1  ;;  %v752_v25 = vld [vmem:[%s15153_s30 + $0x2c] sm:$0x3]  ;;  %v780_v26 = vsel %vm19030_vm0, %v15219_v14, %v779_v15  ;;  %v13893_v47 = vld [vmem:[#allocation6 + $0x90] sm:$0xff]  ;;  %vm15625_vm8 = vmand %vm254_vm5, %vm255_vm6 }
  0x49   : > { %1100 = vmatpush.bf16.msra.mxu2 %v13918_v28  ;;  %v13888_v28 = vld [vmem:[#allocation6 + $0x68] sm:$0xff]  ;;  %v766_v31 = vunpack.c.l.b16 %v752_v25  ;;  %v13930_v33 = vld [vmem:[#allocation6 + $0x1a0] sm:$0xff]  ;;  %v858_v35 = vrot.slane %v780_v26, 1  ;;  %v783_v56 = vor.u32 %v781_v46, %v779_v15  ;;  %v13885_v59 = vld [vmem:[#allocation6 + $0x50] sm:$0xff] }
  0x4a   : > { %1277 = vmatpush.bf16.msra.mxu3 %v13878_v29  ;;  %v775_v53 = vsel %vm19030_vm0, %v774_v44, %v15176_v30  ;;  %v857_v6 = vsel %vm685_vm1, %v855_v0, %v856_v1  ;;  %v760_v29 = vunpack.c.l.b16 %v15225_v24  ;;  %v13895_v38 = vld [vmem:[#allocation6 + $0xa0] sm:$0xff]  ;;  %v13991_v24 = vld [vmem:[#allocation6 + $0x138] sm:$0xff]  ;;  %vm15637_vm10 = vmand %vm260_vm7, %vm261_vm9 }
  0x4b   : > { %1035 = vmatpush.bf16.msra.mxu0 %v13901_v36  ;;  %v852_v60 = vrot.slane %v775_v53, 1  ;;  %v860_v36 = vrot.slane %v798_v32, 1  ;;  %v859_v42 = vsel %vm685_vm1, %v853_v61, %v858_v35  ;;  %v13936_v53 = vld [vmem:[#allocation6 + $0x1d0] sm:$0xff]  ;;  %v13926_v10 = vld [vmem:[#allocation6 + $0x180] sm:$0xff] }
  0x4c   : > { %1068 = vmatpush.bf16.msra.mxu1 %v13909_v37  ;;  %v15236_v37 = vpack.c.b16 %v766_v31, %v760_v29  ;;  %v13934_v11 = vld [vmem:[#allocation6 + $0x1c0] sm:$0xff]  ;;  %v13983_v31 = vld [vmem:[#allocation6 + $0xf8] sm:$0xff] }
  0x4d   : > { %1101 = vmatpush.bf16.msra.mxu2 %v13917_v39  ;;  %v854_v5 = vsel %vm685_vm1, %v852_v60, %v853_v61  ;;  %v13887_v39 = vld [vmem:[#allocation6 + $0x60] sm:$0xff]  ;;  %v861_v44 = vsel %vm685_vm1, %v856_v1, %v860_v36  ;;  %v13927_v60 = vld [vmem:[#allocation6 + $0x188] sm:$0xff] }
  0x4e   : > { %1278 = vmatpush.bf16.msra.mxu3 %v13877_v40  ;;  %v13929_v40 = vld [vmem:[#allocation6 + $0x198] sm:$0xff]  ;;  %v13935_v61 = vld [vmem:[#allocation6 + $0x1c8] sm:$0xff] }
  0x4f   : > { %1036 = vmatpush.bf16.msra.mxu0 %v13900_v48  ;;  %v785_v48 = vshll.u32 %v15236_v37, 16 }
  0x50   : > { %1069 = vmatpush.bf16.msra.mxu1 %v13908_v49  ;;  %v13894_v49 = vld [vmem:[#allocation6 + $0x98] sm:$0xff] }
  0x51   : > { %1102 = vmatpush.bf16.msra.mxu2 %v13916_v50  ;;  %v13886_v50 = vld [vmem:[#allocation6 + $0x58] sm:$0xff] }
  0x52   : > { %1279 = vmatpush.bf16.msra.mxu3 %v13876_v51  ;;  %v13928_v51 = vld [vmem:[#allocation6 + $0x190] sm:$0xff] }
  0x53   : > { %1037 = vmatpush.bf16.msra.mxu0 %v13899_v57  ;;  %v787_v57 = vrot.slane %v785_v48, 1 }
  0x54   : > { %1070 = vmatpush.bf16.msra.mxu1 %v13907_v58  ;;  %v799_v58 = vrot.slane %v15236_v37, 1 }
  0x55   : > { %1103 = vmatpush.bf16.msra.mxu2 %v13915_v62  ;;  %v788_v62 = vsel %vm19030_vm0, %v783_v56, %v787_v57  ;;  %v14690_v56 = vld [vmem:[%s15153_s30] sm:$0xf0] }
  0x56   : > { %1280 = vmatpush.bf16.msra.mxu3 %v13875_v63  ;;  %1038 = vmatmul.bf16.vlgmr.msra.gmra.mxu0 %v851_v4  ;;  %v800_v63 = vsel %vm685_vm1, %v15222_v22, %v799_v58  ;;  %v862_v0 = vrot.slane %v788_v62, 1  ;;  %v751_v4 = vld [vmem:[%s15153_s30 + $0x2c] sm:$0x1] }
  0x57   : > { %1071 = vmatmul.bf16.vlgmr.msra.gmra.mxu1 %v854_v5  ;;  %1306 = vmatpush.bf16.msrb.mxu0 %v13890_v9  ;;  %v864_v1 = vrot.slane %v800_v63, 1  ;;  %v761_v5 = vunpack.c.l.b16 %v751_v4  ;;  %v13884_v9 = vld [vmem:[#allocation6 + $0x48] sm:$0xff]  ;;  %v13988_v63 = vld [vmem:[#allocation6 + $0x120] sm:$0xff] }
  0x58   : > { %1104 = vmatmul.bf16.vlgmr.msra.gmra.mxu2 %v857_v6  ;;  %1339 = vmatpush.bf16.msrb.mxu1 %v13898_v8  ;;  %v789_v6 = vshrl.u32 %v15236_v37, 16  ;;  %v13892_v8 = vld [vmem:[#allocation6 + $0x88] sm:$0xff] }
  0x59   : > { %1699 = vmatpush.bf16.msrb.mxu2 %v13933_v2  ;;  %1281 = vmatmul.bf16.vlgmr.msra.gmra.mxu3 %v15214_v7  ;;  %v863_v2 = vsel %vm685_vm1, %v858_v35, %v862_v0  ;;  %v764_v15 = vpack.c.b16 %v761_v5, %v760_v29  ;;  %v13999_v29 = vld [vmem:[#allocation6 + $0x178] sm:$0xff]  ;;  %v13998_v35 = vld [vmem:[#allocation6 + $0x170] sm:$0xff]  ;;  %v13947_v62 = vld [vmem:[#allocation6 + $0x228] sm:$0xff] }
  0x5a   : > { %1732 = vmatpush.bf16.msrb.mxu3 %v13941_v3  ;;  %v865_v3 = vsel %vm685_vm1, %v860_v36, %v864_v1  ;;  %v15268_v36 = vld [vmem:[%s15153_s30 + $0x18] sm:$0xff] }
  0x5b   : > { %1307 = vmatpush.bf16.msrb.mxu0 %v13889_v19  ;;  %v1424_v46 = vshrl.u32 %v15268_v36, 16 }
  0x5c   : > { %1340 = vmatpush.bf16.msrb.mxu1 %v13897_v17  ;;  %v791_v17 = vor.u32 %v789_v6, %v787_v57  ;;  %v14691_v57 = vld [vmem:[%s15153_s30] sm:$0xe] }
  0x5d   : > { %1700 = vmatpush.bf16.msrb.mxu2 %v13932_v12  ;;  %v13891_v12 = vld [vmem:[#allocation6 + $0x80] sm:$0xff] }
  0x5e   : > { %1733 = vmatpush.bf16.msrb.mxu3 %v13940_v13  ;;  %v13883_v13 = vld [vmem:[#allocation6 + $0x40] sm:$0xff]  ;;  %v868_v19 = vrot.slane %v791_v17, 1 }
  0x5f   : > { %1308 = vmatpush.bf16.msrb.mxu0 %v13888_v28  ;;  %v15263_v28 = vld [vmem:[%s15153_s30 + $0x14] sm:$0xf] }
  0x60   : > { %1341 = vmatpush.bf16.msrb.mxu1 %v13896_v27  ;;  %v869_v25 = vsel %vm685_vm1, %v862_v0, %v868_v19  ;;  %v1372_v27 = vld [vmem:[%s15153_s30 + $0x10] sm:$0xc]  ;;  %v639_v0 = vshrl.u32 %v15214_v7, 16 }
  0x61   : > { %1701 = vmatpush.bf16.msrb.mxu2 %v13931_v21  ;;  %v870_v21 = vrot.slane %v799_v58, 1 }
  0x62   : > { %1734 = vmatpush.bf16.msrb.mxu3 %v13939_v23 }
  0x63   : > { %1309 = vmatpush.bf16.msrb.mxu0 %v13887_v39  ;;  %v871_v26 = vsel %vm685_vm1, %v864_v1, %v870_v21  ;;  %v1420_v39 = vshll.u32 %v15268_v36, 16 }
  0x64   : > { %1342 = vmatpush.bf16.msrb.mxu1 %v13895_v38 }
  0x65   : > { %1702 = vmatpush.bf16.msrb.mxu2 %v13930_v33  ;;  %v1394_v33 = vunpack.c.l.b16 %v1372_v27  ;;  %v13980_v27 = vld [vmem:[#allocation6 + $0xe0] sm:$0xff] }
  0x66   : > { %1735 = vmatpush.bf16.msrb.mxu3 %v13938_v34  ;;  %1043 = vmatmul.bf16.gmra.mxu0 %v15201_v55  ;;  %v13990_v34 = vld [vmem:[#allocation6 + $0x130] sm:$0xff] }
  0x67   : > { %1076 = vmatmul.bf16.gmra.mxu1 %v859_v42  ;;  %1310 = vmatpush.bf16.msrb.mxu0 %v13886_v50  ;;  %v13982_v50 = vld [vmem:[#allocation6 + $0xf0] sm:$0xff] }
  0x68   : > { %1109 = vmatmul.bf16.gmra.mxu2 %v861_v44  ;;  %1343 = vmatpush.bf16.msrb.mxu1 %v13894_v49  ;;  %v1422_v44 = vrot.slane %v1420_v39, 1  ;;  %v641_v49 = vshll.u32 %v15214_v7, 16  ;;  %v1514_v7 = vrot.slane %v15268_v36, 2 }
  0x69   : > { %1703 = vmatpush.bf16.msrb.mxu2 %v13929_v40  ;;  %1286 = vmatmul.bf16.gmra.mxu3 %v15164_v16  ;;  %v628_v40 = vpack.c.b16 %v15196_v54, %v15196_v54 }
  0x6a   : > { %1736 = vmatpush.bf16.msrb.mxu3 %v13937_v41  ;;  %v643_v1 = vrot.slane %v641_v49, 1 }
  0x6b   : > { %1311 = vmatpush.bf16.msrb.mxu0 %v13885_v59  ;;  %v1426_v59 = vor.u32 %v1424_v46, %v1422_v44 }
  0x6c   : > { %1344 = vmatpush.bf16.msrb.mxu1 %v13893_v47  ;;  %v13997_v47 = vld [vmem:[#allocation6 + $0x168] sm:$0xff]  ;;  %v644_v6 = vor.u32 %v643_v1, %v639_v0  ;;  %v604_v0 = vld [vmem:[%s15153_s30 + $0x24] sm:$0x1] }
  0x6d   : > { %1704 = vmatpush.bf16.msrb.mxu2 %v13928_v51  ;;  %v13948_v51 = vld [vmem:[#allocation6 + $0x230] sm:$0xff]  ;;  %v635_v1 = vunpack.c.l.b16 %v604_v0 }
  0x6e   : > { %1737 = vmatpush.bf16.msrb.mxu3 %v13936_v53  ;;  %v13989_v53 = vld [vmem:[#allocation6 + $0x128] sm:$0xff] }
  0x6f   : > { %1312 = vmatpush.bf16.msrb.mxu0 %v13884_v9 }
  0x70   : > { %1345 = vmatpush.bf16.msrb.mxu1 %v13892_v8 }
  0x71   : > { %1705 = vmatpush.bf16.msrb.mxu2 %v13927_v60 }
  0x72   : > { %1738 = vmatpush.bf16.msrb.mxu3 %v13935_v61  ;;  %v13981_v61 = vld [vmem:[#allocation6 + $0xe8] sm:$0xff] }
  0x73   : > { %1313 = vmatpush.bf16.msrb.mxu0 %v13883_v13 }
  0x74   : > { %1346 = vmatpush.bf16.msrb.mxu1 %v13891_v12 }
  0x75   : > { %1706 = vmatpush.bf16.msrb.mxu2 %v13926_v10  ;;  %v687_v10 = vrot.slane %v15164_v16, 1 }
  0x76   : > { %1048 = vmatmul.bf16.gmra.mxu0 %v798_v32  ;;  %1739 = vmatpush.bf16.msrb.mxu3 %v13934_v11  ;;  %v13949_v32 = vld [vmem:[#allocation6 + $0x238] sm:$0xff] }
  0x77   : > { %1081 = vmatmul.bf16.gmra.mxu1 %v863_v2  ;;  %1765 = vmatpush.bf16.msra.mxu0 %v13949_v32  ;;  %v646_v2 = vshll.u32 %v15164_v16, 16  ;;  %v690_v49 = vsel %vm685_vm1, %v687_v10, %v15182_v43 }
  0x78   : > { %1114 = vmatmul.bf16.gmra.mxu2 %v865_v3  ;;  %2409 = vmatpush.bf16.msra.mxu1 %v13983_v31  ;;  %v14692_v3 = vor.u32 %v14691_v57, %v14690_v56  ;;  %v13945_v57 = vld [vmem:[#allocation6 + $0x218] sm:$0xff] }
  0x79   : > { %1291 = vmatmul.bf16.gmra.mxu3 %v15168_v18  ;;  %v866_v18 = vrot.slane %v764_v15, 1  ;;  %2442 = vmatpush.bf16.msra.mxu2 %v13991_v24  ;;  %v648_v8 = vrot.slane %v646_v2, 1  ;;  %v15290_v15 = vld [vmem:[%s15153_s30 + $0x28] sm:$0xff] }
  0x7a   : > { %2475 = vmatpush.bf16.msra.mxu3 %v13999_v29  ;;  %v686_v9 = vrot.slane %v14692_v3, 1  ;;  %v13946_v24 = vld [vmem:[#allocation6 + $0x220] sm:$0xff]  ;;  %v13987_v29 = vld [vmem:[#allocation6 + $0x118] sm:$0xff] }
  0x7b   : > { %v867_v23 = vsel %vm685_vm1, %v15222_v22, %v866_v18  ;;  %v1395_v22 = vunpack.c.l.b16 %v15263_v28  ;;  %1766 = vmatpush.bf16.msra.mxu0 %v13948_v51  ;;  %v649_v17 = vsel %vm19030_vm0, %v644_v6, %v648_v8  ;;  %v13979_v51 = vld [vmem:[#allocation6 + $0xd8] sm:$0xff]  ;;  %v13993_v6 = vld [vmem:[#allocation6 + $0x148] sm:$0xff] }
  0x7c   : > { %2410 = vmatpush.bf16.msra.mxu1 %v13982_v50 }
  0x7d   : > { %v1404_v37 = vpack.c.b16 %v1395_v22, %v1394_v33  ;;  %2443 = vmatpush.bf16.msra.mxu2 %v13990_v34  ;;  %v13995_v33 = vld [vmem:[#allocation6 + $0x158] sm:$0xff]  ;;  %v1380_v34 = vld [vmem:[%s15153_s30 + $0x30] sm:$0xf] }
  0x7e   : > { %2476 = vmatpush.bf16.msra.mxu3 %v13998_v35  ;;  %v1382_v35 = vld [vmem:[%s15153_s30 + $0x34] sm:$0x7]  ;;  %v1402_v39 = vunpack.c.l.b16 %v1380_v34  ;;  %v1980_v34 = vld [vmem:[%s15153_s30 + $0x30] sm:$0xf] }
  0x7f   : > { %v1415_v38 = vshll.u32 %v1404_v37, 16  ;;  %v1413_v41 = vshrl.u32 %v1404_v37, 16  ;;  %1767 = vmatpush.bf16.msra.mxu0 %v13947_v62  ;;  %v1513_v11 = vrot.slane %v1404_v37, 2  ;;  %v650_v37 = vshrl.u32 %v15164_v16, 16 }
  0x80   : > { %2411 = vmatpush.bf16.msra.mxu1 %v13981_v61  ;;  %v13944_v61 = vld [vmem:[#allocation6 + $0x210] sm:$0xff]  ;;  %v1528_v62 = vrot.slane %v15290_v15, 2 }
  0x81   : > { %v1417_v42 = vrot.slane %v1415_v38, 1  ;;  %2444 = vmatpush.bf16.msra.mxu2 %v13989_v53  ;;  %v1440_v53 = vshrl.u32 %v15290_v15, 16 }
  0x82   : > { %2477 = vmatpush.bf16.msra.mxu3 %v13997_v47  ;;  %v13986_v47 = vld [vmem:[#allocation6 + $0x110] sm:$0xff] }
  0x83   : > { %v1418_v58 = vor.u32 %v1417_v42, %v1413_v41  ;;  %1768 = vmatpush.bf16.msra.mxu0 %v13946_v24  ;;  %v652_v41 = vor.u32 %v650_v37, %v648_v8  ;;  %v15322_v8 = vpack.c.b16 %v635_v1, %v15196_v54  ;;  %v15347_v37 = vunpack.c.l.b16 %v1980_v34 }
  0x84   : > { %2412 = vmatpush.bf16.msra.mxu1 %v13980_v27 }
  0x85   : > { %v1423_v4 = vsel %vm19030_vm0, %v1418_v58, %v1422_v44  ;;  %2445 = vmatpush.bf16.msra.mxu2 %v13988_v63  ;;  %v693_v54 = vrot.slane %v15322_v8, 1 }
  0x86   : > { %1053 = vmatmul.bf16.gmra.mxu0 %v867_v23  ;;  %v1516_v12 = vrot.slane %v1423_v4, 2  ;;  %v1381_v4 = vld [vmem:[%s15153_s30 + $0x34] sm:$0x3] }
  0x87   : > { %1086 = vmatmul.bf16.gmra.mxu1 %v869_v25  ;;  %v1436_v25 = vshll.u32 %v15290_v15, 16  ;;  %1769 = vmatpush.bf16.msra.mxu0 %v13945_v57  ;;  %v13974_v57 = vld [vmem:[#allocation6 + $0xb0] sm:$0xff] }
  0x88   : > { %1119 = vmatmul.bf16.gmra.mxu2 %v871_v26  ;;  %v13996_v26 = vld [vmem:[#allocation6 + $0x160] sm:$0xff]  ;;  %2413 = vmatpush.bf16.msra.mxu1 %v13979_v51 }
  0x89   : > { %1296 = vmatmul.bf16.gmra.mxu3 %v15172_v20  ;;  %v15273_v20 = vld [vmem:[%s15153_s30 + $0x20] sm:$0xff]  ;;  %v1438_v32 = vrot.slane %v1436_v25, 1  ;;  %2446 = vmatpush.bf16.msra.mxu2 %v13987_v29  ;;  %v694_v29 = vsel %vm685_vm1, %v15185_v45, %v693_v54 }
  0x8a   : > { %v1428_v48 = vshll.u32 %v15273_v20, 16  ;;  %v1432_v23 = vshrl.u32 %v15273_v20, 16  ;;  %2478 = vmatpush.bf16.msra.mxu3 %v13996_v26  ;;  %v1522_v42 = vrot.slane %v15273_v20, 2  ;;  %v13942_v25 = vld [vmem:[#allocation6 + $0x200] sm:$0xff]  ;;  %v13975_v45 = vld [vmem:[#allocation6 + $0xb8] sm:$0xff] }
  0x8b   : > { %1770 = vmatpush.bf16.msra.mxu0 %v13944_v61 }
  0x8c   : > { %v1430_v60 = vrot.slane %v1428_v48, 1  ;;  %v657_v48 = vsel %vm19030_vm0, %v652_v41, %v15176_v30  ;;  %v1523_v50 = vsel %vm19060_vm2, %v1514_v7, %v1522_v42  ;;  %v1442_v30 = vor.u32 %v1440_v53, %v1438_v32  ;;  %v13967_v53 = vld [vmem:[#allocation6 + $0x78] sm:$0xff] }
  0x8d   : > { %2447 = vmatpush.bf16.msra.mxu2 %v13986_v47  ;;  %v1529_v2 = vsel %vm19060_vm2, %v1522_v42, %v1528_v62  ;;  %v674_v47 = vshrl.u32 %v15322_v8, 16 }
  0x8e   : > { %v1431_v5 = vsel %vm19030_vm0, %v1426_v59, %v1430_v60  ;;  %v1434_v31 = vor.u32 %v1432_v23, %v1430_v60  ;;  %2479 = vmatpush.bf16.msra.mxu3 %v13995_v33  ;;  %v13994_v59 = vld [vmem:[#allocation6 + $0x150] sm:$0xff]  ;;  %v13976_v23 = vld [vmem:[#allocation6 + $0xc0] sm:$0xff] }
  0x8f   : > { %v1517_v13 = vrot.slane %v1431_v5, 2  ;;  %v13978_v60 = vld [vmem:[#allocation6 + $0xd0] sm:$0xff]  ;;  %v13985_v5 = vld [vmem:[#allocation6 + $0x108] sm:$0xff] }
  0x90   : > { %v1439_v38 = vsel %vm19030_vm0, %v1434_v31, %v1438_v32  ;;  %2414 = vmatpush.bf16.msra.mxu1 %v13978_v60 }
  0x91   : > { %v1524_v44 = vrot.slane %v1439_v38, 2  ;;  %2448 = vmatpush.bf16.msra.mxu2 %v13985_v5 }
  0x92   : > { %2480 = vmatpush.bf16.msra.mxu3 %v13994_v59 }
  0x93   : > { %v1525_v16 = vsel %vm19060_vm2, %v1517_v13, %v1524_v44 }
  0x96   : > { %1058 = vmatmul.bf16.gmra.mxu0 %v866_v18  ;;  %v688_v18 = vsel %vm685_vm1, %v686_v9, %v687_v10  ;;  %v13977_v9 = vld [vmem:[#allocation6 + $0xc8] sm:$0xff]  ;;  %v1403_v10 = vunpack.c.l.b16 %v1381_v4  ;;  %2481 = vmatpush.bf16.msra.mxu3 %v13993_v6 }
  0x97   : > { %1091 = vmatmul.bf16.gmra.mxu1 %v868_v19  ;;  %v1515_v19 = vsel %vm19060_vm2, %v1513_v11, %v1514_v7  ;;  %v670_v7 = vshll.u32 %v15322_v8, 16 }
  0x98   : > { %1124 = vmatmul.bf16.gmra.mxu2 %v870_v21  ;;  %v1518_v21 = vsel %vm19060_vm2, %v1516_v12, %v1517_v13  ;;  %2415 = vmatpush.bf16.msra.mxu1 %v13977_v9  ;;  %v15326_v12 = vpack.c.b16 %v1403_v10, %v1402_v39 }
  0x99   : > { %1301 = vmatmul.bf16.gmra.mxu3 %v628_v40  ;;  %v1410_v40 = vunpack.c.l.b16 %v1382_v35  ;;  %v2128_v35 = vld [vmem:[%s15153_s30 + $0x2c] sm:$0xe] }
  0x9a   : > { %v2138_v38 = vunpack.c.l.b16 %v2128_v35 }
  0x9b   : > { %v15303_v46 = vpack.c.b16 %v1410_v40, %v1402_v39 }
  0x9c   : > { %2416 = vmatpush.bf16.msra.mxu1 %v13976_v23 }
  0x9d   : > { %v1444_v56 = vshll.u32 %v15303_v46, 16  ;;  %v1448_v11 = vshrl.u32 %v15303_v46, 16 }
  0x9f   : > { %v1446_v58 = vrot.slane %v1444_v56, 1  ;;  %v13959_v56 = vld [vmem:[#allocation6 + $0x38] sm:$0xff] }
  0xa1   : > { %v1447_v43 = vsel %vm19030_vm0, %v1442_v30, %v1446_v58  ;;  %v15328_v13 = vor.u32 %v1448_v11, %v1446_v58  ;;  %v2133_v58 = vld [vmem:[%s15153_s30 + $0x2c] sm:$0xc] }
  0xa2   : > { %v1530_v63 = vrot.slane %v1447_v43, 2  ;;  %v15361_v43 = vld [vmem:[%s15153_s30 + $0x3c] sm:$0xff]  ;;  %v2173_v61 = vunpack.c.l.b16 %v2133_v58 }
  0xa3   : > { %v2043_v9 = vshll.u32 %v15361_v43, 16 }
  0xa4   : > { %v1531_v3 = vsel %vm19060_vm2, %v1524_v44, %v1530_v63 }
  0xa6   : > { %1314 = vmatmul.bf16.vlgmr.msrb.gmra.mxu0 %v649_v17  ;;  %v13992_v17 = vld [vmem:[#allocation6 + $0x140] sm:$0xff] }
  0xa7   : > { %1347 = vmatmul.bf16.vlgmr.msrb.gmra.mxu1 %v688_v18  ;;  %v672_v18 = vrot.slane %v670_v7, 1  ;;  %2482 = vmatpush.bf16.msra.mxu3 %v13992_v17  ;;  %v14009_v17 = vld [vmem:[#allocation6 + $0x1b0] sm:$0xff] }
  0xa8   : > { %1707 = vmatmul.bf16.vlgmr.msrb.gmra.mxu2 %v1515_v19  ;;  %v1534_v19 = vrot.slane %v15326_v12, 2  ;;  %2685 = vmatpush.bf16.msrb.mxu1 %v13967_v53  ;;  %v15388_v12 = vrot.slane %v15361_v43, 1 }
  0xa9   : > { %1740 = vmatmul.bf16.vlgmr.msrb.gmra.mxu3 %v1518_v21  ;;  %v1536_v21 = vrot.slane %v15328_v13, 2  ;;  %v673_v24 = vsel %vm19030_vm0, %v15219_v14, %v672_v18  ;;  %v14010_v14 = vld [vmem:[#allocation6 + $0x1b8] sm:$0xff]  ;;  %v676_v0 = vor.u32 %v674_v47, %v672_v18  ;;  %v1457_v18 = vrot.slane %v15273_v20, 1 }
  0xaa   : > { %v1535_v32 = vsel %vm19060_vm2, %v1528_v62, %v1534_v19  ;;  %v1985_v13 = vld [vmem:[%s15153_s30 + $0x44] sm:$0xf] }
  0xab   : > { %v1537_v33 = vsel %vm19060_vm2, %v1530_v63, %v1536_v21  ;;  %3076 = vmatpush.bf16.msrb.mxu3 %v14010_v14  ;;  %v13971_v20 = vld [vmem:[#allocation6 + $0x98] sm:$0xff] }
  0xaf   : > { %3077 = vmatpush.bf16.msrb.mxu3 %v14009_v17  ;;  %v14007_v17 = vld [vmem:[#allocation6 + $0x1a0] sm:$0xff] }
  0xb6   : > { %1319 = vmatmul.bf16.gmra.mxu0 %v657_v48  ;;  %v1383_v48 = vld [vmem:[%s15153_s30 + $0x10] sm:$0x8] }
  0xb7   : > { %1352 = vmatmul.bf16.gmra.mxu1 %v690_v49  ;;  %v15351_v49 = vld [vmem:[%s15153_s30 + $0x34] sm:$0xff]  ;;  %v1452_v30 = vunpack.c.l.b16 %v1383_v48 }
  0xb8   : > { %1712 = vmatmul.bf16.gmra.mxu2 %v1523_v50  ;;  %v2035_v59 = vshll.u32 %v15351_v49, 16  ;;  %v2039_v6 = vshrl.u32 %v15351_v49, 16  ;;  %v14008_v48 = vld [vmem:[#allocation6 + $0x1a8] sm:$0xff] }
  0xb9   : > { %1745 = vmatmul.bf16.gmra.mxu3 %v1525_v16  ;;  %v15354_v16 = vpack.c.b16 %v15347_v37, %v2138_v38  ;;  %v1453_v1 = vpack.c.b16 %v1395_v22, %v1452_v30  ;;  %v1455_v22 = vrot.slane %v15268_v36, 1  ;;  %v15405_v38 = vunpack.c.l.b16 %v1985_v13 }
  0xba   : > { %v15367_v5 = vrot.slane %v2035_v59, 1  ;;  %3078 = vmatpush.bf16.msrb.mxu3 %v14008_v48 }
  0xbb   : > { %v2151_v60 = vshll.u32 %v15354_v16, 16  ;;  %v2149_v11 = vshrl.u32 %v15354_v16, 16  ;;  %v1454_v28 = vrot.slane %v1453_v1, 1  ;;  %v15398_v34 = vsel %vm685_vm1, %v1455_v22, %v1457_v18 }
  0xbc   : > { %v2041_v23 = vor.u32 %v2039_v6, %v15367_v5 }
  0xbd   : > { %v2153_v7 = vrot.slane %v2151_v60, 1 }
  0xbe   : > { %3079 = vmatpush.bf16.msrb.mxu3 %v14007_v17 }
  0xbf   : > { %v2154_v8 = vor.u32 %v2153_v7, %v2149_v11  ;;  %v13957_v7 = vld [vmem:[#allocation6 + $0x28] sm:$0xff] }
  0xc1   : > { %v2155_v14 = vsel %vm19030_vm0, %v2154_v8, %v15367_v5  ;;  %v2132_v8 = vld [vmem:[%s15153_s30 + $0x50] sm:$0x3] }
  0xc2   : > { %v2231_v47 = vrot.slane %v2155_v14, 1  ;;  %v13964_v14 = vld [vmem:[#allocation6 + $0x60] sm:$0xff] }
  0xc6   : > { %1324 = vmatmul.bf16.gmra.mxu0 %v15191_v52  ;;  %v13943_v52 = vld [vmem:[#allocation6 + $0x208] sm:$0xff] }
  0xc7   : > { %1357 = vmatmul.bf16.gmra.mxu1 %v15201_v55  ;;  %v13984_v55 = vld [vmem:[#allocation6 + $0x100] sm:$0xff]  ;;  %1771 = vmatpush.bf16.msra.mxu0 %v13943_v52 }
  0xc8   : > { %1717 = vmatmul.bf16.gmra.mxu2 %v1529_v2 }
  0xc9   : > { %1750 = vmatmul.bf16.gmra.mxu3 %v1531_v3  ;;  %2449 = vmatpush.bf16.msra.mxu2 %v13984_v55  ;;  %v2174_v55 = vpack.c.b16 %v15347_v37, %v2173_v61 }
  0xcb   : > { %1772 = vmatpush.bf16.msra.mxu0 %v13942_v25  ;;  %v2045_v25 = vrot.slane %v2043_v9, 1  ;;  %v2047_v9 = vshrl.u32 %v15361_v43, 16 }
  0xcd   : > { %2718 = vmatpush.bf16.msrb.mxu2 %v13975_v45  ;;  %v15401_v35 = vsel %vm19030_vm0, %v2041_v23, %v2045_v25 }
  0xce   : > { %v2232_v30 = vrot.slane %v15401_v35, 1 }
  0xcf   : > { %2652 = vmatpush.bf16.msrb.mxu0 %v13959_v56  ;;  %v1520_v56 = vrot.slane %v15398_v34, 2  ;;  %v13963_v34 = vld [vmem:[#allocation6 + $0x58] sm:$0xff] }
  0xd1   : > { %2719 = vmatpush.bf16.msrb.mxu2 %v13974_v57  ;;  %v2229_v57 = vrot.slane %v15354_v16, 1 }
  0xd3   : > { %v1039_v26 = vpop.f32.mrf.mxu0 }
  0xd4   : > { %v1072_v27 = vpop.f32.mrf.mxu1 }
  0xd5   : > { %v1073_v31 = vadd.f32 %v1072_v27, %v1039_v26  ;;  %v13966_v26 = vld [vmem:[#allocation6 + $0x70] sm:$0xff] }
  0xd6   : > { %1329 = vmatmul.bf16.gmra.mxu0 %v673_v24  ;;  %v13958_v27 = vld [vmem:[#allocation6 + $0x30] sm:$0xff]  ;;  %2686 = vmatpush.bf16.msrb.mxu1 %v13966_v26 }
  0xd7   : > { %1362 = vmatmul.bf16.gmra.mxu1 %v694_v29  ;;  %2653 = vmatpush.bf16.msrb.mxu0 %v13958_v27 }
  0xd8   : > { %1722 = vmatmul.bf16.gmra.mxu2 %v1535_v32 }
  0xd9   : > { %1755 = vmatmul.bf16.gmra.mxu3 %v1537_v33  ;;  %v1456_v33 = vsel %vm685_vm1, %v1454_v28, %v1455_v22  ;;  %v1459_v28 = vrot.slane %v15290_v15, 1  ;;  %v15440_v22 = vor.u32 %v2047_v9, %v2045_v25 }
  0xda   : > { %v1519_v53 = vrot.slane %v1456_v33, 2 }
  0xdb   : > { %v1105_v39 = vpop.f32.mrf.mxu2  ;;  %v1041_v42 = vpop.f32.mrf.mxu0  ;;  %2654 = vmatpush.bf16.msrb.mxu0 %v13957_v7  ;;  %v15451_v25 = vsel %vm685_vm1, %v1457_v18, %v1459_v28 }
  0xdc   : > { %v1282_v40 = vpop.f32.mrf.mxu3  ;;  %v1106_v41 = vadd.f32 %v1105_v39, %v1073_v31  ;;  %v1074_v44 = vpop.f32.mrf.mxu1  ;;  %v1521_v16 = vsel %vm19060_vm2, %v1519_v53, %v1520_v56  ;;  %v1526_v18 = vrot.slane %v15451_v25, 2 }
  0xdd   : > { %v1075_v50 = vadd.f32 %v1074_v44, %v1041_v42  ;;  %v13973_v44 = vld [vmem:[#allocation6 + $0xa8] sm:$0xff] }
  0xde   : > { %v15356_v51 = vadd.f32 %v1282_v40, %v1106_v41  ;;  %2720 = vmatpush.bf16.msrb.mxu2 %v13973_v44 }
  0xe3   : > { %v1107_v62 = vpop.f32.mrf.mxu2  ;;  %v1044_v3 = vpop.f32.mrf.mxu0 }
  0xe4   : > { %v1284_v63 = vpop.f32.mrf.mxu3  ;;  %v1108_v2 = vadd.f32 %v1107_v62, %v1075_v50  ;;  %v1077_v4 = vpop.f32.mrf.mxu1  ;;  %v13965_v50 = vld [vmem:[#allocation6 + $0x68] sm:$0xff] }
  0xe5   : > { %v1078_v10 = vadd.f32 %v1077_v4, %v1044_v3  ;;  %2687 = vmatpush.bf16.msrb.mxu1 %v13965_v50  ;;  %v2233_v3 = vsel %vm685_vm1, %v2231_v47, %v2232_v30 }
  0xe6   : > { %v15372_v52 = vadd.f32 %v1284_v63, %v1108_v2  ;;  %1334 = vmatmul.bf16.gmra.mxu0 %v676_v0 }
  0xe7   : > { %1367 = vmatmul.bf16.gmra.mxu1 %v693_v54  ;;  %v15385_v54 = vrot.slane %v15351_v49, 1 }
  0xe8   : > { %1727 = vmatmul.bf16.gmra.mxu2 %v1534_v19  ;;  %v2175_v19 = vrot.slane %v2174_v55, 1  ;;  %v13972_v55 = vld [vmem:[#allocation6 + $0xa0] sm:$0xff] }
  0xe9   : > { %1760 = vmatmul.bf16.gmra.mxu3 %v1536_v21  ;;  %v15392_v21 = vld [vmem:[%s15153_s30 + $0x48] sm:$0xff]   ;;  %v15413_v41 = vsel %vm685_vm1, %v15385_v54, %v15388_v12  ;;  %v2230_v2 = vsel %vm685_vm1, %v2229_v57, %v15385_v54  ;;  %2721 = vmatpush.bf16.msrb.mxu2 %v13972_v55 }
  0xea   : > { %v14503_v39 = vunpack.c.l.b16 %v15392_v21  ;;  %v2176_v42 = vsel %vm685_vm1, %v2175_v19, %v15385_v54  ;;  %v2235_v59 = vrot.slane %v15413_v41, 1  ;;  %v14504_v33 = vunpack.c.h.b16 %v15392_v21  ;;  %2688 = vmatpush.bf16.msrb.mxu1 %v13964_v14 }
  0xeb   : > { %v1110_v36 = vpop.f32.mrf.mxu2  ;;  %v1046_v31 = vpop.f32.mrf.mxu0  ;;  %v2234_v58 = vrot.slane %v2176_v42, 1  ;;  %v14006_v42 = vld [vmem:[#allocation6 + $0x198] sm:$0xff] }
  0xec   : > { %v1287_v24 = vpop.f32.mrf.mxu3  ;;  %v1111_v29 = vadd.f32 %v1110_v36, %v1078_v10  ;;  %v1079_v32 = vpop.f32.mrf.mxu1  ;;  %v15422_v60 = vpack.c.b16 %v14503_v39, %v15405_v38  ;;  %v13956_v39 = vld [vmem:[#allocation6 + $0x20] sm:$0xff]  ;;  %3080 = vmatpush.bf16.msrb.mxu3 %v14006_v42  ;;  %v13969_v42 = vld [vmem:[#allocation6 + $0x88] sm:$0xff] }
  0xed   : > { %v1080_v45 = vadd.f32 %v1079_v32, %v1046_v31  ;;  %v2236_v6 = vsel %vm685_vm1, %v2234_v58, %v2235_v59  ;;  %2655 = vmatpush.bf16.msrb.mxu0 %v13956_v39  ;;  %2722 = vmatpush.bf16.msrb.mxu2 %v13971_v20 }
  0xee   : > { %v15408_v40 = vadd.f32 %v1287_v24, %v1111_v29  ;;  %v2157_v10 = vshll.u32 %v15422_v60, 16  ;;  %v15443_v43 = vrot.slane %v15422_v60, 1  ;;  %2689 = vmatpush.bf16.msrb.mxu1 %v13963_v34 }
  0xf0   : > { %v2159_v23 = vrot.slane %v2157_v10, 1  ;;  %v15462_v32 = vsel %vm685_vm1, %v15388_v12, %v15443_v43 }
  0xf1   : > { %v2239_v48 = vrot.slane %v15462_v32, 1 }
  0xf2   : > { %v15455_v29 = vsel %vm19030_vm0, %v15440_v22, %v2159_v23 }
  0xf3   : > { %v1112_v61 = vpop.f32.mrf.mxu2  ;;  %v1049_v0 = vpop.f32.mrf.mxu0  ;;  %v2237_v44 = vrot.slane %v15455_v29, 1 }
  0xf4   : > { %v1289_v62 = vpop.f32.mrf.mxu3  ;;  %v1113_v63 = vadd.f32 %v1112_v61, %v1080_v45  ;;  %v1082_v1 = vpop.f32.mrf.mxu1  ;;  %v2146_v45 = vunpack.c.l.b16 %v2132_v8 }
  0xf5   : > { %v1083_v4 = vadd.f32 %v1082_v1, %v1049_v0  ;;  %v2238_v0 = vsel %vm685_vm1, %v2232_v30, %v2237_v44  ;;  %v2240_v1 = vsel %vm685_vm1, %v2235_v59, %v2239_v48  ;;  %v1461_v30 = vrot.slane %v15303_v46, 1 }
  0xf6   : > { %v15437_v11 = vadd.f32 %v1289_v62, %v1113_v63  ;;  %1773 = vmatmul.bf16.vlgmr.msra.gmra.mxu0 %v1521_v16  ;;  %v15470_v50 = vpack.c.b16 %v2146_v45, %v14504_v33  ;;  %v1527_v62 = vsel %vm19060_vm2, %v1520_v56, %v1526_v18  ;;  %v13955_v56 = vld [vmem:[#allocation6 + $0x18] sm:$0xff] }
  0xf7   : > { %2417 = vmatmul.bf16.vlgmr.msra.gmra.mxu1 %v2230_v2  ;;  %v2161_v2 = vshrl.u32 %v15422_v60, 16  ;;  %2656 = vmatpush.bf16.msrb.mxu0 %v13955_v56  ;;  %v1462_v8 = vsel %vm685_vm1, %v1459_v28, %v1461_v30  ;;  %v13953_v56 = vld [vmem:[#allocation6 + $0x8] sm:$0xff] }
  0xf8   : > { %2450 = vmatmul.bf16.vlgmr.msra.gmra.mxu2 %v2233_v3  ;;  %v2165_v3 = vshll.u32 %v15470_v50, 16  ;;  %v2179_v59 = vrot.slane %v15470_v50, 1 }
  0xf9   : > { %2483 = vmatmul.bf16.vlgmr.msra.gmra.mxu3 %v2236_v6  ;;  %v2163_v6 = vor.u32 %v2161_v2, %v2159_v23 }
  0xfa   : > { %v2167_v9 = vrot.slane %v2165_v3, 1  ;;  %v2180_v23 = vsel %vm685_vm1, %v15443_v43, %v2179_v59 }
  0xfb   : > { %v1115_v26 = vpop.f32.mrf.mxu2  ;;  %v1051_v13 = vpop.f32.mrf.mxu0  ;;  %v2243_v29 = vrot.slane %v2180_v23, 1 }
  0xfc   : > { %v1292_v27 = vpop.f32.mrf.mxu3  ;;  %v1116_v19 = vadd.f32 %v1115_v26, %v1083_v4  ;;  %v1084_v36 = vpop.f32.mrf.mxu1  ;;  %v13970_v4 = vld [vmem:[#allocation6 + $0x90] sm:$0xff]  ;;  %v2168_v46 = vsel %vm19030_vm0, %v2163_v6, %v2167_v9  ;;  %v13968_v6 = vld [vmem:[#allocation6 + $0x80] sm:$0xff] }
  0xfd   : > { %v1085_v24 = vadd.f32 %v1084_v36, %v1051_v13  ;;  %2723 = vmatpush.bf16.msrb.mxu2 %v13970_v4  ;;  %v14005_v26 = vld [vmem:[#allocation6 + $0x190] sm:$0xff]  ;;  %v2241_v25 = vrot.slane %v2168_v46, 1 }
  0xfe   : > { %v15457_v31 = vadd.f32 %v1292_v27, %v1116_v19  ;;  %3081 = vmatpush.bf16.msrb.mxu3 %v14005_v26  ;;  %v13962_v13 = vld [vmem:[#allocation6 + $0x50] sm:$0xff]  ;;  %v13952_v26 = vld [vmem:[#allocation6] sm:$0xff] }
  0xff   : > { %v13954_v36 = vld [vmem:[#allocation6 + $0x10] sm:$0xff]  ;;  %2690 = vmatpush.bf16.msrb.mxu1 %v13962_v13 }
 0x100   : > { %2657 = vmatpush.bf16.msrb.mxu0 %v13954_v36  ;;  %v14060_v36 = vld [vmem:[#allocation6 + $0xf8] sm:$0xff] }
 0x101   : > { %2724 = vmatpush.bf16.msrb.mxu2 %v13969_v42  ;;  %v14018_v42 = vld [vmem:[#allocation6 + $0x1f8] sm:$0xff] }
 0x103   : > { %v1117_v53 = vpop.f32.mrf.mxu2  ;;  %v1054_v58 = vpop.f32.mrf.mxu0 }
 0x104   : > { %v1294_v57 = vpop.f32.mrf.mxu3  ;;  %v1118_v47 = vadd.f32 %v1117_v53, %v1085_v24  ;;  %v1087_v61 = vpop.f32.mrf.mxu1  ;;  %v1532_v24 = vrot.slane %v1462_v8, 2  ;;  %2658 = vmatpush.bf16.msrb.mxu0 %v13953_v56 }
 0x105   : > { %v1088_v63 = vadd.f32 %v1087_v61, %v1054_v58  ;;  %v2131_v58 = vld [vmem:[%s15153_s30 + $0x50] sm:$0x1]  ;;  %2725 = vmatpush.bf16.msrb.mxu2 %v13968_v6 }
 0x106   : > { %v15481_v16 = vadd.f32 %v1294_v57, %v1118_v47  ;;  %1778 = vmatmul.bf16.gmra.mxu0 %v1527_v62  ;;  %v1533_v20 = vsel %vm19060_vm2, %v1526_v18, %v1532_v24  ;;  %v2242_v57 = vsel %vm685_vm1, %v2237_v44, %v2241_v25  ;;  %v2244_v47 = vsel %vm685_vm1, %v2239_v48, %v2243_v29  ;;  %v14004_v62 = vld [vmem:[#allocation6 + $0x188] sm:$0xff] }
 0x107   : > { %2422 = vmatmul.bf16.gmra.mxu1 %v15413_v41  ;;  %v2169_v18 = vshrl.u32 %v15470_v50, 16  ;;  %3082 = vmatpush.bf16.msrb.mxu3 %v14004_v62  ;;  %v1538_v50 = vrot.slane %v1461_v30, 2 }
 0x108   : > { %2455 = vmatmul.bf16.gmra.mxu2 %v2238_v0  ;;  %v13961_v0 = vld [vmem:[#allocation6 + $0x48] sm:$0xff]  ;;  %2659 = vmatpush.bf16.msrb.mxu0 %v13952_v26 }
 0x109   : > { %2488 = vmatmul.bf16.gmra.mxu3 %v2240_v1  ;;  %2691 = vmatpush.bf16.msrb.mxu1 %v13961_v0  ;;  %v1539_v8 = vsel %vm19060_vm2, %v1532_v24, %v1538_v50  ;;  %v14068_v24 = vld [vmem:[#allocation6 + $0x138] sm:$0xff] }
 0x10a   : > { %3765 = vmatpush.bf16.msra.mxu2 %v14060_v36 }
 0x10b   : > { %v1120_v60 = vpop.f32.mrf.mxu2  ;;  %v1056_v55 = vpop.f32.mrf.mxu0 }
 0x10c   : > { %v1297_v10 = vpop.f32.mrf.mxu3  ;;  %v1121_v7 = vadd.f32 %v1120_v60, %v1088_v63  ;;  %v1089_v17 = vpop.f32.mrf.mxu1  ;;  %v2141_v63 = vunpack.c.l.b16 %v2131_v58  ;;  %v14003_v60 = vld [vmem:[#allocation6 + $0x180] sm:$0xff]  ;;  %3109 = vmatpush.bf16.msra.mxu0 %v14018_v42 }
 0x10d   : > { %v1090_v27 = vadd.f32 %v1089_v17, %v1056_v55  ;;  %v2249_v55 = vrot.slane %v2179_v59, 1  ;;  %3083 = vmatpush.bf16.msrb.mxu3 %v14003_v60  ;;  %v14025_v60 = vld [vmem:[#allocation6 + $0x230] sm:$0xff] }
 0x10e   : > { %v15491_v19 = vadd.f32 %v1297_v10, %v1121_v7  ;;  %v15506_v34 = vpack.c.b16 %v2141_v63, %v14504_v33  ;;  %v13960_v33 = vld [vmem:[#allocation6 + $0x40] sm:$0xff] }
 0x10f   : > { %v2250_v13 = vsel %vm685_vm1, %v2243_v29, %v2249_v55  ;;  %2692 = vmatpush.bf16.msrb.mxu1 %v13960_v33 }
 0x110   : > { %v2245_v10 = vrot.slane %v15506_v34, 1  ;;  %v15537_v34 = vld [vmem:[%s15153_s30 + $0x38] sm:$0xf] }
 0x111   : > { %3798 = vmatpush.bf16.msra.mxu3 %v14068_v24  ;;  %v19001_v33 = vunpack.c.l.b16 %v15537_v34  ;;  %v14066_v24 = vld [vmem:[#allocation6 + $0x128] sm:$0xff] }
 0x112   : > { %v2246_v46 = vsel %vm685_vm1, %v15443_v43, %v2245_v10 }
 0x113   : > { %v1122_v45 = vpop.f32.mrf.mxu2  ;;  %v1059_v28 = vpop.f32.mrf.mxu0 }
 0x114   : > { %v1299_v15 = vpop.f32.mrf.mxu3  ;;  %v1123_v14 = vadd.f32 %v1122_v45, %v1090_v27  ;;  %v1092_v39 = vpop.f32.mrf.mxu1 }
 0x115   : > { %v1093_v53 = vadd.f32 %v1092_v39, %v1059_v28  ;;  %v14693_v28 = vld [vmem:[%s15153_s30 + $0x28] sm:$0xff]  }
 0x116   : > { %v15500_v61 = vadd.f32 %v1299_v15, %v1123_v14  ;;  %1783 = vmatmul.bf16.gmra.mxu0 %v1533_v20  ;;  %v1977_v14 = vld [vmem:[%s15153_s30 + $0x24] sm:$0xf] }
 0x117   : > { %2427 = vmatmul.bf16.gmra.mxu1 %v15462_v32  ;;  %v15508_v32 = vor.u32 %v2169_v18, %v2167_v9  ;;  %v14026_v20 = vld [vmem:[#allocation6 + $0x238] sm:$0xff]  ;;  %v14500_v18 = vunpack.c.h.b16 %v14693_v28 }
 0x118   : > { %2460 = vmatmul.bf16.gmra.mxu2 %v2242_v57  ;;  %v14499_v57 = vunpack.c.l.b16 %v14693_v28  ;;  %3142 = vmatpush.bf16.msra.mxu1 %v14026_v20 }
 0x119   : > { %2493 = vmatmul.bf16.gmra.mxu3 %v2244_v47  ;;  %v2247_v7 = vrot.slane %v15508_v32, 1  ;;  %v1997_v47 = vunpack.c.l.b16 %v1977_v14  ;;  %v15542_v32 = vpack.c.b16 %v15347_v37, %v14500_v18 }
 0x11b   : > { %v1125_v1 = vpop.f32.mrf.mxu2  ;;  %v1061_v48 = vpop.f32.mrf.mxu0  ;;  %v2248_v23 = vsel %vm685_vm1, %v2241_v25, %v2247_v7  ;;  %v2067_v14 = vrot.slane %v15542_v32, 1 }
 0x11c   : > { %v1302_v44 = vpop.f32.mrf.mxu3  ;;  %v1126_v2 = vadd.f32 %v1125_v1, %v1093_v53  ;;  %v1094_v3 = vpop.f32.mrf.mxu1  ;;  %v14059_v53 = vld [vmem:[#allocation6 + $0xf0] sm:$0xff]  ;;  %v15531_v1 = vpack.c.b16 %v14499_v57, %v1997_v47  ;;  %v1987_v48 = vld [vmem:[%s15153_s30 + $0x24] sm:$0xe]  ;;  %3143 = vmatpush.bf16.msra.mxu1 %v14025_v60 }
 0x11d   : > { %3766 = vmatpush.bf16.msra.mxu2 %v14059_v53  ;;  %v2751_v3 = vld [vmem:[%s15153_s30 + $0x34] sm:$0xc]  ;;  %v14057_v60 = vld [vmem:[#allocation6 + $0xe0] sm:$0xff] }
 0x11e   : > { %v15510_v4 = vadd.f32 %v1302_v44, %v1126_v2  ;;  %v14067_v44 = vld [vmem:[#allocation6 + $0x130] sm:$0xff]  ;;  %v2022_v6 = vshll.u32 %v15531_v1, 16  ;;  %v2020_v37 = vshrl.u32 %v15531_v1, 16 }
 0x11f   : > { %3799 = vmatpush.bf16.msra.mxu3 %v14067_v44 }
 0x123   : > { %v1127_v17 = vpop.f32.mrf.mxu2  ;;  %v1315_v27 = vpop.f32.mrf.mxu0  ;;  %3800 = vmatpush.bf16.msra.mxu3 %v14066_v24 }
 0x124   : > { %v1304_v21 = vpop.f32.mrf.mxu3  ;;  %v1348_v9 = vpop.f32.mrf.mxu1  ;;  %v1316_v30 = vadd.f32 %v1315_v27, %v15356_v51  ;;  %v14017_v17 = vld [vmem:[#allocation6 + $0x1f0] sm:$0xff] }
 0x125   : > { %v2064_v21 = vunpack.c.l.b16 %v1987_v48  ;;  %3110 = vmatpush.bf16.msra.mxu0 %v14017_v17 }
 0x126   : > { %v15520_v59 = vadd.f32 %v1348_v9, %v1316_v30  ;;  %1788 = vmatmul.bf16.gmra.mxu0 %v1539_v8  ;;  %v2027_v9 = vshll.u32 %v15542_v32, 16  ;;  %v14058_v8 = vld [vmem:[#allocation6 + $0xe8] sm:$0xff] }
 0x127   : > { %2432 = vmatmul.bf16.gmra.mxu1 %v2246_v46  ;;  %v2065_v30 = vpack.c.b16 %v14499_v57, %v2064_v21  ;;  %3767 = vmatpush.bf16.msra.mxu2 %v14058_v8 }
 0x128   : > { %2465 = vmatmul.bf16.gmra.mxu2 %v2248_v23  ;;  %v15552_v23 = vld [vmem:[%s15153_s30 + $0x3c] sm:$0xff] }
 0x129   : > { %2498 = vmatmul.bf16.gmra.mxu3 %v2250_v13  ;;  %v2891_v28 = vrot.slane %v15552_v23, 2 }
 0x12b   : > { %v1708_v43 = vpop.f32.mrf.mxu2  ;;  %v1317_v25 = vpop.f32.mrf.mxu0  ;;  %3768 = vmatpush.bf16.msra.mxu2 %v14057_v60 }
 0x12c   : > { %v1741_v51 = vpop.f32.mrf.mxu3  ;;  %v1350_v29 = vpop.f32.mrf.mxu1  ;;  %v1318_v15 = vadd.f32 %v1317_v25, %v15372_v52  ;;  %v2029_v25 = vrot.slane %v2027_v9, 1 }
 0x12d   : > { %v15522_v45 = vadd.f32 %v1741_v51, %v1708_v43  ;;  %v14024_v43 = vld [vmem:[#allocation6 + $0x228] sm:$0xff] }
 0x12e   : > { %v15527_v39 = vadd.f32 %v1350_v29, %v1318_v15  ;;  %v270_v29 = vlaneseq  ;;  %v2066_v15 = vrot.slane %v2065_v30, 1  ;;  %3144 = vmatpush.bf16.msra.mxu1 %v14024_v43 }
 0x130   : > { %v15563_v20 = vshrl.u32 %v270_v29, 7  ;;  %v2068_v44 = vsel %vm685_vm1, %v2066_v15, %v2067_v14  ;;  %v14015_v29 = vld [vmem:[#allocation6 + $0x1e0] sm:$0xff]  ;;  %v14056_v15 = vld [vmem:[#allocation6 + $0xd8] sm:$0xff] }
 0x131   : > { %3769 = vmatpush.bf16.msra.mxu2 %v14056_v15 }
 0x132   : > { %v284_v48 = vshrl.u32 %v15563_v20, 16 }
 0x133   : > { %v1710_v58 = vpop.f32.mrf.mxu2  ;;  %v1320_v52 = vpop.f32.mrf.mxu0 }
 0x134   : > { %v1743_v62 = vpop.f32.mrf.mxu3  ;;  %v1353_v0 = vpop.f32.mrf.mxu1  ;;  %v1321_v2 = vadd.f32 %v1320_v52, %v15408_v40  ;;  %v2773_v40 = vunpack.c.l.b16 %v2751_v3  ;;  %v14016_v52 = vld [vmem:[#allocation6 + $0x1e8] sm:$0xff]  ;;  %v288_v21 = vmul.u32 14564, %v284_v48 }
 0x135   : > { %v15529_v63 = vadd.f32 %v1743_v62, %v1710_v58  ;;  %3111 = vmatpush.bf16.msra.mxu0 %v14016_v52 }
 0x136   : > { %v15539_v56 = vadd.f32 %v1353_v0, %v1321_v2  ;;  %1793 = vmatmul.bf16.gmra.mxu0 %v1538_v50  ;;  %v15556_v13 = vpack.c.b16 %v19001_v33, %v2773_v40  ;;  %v283_v0 = vand.u32 65535, %v15563_v20 }
 0x137   : > { %2437 = vmatmul.bf16.gmra.mxu1 %v2245_v10 }
 0x138   : > { %2470 = vmatmul.bf16.gmra.mxu2 %v2247_v7  ;;  %v287_v3 = vmul.u32 58254, %v283_v0  ;;  %v286_v17 = vmul.u32 14564, %v283_v0  ;;  %v1986_v0 = vld [vmem:[%s15153_s30 + $0x48] sm:$0x1] }
 0x139   : > { %2503 = vmatmul.bf16.gmra.mxu3 %v2249_v55  ;;  %v2024_v55 = vrot.slane %v2022_v6, 1  ;;  %3112 = vmatpush.bf16.msra.mxu0 %v14015_v29  ;;  %v15633_v29 = vld [vmem:[%s15153_s30 + $0x4c] sm:$0xff] }
 0x13a   : > { %v290_v40 = vshll.u32 %v287_v3, 16 }
 0x13b   : > { %v1713_v26 = vpop.f32.mrf.mxu2  ;;  %v1322_v10 = vpop.f32.mrf.mxu0  ;;  %v2025_v51 = vor.u32 %v2024_v55, %v2020_v37  ;;  %v15582_v55 = vld [vmem:[%s15153_s30 + $0x44] sm:$0xff] }
 0x13c   : > { %v1746_v27 = vpop.f32.mrf.mxu3  ;;  %v1355_v7 = vpop.f32.mrf.mxu1  ;;  %v1323_v46 = vadd.f32 %v1322_v10, %v15437_v11  ;;  %v2890_v11 = vrot.slane %v15556_v13, 2  ;;  %v292_v10 = vshll.u32 %v288_v21, 16  ;;  %vm294_vm3 = vc.u32 %v286_v17, %v290_v40 }
 0x13d   : > { %v15546_v50 = vadd.f32 %v1746_v27, %v1713_v26  ;;  %v2030_v62 = vsel %vm19030_vm0, %v2025_v51, %v2029_v25  ;;  %v2031_v26 = vshrl.u32 %v15542_v32, 16  ;;  %v289_v27 = vmul.u32 58254, %v284_v48  ;;  %v14023_v51 = vld [vmem:[#allocation6 + $0x220] sm:$0xff] }
 0x13e   : > { %v15558_v36 = vadd.f32 %v1355_v7, %v1323_v46  ;;  %v2892_v2 = vsel %vm19060_vm2, %v2890_v11, %v2891_v28  ;;  %v296_v8 = vadd.s32 %v290_v40, %v286_v17  ;;  %v15587_v46 = vadd.s32 8, %v15563_v20  ;;  %3145 = vmatpush.bf16.msra.mxu1 %v14023_v51  ;;  %v15612_v40 = vld [vmem:[%s15153_s30 + $0x54] sm:$0xf] }
 0x13f   : > { %v293_v48 = vshrl.u32 %v288_v21, 16 }
 0x140   : > { %vm298_vm4 = vc.u32 %v296_v8, %v292_v10  ;;  %v19117_v8 = vmov 0 }
 0x141   : > { %v19118_v8 = vsel %vm15625_vm8, 4294967295, %v19117_v8 }
 0x142   : > { %19119 = vst [vmem:[#allocation13_spill] sm:$0xff] %v19118_v8 }
 0x143   : > { %v1715_v42 = vpop.f32.mrf.mxu2  ;;  %v1325_v47 = vpop.f32.mrf.mxu0 }
 0x144   : > { %v1748_v53 = vpop.f32.mrf.mxu3  ;;  %v1358_v58 = vpop.f32.mrf.mxu1  ;;  %v1326_v18 = vadd.f32 %v1325_v47, %v15457_v31  ;;  %v14065_v31 = vld [vmem:[#allocation6 + $0x120] sm:$0xff]  ;;  %v312_v47 = vand.u32 65535, %v15587_v46 }
 0x145   : > { %v15565_v57 = vadd.f32 %v1748_v53, %v1715_v42  ;;  %3801 = vmatpush.bf16.msra.mxu3 %v14065_v31  ;;  %v14064_v53 = vld [vmem:[#allocation6 + $0x118] sm:$0xff]  ;;  %v2070_v31 = vsel %vm685_vm1, %v2067_v14, %v15385_v54 }
 0x146   : > { %v15577_v6 = vadd.f32 %v1358_v58, %v1326_v18  ;;  %2660 = vmatmul.bf16.vlgmr.msrb.gmra.mxu0 %v15531_v1  ;;  %v19005_v1 = vmov 0   ;;  %v2033_v58 = vor.u32 %v2031_v26, %v2029_v25  ;;  %v313_v25 = vshrl.u32 %v15587_v46, 16  ;;  %v2760_v26 = vld [vmem:[%s15153_s30 + $0x58] sm:$0x3] }
 0x147   : > { %2693 = vmatmul.bf16.vlgmr.msrb.gmra.mxu1 %v2030_v62  ;;  %v295_v9 = vsel %vm294_vm3, 1, %v19005_v1  ;;  %252 = vst [vmem:[#allocation2] sm:$0xf] %v19005_v1  ;;  %v291_v62 = vshrl.u32 %v287_v3, 16  ;;  %v299_v52 = vsel %vm298_vm4, 1, %v19005_v1 }
 0x148   : > { %2726 = vmatmul.bf16.vlgmr.msrb.gmra.mxu2 %v2068_v44  ;;  %v297_v11 = vadd.s32 %v295_v9, %v289_v27  ;;  %253 = vst [vmem:[#allocation2 + $0x4] sm:$0xf] %v19005_v1  ;;  %v2017_v44 = vunpack.c.l.b16 %v1986_v0  ;;  %v2038_v3 = vsel %vm19030_vm0, %v2033_v58, %v15367_v5  ;;  %v15615_v27 = vmul.u32 58254, %v312_v47 }
 0x149   : > { %3084 = vmatmul.bf16.vlgmr.msrb.gmra.mxu3 %v2892_v2  ;;  %266 = vst [vmem:[#allocation2 + $0x9c] sm:$0xf] %v19005_v1  ;;  %v2899_v2 = vrot.slane %v15582_v55, 2  ;;  %v18999_v58 = vunpack.c.l.b16 %v15612_v40 }
 0x14a   : > { %267 = vst [vmem:[#allocation2 + $0xa0] sm:$0xf] %v19005_v1  ;;  %3802 = vmatpush.bf16.msra.mxu3 %v14064_v53  ;;  %v15609_v17 = vpack.c.b16 %v2017_v44, %v15405_v38 }
 0x14b   : > { %v1718_v7 = vpop.f32.mrf.mxu2  ;;  %v1327_v24 = vpop.f32.mrf.mxu0  ;;  %v2900_v14 = vsel %vm19060_vm2, %v2891_v28, %v2899_v2  ;;  %v315_v28 = vmul.u32 14564, %v312_v47 }
 0x14c   : > { %v1751_v37 = vpop.f32.mrf.mxu3  ;;  %v1360_v43 = vpop.f32.mrf.mxu1  ;;  %v1328_v42 = vadd.f32 %v1327_v24, %v15481_v16  ;;  %v301_v16 = vadd.s32 %v299_v52, %v297_v11  ;;  %v263_v24 = vld [vmem:[#allocation2 + $0x98] sm:$0xe]  ;;  %v19120_v11 = vmov 0  ;;  %v2051_v47 = vshll.u32 %v15609_v17, 16 }
 0x14d   : > { %v15589_v30 = vadd.f32 %v1751_v37, %v1718_v7  ;;  %v257_v7 = vld [vmem:[#allocation2 + $0x8] sm:$0x3]  ;;  %v19121_v11 = vsel %vm15637_vm10, 4294967295, %v19120_v11  ;;  %v264_v53 = vsel %vm15637_vm10, 0, %v263_v24 }
 0x14e   : > { %v15598_v18 = vadd.f32 %v1360_v43, %v1328_v42  ;;  %v302_v60 = vadd.s32 %v301_v16, %v291_v62  ;;  %v15629_v43 = vmul.u32 14564, %v313_v25  ;;  %v258_v15 = vsel %vm15625_vm8, 0, %v257_v7  ;;  %19122 = vst [vmem:[#allocation14_spill] sm:$0xff] %v19121_v11 }
 0x14f   : > { %v15642_v42 = vadd.s32 16, %v15563_v20  ;;  %259 = vst [vmem:[#allocation2 + $0x8] sm:$0x3] %v258_v15  ;;  %v319_v62 = vshll.u32 %v15615_v27, 16  ;;  %v318_v16 = vmul.u32 58254, %v313_v25 }
 0x150   : > { %v303_v5 = vadd.s32 %v302_v60, %v293_v48  ;;  %265 = vst [vmem:[#allocation2 + $0x98] sm:$0xe] %v264_v53  ;;  %v321_v44 = vshll.u32 %v15629_v43, 16  ;;  %v2905_v48 = vrot.slane %v15633_v29, 2 }
 0x151   : > { %vm323_vm11 = vc.u32 %v315_v28, %v319_v62  ;;  %v325_v60 = vadd.s32 %v319_v62, %v315_v28  ;;  %v342_v25 = vshrl.u32 %v15642_v42, 16  ;;  %v15668_v28 = vadd.s32 24, %v15563_v20 }
 0x152   : > { %v304_v0 = vshrl.u32 %v303_v5, 4  ;;  %v15662_v5 = vrot.slane %v2051_v47, 1 }
 0x153   : > { %v1720_v21 = vpop.f32.mrf.mxu2  ;;  %v1330_v9 = vpop.f32.mrf.mxu0  ;;  %vm327_vm12 = vc.u32 %v325_v60, %v321_v44  ;;  %v347_v60 = vmul.u32 58254, %v342_v25 }
 0x154   : > { %v1753_v10 = vpop.f32.mrf.mxu3  ;;  %v1363_v54 = vpop.f32.mrf.mxu1  ;;  %v1331_v51 = vadd.f32 %v1330_v9, %v15491_v19  ;;  %v2782_v19 = vunpack.c.l.b16 %v2760_v26  ;;  %v341_v26 = vand.u32 65535, %v15642_v42  ;;  %v305_v7 = vmul.u32 18, %v304_v0 }
 0x155   : > { %v15617_v37 = vadd.f32 %v1753_v10, %v1720_v21  ;;  %v19000_v21 = vrot.slane %v15609_v17, 1  ;;  %v320_v9 = vshrl.u32 %v15615_v27, 16  ;;  %v346_v0 = vmul.u32 14564, %v342_v25 }
 0x156   : > { %v15648_v52 = vadd.f32 %v1363_v54, %v1331_v51  ;;  %2665 = vmatmul.bf16.gmra.mxu0 %v15542_v32  ;;  %v15658_v32 = vpack.c.b16 %v2782_v19, %v18999_v58  ;;  %v345_v15 = vmul.u32 58254, %v341_v26  ;;  %v328_v19 = vsel %vm327_vm12, 1, %v19005_v1 }
 0x157   : > { %2698 = vmatmul.bf16.gmra.mxu1 %v2038_v3  ;;  %v324_v3 = vsel %vm323_vm11, 1, %v19005_v1  ;;  %v344_v62 = vmul.u32 14564, %v341_v26  ;;  %v2906_v27 = vsel %vm19060_vm2, %v2899_v2, %v2905_v48  ;;  %v371_v2 = vshrl.u32 %v15668_v28, 16 }
 0x158   : > { %2731 = vmatmul.bf16.gmra.mxu2 %v2070_v31  ;;  %v326_v54 = vadd.s32 %v324_v3, %v318_v16  ;;  %v322_v16 = vshrl.u32 %v15629_v43, 16  ;;  %v15688_v58 = vsub.s32 %v15563_v20, %v305_v7  ;;  %v15693_v43 = vsel %vm19030_vm0, %v15440_v22, %v15662_v5 }
 0x159   : > { %3089 = vmatmul.bf16.gmra.mxu3 %v2900_v14  ;;  %v15698_v7 = vmul.u32 14564, %v371_v2 }
 0x15a   : > { %v330_v3 = vadd.s32 %v328_v19, %v326_v54  ;;  %vm541_vm15 = vcmp.ne.s32.totalorder %v15688_v58, 0  ;;  %vm550_vm4 = vcmp.lt.s32.totalorder %v15688_v58, 0 }
 0x15b   : > { %v1723_v31 = vpop.f32.mrf.mxu2  ;;  %v1332_v24 = vpop.f32.mrf.mxu0  ;;  %vm15735_vm7 = vmand %vm550_vm4, %vm541_vm15 }
 0x15c   : > { %v1756_v10 = vpop.f32.mrf.mxu3  ;;  %v1365_v51 = vpop.f32.mrf.mxu1  ;;  %v1333_v53 = vadd.f32 %v1332_v24, %v15500_v61  ;;  %v15683_v61 = vsel %vm685_vm1, %v15388_v12, %v19000_v21  ;;  %v331_v26 = vadd.s32 %v330_v3, %v320_v9  ;;  %v370_v24 = vand.u32 65535, %v15668_v28 }
 0x15d   : > { %v15665_v14 = vadd.f32 %v1756_v10, %v1723_v31  ;;  %v348_v31 = vshll.u32 %v345_v15, 16  ;;  %v350_v10 = vshll.u32 %v346_v0, 16 }
 0x15e   : > { %v15677_v44 = vadd.f32 %v1365_v51, %v1333_v53  ;;  %v332_v54 = vadd.s32 %v331_v26, %v322_v16  ;;  %v349_v51 = vshrl.u32 %v345_v15, 16  ;;  %v15696_v53 = vmul.u32 58254, %v370_v24 }
 0x15f   : > { %vm352_vm13 = vc.u32 %v344_v62, %v348_v31  ;;  %v354_v25 = vadd.s32 %v348_v31, %v344_v62  ;;  %v373_v21 = vmul.u32 14564, %v370_v24  ;;  %v376_v31 = vmul.u32 58254, %v371_v2 }
 0x160   : > { %19123 = vst [vmem:[#allocation15_spill] sm:$0xff] %v15677_v44  ;;  %v353_v12 = vsel %vm352_vm13, 1, %v19005_v1  ;;  %v333_v8 = vshrl.u32 %v332_v54, 4  ;;  %v351_v44 = vshrl.u32 %v346_v0, 16  ;;  %v377_v26 = vshll.u32 %v15696_v53, 16  ;;  %v14014_v0 = vld [vmem:[#allocation6 + $0x1d8] sm:$0xff] }
 0x161   : > { %v355_v3 = vadd.s32 %v353_v12, %v347_v60  ;;  %vm356_vm14 = vc.u32 %v354_v25, %v350_v10  ;;  %v19124_v60 = vrot.slane %v15658_v32, 2  ;;  %v379_v25 = vshll.u32 %v15698_v7, 16  ;;  %v14063_v12 = vld [vmem:[#allocation6 + $0x110] sm:$0xff]  ;;  %3113 = vmatpush.bf16.msra.mxu0 %v14014_v0 }
 0x162   : > { %v357_v62 = vsel %vm356_vm14, 1, %v19005_v1  ;;  %v334_v24 = vmul.u32 18, %v333_v8  ;;  %vm381_vm3 = vc.u32 %v373_v21, %v377_v26  ;;  %v15717_v2 = vadd.s32 32, %v15563_v20  ;;  %3803 = vmatpush.bf16.msra.mxu3 %v14063_v12 }
 0x163   : > { %v1725_v9 = vpop.f32.mrf.mxu2  ;;  %v1335_v47 = vpop.f32.mrf.mxu0  ;;  %v359_v16 = vadd.s32 %v357_v62, %v355_v3  ;;  %v15709_v10 = vsel %vm19060_vm2, %v2905_v48, %v19124_v60  ;;  %v568_v8 = vadd.s32 18, %v15688_v58  ;;  %v14055_v48 = vld [vmem:[#allocation6 + $0xd0] sm:$0xff] }
 0x164   : > { %v1758_v19 = vpop.f32.mrf.mxu3  ;;  %v1368_v22 = vpop.f32.mrf.mxu1  ;;  %v1336_v15 = vadd.f32 %v1335_v47, %v15510_v4  ;;  %v14022_v4 = vld [vmem:[#allocation6 + $0x218] sm:$0xff]  ;;  %v399_v3 = vand.u32 65535, %v15717_v2  ;;  %3770 = vmatpush.bf16.msra.mxu2 %v14055_v48 }
 0x165   : > { %v15700_v33 = vadd.f32 %v1758_v19, %v1725_v9  ;;  %v360_v47 = vadd.s32 %v359_v16, %v349_v51  ;;  %3146 = vmatpush.bf16.msra.mxu1 %v14022_v4  ;;  %v383_v9 = vadd.s32 %v377_v26, %v373_v21  ;;  %v14020_v21 = vld [vmem:[#allocation6 + $0x208] sm:$0xff] }
 0x166   : > { %v15712_v54 = vadd.f32 %v1368_v22, %v1336_v15  ;;  %2670 = vmatmul.bf16.gmra.mxu0 %v15351_v49  ;;  %v15723_v49 = vsub.s32 %v15587_v46, %v334_v24  ;;  %v380_v46 = vshrl.u32 %v15698_v7, 16  ;;  %v14013_v15 = vld [vmem:[#allocation6 + $0x1d0] sm:$0xff]  ;;  %v402_v24 = vmul.u32 14564, %v399_v3 }
 0x167   : > { %2703 = vmatmul.bf16.gmra.mxu1 %v15401_v35  ;;  %v382_v35 = vsel %vm381_vm3, 1, %v19005_v1  ;;  %v361_v51 = vadd.s32 %v360_v47, %v351_v44  ;;  %v14021_v44 = vld [vmem:[#allocation6 + $0x210] sm:$0xff]  ;;  %vm385_vm11 = vc.u32 %v383_v9, %v379_v25  ;;  %v15744_v4 = vmul.u32 58254, %v399_v3  ;;  %3114 = vmatpush.bf16.msra.mxu0 %v14013_v15 }
 0x168   : > { %2736 = vmatmul.bf16.gmra.mxu2 %v15413_v41  ;;  %v384_v19 = vadd.s32 %v382_v35, %v376_v31  ;;  %vm542_vm5 = vcmp.ne.s32.totalorder %v15723_v49, 0  ;;  %v2055_v41 = vshrl.u32 %v15609_v17, 16  ;;  %vm551_vm9 = vcmp.lt.s32.totalorder %v15723_v49, 0 }
 0x169   : > { %3094 = vmatmul.bf16.gmra.mxu3 %v2906_v27  ;;  %v378_v27 = vshrl.u32 %v15696_v53, 16  ;;  %v362_v16 = vshrl.u32 %v361_v51, 4  ;;  %v400_v53 = vshrl.u32 %v15717_v2, 16  ;;  %v386_v60 = vsel %vm385_vm11, 1, %v19005_v1  ;;  %3147 = vmatpush.bf16.msra.mxu1 %v14021_v44  ;;  %vm15758_vm12 = vmand %vm551_vm9, %vm542_vm5 }
 0x16a   : > { %v15747_v0 = vadd.s32 18, %v15723_v49  ;;  %v388_v48 = vadd.s32 %v386_v60, %v384_v19  ;;  %v577_v25 = vsel %vm15735_vm7, %v568_v8, %v15688_v58  ;;  %v406_v9 = vshll.u32 %v15744_v4, 16  ;;  %v14054_v19 = vld [vmem:[#allocation6 + $0xc8] sm:$0xff] }
 0x16b   : > { %v1728_v22 = vpop.f32.mrf.mxu2  ;;  %v1337_v7 = vpop.f32.mrf.mxu0  ;;  %v363_v47 = vmul.u32 18, %v362_v16  ;;  %v15749_v12 = vmul.u32 14564, %v400_v53  ;;  %v405_v51 = vmul.u32 58254, %v400_v53  ;;  %v2794_v3 = vshll.u32 %v15556_v13, 16  ;;  %v14012_v16 = vld [vmem:[#allocation6 + $0x1c8] sm:$0xff]  ;;  %3771 = vmatpush.bf16.msra.mxu2 %v14054_v19 }
 0x16c   : > { %v1761_v62 = vpop.f32.mrf.mxu3  ;;  %v1370_v26 = vpop.f32.mrf.mxu1  ;;  %v389_v58 = vadd.s32 %v388_v48, %v378_v27  ;;  %v2799_v44 = vshll.u32 %v15552_v23, 16  ;;  %v2010_v15 = vpack.c.b16 %v15405_v38, %v15405_v38  ;;  %vm410_vm13 = vc.u32 %v402_v24, %v406_v9  ;;  %3115 = vmatpush.bf16.msra.mxu0 %v14012_v16  ;;  %v15795_v16 = vld [vmem:[%s18995_s3] ss:$0 sm:$0xff] }
 0x16d   : > { %v15741_v31 = vadd.f32 %v1761_v62, %v1728_v22  ;;  %v15765_v22 = vsub.s32 %v15642_v42, %v363_v47  ;;  %v14062_v62 = vld [vmem:[#allocation6 + $0x108] sm:$0xff]  ;;  %v408_v8 = vshll.u32 %v15749_v12, 16  ;;  %v412_v53 = vadd.s32 %v406_v9, %v402_v24  ;;  %3148 = vmatpush.bf16.msra.mxu1 %v14020_v21  ;;  %v14011_v21 = vld [vmem:[#allocation6 + $0x1c0] sm:$0xff] }
 0x16e   : > { %v2792_v7 = vshrl.u32 %v15556_v13, 16  ;;  %v578_v42 = vsel %vm15758_vm12, %v15747_v0, %v15723_v49  ;;  %3804 = vmatpush.bf16.msra.mxu3 %v14062_v62  ;;  %v15777_v27 = vor.u32 %v2055_v41, %v15662_v5  ;;  %v390_v26 = vadd.s32 %v389_v58, %v380_v46  ;;  %v2762_v49 = vld [vmem:[%s15153_s30 + $0x34] sm:$0x8]  ;;  %v14053_v41 = vld [vmem:[#allocation6 + $0xc0] sm:$0xff] }
 0x16f   : > { %v407_v60 = vshrl.u32 %v15744_v4, 16  ;;  %vm15780_vm14 = vcmp.lt.s32.totalorder %v577_v25, 16  ;;  %v19129_v47 = vmov 0  ;;  %v411_v13 = vsel %vm410_vm13, 1, %v19005_v1  ;;  %v14061_v46 = vld [vmem:[#allocation6 + $0x100] sm:$0xff]  ;;  %3772 = vmatpush.bf16.msra.mxu2 %v14053_v41 }
 0x170   : > { %v19130_v47 = vsel %vm15780_vm14, 4294967295, %v19129_v47  ;;  %vm414_vm15 = vc.u32 %v412_v53, %v408_v8  ;;  %v2796_v24 = vrot.slane %v2794_v3, 1  ;;  %v2801_v48 = vrot.slane %v2799_v44, 1  ;;  %v14019_v4 = vld [vmem:[#allocation6 + $0x200] sm:$0xff]  ;;  %3116 = vmatpush.bf16.msra.mxu0 %v14011_v21 }
 0x171   : > { %19131 = vst [vmem:[#allocation16_spill] sm:$0xff] %v19130_v47  ;;  %vm543_vm3 = vcmp.ne.s32.totalorder %v15765_v22, 0  ;;  %v391_v5 = vshrl.u32 %v390_v26, 4  ;;  %v413_v25 = vadd.s32 %v411_v13, %v405_v51  ;;  %v415_v9 = vsel %vm414_vm15, 1, %v19005_v1  ;;  %3149 = vmatpush.bf16.msra.mxu1 %v14019_v4 }
 0x172   : > { %vm552_vm4 = vcmp.lt.s32.totalorder %v15765_v22, 0  ;;  %v2797_v58 = vor.u32 %v2796_v24, %v2792_v7  ;;  %v2803_v3 = vshrl.u32 %v15552_v23, 16  ;;  %v2807_v8 = vshll.u32 %v15582_v55, 16  ;;  %3805 = vmatpush.bf16.msra.mxu3 %v14061_v46 }
 0x173   : > { %v1730_v0 = vpop.f32.mrf.mxu2  ;;  %v1774_v19 = vpop.f32.mrf.mxu0  ;;  %v392_v51 = vmul.u32 18, %v391_v5  ;;  %v417_v53 = vadd.s32 %v415_v9, %v413_v25  ;;  %v2831_v26 = vunpack.c.l.b16 %v2762_v49  ;;  %v15798_v13 = vadd.s32 18, %v15765_v22  ;;  %vm15810_vm5 = vmand %vm552_vm4, %vm543_vm3  ;;  %v15829_v25 = vld [vmem:[%s15153_s30 + $0x50] sm:$0xff]  }
 0x174   : > { %v1763_v35 = vpop.f32.mrf.mxu3  ;;  %v2418_v62 = vpop.f32.mrf.mxu1  ;;  %v1775_v44 = vadd.f32 %v1774_v19, %v15522_v45  ;;  %v409_v7 = vshrl.u32 %v15749_v12, 16  ;;  %v2805_v24 = vor.u32 %v2803_v3, %v2801_v48  ;;  %v15801_v45 = vrot.slane %v2807_v8, 1  ;;  %v3484_v19 = vld [vmem:[%s15153_s30 + $0x50] sm:$0xe] }
 0x175   : > { %v14823_v35 = vld [vmem:[%s15153_s30 + $0x3c] sm:$0xff]  ;;  %v15815_v12 = vsub.s32 %v15668_v28, %v392_v51  ;;  %v418_v5 = vadd.s32 %v417_v53, %v407_v60  ;;  %v2834_v41 = vrot.slane %v15552_v23, 1  ;;  %v19134_v46 = vunpack.c.l.b16 %v15537_v34 }
 0x176   : > { %v1798_v0 = vadd.f32 %v1775_v44, %v15520_v59  ;;  %2675 = vmatmul.bf16.gmra.mxu0 %v14823_v35  ;;  %v2802_v59 = vsel %vm19030_vm0, %v2797_v58, %v2801_v48  ;;  %v19004_v28 = vrot.slane %v15582_v55, 1  ;;  %vm15837_vm11 = vcmp.lt.s32.totalorder %v578_v42, 16 }
 0x177   : > { %2708 = vmatmul.bf16.gmra.mxu1 %v15693_v43  ;;  %v15823_v43 = vsel %vm19030_vm0, %v2805_v24, %v15801_v45  ;;  %v2832_v4 = vpack.c.b16 %v19134_v46, %v2831_v26  ;;  %vm544_vm7 = vcmp.ne.s32.totalorder %v15815_v12, 0  ;;  %vm553_vm9 = vcmp.lt.s32.totalorder %v15815_v12, 0 }
 0x178   : > { %2741 = vmatmul.bf16.gmra.mxu2 %v15683_v61  ;;  %v1808_v23 = vadd.f32 %v15795_v16, %v1798_v0  ;;  %v15835_v61 = vadd.s32 18, %v15815_v12  ;;  %v579_v34 = vsel %vm15810_vm5, %v15798_v13, %v15765_v22  ;;  %vm15845_vm12 = vmand %vm553_vm9, %vm544_vm7  ;;  %v419_v48 = vadd.s32 %v418_v5, %v409_v7  ;;  %v14027_v22 = vld [vmem:[%s15153_s30 + $0x58] sm:$0xff] }
 0x179   : > { %3099 = vmatmul.bf16.gmra.mxu3 %v15709_v10  ;;  %v19135_v10 = vmov 0  ;;  %v2833_v9 = vrot.slane %v2832_v4, 1  ;;  %v2893_v42 = vrot.slane %v2802_v59, 2  ;;  %v15853_v8 = vsel %vm685_vm1, %v2834_v41, %v19004_v28  ;;  %v15867_v59 = vld [vmem:[%s15153_s30 + $0x60] sm:$0xff] }
 0x17a   : > { %v19136_v10 = vsel %vm15837_vm11, 4294967295, %v19135_v10  ;;  %v1817_v21 = vmax.f32 %v1808_v23, 0.0  ;;  %v19007_v44 = vunpack.c.h.b16 %v15829_v25  ;;  %v420_v7 = vshrl.u32 %v419_v48, 4 }
 0x17b   : > { %19137 = vst [vmem:[#allocation17_spill] sm:$0xff] %v19136_v10  ;;  %v2451_v58 = vpop.f32.mrf.mxu2  ;;  %v1776_v53 = vpop.f32.mrf.mxu0  ;;  %v19008_v24 = vrot.slane %v15823_v43, 2  ;;  %v2835_v49 = vsel %vm685_vm1, %v2833_v9, %v2834_v41  ;;  %v3494_v5 = vunpack.c.l.b16 %v3484_v19  ;;  %v19009_v23 = vrot.slane %v15853_v8, 2 }
 0x17c   : > { %v2484_v3 = vpop.f32.mrf.mxu3  ;;  %v2452_v51 = vadd.f32 %v2451_v58, %v2418_v62  ;;  %v2420_v26 = vpop.f32.mrf.mxu1  ;;  %v1844_v0 = vsel %vm15780_vm14, %v1817_v21, 0.0  ;;  %v1777_v35 = vadd.f32 %v1776_v53, %v15529_v63  ;;  %v421_v4 = vmul.u32 18, %v420_v7 }
 0x17d   : > { %v1853_v62 = vpack.c.bf16 %v1844_v0, %v1844_v0  ;;  %v2896_v58 = vrot.slane %v2835_v49, 2  ;;  %v3391_v28 = vshll.u32 %v14027_v22, 16  ;;  %v3395_v1 = vshrl.u32 %v14027_v22, 16 }
 0x17e   : > { %v15869_v46 = vadd.f32 %v2484_v3, %v2452_v51  ;;  %v1799_v48 = vadd.f32 %v1777_v35, %v15527_v39  ;;  %vm1862_vm13 = vsmask.f32 5392  ;;  %v15874_v63 = vsub.s32 %v15717_v2, %v421_v4  ;;  %v1963_v35 = vld [vmem:[#allocation2 + $0x8] sm:$0xe] }
 0x17f   : > { %v1865_v21 = vshrl.u32 %v1853_v62, 16  ;;  %v1868_v13 = vshll.u32 %v1853_v62, 16  ;;  %v3498_v41 = vpack.c.b16 %v19007_v44, %v3494_v5  ;;  %v15879_v19 = vrot.slane %v14027_v22, 1  ;;  %vm15954_vm7 = vmor %vm255_vm6, %vm1862_vm13 }
 0x180   : > { %v1809_v9 = vadd.f32 %v15795_v16, %v1799_v48  ;;  %v15881_v3 = vrot.slane %v3391_v28, 1  ;;  %v3399_v39 = vshll.u32 %v15867_v59, 16  ;;  %vm15884_vm15 = vcmp.lt.s32.totalorder %v579_v34, 16 }
 0x181   : > { %v1867_v51 = vrot.slane %v1865_v21, 6  ;;  %v1870_v53 = vrot.slane %v1868_v13, 7  ;;  %v19140_v7 = vmov 0  ;;  %v15891_v2 = vsel %vm19060_vm2, %v2893_v42, %v19008_v24 }
 0x182   : > { %v19141_v7 = vsel %vm15884_vm15, 4294967295, %v19140_v7  ;;  %v3585_v0 = vrot.slane %v3498_v41, 1  ;;  %v1818_v49 = vmax.f32 %v1809_v9, 0.0  ;;  %vm545_vm3 = vcmp.ne.s32.totalorder %v15874_v63, 0 }
 0x183   : > { %19142 = vst [vmem:[#allocation18_spill] sm:$0xff] %v19141_v7  ;;  %v2453_v22 = vpop.f32.mrf.mxu2  ;;  %v15899_v28 = vsel %vm19060_vm2, %v2896_v58, %v19009_v23  ;;  %v3397_v34 = vor.u32 %v3395_v1, %v15881_v3  ;;  %v1871_v13 = vor.u32 %v1870_v53, %v1867_v51  ;;  %v1779_v42 = vpop.f32.mrf.mxu0  ;;  %vm554_vm4 = vcmp.lt.s32.totalorder %v15874_v63, 0 }
 0x184   : > { %v15893_v5 = vpop.f32.mrf.mxu3  ;;  %v15902_v62 = vadd.f32 %v2453_v22, %v2420_v26  ;;  %v2423_v4 = vpop.f32.mrf.mxu1  ;;  %v15905_v48 = vrot.slane %v3399_v39, 1  ;;  %v1845_v21 = vsel %vm15837_vm11, %v1818_v49, 0.0  ;;  %v1780_v9 = vadd.f32 %v1779_v42, %v15546_v50  ;;  %v14052_v49 = vld [vmem:[#allocation6 + $0xb8] sm:$0xff]  ;;  %vm15966_vm6 = vmand %vm554_vm4, %vm545_vm3 }
 0x185   : > { %v3505_v44 = vshrl.u32 %v3498_v41, 16  ;;  %v3507_v24 = vshll.u32 %v3498_v41, 16  ;;  %v1964_v58 = vsel %vm15637_vm10, %v1871_v13, %v1963_v35  ;;  %v1854_v1 = vpack.c.bf16 %v1845_v21, %v1845_v21  ;;  %v14044_v35 = vld [vmem:[#allocation6 + $0x78] sm:$0xff]  ;;  %4074 = vmatpush.bf16.msrb.mxu3 %v14052_v49 }
 0x186   : > { %v15913_v26 = vadd.s32 18, %v15874_v63  ;;  %v15917_v51 = vsel %vm685_vm1, %v3585_v0, %v15879_v19  ;;  %v1872_v39 = vrot.slane %v1871_v13, 4  ;;  %1965 = vst [vmem:[#allocation2 + $0x8] sm:$0xe] %v1964_v58  ;;  %v1800_v53 = vadd.f32 %v1780_v9, %v15539_v56  ;;  %2680 = vmatmul.bf16.gmra.mxu0 %v2010_v15  ;;  %4041 = vmatpush.bf16.msrb.mxu2 %v14044_v35 }
 0x187   : > { %2713 = vmatmul.bf16.gmra.mxu1 %v15777_v27  ;;  %v15926_v50 = vsel %vm19030_vm0, %v3397_v34, %v15905_v48  ;;  %v3509_v41 = vrot.slane %v3507_v24, 1  ;;  %v1874_v22 = vshrl.u32 %v1854_v1, 16  ;;  %v1877_v0 = vshll.u32 %v1854_v1, 16 }
 0x188   : > { %v19143_v13 = vrot.slane %v15609_v17, 1  ;;  %v19144_v56 = vrot.slane %v15658_v32, 2  ;;  %v15934_v15 = vadd.s32 40, %v15563_v20  ;;  %v1810_v27 = vadd.f32 %v15795_v16, %v1800_v53 }
 0x189   : > { %v3510_v34 = vor.u32 %v3509_v41, %v3505_v44  ;;  %v15938_v24 = vadd.s32 48, %v15563_v20  ;;  %v1876_v17 = vrot.slane %v1874_v22, 6  ;;  %v1879_v21 = vrot.slane %v1877_v0, 7 }
 0x18a   : > { %2746 = vmatmul.bf16.gmra.mxu2 %v19143_v13  ;;  %3104 = vmatmul.bf16.gmra.mxu3 %v19144_v56  ;;  %v19145_v32 = vsel %vm15845_vm12, %v15835_v61, %v15815_v12  ;;  %v19146_v9 = vmov 0  ;;  %v428_v44 = vand.u32 65535, %v15934_v15  ;;  %v429_v58 = vshrl.u32 %v15934_v15, 16 }
 0x18b   : > { %vm15946_vm5 = vcmp.lt.s32.totalorder %v19145_v32, 16  ;;  %v1819_v53 = vmax.f32 %v1810_v27, 0.0  ;;  %v2456_v41 = vpop.f32.mrf.mxu2  ;;  %v3511_v12 = vsel %vm19030_vm0, %v3510_v34, %v15881_v3  ;;  %v457_v61 = vand.u32 65535, %v15938_v24  ;;  %v1781_v0 = vpop.f32.mrf.mxu0 }
 0x18c   : > { %v19147_v9 = vsel %vm15946_vm5, 4294967295, %v19146_v9  ;;  %v2489_v60 = vpop.f32.mrf.mxu3  ;;  %v458_v35 = vshrl.u32 %v15938_v24, 16  ;;  %v1880_v49 = vor.u32 %v1879_v21, %v1876_v17  ;;  %v2457_v22 = vadd.f32 %v2456_v41, %v2423_v4  ;;  %v2425_v13 = vpop.f32.mrf.mxu1 }
 0x18d   : > { %19148 = vst [vmem:[#allocation19_spill] sm:$0xff] %v19147_v9  ;;  %v3587_v27 = vrot.slane %v3511_v12, 1  ;;  %v431_v32 = vmul.u32 14564, %v428_v44  ;;  %v1846_v34 = vsel %vm15884_vm15, %v1819_v53, 0.0  ;;  %v1782_v23 = vadd.f32 %v1781_v0, %v15565_v57  ;;  %v14076_v0 = vld [vmem:[#allocation6 + $0x178] sm:$0xff] }
 0x18e   : > { %v432_v42 = vmul.u32 58254, %v428_v44  ;;  %v15973_v17 = vmul.u32 14564, %v429_v58  ;;  %v1881_v4 = vsel %vm15954_vm7, %v1872_v39, %v1880_v49  ;;  %v1882_v21 = vrot.slane %v1880_v49, 4  ;;  %v14036_v44 = vld [vmem:[#allocation6 + $0x38] sm:$0xff]  ;;  %3831 = vmatpush.bf16.msrb.mxu0 %v14076_v0 }
 0x18f   : > { %v1855_v41 = vpack.c.bf16 %v1846_v34, %v1846_v34  ;;  %v15977_v38 = vadd.f32 %v2489_v60, %v2457_v22  ;;  %1966 = vst [vmem:[#allocation2 + $0xc] sm:$0xf] %v1881_v4  ;;  %v1801_v11 = vadd.f32 %v1782_v23, %v15558_v36  ;;  %v581_v53 = vsel %vm15966_vm6, %v15913_v26, %v15874_v63  ;;  %v14043_v22 = vld [vmem:[#allocation6 + $0x70] sm:$0xff] }
 0x190   : > { %v434_v12 = vmul.u32 58254, %v429_v58  ;;  %v435_v57 = vshll.u32 %v432_v42, 16  ;;  %v19153_v39 = vrot.slane %v15926_v50, 1  ;;  %v437_v60 = vshll.u32 %v15973_v17, 16  ;;  %v14051_v34 = vld [vmem:[#allocation6 + $0xb0] sm:$0xff]  ;;  %4008 = vmatpush.bf16.msrb.mxu1 %v14036_v44  ;;  %4042 = vmatpush.bf16.msrb.mxu2 %v14043_v22 }
 0x191   : > { %v1884_v7 = vshrl.u32 %v1855_v41, 16  ;;  %v1887_v10 = vshll.u32 %v1855_v41, 16  ;;  %v1811_v36 = vadd.f32 %v15795_v16, %v1801_v11  ;;  %v436_v23 = vshrl.u32 %v432_v42, 16  ;;  %4075 = vmatpush.bf16.msrb.mxu3 %v14051_v34 }
 0x192   : > { %v3589_v49 = vsel %vm685_vm1, %v3587_v27, %v19153_v39  ;;  %vm439_vm9 = vc.u32 %v431_v32, %v435_v57  ;;  %v441_v56 = vadd.s32 %v435_v57, %v431_v32  ;;  %vm15989_vm12 = vcmp.lt.s32.totalorder %v581_v53, 16 }
 0x193   : > { %v1886_v63 = vrot.slane %v1884_v7, 6  ;;  %v1889_v26 = vrot.slane %v1887_v10, 7  ;;  %v19154_v58 = vmov 0  ;;  %v438_v4 = vshrl.u32 %v15973_v17, 16  ;;  %v2458_v47 = vpop.f32.mrf.mxu2  ;;  %v1784_v53 = vpop.f32.mrf.mxu0 }
 0x194   : > { %v19155_v58 = vsel %vm15989_vm12, 4294967295, %v19154_v58  ;;  %v19157_v27 = vmov 0   ;;  %v1820_v39 = vmax.f32 %v1811_v36, 0.0  ;;  %v15995_v11 = vpop.f32.mrf.mxu3  ;;  %vm443_vm13 = vc.u32 %v441_v56, %v437_v60  ;;  %v2428_v57 = vpop.f32.mrf.mxu1 }
 0x195   : > { %19156 = vst [vmem:[#allocation20_spill] sm:$0xff] %v19155_v58  ;;  %v440_v41 = vsel %vm439_vm9, 1, %v19157_v27  ;;  %v15997_v32 = vmul.u32 58254, %v457_v61  ;;  %v1890_v7 = vor.u32 %v1889_v26, %v1886_v63  ;;  %v15999_v10 = vadd.f32 %v2458_v47, %v2425_v13  ;;  %v14048_v58 = vld [vmem:[#allocation6 + $0x98] sm:$0xff] }
 0x196   : > { %v442_v42 = vadd.s32 %v440_v41, %v434_v12  ;;  %v444_v44 = vsel %vm443_vm13, 1, %v19157_v27  ;;  %v16002_v17 = vmul.u32 14564, %v458_v35  ;;  %v1847_v0 = vsel %vm15946_vm5, %v1820_v39, 0.0  ;;  %3117 = vmatmul.bf16.vlgmr.msra.gmra.mxu0 %v15891_v2 }
 0x197   : > { %v1785_v22 = vadd.f32 %v1784_v53, %v15589_v30  ;;  %v460_v36 = vmul.u32 14564, %v457_v61  ;;  %v1891_v12 = vsel %vm15954_vm7, %v1882_v21, %v1890_v7  ;;  %v1892_v60 = vrot.slane %v1890_v7, 4  ;;  %3150 = vmatmul.bf16.vlgmr.msra.gmra.mxu1 %v15899_v28  ;;  %v14035_v28 = vld [vmem:[#allocation6 + $0x30] sm:$0xff] }
 0x198   : > { %v446_v34 = vadd.s32 %v444_v44, %v442_v42  ;;  %v1856_v56 = vpack.c.bf16 %v1847_v0, %v1847_v0  ;;  %v463_v47 = vmul.u32 58254, %v458_v35  ;;  %1967 = vst [vmem:[#allocation2 + $0x10] sm:$0xf] %v1891_v12  ;;  %v464_v26 = vshll.u32 %v15997_v32, 16  ;;  %v14042_v42 = vld [vmem:[#allocation6 + $0x68] sm:$0xff]  ;;  %4009 = vmatpush.bf16.msrb.mxu1 %v14035_v28 }
 0x199   : > { %v1802_v13 = vadd.f32 %v1785_v22, %v15577_v6  ;;  %v465_v30 = vshrl.u32 %v15997_v32, 16  ;;  %v466_v21 = vshll.u32 %v16002_v17, 16  ;;  %v467_v35 = vshrl.u32 %v16002_v17, 16  ;;  %4043 = vmatpush.bf16.msrb.mxu2 %v14042_v42 }
 0x19a   : > { %v447_v63 = vadd.s32 %v446_v34, %v436_v23  ;;  %v1894_v41 = vshrl.u32 %v1856_v56, 16  ;;  %v1897_v61 = vshll.u32 %v1856_v56, 16  ;;  %3773 = vmatmul.bf16.vlgmr.msra.gmra.mxu2 %v15917_v51  ;;  %3806 = vmatmul.bf16.vlgmr.msra.gmra.mxu3 %v3589_v49  ;;  %vm468_vm3 = vc.u32 %v460_v36, %v464_v26  ;;  %v14075_v23 = vld [vmem:[#allocation6 + $0x170] sm:$0xff] }
 0x19b   : > { %v1812_v6 = vadd.f32 %v15795_v16, %v1802_v13  ;;  %v470_v2 = vadd.s32 %v464_v26, %v460_v36  ;;  %v469_v32 = vsel %vm468_vm3, 1, %v19157_v27  ;;  %v19158_v51 = vshrl.u32 %v15582_v55, 16  ;;  %v2461_v0 = vpop.f32.mrf.mxu2  ;;  %3832 = vmatpush.bf16.msrb.mxu0 %v14075_v23  ;;  %v1786_v12 = vpop.f32.mrf.mxu0 }
 0x19c   : > { %v448_v39 = vadd.s32 %v447_v63, %v438_v4  ;;  %v1896_v7 = vrot.slane %v1894_v41, 6  ;;  %v1899_v53 = vrot.slane %v1897_v61, 7  ;;  %v2494_v22 = vpop.f32.mrf.mxu3  ;;  %v471_v34 = vadd.s32 %v469_v32, %v463_v47  ;;  %v2430_v56 = vpop.f32.mrf.mxu1 }
 0x19d   : > { %v2813_v49 = vor.u32 %v19158_v51, %v15801_v45  ;;  %v1821_v44 = vmax.f32 %v1812_v6, 0.0  ;;  %vm472_vm4 = vc.u32 %v470_v2, %v466_v21  ;;  %v2462_v36 = vadd.f32 %v2461_v0, %v2428_v57 }
 0x19e   : > { %v449_v17 = vshrl.u32 %v448_v39, 4  ;;  %v1900_v4 = vor.u32 %v1899_v53, %v1896_v7  ;;  %v473_v13 = vsel %vm472_vm4, 1, %v19157_v27  ;;  %v2815_v63 = vshll.u32 %v15633_v29, 16 }
 0x19f   : > { %v1848_v45 = vsel %vm15989_vm12, %v1821_v44, 0.0  ;;  %v1787_v41 = vadd.f32 %v1786_v12, %v15617_v37  ;;  %v475_v61 = vadd.s32 %v473_v13, %v471_v34  ;;  %v16029_v57 = vadd.f32 %v2494_v22, %v2462_v36 }
 0x1a0   : > { %v450_v26 = vmul.u32 18, %v449_v17  ;;  %v1901_v47 = vsel %vm15954_vm7, %v1892_v60, %v1900_v4  ;;  %v1902_v21 = vrot.slane %v1900_v4, 4  ;;  %v1857_v6 = vpack.c.bf16 %v1848_v45, %v1848_v45 }
 0x1a1   : > { %1968 = vst [vmem:[#allocation2 + $0x14] sm:$0xf] %v1901_v47  ;;  %v1803_v2 = vadd.f32 %v1787_v41, %v15598_v18  ;;  %v476_v28 = vadd.s32 %v475_v61, %v465_v30  ;;  %v16033_v23 = vrot.slane %v2815_v63, 1  ;;  %v19020_v37 = vrot.slane %v15633_v29, 1 }
 0x1a2   : > { %v451_v39 = vsub.s32 %v15934_v15, %v450_v26  ;;  %v1904_v42 = vshrl.u32 %v1857_v6, 16  ;;  %v1907_v7 = vshll.u32 %v1857_v6, 16  ;;  %v16037_v53 = vrot.slane %v15867_v59, 1  ;;  %v2761_v26 = vld [vmem:[%s15153_s30 + $0x58] sm:$0x7] }
 0x1a3   : > { %v1813_v32 = vadd.f32 %v15795_v16, %v1803_v2  ;;  %v477_v18 = vadd.s32 %v476_v28, %v467_v35  ;;  %v16042_v15 = vsel %vm19030_vm0, %v2813_v49, %v16033_v23  ;;  %v2463_v22 = vpop.f32.mrf.mxu2  ;;  %v19159_v4 = vrot.slane %v15582_v55, 1  ;;  %v1789_v63 = vpop.f32.mrf.mxu0 }
 0x1a4   : > { %vm546_vm6 = vcmp.ne.s32.totalorder %v451_v39, 0  ;;  %vm555_vm9 = vcmp.lt.s32.totalorder %v451_v39, 0  ;;  %v573_v60 = vadd.s32 18, %v451_v39  ;;  %v1906_v51 = vrot.slane %v1904_v42, 6  ;;  %v16044_v17 = vpop.f32.mrf.mxu3  ;;  %v2433_v45 = vpop.f32.mrf.mxu1 }
 0x1a5   : > { %v1909_v44 = vrot.slane %v1907_v7, 7  ;;  %vm564_vm13 = vmand %vm555_vm9, %vm546_vm6  ;;  %v1822_v0 = vmax.f32 %v1813_v32, 0.0  ;;  %v19019_v34 = vrot.slane %v16042_v15, 2  ;;  %v16052_v36 = vsel %vm685_vm1, %v19159_v4, %v19020_v37 }
 0x1a6   : > { %v582_v30 = vsel %vm564_vm13, %v573_v60, %v451_v39  ;;  %v19160_v12 = vmov 0  ;;  %v16058_v49 = vadd.f32 %v2463_v22, %v2430_v56  ;;  %v478_v13 = vshrl.u32 %v477_v18, 4  ;;  %v16071_v39 = vld [vmem:[%s15153_s30 + $0x68] sm:$0xff]  }
 0x1a7   : > { %v1910_v35 = vor.u32 %v1909_v44, %v1906_v51  ;;  %vm16054_vm3 = vcmp.lt.s32.totalorder %v582_v30, 16  ;;  %v1790_v61 = vadd.f32 %v1789_v63, %v15665_v14  ;;  %v19163_v55 = vrot.slane %v15823_v43, 2 }
 0x1a8   : > { %v19161_v12 = vsel %vm16054_vm3, 4294967295, %v19160_v12  ;;  %v1849_v41 = vsel %vm16054_vm3, %v1822_v0, 0.0  ;;  %v19018_v6 = vrot.slane %v16052_v36, 2  ;;  %v479_v28 = vmul.u32 18, %v478_v13 }
 0x1a9   : > { %19162 = vst [vmem:[#allocation21_spill] sm:$0xff] %v19161_v12  ;;  %v2902_v47 = vsel %vm19060_vm2, %v19163_v55, %v19019_v34  ;;  %v1911_v56 = vsel %vm15954_vm7, %v1902_v21, %v1910_v35  ;;  %v1858_v2 = vpack.c.bf16 %v1849_v41, %v1849_v41  ;;  %v1804_v42 = vadd.f32 %v1790_v61, %v15648_v52 }
 0x1aa   : > { %1969 = vst [vmem:[#allocation2 + $0x18] sm:$0xf] %v1911_v56  ;;  %3122 = vmatmul.bf16.gmra.mxu0 %v2902_v47  ;;  %v19164_v14 = vrot.slane %v15853_v8, 2  ;;  %v16084_v7 = vsel %vm685_vm1, %v15879_v19, %v16037_v53  ;;  %v2789_v60 = vunpack.c.l.b16 %v2761_v26  ;;  %v16088_v52 = vunpack.c.l.b16 %v16071_v39 }
 0x1ab   : > { %v1914_v32 = vshrl.u32 %v1858_v2, 16  ;;  %v1917_v21 = vshll.u32 %v1858_v2, 16  ;;  %3778 = vmatmul.bf16.gmra.mxu2 %v16084_v7  ;;  %v1912_v51 = vrot.slane %v1910_v35, 4  ;;  %v480_v44 = vsub.s32 %v15938_v24, %v479_v28  ;;  %v2466_v63 = vpop.f32.mrf.mxu2  ;;  %v1791_v24 = vpop.f32.mrf.mxu0 }
 0x1ac   : > { %v2904_v43 = vsel %vm19060_vm2, %v19164_v14, %v19018_v6  ;;  %v1814_v8 = vadd.f32 %v15795_v16, %v1804_v42  ;;  %v3403_v0 = vshrl.u32 %v15867_v59, 16  ;;  %v16094_v22 = vadd.s32 56, %v15563_v20  ;;  %v2499_v26 = vpop.f32.mrf.mxu3  ;;  %v2435_v61 = vpop.f32.mrf.mxu1 }
 0x1ad   : > { %3155 = vmatmul.bf16.gmra.mxu1 %v2904_v43  ;;  %v1916_v18 = vrot.slane %v1914_v32, 6  ;;  %v1919_v30 = vrot.slane %v1917_v21, 7  ;;  %vm547_vm4 = vcmp.ne.s32.totalorder %v480_v44, 0  ;;  %vm556_vm6 = vcmp.lt.s32.totalorder %v480_v44, 0 }
 0x1ae   : > { %v574_v4 = vadd.s32 18, %v480_v44  ;;  %v1823_v13 = vmax.f32 %v1814_v8, 0.0  ;;  %vm565_vm9 = vmand %vm556_vm6, %vm547_vm4  ;;  %v2467_v35 = vadd.f32 %v2466_v63, %v2433_v45  ;;  %v16099_v55 = vadd.s32 64, %v15563_v20  ;;  %v14050_v63 = vld [vmem:[#allocation6 + $0xa8] sm:$0xff] }
 0x1af   : > { %v16096_v41 = vor.u32 %v1919_v30, %v1916_v18  ;;  %v486_v59 = vand.u32 65535, %v16094_v22  ;;  %v487_v56 = vshrl.u32 %v16094_v22, 16  ;;  %v1792_v2 = vadd.f32 %v1791_v24, %v15700_v33  ;;  %v14034_v24 = vld [vmem:[#allocation6 + $0x28] sm:$0xff]  ;;  %4076 = vmatpush.bf16.msrb.mxu3 %v14050_v63 }
 0x1b0   : > { %v583_v47 = vsel %vm565_vm9, %v574_v4, %v480_v44  ;;  %v19165_v42 = vmov 0  ;;  %v16112_v45 = vor.u32 %v3403_v0, %v15905_v48  ;;  %v3513_v20 = vshll.u32 %v16071_v39, 16  ;;  %v19169_v0 = vld [vmem:[#allocation15_spill] sm:$0xff]  ;;  %4010 = vmatpush.bf16.msrb.mxu1 %v14034_v24 }
 0x1b1   : > { %v1921_v28 = vsel %vm15954_vm7, %v1912_v51, %v16096_v41  ;;  %vm16107_vm13 = vcmp.lt.s32.totalorder %v583_v47, 16  ;;  %v16117_v43 = vadd.f32 %v2499_v26, %v2467_v35  ;;  %v489_v33 = vmul.u32 14564, %v486_v59  ;;  %v14074_v47 = vld [vmem:[#allocation6 + $0x168] sm:$0xff] }
 0x1b2   : > { %v19166_v42 = vsel %vm16107_vm13, 4294967295, %v19165_v42  ;;  %1970 = vst [vmem:[#allocation2 + $0x1c] sm:$0xf] %v1921_v28  ;;  %v1850_v14 = vsel %vm16107_vm13, %v1823_v13, 0.0  ;;  %v490_v32 = vmul.u32 58254, %v486_v59  ;;  %v16119_v44 = vrot.slane %v3513_v20, 1  ;;  %3833 = vmatpush.bf16.msrb.mxu0 %v14074_v47 }
 0x1b3   : > { %19167 = vst [vmem:[#allocation22_spill] sm:$0xff] %v19166_v42  ;;  %v1859_v21 = vpack.c.bf16 %v1850_v14, %v1850_v14  ;;  %v491_v51 = vmul.u32 14564, %v487_v56  ;;  %v19168_v8 = vunpack.c.l.b16 %v15612_v40  ;;  %v492_v48 = vmul.u32 58254, %v487_v56 }
 0x1b4   : > { %v493_v30 = vshll.u32 %v490_v32, 16  ;;  %v1805_v4 = vadd.f32 %v1792_v2, %v19169_v0  ;;  %v16129_v35 = vsel %vm19030_vm0, %v16112_v45, %v16119_v44  ;;  %v16132_v56 = vpop.f32.mrf.mxu3  ;;  %v515_v2 = vand.u32 65535, %v16099_v55  ;;  %v1794_v0 = vpop.f32.mrf.mxu0 }
 0x1b5   : > { %v16123_v18 = vpack.c.b16 %v2789_v60, %v19168_v8  ;;  %v1924_v13 = vshrl.u32 %v1859_v21, 16  ;;  %v1927_v26 = vshll.u32 %v1859_v21, 16  ;;  %v495_v59 = vshll.u32 %v491_v51, 16  ;;  %v2468_v60 = vpop.f32.mrf.mxu2  ;;  %v16136_v6 = vpop.f32.mrf.mxu1 }
 0x1b6   : > { %v19025_v28 = vrot.slane %v16129_v35, 1  ;;  %vm497_vm4 = vc.u32 %v489_v33, %v493_v30  ;;  %v499_v40 = vadd.s32 %v493_v30, %v489_v33  ;;  %v494_v21 = vshrl.u32 %v490_v32, 16 }
 0x1b7   : > { %v1926_v20 = vrot.slane %v1924_v13, 6  ;;  %v1929_v14 = vrot.slane %v1927_v26, 7  ;;  %v498_v8 = vsel %vm497_vm4, 1, %v19157_v27  ;;  %v19170_v33 = vrot.slane %v15926_v50, 1 }
 0x1b8   : > { %v500_v63 = vadd.s32 %v498_v8, %v492_v48  ;;  %vm501_vm6 = vc.u32 %v499_v40, %v495_v59  ;;  %v16143_v24 = vadd.f32 %v2468_v60, %v2435_v61  ;;  %v1922_v13 = vrot.slane %v16096_v41, 4 }
 0x1b9   : > { %v3594_v30 = vsel %vm685_vm1, %v19170_v33, %v19025_v28  ;;  %v16146_v26 = vor.u32 %v1929_v14, %v1926_v20  ;;  %v502_v32 = vsel %vm501_vm6, 1, %v19157_v27  ;;  %v516_v47 = vshrl.u32 %v16099_v55, 16  ;;  %v14824_v14 = vld [vmem:[%s15153_s30 + $0x4c] sm:$0xff]  ;;  %v3488_v28 = vld [vmem:[%s15153_s30 + $0x74] sm:$0x3] }
 0x1ba   : > { %3811 = vmatmul.bf16.gmra.mxu3 %v3594_v30  ;;  %v496_v34 = vshrl.u32 %v491_v51, 16  ;;  %v504_v37 = vadd.s32 %v502_v32, %v500_v63  ;;  %v518_v42 = vmul.u32 14564, %v515_v2  ;;  %v519_v12 = vmul.u32 58254, %v515_v2 }
 0x1bb   : > { %v1931_v48 = vsel %vm15954_vm7, %v1922_v13, %v16146_v26  ;;  %v16153_v61 = vmul.u32 14564, %v516_v47  ;;  %v521_v59 = vmul.u32 58254, %v516_v47  ;;  %v1795_v60 = vadd.f32 %v1794_v0, %v15741_v31 }
 0x1bc   : > { %1971 = vst [vmem:[#allocation2 + $0x20] sm:$0xf] %v1931_v48  ;;  %v505_v41 = vadd.s32 %v504_v37, %v494_v21  ;;  %v522_v40 = vshll.u32 %v519_v12, 16  ;;  %v16157_v20 = vadd.f32 %v15795_v16, %v1805_v4  ;;  %v2819_v2 = vshrl.u32 %v14824_v14, 16  ;;  %v14041_v37 = vld [vmem:[#allocation6 + $0x60] sm:$0xff]  ;;  %v2504_v31 = vpop.f32.mrf.mxu3 }
 0x1bd   : > { %v524_v51 = vshll.u32 %v16153_v61, 16  ;;  %v2823_v8 = vshll.u32 %v16123_v18, 16  ;;  %v16163_v63 = vadd.f32 %v1795_v60, %v15712_v54  ;;  %v14049_v21 = vld [vmem:[#allocation6 + $0xa0] sm:$0xff]  ;;  %v2471_v13 = vpop.f32.mrf.mxu2  ;;  %v2840_v48 = vrot.slane %v16123_v18, 1  ;;  %4044 = vmatpush.bf16.msrb.mxu2 %v14041_v37  ;;  %v14072_v37 = vld [vmem:[#allocation6 + $0x158] sm:$0xff] }
 0x1be   : > { %v506_v33 = vadd.s32 %v505_v41, %v496_v34  ;;  %vm526_vm9 = vc.u32 %v518_v42, %v522_v40  ;;  %v528_v30 = vadd.s32 %v522_v40, %v518_v42  ;;  %v14033_v4 = vld [vmem:[#allocation6 + $0x20] sm:$0xff]  ;;  %v2821_v32 = vor.u32 %v2819_v2, %v16033_v23  ;;  %v16171_v34 = vld [vmem:[%s15153_s30 + $0x70] sm:$0xf]  ;;  %v1796_v42 = vpop.f32.mrf.mxu0  ;;  %v2440_v41 = vpop.f32.mrf.mxu1  ;;  %4077 = vmatpush.bf16.msrb.mxu3 %v14049_v21 }
 0x1bf   : > { %v527_v0 = vsel %vm526_vm9, 1, %v19157_v27  ;;  %v16167_v47 = vrot.slane %v2823_v8, 1  ;;  %v14073_v54 = vld [vmem:[#allocation6 + $0x160] sm:$0xff]  ;;  %v523_v60 = vshrl.u32 %v519_v12, 16  ;;  %v19171_v2 = vrot.slane %v15633_v29, 1  ;;  %4011 = vmatpush.bf16.msrb.mxu1 %v14033_v4  ;;  %v14032_v4 = vld [vmem:[#allocation6 + $0x18] sm:$0xff] }
 0x1c0   : > { %v507_v40 = vshrl.u32 %v506_v33, 4  ;;  %v529_v14 = vadd.s32 %v527_v0, %v521_v59  ;;  %vm530_vm4 = vc.u32 %v528_v30, %v524_v51  ;;  %v16187_v12 = vrot.slane %v16071_v39, 1  ;;  %3834 = vmatpush.bf16.msrb.mxu0 %v14073_v54  ;;  %v14040_v59 = vld [vmem:[#allocation6 + $0x58] sm:$0xff] }
 0x1c1   : > { %v531_v9 = vsel %vm530_vm4, 1, %v19157_v27  ;;  %v16177_v23 = vsel %vm19030_vm0, %v2821_v32, %v16167_v47  ;;  %v16184_v8 = vsel %vm685_vm1, %v19171_v2, %v2840_v48  ;;  %v525_v27 = vshrl.u32 %v16153_v61, 16  ;;  %4045 = vmatpush.bf16.msrb.mxu2 %v14040_v59 }
 0x1c2   : > { %v508_v51 = vmul.u32 18, %v507_v40  ;;  %v533_v33 = vadd.s32 %v531_v9, %v529_v14  ;;  %v2907_v30 = vrot.slane %v16177_v23, 2  ;;  %v2909_v21 = vrot.slane %v16184_v8, 2  ;;  %4078 = vmatpush.bf16.msrb.mxu3 %v14048_v58  ;;  %v14047_v40 = vld [vmem:[#allocation6 + $0x90] sm:$0xff] }
 0x1c3   : > { %v16195_v29 = vsel %vm685_vm1, %v16037_v53, %v16187_v12  ;;  %v3496_v0 = vunpack.c.l.b16 %v16171_v34  ;;  %v3502_v32 = vunpack.c.l.b16 %v3488_v28  ;;  %v1824_v41 = vmax.f32 %v16157_v20, 0.0  ;;  %4012 = vmatpush.bf16.msrb.mxu1 %v14032_v4 }
 0x1c4   : > { %v509_v42 = vsub.s32 %v16094_v22, %v508_v51  ;;  %v534_v61 = vadd.s32 %v533_v33, %v523_v60  ;;  %v19172_v9 = vrot.slane %v16042_v15, 2  ;;  %3783 = vmatmul.bf16.gmra.mxu2 %v16195_v29  ;;  %v19173_v28 = vrot.slane %v16052_v36, 2  ;;  %v14039_v60 = vld [vmem:[#allocation6 + $0x50] sm:$0xff]  ;;  %v2506_v51 = vpop.f32.mrf.mxu3  ;;  %3835 = vmatpush.bf16.msrb.mxu0 %v14072_v37 }
 0x1c5   : > { %v16211_v20 = vpack.c.b16 %v3502_v32, %v3496_v0  ;;  %v3517_v34 = vshrl.u32 %v16071_v39, 16  ;;  %v2472_v15 = vadd.f32 %v2471_v13, %v16136_v6  ;;  %v2473_v2 = vpop.f32.mrf.mxu2  ;;  %v3487_v33 = vld [vmem:[%s15153_s30 + $0x74] sm:$0x1]  ;;  %v2827_v59 = vshrl.u32 %v16123_v18, 16  ;;  %4046 = vmatpush.bf16.msrb.mxu2 %v14039_v60 }
 0x1c6   : > { %v2908_v54 = vsel %vm19060_vm2, %v19172_v9, %v2907_v30  ;;  %v2910_v22 = vsel %vm19060_vm2, %v19173_v28, %v2909_v21  ;;  %vm548_vm6 = vcmp.ne.s32.totalorder %v509_v42, 0  ;;  %vm557_vm9 = vcmp.lt.s32.totalorder %v509_v42, 0  ;;  %v14071_v36 = vld [vmem:[#allocation6 + $0x150] sm:$0xff]  ;;  %v2661_v6 = vpop.f32.mrf.mxu0  ;;  %v2694_v13 = vpop.f32.mrf.mxu1  ;;  %4079 = vmatpush.bf16.msrb.mxu3 %v14047_v40 }
 0x1c7   : > { %3127 = vmatmul.bf16.gmra.mxu0 %v2908_v54  ;;  %v575_v58 = vadd.s32 18, %v509_v42  ;;  %v535_v14 = vadd.s32 %v534_v61, %v525_v27  ;;  %3160 = vmatmul.bf16.gmra.mxu1 %v2910_v22  ;;  %vm566_vm4 = vmand %vm557_vm9, %vm548_vm6  ;;  %v3519_v32 = vor.u32 %v3517_v34, %v16119_v44  ;;  %v3521_v9 = vshll.u32 %v16211_v20, 16  ;;  %v14031_v54 = vld [vmem:[#allocation6 + $0x10] sm:$0xff]  ;;  %v14046_v22 = vld [vmem:[#allocation6 + $0x88] sm:$0xff] }
 0x1c8   : > { %v16218_v39 = vadd.f32 %v2504_v31, %v2472_v15  ;;  %v1816_v28 = vadd.f32 %v15795_v16, %v16163_v63  ;;  %v2662_v37 = vadd.f32 %v2661_v6, %v15869_v46  ;;  %v16229_v34 = vor.u32 %v2827_v59, %v16167_v47  ;;  %v14038_v15 = vld [vmem:[#allocation6 + $0x48] sm:$0xff]  ;;  %3836 = vmatpush.bf16.msrb.mxu0 %v14071_v36 }
 0x1c9   : > { %v584_v27 = vsel %vm566_vm4, %v575_v58, %v509_v42  ;;  %v536_v61 = vshrl.u32 %v535_v14, 4  ;;  %v3523_v31 = vrot.slane %v3521_v9, 1  ;;  %v3497_v4 = vunpack.c.l.b16 %v3487_v33  ;;  %4013 = vmatpush.bf16.msrb.mxu1 %v14031_v54  ;;  %4047 = vmatpush.bf16.msrb.mxu2 %v14038_v15 }
 0x1ca   : > { %vm16224_vm6 = vcmp.lt.s32.totalorder %v584_v27, 16  ;;  %v2695_v16 = vadd.f32 %v2694_v13, %v2662_v37  ;;  %v1825_v47 = vmax.f32 %v1816_v28, 0.0  ;;  %4080 = vmatpush.bf16.msrb.mxu3 %v14046_v22  ;;  %v2487_v6 = vadd.f32 %v15893_v5, %v15902_v62  ;;  %v14030_v28 = vld [vmem:[#allocation6 + $0x8] sm:$0xff]  ;;  %v14037_v5 = vld [vmem:[#allocation6 + $0x40] sm:$0xff] }
 0x1cb   : > { %v1851_v42 = vsel %vm16224_vm6, %v1824_v41, 0.0  ;;  %v537_v58 = vmul.u32 18, %v536_v61  ;;  %v16234_v63 = vsel %vm19030_vm0, %v3519_v32, %v3523_v31  ;;  %v16236_v40 = vpack.c.b16 %v3497_v4, %v3496_v0  ;;  %v14045_v62 = vld [vmem:[#allocation6 + $0x80] sm:$0xff] }
 0x1cc   : > { %v1860_v46 = vpack.c.bf16 %v1851_v42, %v1851_v42  ;;  %v3597_v2 = vrot.slane %v16234_v63, 1  ;;  %v2913_v41 = vrot.slane %v16229_v34, 2  ;;  %v19176_v0 = vrot.slane %v16129_v35, 1  ;;  %v16247_v9 = vpop.f32.mrf.mxu3  ;;  %v14070_v35 = vld [vmem:[#allocation6 + $0x148] sm:$0xff]  ;;  %v6831_v34 = vld [vmem:[#allocation2 + $0x10] sm:$0x8] }
 0x1cd   : > { %v538_v14 = vsub.s32 %v16099_v55, %v537_v58  ;;  %v3601_v33 = vrot.slane %v16236_v40, 1  ;;  %v2727_v32 = vpop.f32.mrf.mxu2  ;;  %v16253_v54 = vrot.slane %v2840_v48, 2  ;;  %v1932_v37 = vrot.slane %v16146_v26, 4  ;;  %4014 = vmatpush.bf16.msrb.mxu1 %v14030_v28  ;;  %3837 = vmatpush.bf16.msrb.mxu0 %v14070_v35  ;;  %v14029_v26 = vld [vmem:[#allocation6] sm:$0xff] }
 0x1ce   : > { %v1934_v60 = vshrl.u32 %v1860_v46, 16  ;;  %v1937_v51 = vshll.u32 %v1860_v46, 16  ;;  %v3598_v55 = vsel %vm685_vm1, %v19176_v0, %v3597_v2  ;;  %v2663_v27 = vpop.f32.mrf.mxu0  ;;  %v2696_v61 = vpop.f32.mrf.mxu1  ;;  %v3525_v4 = vshrl.u32 %v16211_v20, 16  ;;  %4048 = vmatpush.bf16.msrb.mxu2 %v14037_v5  ;;  %4081 = vmatpush.bf16.msrb.mxu3 %v14045_v62  ;;  %v3489_v62 = vld [vmem:[%s15153_s30 + $0x50] sm:$0xc] }
 0x1cf   : > { %vm549_vm9 = vcmp.ne.s32.totalorder %v538_v14, 0  ;;  %vm558_vm4 = vcmp.lt.s32.totalorder %v538_v14, 0  ;;  %v576_v36 = vadd.s32 18, %v538_v14  ;;  %3816 = vmatmul.bf16.gmra.mxu3 %v3598_v55  ;;  %v16257_v15 = vadd.f32 %v2727_v32, %v2695_v16 }
 0x1d0   : > { %v1936_v13 = vrot.slane %v1934_v60, 6  ;;  %v1939_v59 = vrot.slane %v1937_v51, 7  ;;  %vm567_vm0 = vmand %vm558_vm4, %vm549_vm9  ;;  %v3602_v18 = vsel %vm685_vm1, %v16187_v12, %v3601_v33  ;;  %v2664_v48 = vadd.f32 %v2663_v27, %v2487_v6 }
 0x1d1   : > { %v585_v22 = vsel %vm567_vm0, %v576_v36, %v538_v14  ;;  %v2914_v46 = vsel %vm19060_vm2, %v2907_v30, %v2913_v41  ;;  %v14069_v14 = vld [vmem:[#allocation6 + $0x140] sm:$0xff]  ;;  %v2916_v36 = vsel %vm19060_vm2, %v2909_v21, %v16253_v54  ;;  %4015 = vmatpush.bf16.msrb.mxu1 %v14029_v26  ;;  %v2492_v26 = vadd.f32 %v15995_v11, %v15999_v10 }
 0x1d2   : > { %v1940_v42 = vor.u32 %v1939_v59, %v1936_v13  ;;  %vm16259_vm9 = vcmp.lt.s32.totalorder %v585_v22, 16  ;;  %v2697_v30 = vadd.f32 %v2696_v61, %v2664_v48  ;;  %3838 = vmatpush.bf16.msrb.mxu0 %v14069_v14  ;;  %v1974_v61 = vld [vmem:[#allocation2 + $0x2c] sm:$0x3]  ;;  %v3529_v63 = vunpack.c.l.b16 %v3489_v62 }
 0x1d3   : > { %v1852_v16 = vsel %vm16259_vm9, %v1825_v47, 0.0  ;;  %v16280_v47 = vor.u32 %v3525_v4, %v3523_v31  ;;  %v19180_v11 = vunpack.c.h.b16 %v15829_v25  ;;  %v6900_v62 = vunpack.c.l.b16 %v6831_v34 }
 0x1d4   : > { %v1941_v60 = vsel %vm15954_vm7, %v1932_v37, %v1940_v42  ;;  %v1861_v51 = vpack.c.bf16 %v1852_v16, %v1852_v16  ;;  %3788 = vmatmul.bf16.gmra.mxu2 %v3602_v18  ;;  %v16282_v32 = vpop.f32.mrf.mxu3  ;;  %v1942_v28 = vrot.slane %v1940_v42, 4  ;;  %vm19182_vm0 = vsmask.f32 7424 }
 0x1d5   : > { %1972 = vst [vmem:[#allocation2 + $0x24] sm:$0xf] %v1941_v60  ;;  %v2729_v55 = vpop.f32.mrf.mxu2  ;;  %v3603_v31 = vrot.slane %v16280_v47, 1  ;;  %v14103_v60 = vld [vmem:[#allocation6 + $0x238] sm:$0xff]  ;;  %v3530_v10 = vpack.c.b16 %v19180_v11, %v3529_v63  ;;  %v14093_v47 = vld [vmem:[#allocation6 + $0x1e8] sm:$0xff]  ;;  %vm19189_vm4 = vmmov %vm19182_vm0 }
 0x1d6   : > { %v1944_v0 = vshrl.u32 %v1861_v51, 16  ;;  %v1947_v23 = vshll.u32 %v1861_v51, 16  ;;  %v16284_v8 = vadd.f32 %v2729_v55, %v2697_v30  ;;  %v2666_v21 = vpop.f32.mrf.mxu0  ;;  %v2699_v59 = vpop.f32.mrf.mxu1  ;;  %v14095_v51 = vld [vmem:[#allocation6 + $0x1f8] sm:$0xff]  ;;  %4498 = vmatpush.bf16.msra.mxu2 %v14103_v60  ;;  %v16305_v30 = vld [vmem:[%s15153_s30 + $0x48] sm:$0xff]   ;;  %v14136_v55 = vld [vmem:[#allocation6 + $0xf0] sm:$0xff] }
 0x1d7   : > { %3132 = vmatmul.bf16.gmra.mxu0 %v2914_v46  ;;  %3165 = vmatmul.bf16.gmra.mxu1 %v2916_v36  ;;  %v2667_v27 = vadd.f32 %v2666_v21, %v15977_v38  ;;  %v3604_v5 = vsel %vm685_vm1, %v3597_v2, %v3603_v31  ;;  %v14137_v2 = vld [vmem:[#allocation6 + $0xf8] sm:$0xff]  ;;  %v16314_v21 = vld [vmem:[#allocation2 + $0x14] sm:$0xf] }
 0x1d8   : > { %v1946_v6 = vrot.slane %v1944_v0, 6  ;;  %v1949_v13 = vrot.slane %v1947_v23, 7  ;;  %v14087_v36 = vld [vmem:[#allocation6 + $0x1b8] sm:$0xff]  ;;  %5121 = vmatpush.bf16.msra.mxu3 %v14137_v2  ;;  %v14102_v23 = vld [vmem:[#allocation6 + $0x230] sm:$0xff]  ;;  %4465 = vmatpush.bf16.msra.mxu1 %v14095_v51  ;;  %19181 = vst [vmem:[#allocation15_spill] sm:$0xff] %v16314_v21 }
 0x1d9   : > { %v2700_v37 = vadd.f32 %v2699_v59, %v2667_v27  ;;  %4432 = vmatpush.bf16.msra.mxu0 %v14087_v36  ;;  %v14697_v60 = vld [vmem:[%s15153_s30 + $0x48] sm:$0xf0] }
 0x1da   : > { %v1950_v35 = vor.u32 %v1949_v13, %v1946_v6  ;;  %v3378_v13 = vshll.u32 %v16305_v30, 16  ;;  %4499 = vmatpush.bf16.msra.mxu2 %v14102_v23 }
 0x1dc   : > { %v1951_v22 = vsel %vm15954_vm7, %v1942_v28, %v1950_v35  ;;  %v1952_v4 = vrot.slane %v1950_v35, 4  ;;  %v16298_v42 = vpop.f32.mrf.mxu3  ;;  %5122 = vmatpush.bf16.msra.mxu3 %v14136_v55  ;;  %v3531_v28 = vrot.slane %v3530_v10, 1  ;;  %v16322_v35 = vld [vmem:[#allocation2 + $0x18] sm:$0xff] }
 0x1dd   : > { %1973 = vst [vmem:[#allocation2 + $0x28] sm:$0xf] %v1951_v22  ;;  %v2732_v38 = vpop.f32.mrf.mxu2  ;;  %v16327_v22 = vld [vmem:[%s15153_s30 + $0x50] sm:$0xff]  }
 0x1de   : > { %v1975_v48 = vsel %vm15625_vm8, %v1952_v4, %v1974_v61  ;;  %v16302_v16 = vadd.f32 %v2732_v38, %v2700_v37  ;;  %v2668_v46 = vpop.f32.mrf.mxu0  ;;  %v2701_v14 = vpop.f32.mrf.mxu1  ;;  %v19032_v61 = vunpack.c.l.b16 %v16314_v21  ;;  %v3376_v37 = vshrl.u32 %v16305_v30, 16  ;;  %v14094_v10 = vld [vmem:[#allocation6 + $0x1f0] sm:$0xff] }
 0x1df   : > { %1976 = vst [vmem:[#allocation2 + $0x2c] sm:$0x3] %v1975_v48  ;;  %3821 = vmatmul.bf16.gmra.mxu3 %v3604_v5  ;;  %v2669_v0 = vadd.f32 %v2668_v46, %v2492_v26  ;;  %v3383_v4 = vshll.u32 %v16327_v22, 16  ;;  %v3532_v48 = vsel %vm685_vm1, %v3531_v28, %v15879_v19  ;;  %v6903_v38 = vrot.slane %v16322_v35, 1  ;;  %v14182_v28 = vld [vmem:[#allocation2 + $0x18] sm:$0xff]  ;;  %4466 = vmatpush.bf16.msra.mxu1 %v14094_v10 }
 0x1e0   : > { %v3590_v63 = vrot.slane %v3532_v48, 1  ;;  %v6111_v48 = vshll.u32 %v14182_v28, 16 }
 0x1e1   : > { %v2702_v6 = vadd.f32 %v2701_v14, %v2669_v0  ;;  %v16335_v46 = vrot.slane %v3383_v4, 1  ;;  %v3591_v14 = vrot.slane %v16084_v7, 1  ;;  %v2497_v0 = vadd.f32 %v16044_v17, %v16058_v49 }
 0x1e3   : > { %4467 = vmatpush.bf16.msra.mxu1 %v14093_v47 }
 0x1e4   : > { %3793 = vmatmul.bf16.gmra.mxu2 %v3601_v33  ;;  %v16317_v27 = vpop.f32.mrf.mxu3 }
 0x1e5   : > { %v2734_v59 = vpop.f32.mrf.mxu2 }
 0x1e6   : > { %v16319_v25 = vadd.f32 %v2734_v59, %v2702_v6  ;;  %v2671_v40 = vpop.f32.mrf.mxu0  ;;  %v2704_v33 = vpop.f32.mrf.mxu1  ;;  %v14086_v6 = vld [vmem:[#allocation6 + $0x1b0] sm:$0xff]  ;;  %v3535_v59 = vrot.slane %v16211_v20, 1 }
 0x1e7   : > { %3137 = vmatmul.bf16.gmra.mxu0 %v2913_v41  ;;  %3170 = vmatmul.bf16.gmra.mxu1 %v16253_v54  ;;  %v2672_v41 = vadd.f32 %v2671_v40, %v16029_v57  ;;  %v3380_v54 = vrot.slane %v3378_v13, 1  ;;  %v6901_v57 = vpack.c.b16 %v19032_v61, %v6900_v62  ;;  %v14101_v13 = vld [vmem:[#allocation6 + $0x228] sm:$0xff]  ;;  %v14698_v40 = vld [vmem:[%s15153_s30 + $0x48] sm:$0xe] }
 0x1e8   : > { %4433 = vmatpush.bf16.msra.mxu0 %v14086_v6  ;;  %4500 = vmatpush.bf16.msra.mxu2 %v14101_v13  ;;  %v14699_v4 = vor.u32 %v14698_v40, %v14697_v60  ;;  %v16377_v13 = vrot.slane %v6111_v48, 1  ;;  %v16380_v40 = vld [vmem:[#allocation2 + $0x20] sm:$0xff]  ;;  %v3595_v48 = vrot.slane %v16195_v29, 1 }
 0x1e9   : > { %v2705_v5 = vadd.f32 %v2704_v33, %v2672_v41  ;;  %v3381_v26 = vor.u32 %v3380_v54, %v3376_v37  ;;  %v6902_v36 = vrot.slane %v6901_v57, 1  ;;  %v14135_v33 = vld [vmem:[#allocation6 + $0xe8] sm:$0xff]  ;;  %v6053_v41 = vld [vmem:[#allocation2 + $0x20] sm:$0xff]   ;;  %v3592_v37 = vsel %vm685_vm1, %v3590_v63, %v3591_v14 }
 0x1ea   : > { %5123 = vmatpush.bf16.msra.mxu3 %v14135_v33  ;;  %v14085_v54 = vld [vmem:[#allocation6 + $0x1a8] sm:$0xff]  ;;  %v16365_v62 = vunpack.c.l.b16 %v6053_v41  ;;  %v6054_v57 = vld [vmem:[#allocation2 + $0x24] sm:$0x1]  ;;  %v3422_v63 = vrot.slane %v14699_v4, 1  ;;  %19185 = vst [vmem:[#allocation24_spill] sm:$0xff] %v16377_v13  ;;  %v16384_v41 = vrot.slane %v14182_v28, 1 }
 0x1eb   : > { %v16352_v34 = vsel %vm685_vm1, %v6902_v36, %v6903_v38  ;;  %v3386_v17 = vsel %vm19182_vm0, %v3381_v26, %v16335_v46 }
 0x1ec   : > { %v16339_v51 = vpop.f32.mrf.mxu3  ;;  %19183 = vst [vmem:[#allocation13_spill] sm:$0xff] %v16365_v62  ;;  %4434 = vmatpush.bf16.msra.mxu0 %v14085_v54 }
 0x1ed   : > { %v2737_v2 = vpop.f32.mrf.mxu2  ;;  %19186 = vst [vmem:[#allocation25_spill] sm:$0xff] %v16384_v41 }
 0x1ee   : > { %v16345_v23 = vadd.f32 %v2737_v2, %v2705_v5  ;;  %v2673_v55 = vpop.f32.mrf.mxu0  ;;  %v2706_v11 = vpop.f32.mrf.mxu1  ;;  %v14100_v5 = vld [vmem:[#allocation6 + $0x220] sm:$0xff] }
 0x1ef   : > { %3826 = vmatmul.bf16.gmra.mxu3 %v3603_v31  ;;  %v2674_v49 = vadd.f32 %v2673_v55, %v2497_v0  ;;  %v16360_v31 = vsel %vm685_vm1, %v16187_v12, %v3535_v59  ;;  %v6085_v12 = vunpack.c.l.b16 %v6054_v57  ;;  %v3423_v0 = vrot.slane %v16327_v22, 1  ;;  %4501 = vmatpush.bf16.msra.mxu2 %v14100_v5 }
 0x1f0   : > { %v19034_v5 = vrot.slane %v16380_v40, 1 }
 0x1f1   : > { %v2707_v26 = vadd.f32 %v2706_v11, %v2674_v49  ;;  %v16374_v6 = vpack.c.b16 %v6085_v12, %v16365_v62  ;;  %v6115_v49 = vshrl.u32 %v14182_v28, 16  ;;  %v3424_v47 = vsel %vm685_vm1, %v3422_v63, %v3423_v0 }
 0x1f3   : > { %19184 = vst [vmem:[#allocation23_spill] sm:$0xff] %v16374_v6  ;;  %v6119_v33 = vshll.u32 %v16374_v6, 16 }
 0x1f4   : > { %4049 = vmatmul.bf16.vlgmr.msrb.gmra.mxu2 %v3386_v17  ;;  %v16368_v36 = vpop.f32.mrf.mxu3 }
 0x1f5   : > { %v2739_v2 = vpop.f32.mrf.mxu2  ;;  %v16389_v54 = vrot.slane %v6119_v33, 1  ;;  %v14099_v33 = vld [vmem:[#allocation6 + $0x218] sm:$0xff] }
 0x1f6   : > { %v16371_v60 = vadd.f32 %v2739_v2, %v2707_v26  ;;  %v2676_v55 = vpop.f32.mrf.mxu0  ;;  %v2709_v10 = vpop.f32.mrf.mxu1  ;;  %4502 = vmatpush.bf16.msra.mxu2 %v14099_v33 }
 0x1f7   : > { %3839 = vmatmul.bf16.vlgmr.msrb.gmra.mxu0 %v3592_v37  ;;  %4016 = vmatmul.bf16.vlgmr.msrb.gmra.mxu1 %v16305_v30  ;;  %v2677_v11 = vadd.f32 %v2676_v55, %v16117_v43  ;;  %v3387_v30 = vshrl.u32 %v16327_v22, 16  ;;  %v16387_v37 = vor.u32 %v6115_v49, %v16377_v13  ;;  %19188 = vst [vmem:[#allocation27_spill] sm:$0xff] %v16389_v54  ;;  %v19031_v43 = vrot.slane %v16374_v6, 1  ;;  %v14134_v55 = vld [vmem:[#allocation6 + $0xe0] sm:$0xff]  ;;  %v14151_v6 = vld [vmem:[#allocation6 + $0x168] sm:$0xff] }
 0x1f8   : > { %v6966_v49 = vrot.slane %v16352_v34, 2  ;;  %5124 = vmatpush.bf16.msra.mxu3 %v14134_v55 }
 0x1f9   : > { %v2710_v17 = vadd.f32 %v2709_v10, %v2677_v11  ;;  %19187 = vst [vmem:[#allocation26_spill] sm:$0xff] %v16387_v37  ;;  %v3389_v4 = vor.u32 %v3387_v30, %v16335_v46  ;;  %v16400_v28 = vsel %vm19189_vm4, %v16387_v37, %v16389_v54  ;;  %v16406_v12 = vsel %vm685_vm1, %v16384_v41, %v19031_v43  ;;  %v14092_v10 = vld [vmem:[#allocation6 + $0x1e0] sm:$0xff]  ;;  %vm19193_vm4 = vmmov %vm19182_vm0 }
 0x1fa   : > { %19190 = vst [vmem:[#allocation28_spill] sm:$0xff] %v16400_v28  ;;  %v2502_v46 = vadd.f32 %v16132_v56, %v16143_v24  ;;  %v14084_v11 = vld [vmem:[#allocation6 + $0x1a0] sm:$0xff]  ;;  %v16417_v30 = vsel %vm685_vm1, %v6903_v38, %v19034_v5  ;;  %4468 = vmatpush.bf16.msra.mxu1 %v14092_v10  ;;  %v3426_v10 = vsel %vm685_vm1, %v3423_v0, %v15879_v19  ;;  %v14098_v0 = vld [vmem:[#allocation6 + $0x210] sm:$0xff] }
 0x1fb   : > { %19191 = vst [vmem:[#allocation29_spill] sm:$0xff] %v16406_v12  ;;  %v19033_v56 = vrot.slane %v16417_v30, 2  ;;  %v3394_v24 = vsel %vm19182_vm0, %v3389_v4, %v15881_v3  ;;  %4435 = vmatpush.bf16.msra.mxu0 %v14084_v11  ;;  %v3599_v11 = vrot.slane %v16360_v31, 1  ;;  %v14083_v31 = vld [vmem:[#allocation6 + $0x198] sm:$0xff]  ;;  %4503 = vmatpush.bf16.msra.mxu2 %v14098_v0  ;;  %v16507_v43 = vld [vmem:[%s15153_s30 + $0x68] sm:$0xff] }
 0x1fc   : > { %v16395_v26 = vpop.f32.mrf.mxu3  ;;  %v14143_v12 = vld [vmem:[#allocation6 + $0x128] sm:$0xff] }
 0x1fd   : > { %v2742_v57 = vpop.f32.mrf.mxu2  ;;  %v16429_v35 = vsel %vm19060_vm2, %v6966_v49, %v19033_v56 }
 0x1fe   : > { %v16410_v2 = vadd.f32 %v2742_v57, %v2710_v17  ;;  %v2678_v29 = vpop.f32.mrf.mxu0  ;;  %v2711_v63 = vpop.f32.mrf.mxu1  ;;  %v3596_v57 = vsel %vm685_vm1, %v3591_v14, %v3595_v48  ;;  %19192 = vst [vmem:[#allocation30_spill] sm:$0xff] %v16429_v35  ;;  %v16556_v35 = vld [vmem:[%s15153_s30 + $0x70] sm:$0xff] }
 0x1ff   : > { %4082 = vmatmul.bf16.vlgmr.msrb.gmra.mxu3 %v3424_v47  ;;  %v2679_v17 = vadd.f32 %v2678_v29, %v2502_v46  ;;  %v14133_v47 = vld [vmem:[#allocation6 + $0xd8] sm:$0xff]  ;;  %4436 = vmatpush.bf16.msra.mxu0 %v14083_v31  ;;  %v16465_v31 = vld [vmem:[%s18995_s3] ss:$0 sm:$0xff] }
 0x200   : > { %5125 = vmatpush.bf16.msra.mxu3 %v14133_v47 }
 0x201   : > { %v2712_v38 = vadd.f32 %v2711_v63, %v2679_v17  ;;  %v14091_v63 = vld [vmem:[#allocation6 + $0x1d8] sm:$0xff]  ;;  %v3342_v17 = vld [vmem:[%s15153_s30 + $0x6c] sm:$0x1] }
 0x202   : > { %4469 = vmatpush.bf16.msra.mxu1 %v14091_v63  ;;  %v3373_v20 = vunpack.c.l.b16 %v3342_v17 }
 0x204   : > { %4054 = vmatmul.bf16.gmra.mxu2 %v3394_v24  ;;  %v16432_v34 = vpop.f32.mrf.mxu3 }
 0x205   : > { %v2744_v3 = vpop.f32.mrf.mxu2 }
 0x206   : > { %v16434_v4 = vadd.f32 %v2744_v3, %v2712_v38  ;;  %v2681_v14 = vpop.f32.mrf.mxu0  ;;  %v2714_v46 = vpop.f32.mrf.mxu1  ;;  %v14090_v38 = vld [vmem:[#allocation6 + $0x1d0] sm:$0xff] }
 0x207   : > { %3844 = vmatmul.bf16.gmra.mxu0 %v3596_v57  ;;  %4021 = vmatmul.bf16.gmra.mxu1 %v16327_v22  ;;  %v2682_v29 = vadd.f32 %v2681_v14, %v16218_v39  ;;  %v16442_v22 = vrot.slane %v3535_v59, 1  ;;  %v14132_v57 = vld [vmem:[#allocation6 + $0xd0] sm:$0xff]  ;;  %v3600_v59 = vsel %vm685_vm1, %v3595_v48, %v3599_v11  ;;  %v14097_v14 = vld [vmem:[#allocation6 + $0x208] sm:$0xff] }
 0x208   : > { %5126 = vmatpush.bf16.msra.mxu3 %v14132_v57  ;;  %v14082_v3 = vld [vmem:[#allocation6 + $0x190] sm:$0xff]  ;;  %4470 = vmatpush.bf16.msra.mxu1 %v14090_v38  ;;  %v14089_v38 = vld [vmem:[#allocation6 + $0x1c8] sm:$0xff] }
 0x209   : > { %v2715_v55 = vadd.f32 %v2714_v46, %v2682_v29  ;;  %v3606_v24 = vsel %vm685_vm1, %v3599_v11, %v16442_v22  ;;  %v16454_v46 = vpack.c.b16 %v3373_v20, %v16088_v52  ;;  %v14826_v29 = vld [vmem:[%s15153_s30 + $0x58] sm:$0xff]  ;;  %4437 = vmatpush.bf16.msra.mxu0 %v14082_v3  ;;  %4504 = vmatpush.bf16.msra.mxu2 %v14097_v14  ;;  %v14081_v3 = vld [vmem:[#allocation6 + $0x188] sm:$0xff] }
 0x20c   : > { %4471 = vmatpush.bf16.msra.mxu1 %v14089_v38 }
 0x20d   : > { %v2747_v33 = vpop.f32.mrf.mxu2  ;;  %v16444_v49 = vpop.f32.mrf.mxu3  ;;  %4438 = vmatpush.bf16.msra.mxu0 %v14081_v3 }
 0x20e   : > { %v16449_v39 = vadd.f32 %v2747_v33, %v2715_v55  ;;  %v2683_v47 = vpop.f32.mrf.mxu0  ;;  %v2716_v19 = vpop.f32.mrf.mxu1 }
 0x20f   : > { %4087 = vmatmul.bf16.gmra.mxu3 %v3426_v10  ;;  %v14131_v47 = vld [vmem:[#allocation6 + $0xc8] sm:$0xff] }
 0x210   : > { %5127 = vmatpush.bf16.msra.mxu3 %v14131_v47  ;;  %v4108_v47 = vld [vmem:[%s15153_s30 + $0x5c] sm:$0xf] }
 0x214   : > { %4059 = vmatmul.bf16.gmra.mxu2 %v15926_v50  ;;  %v3407_v50 = vshll.u32 %v16454_v46, 16 }
 0x215   : > { %v2749_v55 = vpop.f32.mrf.mxu2  ;;  %v3107_v10 = vpop.f32.mrf.mxu3 }
 0x216   : > { %v3118_v63 = vpop.f32.mrf.mxu0  ;;  %v3151_v33 = vpop.f32.mrf.mxu1  ;;  %v16460_v19 = vrot.slane %v3407_v50, 1  ;;  %v17596_v10 = vld [vmem:[#allocation2 + $0x18] sm:$0xff] }
 0x217   : > { %3849 = vmatmul.bf16.gmra.mxu0 %v3600_v59  ;;  %4026 = vmatmul.bf16.gmra.mxu1 %v14826_v29  ;;  %v3119_v48 = vadd.f32 %v3118_v63, %v16247_v9 }
 0x218   : > { %v3410_v55 = vsel %vm19193_vm4, %v16112_v45, %v16460_v19  ;;  %v14828_v45 = vld [vmem:[%s15153_s30 + $0x60] sm:$0xff]  ;;  %vm19199_vm4 = vmmov %vm19182_vm0 }
 0x219   : > { %v3152_v11 = vadd.f32 %v3151_v33, %v3119_v48  ;;  %v4107_v48 = vld [vmem:[%s15153_s30 + $0x58] sm:$0xc] }
 0x21a   : > { %v4129_v3 = vunpack.c.l.b16 %v4107_v48 }
 0x21b   : > { %v3175_v17 = vadd.f32 %v3152_v11, %v16257_v15  ;;  %v14096_v11 = vld [vmem:[#allocation6 + $0x200] sm:$0xff] }
 0x21c   : > { %4505 = vmatpush.bf16.msra.mxu2 %v14096_v11 }
 0x21d   : > { %v3184_v0 = vadd.f32 %v16465_v31, %v3175_v17  ;;  %v3774_v57 = vpop.f32.mrf.mxu2  ;;  %v3807_v20 = vpop.f32.mrf.mxu3  ;;  %v14130_v17 = vld [vmem:[#allocation6 + $0xc0] sm:$0xff] }
 0x21e   : > { %v16469_v9 = vadd.f32 %v3807_v20, %v3774_v57  ;;  %v3120_v59 = vpop.f32.mrf.mxu0  ;;  %v3153_v15 = vpop.f32.mrf.mxu1  ;;  %v14088_v57 = vld [vmem:[#allocation6 + $0x1c0] sm:$0xff]  ;;  %5128 = vmatpush.bf16.msra.mxu3 %v14130_v17  ;;  %v4118_v17 = vld [vmem:[%s15153_s30 + $0x58] sm:$0x8] }
 0x21f   : > { %4092 = vmatmul.bf16.gmra.mxu3 %v16084_v7  ;;  %v3193_v14 = vmax.f32 %v3184_v0, 0.0  ;;  %v3121_v29 = vadd.f32 %v3120_v59, %v16282_v32  ;;  %4472 = vmatpush.bf16.msra.mxu1 %v14088_v57 }
 0x221   : > { %v3202_v7 = vsel %vm15780_vm14, %v3193_v14, 0.0  ;;  %v3154_v63 = vadd.f32 %v3153_v15, %v3121_v29  ;;  %v19035_v14 = vrot.slane %v16454_v46, 1 }
 0x222   : > { %v3211_v33 = vpack.c.bf16 %v3202_v7, %v3202_v7 }
 0x223   : > { %v3176_v50 = vadd.f32 %v3154_v63, %v16284_v8  ;;  %v4130_v8 = vunpack.c.l.b16 %v4108_v47 }
 0x224   : > { %4064 = vmatmul.bf16.gmra.mxu2 %v3410_v55  ;;  %v3221_v32 = vshrl.u32 %v3211_v33, 16  ;;  %v3224_v0 = vshll.u32 %v3211_v33, 16  ;;  %v3319_v33 = vld [vmem:[#allocation2 + $0x2c] sm:$0xe] }
 0x225   : > { %v3185_v20 = vadd.f32 %v16465_v31, %v3176_v50  ;;  %v16484_v63 = vpop.f32.mrf.mxu2 }
 0x226   : > { %v3223_v59 = vrot.slane %v3221_v32, 6  ;;  %v3226_v38 = vrot.slane %v3224_v0, 7  ;;  %v14080_v0 = vld [vmem:[#allocation6 + $0x180] sm:$0xff] }
 0x227   : > { %3854 = vmatmul.bf16.gmra.mxu0 %v3606_v24  ;;  %4031 = vmatmul.bf16.gmra.mxu1 %v14828_v45  ;;  %v3123_v15 = vpop.f32.mrf.mxu0  ;;  %v3194_v29 = vmax.f32 %v3185_v20, 0.0  ;;  %v16491_v45 = vpack.c.b16 %v4130_v8, %v4129_v3 }
 0x228   : > { %v3124_v55 = vadd.f32 %v3123_v15, %v16298_v42  ;;  %v3227_v7 = vor.u32 %v3226_v38, %v3223_v59  ;;  %v3430_v42 = vsel %vm685_vm1, %v16037_v53, %v19035_v14  ;;  %v3411_v59 = vshrl.u32 %v16454_v46, 16  ;;  %4439 = vmatpush.bf16.msra.mxu0 %v14080_v0  ;;  %v16500_v38 = vld [vmem:[%s15153_s30 + $0x60] sm:$0xff] }
 0x229   : > { %v3203_v11 = vsel %vm15837_vm11, %v3194_v29, 0.0  ;;  %v4155_v0 = vshll.u32 %v16500_v38, 16 }
 0x22a   : > { %v3156_v24 = vpop.f32.mrf.mxu1  ;;  %v3320_v48 = vsel %vm15637_vm10, %v3227_v7, %v3319_v33  ;;  %v3212_v47 = vpack.c.bf16 %v3203_v11, %v3203_v11  ;;  %v3228_v61 = vrot.slane %v3227_v7, 4 }
 0x22b   : > { %v3157_v32 = vadd.f32 %v3156_v24, %v3124_v55  ;;  %3321 = vst [vmem:[#allocation2 + $0x2c] sm:$0xe] %v3320_v48  ;;  %v4187_v55 = vunpack.c.l.b16 %v4118_v17  ;;  %v4150_v48 = vshll.u32 %v16491_v45, 16 }
 0x22c   : > { %v3230_v15 = vshrl.u32 %v3212_v47, 16  ;;  %v3233_v29 = vshll.u32 %v3212_v47, 16 }
 0x22d   : > { %v3177_v20 = vadd.f32 %v3157_v32, %v16302_v16  ;;  %v3413_v16 = vor.u32 %v3411_v59, %v16460_v19  ;;  %v4188_v56 = vpack.c.b16 %v4130_v8, %v4187_v55  ;;  %v4152_v7 = vrot.slane %v4150_v48, 1 }
 0x22e   : > { %v3232_v24 = vrot.slane %v3230_v15, 6  ;;  %v3235_v33 = vrot.slane %v3233_v29, 7  ;;  %v3366_v29 = vpack.c.b16 %v16088_v52, %v16088_v52  ;;  %v3779_v59 = vpop.f32.mrf.mxu2  ;;  %v4157_v55 = vrot.slane %v4155_v0, 1  ;;  %v14113_v0 = vld [vmem:[#allocation6 + $0x38] sm:$0xff] }
 0x22f   : > { %v3186_v3 = vadd.f32 %v16465_v31, %v3177_v20  ;;  %4097 = vmatmul.bf16.gmra.mxu3 %v3430_v42  ;;  %v3125_v11 = vpop.f32.mrf.mxu0  ;;  %v16510_v20 = vpop.f32.mrf.mxu3  ;;  %v19036_v48 = vrot.slane %v16507_v43, 1  ;;  %5364 = vmatpush.bf16.msrb.mxu2 %v14113_v0  ;;  %v14120_v0 = vld [vmem:[#allocation6 + $0x70] sm:$0xff] }
 0x230   : > { %v3126_v32 = vadd.f32 %v3125_v11, %v16317_v27  ;;  %v3236_v47 = vor.u32 %v3235_v33, %v3232_v24  ;;  %v4148_v11 = vshrl.u32 %v16491_v45, 16  ;;  %v4159_v24 = vshrl.u32 %v16500_v38, 16 }
 0x231   : > { %v3195_v53 = vmax.f32 %v3186_v3, 0.0  ;;  %v4163_v33 = vshll.u32 %v16507_v43, 16 }
 0x232   : > { %v3158_v17 = vpop.f32.mrf.mxu1  ;;  %v3237_v27 = vsel %vm15954_vm7, %v3228_v61, %v3236_v47  ;;  %v4190_v61 = vrot.slane %v16500_v38, 1  ;;  %v4161_v5 = vor.u32 %v4159_v24, %v4157_v55 }
 0x233   : > { %v3204_v15 = vsel %vm15884_vm15, %v3195_v53, 0.0  ;;  %v3159_v3 = vadd.f32 %v3158_v17, %v3126_v32  ;;  %3322 = vst [vmem:[#allocation2 + $0x30] sm:$0xf] %v3237_v27  ;;  %v4189_v32 = vrot.slane %v4188_v56, 1  ;;  %v16526_v14 = vrot.slane %v4163_v33, 1 }
 0x234   : > { %v3213_v19 = vpack.c.bf16 %v3204_v15, %v3204_v15  ;;  %4069 = vmatmul.bf16.gmra.mxu2 %v3413_v16 }
 0x235   : > { %v3178_v8 = vadd.f32 %v3159_v3, %v16319_v25  ;;  %v4153_v25 = vor.u32 %v4152_v7, %v4148_v11  ;;  %v14121_v3 = vld [vmem:[#allocation6 + $0x78] sm:$0xff]  ;;  %v4191_v56 = vsel %vm685_vm1, %v4189_v32, %v4190_v61  ;;  %v16534_v11 = vsel %vm685_vm1, %v4190_v61, %v19036_v48  ;;  %v4692_v32 = vld [vmem:[%s15153_s30 + $0x78] sm:$0xf] }
 0x236   : > { %v3240_v53 = vshrl.u32 %v3213_v19, 16  ;;  %v3243_v52 = vshll.u32 %v3213_v19, 16  ;;  %v3238_v19 = vrot.slane %v3236_v47, 4  ;;  %5397 = vmatpush.bf16.msrb.mxu3 %v14121_v3  ;;  %v3781_v61 = vpop.f32.mrf.mxu2  ;;  %v4840_v3 = vld [vmem:[%s15153_s30 + $0x74] sm:$0xe] }
 0x237   : > { %3859 = vmatmul.bf16.gmra.mxu0 %v16442_v22  ;;  %4036 = vmatmul.bf16.gmra.mxu1 %v3366_v29  ;;  %v3187_v17 = vadd.f32 %v16465_v31, %v3178_v8  ;;  %v4158_v47 = vsel %vm19182_vm0, %v4153_v25, %v4157_v55  ;;  %v4850_v48 = vunpack.c.l.b16 %v4840_v3 }
 0x238   : > { %v3242_v16 = vrot.slane %v3240_v53, 6  ;;  %v3245_v15 = vrot.slane %v3243_v52, 7  ;;  %v16541_v53 = vsel %vm19199_vm4, %v4161_v5, %v16526_v14  ;;  %v4252_v52 = vrot.slane %v4191_v56, 2  ;;  %vm19212_vm4 = vmmov %vm19182_vm0 }
 0x239   : > { %v3196_v27 = vmax.f32 %v3187_v17, 0.0  ;;  %v4249_v25 = vrot.slane %v4158_v47, 2 }
 0x23a   : > { %v3246_v22 = vor.u32 %v3245_v15, %v3242_v16  ;;  %5398 = vmatpush.bf16.msrb.mxu3 %v14120_v0  ;;  %v4167_v0 = vshrl.u32 %v16507_v43, 16 }
 0x23b   : > { %v3205_v8 = vsel %vm15946_vm5, %v3196_v27, 0.0  ;;  %v4246_v27 = vrot.slane %v16491_v45, 2 }
 0x23c   : > { %v3247_v7 = vsel %vm15954_vm7, %v3238_v19, %v3246_v22  ;;  %v3214_v24 = vpack.c.bf16 %v3205_v8, %v3205_v8  ;;  %v19200_v19 = vrot.slane %v16454_v46, 1  ;;  %v14153_v8 = vld [vmem:[#allocation6 + $0x178] sm:$0xff]  ;;  %v3248_v45 = vrot.slane %v3246_v22, 4 }
 0x23d   : > { %3323 = vst [vmem:[#allocation2 + $0x34] sm:$0xf] %v3247_v7  ;;  %v3812_v33 = vpop.f32.mrf.mxu3  ;;  %v14145_v7 = vld [vmem:[#allocation6 + $0x138] sm:$0xff]  ;;  %v19201_v46 = vrot.slane %v16534_v11, 2  ;;  %5187 = vmatpush.bf16.msrb.mxu1 %v14153_v8  ;;  %v4171_v8 = vshll.u32 %v16556_v35, 16 }
 0x23e   : > { %v16544_v17 = vadd.f32 %v3812_v33, %v3779_v59  ;;  %v3250_v16 = vshrl.u32 %v3214_v24, 16  ;;  %v3253_v15 = vshll.u32 %v3214_v24, 16  ;;  %v19037_v59 = vrot.slane %v16541_v53, 2  ;;  %v14112_v24 = vld [vmem:[#allocation6 + $0x30] sm:$0xff]  ;;  %5154 = vmatpush.bf16.msrb.mxu0 %v14145_v7 }
 0x23f   : > { %4102 = vmatmul.bf16.gmra.mxu3 %v19200_v19  ;;  %v16553_v33 = vunpack.c.l.b16 %v4692_v32  ;;  %v4254_v47 = vsel %vm19060_vm2, %v4252_v52, %v19201_v46  ;;  %5365 = vmatpush.bf16.msrb.mxu2 %v14112_v24  ;;  %v14152_v46 = vld [vmem:[#allocation6 + $0x170] sm:$0xff] }
 0x240   : > { %v3252_v5 = vrot.slane %v3250_v16, 6  ;;  %v3255_v56 = vrot.slane %v3253_v15, 7  ;;  %v19202_v15 = vrot.slane %v16500_v38, 2  ;;  %v4251_v52 = vsel %vm19060_vm2, %v4249_v25, %v19037_v59 }
 0x241   : > { %v19039_v25 = vrot.slane %v16556_v35, 1  ;;  %5188 = vmatpush.bf16.msrb.mxu1 %v14152_v46 }
 0x242   : > { %v16558_v55 = vor.u32 %v3255_v56, %v3252_v5  ;;  %v4248_v32 = vsel %vm19060_vm2, %v4246_v27, %v19202_v15  ;;  %v16574_v56 = vld [vmem:[%s15153_s30 + $0x7c] sm:$0xff]  ;;  %v16577_v27 = vpack.c.b16 %v16553_v33, %v4850_v48  ;;  %v14111_v48 = vld [vmem:[#allocation6 + $0x28] sm:$0xff] }
 0x243   : > { %5366 = vmatpush.bf16.msrb.mxu2 %v14111_v48 }
 0x244   : > { %v3128_v16 = vpop.f32.mrf.mxu0  ;;  %v3257_v22 = vsel %vm15954_vm7, %v3248_v45, %v16558_v55  ;;  %v3161_v19 = vpop.f32.mrf.mxu1  ;;  %4506 = vmatmul.bf16.vlgmr.msra.gmra.mxu2 %v4254_v47  ;;  %v14144_v47 = vld [vmem:[#allocation6 + $0x130] sm:$0xff]  ;;  %v4941_v15 = vrot.slane %v16577_v27, 1 }
 0x245   : > { %v3129_v3 = vadd.f32 %v3128_v16, %v16339_v51  ;;  %3324 = vst [vmem:[#allocation2 + $0x38] sm:$0xf] %v3257_v22  ;;  %v3814_v5 = vpop.f32.mrf.mxu3  ;;  %v16586_v16 = vrot.slane %v16574_v56, 1  ;;  %v16590_v22 = vrot.slane %v4171_v8, 1  ;;  %5155 = vmatpush.bf16.msrb.mxu0 %v14144_v47  ;;  %5189 = vmatpush.bf16.msrb.mxu1 %v14151_v6  ;;  %v19209_v6 = vrot.slane %v16541_v53, 2 }
 0x246   : > { %v16581_v7 = vadd.f32 %v3814_v5, %v3781_v61  ;;  %v4169_v61 = vor.u32 %v4167_v0, %v16526_v14 }
 0x247   : > { %v3162_v51 = vadd.f32 %v3161_v19, %v3129_v3  ;;  %4440 = vmatmul.bf16.vlgmr.msra.gmra.mxu0 %v4248_v32  ;;  %4473 = vmatmul.bf16.vlgmr.msra.gmra.mxu1 %v4251_v52  ;;  %v3784_v45 = vpop.f32.mrf.mxu2  ;;  %v16594_v3 = vld [vmem:[%s15153_s30 + $0x78] sm:$0xf]  ;;  %v19203_v52 = vrot.slane %v16507_v43, 1  ;;  %v4942_v8 = vsel %vm685_vm1, %v4941_v15, %v16586_v16 }
 0x248   : > { %v19205_v28 = vunpack.c.l.b16 %v16594_v3 }
 0x249   : > { %v3179_v24 = vadd.f32 %v3162_v51, %v16345_v23  ;;  %v4117_v23 = vld [vmem:[%s15153_s30 + $0x7c] sm:$0x7]  ;;  %v16602_v5 = vsel %vm685_vm1, %v19203_v52, %v19039_v25  ;;  %5156 = vmatpush.bf16.msrb.mxu0 %v14143_v12  ;;  %v4175_v12 = vshrl.u32 %v16556_v35, 16 }
 0x24a   : > { %v4145_v47 = vunpack.c.l.b16 %v4117_v23  ;;  %v19044_v48 = vrot.slane %v16602_v5, 2 }
 0x24b   : > { %v3188_v32 = vadd.f32 %v16465_v31, %v3179_v24  ;;  %v16609_v24 = vsel %vm19182_vm0, %v4169_v61, %v16590_v22  ;;  %v14119_v61 = vld [vmem:[#allocation6 + $0x68] sm:$0xff] }
 0x24c   : > { %v3130_v19 = vpop.f32.mrf.mxu0  ;;  %v3163_v0 = vpop.f32.mrf.mxu1  ;;  %5399 = vmatpush.bf16.msrb.mxu3 %v14119_v61  ;;  %v19208_v61 = vrot.slane %v16609_v24, 2 }
 0x24d   : > { %v3197_v51 = vmax.f32 %v3188_v32, 0.0  ;;  %v3131_v14 = vadd.f32 %v3130_v19, %v16368_v36  ;;  %v19043_v36 = vrot.slane %v16507_v43, 2 }
 0x24f   : > { %v3206_v54 = vsel %vm15989_vm12, %v3197_v51, 0.0  ;;  %v3164_v52 = vadd.f32 %v3163_v0, %v3131_v14  ;;  %5129 = vmatmul.bf16.vlgmr.msra.gmra.mxu3 %v4942_v8  ;;  %v3786_v15 = vpop.f32.mrf.mxu2  ;;  %v16620_v51 = vpack.c.b16 %v4145_v47, %v19205_v28  ;;  %v19206_v14 = vrot.slane %v16534_v11, 2 }
 0x250   : > { %v3215_v32 = vpack.c.bf16 %v3206_v54, %v3206_v54  ;;  %v19207_v28 = vrot.slane %v16500_v38, 2 }
 0x251   : > { %v3180_v19 = vadd.f32 %v3164_v52, %v16371_v60  ;;  %v4260_v60 = vsel %vm19060_vm2, %v19206_v14, %v19044_v48  ;;  %v3258_v14 = vrot.slane %v16558_v55, 4 }
 0x252   : > { %v3260_v46 = vshrl.u32 %v3215_v32, 16  ;;  %v3263_v23 = vshll.u32 %v3215_v32, 16  ;;  %v3817_v52 = vpop.f32.mrf.mxu3  ;;  %v4256_v47 = vsel %vm19060_vm2, %v19207_v28, %v19043_v36  ;;  %v19046_v28 = vrot.slane %v16620_v51, 1 }
 0x253   : > { %v3189_v54 = vadd.f32 %v16465_v31, %v3180_v19  ;;  %v16633_v32 = vadd.f32 %v3817_v52, %v3784_v45  ;;  %v4179_v45 = vshll.u32 %v16620_v51, 16 }
 0x254   : > { %v3262_v0 = vrot.slane %v3260_v46, 6  ;;  %v3265_v8 = vrot.slane %v3263_v23, 7  ;;  %v3133_v25 = vpop.f32.mrf.mxu0  ;;  %v3166_v21 = vpop.f32.mrf.mxu1  ;;  %v4258_v46 = vsel %vm19060_vm2, %v19209_v6, %v19208_v61  ;;  %v16642_v23 = vld [vmem:[%s15153_s30 + $0x84] sm:$0xff]  ;;  %4511 = vmatmul.bf16.gmra.mxu2 %v4260_v60 }
 0x255   : > { %v3198_v19 = vmax.f32 %v3189_v54, 0.0  ;;  %v3134_v11 = vadd.f32 %v3133_v25, %v16395_v26  ;;  %v16654_v60 = vrot.slane %v16642_v23, 1  ;;  %v14118_v6 = vld [vmem:[#allocation6 + $0x60] sm:$0xff]  ;;  %v14140_v54 = vld [vmem:[#allocation6 + $0x110] sm:$0xff] }
 0x256   : > { %v3266_v38 = vor.u32 %v3265_v8, %v3262_v0  ;;  %5400 = vmatpush.bf16.msrb.mxu3 %v14118_v6 }
 0x257   : > { %v3207_v26 = vsel %vm16054_vm3, %v3198_v19, 0.0  ;;  %v3167_v25 = vadd.f32 %v3166_v21, %v3134_v11  ;;  %4445 = vmatmul.bf16.gmra.mxu0 %v4256_v47  ;;  %4478 = vmatmul.bf16.gmra.mxu1 %v4258_v46  ;;  %v3789_v0 = vpop.f32.mrf.mxu2  ;;  %v4177_v19 = vor.u32 %v4175_v12, %v16590_v22  ;;  %v16657_v21 = vrot.slane %v4179_v45, 1  ;;  %v14110_v11 = vld [vmem:[#allocation6 + $0x20] sm:$0xff] }
 0x258   : > { %v3267_v53 = vsel %vm15954_vm7, %v3258_v14, %v3266_v38  ;;  %v3216_v52 = vpack.c.bf16 %v3207_v26, %v3207_v26  ;;  %v14150_v46 = vld [vmem:[#allocation6 + $0x160] sm:$0xff]  ;;  %5367 = vmatpush.bf16.msrb.mxu2 %v14110_v11  ;;  %v16673_v37 = vsel %vm685_vm1, %v16586_v16, %v16654_v60 }
 0x259   : > { %3325 = vst [vmem:[#allocation2 + $0x3c] sm:$0xf] %v3267_v53  ;;  %v3181_v55 = vadd.f32 %v3167_v25, %v16410_v2  ;;  %v19211_v2 = vrot.slane %v16556_v35, 1  ;;  %5190 = vmatpush.bf16.msrb.mxu1 %v14150_v46 }
 0x25a   : > { %v3270_v8 = vshrl.u32 %v3216_v52, 16  ;;  %v3273_v61 = vshll.u32 %v3216_v52, 16  ;;  %v3819_v53 = vpop.f32.mrf.mxu3  ;;  %v14142_v52 = vld [vmem:[#allocation6 + $0x120] sm:$0xff] }
 0x25b   : > { %v3190_v47 = vadd.f32 %v16465_v31, %v3181_v55  ;;  %v16665_v25 = vsel %vm685_vm1, %v19211_v2, %v19046_v28  ;;  %v16667_v22 = vadd.f32 %v3819_v53, %v3786_v15  ;;  %v16677_v15 = vsel %vm19212_vm4, %v4177_v19, %v16657_v21  ;;  %5157 = vmatpush.bf16.msrb.mxu0 %v14142_v52  ;;  %vm19233_vm4 = vmmov %vm19182_vm0 }
 0x25c   : > { %v3272_v14 = vrot.slane %v3270_v8, 6  ;;  %v3275_v26 = vrot.slane %v3273_v61, 7  ;;  %v3135_v36 = vpop.f32.mrf.mxu0  ;;  %v3168_v55 = vpop.f32.mrf.mxu1  ;;  %v14109_v8 = vld [vmem:[#allocation6 + $0x18] sm:$0xff]  ;;  %v3268_v61 = vrot.slane %v3266_v38, 4 }
 0x25d   : > { %v3199_v12 = vmax.f32 %v3190_v47, 0.0  ;;  %v3136_v45 = vadd.f32 %v3135_v36, %v16432_v34  ;;  %v14117_v34 = vld [vmem:[#allocation6 + $0x58] sm:$0xff]  ;;  %5368 = vmatpush.bf16.msrb.mxu2 %v14109_v8 }
 0x25e   : > { %v3276_v48 = vor.u32 %v3275_v26, %v3272_v14  ;;  %v14149_v36 = vld [vmem:[#allocation6 + $0x158] sm:$0xff]  ;;  %v4697_v14 = vld [vmem:[%s15153_s30 + $0x8c] sm:$0xf]  ;;  %v16684_v26 = vld [vmem:[%s15153_s30 + $0x90] sm:$0xff]   ;;  %5401 = vmatpush.bf16.msrb.mxu3 %v14117_v34 }
 0x25f   : > { %v3208_v11 = vsel %vm16107_vm13, %v3199_v12, 0.0  ;;  %v3169_v6 = vadd.f32 %v3168_v55, %v3136_v45  ;;  %5134 = vmatmul.bf16.gmra.mxu3 %v16673_v37  ;;  %v3791_v52 = vpop.f32.mrf.mxu2  ;;  %v14141_v45 = vld [vmem:[#allocation6 + $0x118] sm:$0xff]  ;;  %v14108_v55 = vld [vmem:[#allocation6 + $0x10] sm:$0xff]  ;;  %v16692_v62 = vunpack.c.l.b16 %v4697_v14  ;;  %5191 = vmatpush.bf16.msrb.mxu1 %v14149_v36  ;;  %v19216_v14 = vrot.slane %v16556_v35, 2 }
 0x260   : > { %v3277_v53 = vsel %vm15954_vm7, %v3268_v61, %v3276_v48  ;;  %v3217_v2 = vpack.c.bf16 %v3208_v11, %v3208_v11  ;;  %v14519_v61 = vunpack.c.l.b16 %v16684_v26  ;;  %5158 = vmatpush.bf16.msrb.mxu0 %v14141_v45  ;;  %v4116_v36 = vld [vmem:[%s15153_s30 + $0x7c] sm:$0x3] }
 0x261   : > { %3326 = vst [vmem:[#allocation2 + $0x40] sm:$0xf] %v3277_v53  ;;  %v3182_v46 = vadd.f32 %v3169_v6, %v16434_v4  ;;  %v19214_v53 = vrot.slane %v16665_v25, 2  ;;  %v19215_v4 = vrot.slane %v16602_v5, 2  ;;  %5369 = vmatpush.bf16.msrb.mxu2 %v14108_v55  ;;  %v14116_v45 = vld [vmem:[#allocation6 + $0x50] sm:$0xff]  ;;  %v4138_v55 = vunpack.c.l.b16 %v4116_v36 }
 0x262   : > { %v3280_v28 = vshrl.u32 %v3217_v2, 16  ;;  %v3283_v38 = vshll.u32 %v3217_v2, 16  ;;  %v3822_v19 = vpop.f32.mrf.mxu3  ;;  %v19217_v2 = vrot.slane %v16507_v43, 2  ;;  %v3278_v43 = vrot.slane %v3276_v48, 4  ;;  %5402 = vmatpush.bf16.msrb.mxu3 %v14116_v45  ;;  %v14107_v45 = vld [vmem:[#allocation6 + $0x8] sm:$0xff] }
 0x263   : > { %v3191_v11 = vadd.f32 %v16465_v31, %v3182_v46  ;;  %v4266_v6 = vsel %vm19060_vm2, %v19215_v4, %v19214_v53  ;;  %v16707_v41 = vadd.f32 %v3822_v19, %v3789_v0  ;;  %v19218_v53 = vrot.slane %v16677_v15, 2  ;;  %v14148_v4 = vld [vmem:[#allocation6 + $0x150] sm:$0xff] }
 0x264   : > { %v3282_v8 = vrot.slane %v3280_v28, 6  ;;  %v3285_v12 = vrot.slane %v3283_v38, 7  ;;  %v3138_v13 = vpop.f32.mrf.mxu0  ;;  %v4262_v34 = vsel %vm19060_vm2, %v19217_v2, %v19216_v14  ;;  %v3171_v5 = vpop.f32.mrf.mxu1  ;;  %v19219_v28 = vrot.slane %v16609_v24, 2  ;;  %4516 = vmatmul.bf16.gmra.mxu2 %v4266_v6  ;;  %5159 = vmatpush.bf16.msrb.mxu0 %v14140_v54 }
 0x265   : > { %v3200_v46 = vmax.f32 %v3191_v11, 0.0  ;;  %v3139_v47 = vadd.f32 %v3138_v13, %v16444_v49  ;;  %v16716_v0 = vpack.c.b16 %v14519_v61, %v16692_v62  ;;  %v4183_v61 = vshrl.u32 %v16620_v51, 16  ;;  %5192 = vmatpush.bf16.msrb.mxu1 %v14148_v4  ;;  %5370 = vmatpush.bf16.msrb.mxu2 %v14107_v45 }
 0x266   : > { %v4264_v38 = vsel %vm19060_vm2, %v19219_v28, %v19218_v53  ;;  %v3286_v59 = vor.u32 %v3285_v12, %v3282_v8  ;;  %v19220_v54 = vunpack.c.l.b16 %v16594_v3 }
 0x267   : > { %v3209_v13 = vsel %vm16224_vm6, %v3200_v46, 0.0  ;;  %v3172_v49 = vadd.f32 %v3171_v5, %v3139_v47  ;;  %4450 = vmatmul.bf16.gmra.mxu0 %v4262_v34  ;;  %4483 = vmatmul.bf16.gmra.mxu1 %v4264_v38  ;;  %v3794_v12 = vpop.f32.mrf.mxu2  ;;  %v16725_v47 = vrot.slane %v16716_v0, 1  ;;  %v16737_v38 = vor.u32 %v4183_v61, %v16657_v21 }
 0x268   : > { %v3287_v24 = vsel %vm15954_vm7, %v3278_v43, %v3286_v59  ;;  %v3218_v19 = vpack.c.bf16 %v3209_v13, %v3209_v13  ;;  %v16730_v46 = vpack.c.b16 %v4138_v55, %v19220_v54  ;;  %v3288_v4 = vrot.slane %v3286_v59, 4 }
 0x269   : > { %3327 = vst [vmem:[#allocation2 + $0x44] sm:$0xf] %v3287_v24  ;;  %v3183_v48 = vadd.f32 %v3172_v49, %v16449_v39  ;;  %v16732_v39 = vld [vmem:[#allocation2 + $0x28] sm:$0xff]  ;;  %v16742_v13 = vsel %vm685_vm1, %v16654_v60, %v16725_v47  ;;  %v4843_v24 = vld [vmem:[%s15153_s30 + $0x98] sm:$0x1]  ;;  %v4269_v61 = vrot.slane %v16737_v38, 2 }
 0x26a   : > { %v3290_v11 = vshrl.u32 %v3218_v19, 16  ;;  %v3293_v6 = vshll.u32 %v3218_v19, 16  ;;  %v3824_v34 = vpop.f32.mrf.mxu3  ;;  %v4267_v19 = vrot.slane %v16730_v46, 2  ;;  %v6907_v55 = vrot.slane %v16732_v39, 1  ;;  %v14258_v39 = vld [vmem:[#allocation2 + $0x34] sm:$0xff] }
 0x26b   : > { %v3192_v8 = vadd.f32 %v16465_v31, %v3183_v48  ;;  %v16734_v5 = vadd.f32 %v3824_v34, %v3791_v52  ;;  %v14115_v31 = vld [vmem:[#allocation6 + $0x48] sm:$0xff]  ;;  %v19221_v52 = vrot.slane %v16620_v51, 1  ;;  %v19053_v51 = vunpack.c.h.b16 %v16684_v26 }
 0x26c   : > { %v3292_v14 = vrot.slane %v3290_v11, 6  ;;  %v3295_v2 = vrot.slane %v3293_v6, 7  ;;  %v3140_v36 = vpop.f32.mrf.mxu0  ;;  %v3173_v28 = vpop.f32.mrf.mxu1  ;;  %5403 = vmatpush.bf16.msrb.mxu3 %v14115_v31  ;;  %v14147_v11 = vld [vmem:[#allocation6 + $0x148] sm:$0xff] }
 0x26d   : > { %v3201_v53 = vmax.f32 %v3192_v8, 0.0  ;;  %v16748_v49 = vrot.slane %v19221_v52, 2  ;;  %v19223_v36 = vrot.slane %v16665_v25, 2  ;;  %5193 = vmatpush.bf16.msrb.mxu1 %v14147_v11  ;;  %v19225_v25 = vrot.slane %v16677_v15, 2  ;;  %v14114_v11 = vld [vmem:[#allocation6 + $0x40] sm:$0xff] }
 0x26e   : > { %v3296_v43 = vor.u32 %v3295_v2, %v3292_v14  ;;  %v4853_v14 = vunpack.c.l.b16 %v4843_v24  ;;  %v19222_v2 = vrot.slane %v16380_v40, 1 }
 0x26f   : > { %v3210_v3 = vsel %vm16259_vm9, %v3201_v53, 0.0  ;;  %5139 = vmatmul.bf16.gmra.mxu3 %v16742_v13  ;;  %v3796_v48 = vpop.f32.mrf.mxu2  ;;  %v4272_v54 = vsel %vm19060_vm2, %v19223_v36, %v16748_v49 }
 0x270   : > { %v3297_v21 = vsel %vm15954_vm7, %v3288_v4, %v3296_v43  ;;  %v3219_v59 = vpack.c.bf16 %v3210_v3, %v3210_v3  ;;  %v16763_v34 = vsel %vm685_vm1, %v19222_v2, %v6907_v55  ;;  %v19224_v4 = vrot.slane %v16556_v35, 2  ;;  %v14106_v48 = vld [vmem:[#allocation6] sm:$0xff]  ;;  %5404 = vmatpush.bf16.msrb.mxu3 %v14114_v11 }
 0x271   : > { %3328 = vst [vmem:[#allocation2 + $0x48] sm:$0xf] %v3297_v21  ;;  %v4270_v21 = vsel %vm19060_vm2, %v19225_v25, %v4269_v61  ;;  %v16784_v35 = vpack.c.b16 %v4853_v14, %v19053_v51  ;;  %5371 = vmatpush.bf16.msrb.mxu2 %v14106_v48  ;;  %v16793_v25 = vld [vmem:[#allocation2 + $0x30] sm:$0xf]  ;;  %v4863_v11 = vshll.u32 %v16577_v27, 16  ;;  %v14163_v51 = vld [vmem:[#allocation6 + $0x1b0] sm:$0xff] }
 0x272   : > { %v3300_v6 = vshrl.u32 %v3219_v59, 16  ;;  %v3303_v8 = vshll.u32 %v3219_v59, 16  ;;  %v3827_v45 = vpop.f32.mrf.mxu3  ;;  %v4268_v3 = vsel %vm19060_vm2, %v19224_v4, %v4267_v19  ;;  %v14139_v59 = vld [vmem:[#allocation6 + $0x108] sm:$0xff]  ;;  %v14146_v4 = vld [vmem:[#allocation6 + $0x140] sm:$0xff] }
 0x273   : > { %v16774_v40 = vadd.f32 %v3827_v45, %v3794_v12  ;;  %v3330_v12 = vld [vmem:[#allocation2 + $0x50] sm:$0x3]  ;;  %5160 = vmatpush.bf16.msrb.mxu0 %v14139_v59  ;;  %v4957_v14 = vrot.slane %v16784_v35, 1  ;;  %5194 = vmatpush.bf16.msrb.mxu1 %v14146_v4  ;;  %v4845_v59 = vld [vmem:[%s15153_s30 + $0x74] sm:$0xc] }
 0x274   : > { %v3302_v53 = vrot.slane %v3300_v6, 6  ;;  %v3305_v28 = vrot.slane %v3303_v8, 7  ;;  %v3840_v31 = vpop.f32.mrf.mxu0  ;;  %v4017_v24 = vpop.f32.mrf.mxu1  ;;  %v3298_v6 = vrot.slane %v3296_v43, 4  ;;  %4521 = vmatmul.bf16.gmra.mxu2 %v4272_v54 }
 0x275   : > { %v3841_v52 = vadd.f32 %v3840_v31, %v16469_v9 }
 0x276   : > { %v3306_v8 = vor.u32 %v3305_v28, %v3302_v53  ;;  %v3810_v53 = vadd.f32 %v16510_v20, %v16484_v63  ;;  %v6830_v28 = vld [vmem:[#allocation2 + $0x34] sm:$0x7]  ;;  %v4747_v20 = vshll.u32 %v16574_v56, 16 }
 0x277   : > { %v4018_v2 = vadd.f32 %v4017_v24, %v3841_v52  ;;  %4455 = vmatmul.bf16.gmra.mxu0 %v4268_v3  ;;  %4488 = vmatmul.bf16.gmra.mxu1 %v4270_v21  ;;  %v4050_v36 = vpop.f32.mrf.mxu2  ;;  %v14138_v3 = vld [vmem:[#allocation6 + $0x100] sm:$0xff]  ;;  %v4958_v21 = vsel %vm685_vm1, %v16725_v47, %v4957_v14  ;;  %v6858_v48 = vunpack.c.l.b16 %v6830_v28  ;;  %v4751_v28 = vshrl.u32 %v16574_v56, 16 }
 0x278   : > { %v3307_v9 = vsel %vm15954_vm7, %v3298_v6, %v3306_v8  ;;  %v3308_v15 = vrot.slane %v3306_v8, 4  ;;  %5161 = vmatpush.bf16.msrb.mxu0 %v14138_v3  ;;  %v19052_v6 = vunpack.c.l.b16 %v16793_v25  ;;  %v4861_v3 = vshrl.u32 %v16577_v27, 16 }
 0x279   : > { %3329 = vst [vmem:[#allocation2 + $0x4c] sm:$0xf] %v3307_v9  ;;  %v4051_v54 = vadd.f32 %v4050_v36, %v4018_v2  ;;  %v14172_v2 = vld [vmem:[#allocation6 + $0x1f8] sm:$0xff]  ;;  %v19227_v27 = vrot.slane %v16417_v30, 2 }
 0x27a   : > { %v3331_v43 = vsel %vm15625_vm8, %v3308_v15, %v3330_v12  ;;  %v3829_v45 = vpop.f32.mrf.mxu3  ;;  %v4885_v12 = vunpack.c.l.b16 %v4845_v59  ;;  %v14180_v9 = vld [vmem:[#allocation6 + $0x238] sm:$0xff]  ;;  %v16805_v36 = vpack.c.b16 %v6858_v48, %v19052_v6  ;;  %5821 = vmatpush.bf16.msra.mxu2 %v14172_v2 }
 0x27b   : > { %3332 = vst [vmem:[#allocation2 + $0x50] sm:$0x3] %v3331_v43  ;;  %v7362_v43 = vld [vmem:[#allocation2 + $0x30] sm:$0xf]  ;;  %v4755_v45 = vshll.u32 %v16642_v23, 16  ;;  %5854 = vmatpush.bf16.msra.mxu3 %v14180_v9  ;;  %v14129_v2 = vld [vmem:[#allocation6 + $0xb8] sm:$0xff] }
 0x27c   : > { %v3842_v31 = vpop.f32.mrf.mxu0  ;;  %v4019_v24 = vpop.f32.mrf.mxu1  ;;  %v14171_v9 = vld [vmem:[#allocation6 + $0x1f0] sm:$0xff]  ;;  %v16817_v6 = vunpack.c.l.b16 %v7362_v43  ;;  %5430 = vmatpush.bf16.msra.mxu0 %v14129_v2 }
 0x27d   : > { %v3843_v52 = vadd.f32 %v3842_v31, %v3810_v53  ;;  %v16807_v53 = vrot.slane %v4747_v20, 1  ;;  %v4886_v20 = vpack.c.b16 %v16553_v33, %v4885_v12  ;;  %v16829_v12 = vrot.slane %v4755_v45, 1  ;;  %v16833_v43 = vld [vmem:[%s15153_s30 + $0x70] sm:$0xff]  }
 0x27e   : > { %19226 = vst [vmem:[#allocation16_spill] sm:$0xff] %v16817_v6  ;;  %5822 = vmatpush.bf16.msra.mxu2 %v14171_v9  ;;  %v19054_v38 = vunpack.c.l.b16 %v16833_v43 }
 0x27f   : > { %v4020_v63 = vadd.f32 %v4019_v24, %v3843_v52  ;;  %5144 = vmatmul.bf16.gmra.mxu3 %v4958_v21  ;;  %v4052_v8 = vpop.f32.mrf.mxu2  ;;  %v4865_v52 = vrot.slane %v4863_v11, 1  ;;  %v6973_v24 = vrot.slane %v16763_v34, 2  ;;  %v14712_v21 = vld [vmem:[#allocation2 + $0x28] sm:$0xff]   ;;  %v4887_v45 = vrot.slane %v4886_v20, 1 }
 0x281   : > { %v4053_v15 = vadd.f32 %v4052_v8, %v4020_v63  ;;  %v14164_v8 = vld [vmem:[#allocation6 + $0x1b8] sm:$0xff]  ;;  %v16823_v34 = vsel %vm19060_vm2, %v19227_v27, %v6973_v24  ;;  %v4866_v30 = vor.u32 %v4865_v52, %v4861_v3 }
 0x282   : > { %v4083_v31 = vpop.f32.mrf.mxu3  ;;  %19228 = vst [vmem:[#allocation17_spill] sm:$0xff] %v16823_v34  ;;  %5788 = vmatpush.bf16.msra.mxu1 %v14164_v8 }
 0x283   : > { %v16813_v59 = vadd.f32 %v4083_v31, %v4051_v54  ;;  %v6909_v54 = vrot.slane %v16805_v36, 1  ;;  %v4689_v31 = vld [vmem:[%s15153_s30 + $0x6c] sm:$0xf]  ;;  %v4867_v2 = vsel %vm19233_vm4, %v4866_v30, %v16807_v53  ;;  %vm19242_vm4 = vmmov %vm19182_vm0 }
 0x284   : > { %v3845_v4 = vpop.f32.mrf.mxu0  ;;  %v4022_v63 = vpop.f32.mrf.mxu1  ;;  %4526 = vmatmul.bf16.gmra.mxu2 %v16748_v49  ;;  %v14564_v49 = vunpack.c.h.b16 %v14712_v21  ;;  %v8133_v30 = vld [vmem:[#allocation2 + $0x34] sm:$0xc] }
 0x285   : > { %v3846_v48 = vadd.f32 %v3845_v4, %v16544_v17  ;;  %v4753_v17 = vor.u32 %v4751_v28, %v16807_v53  ;;  %v14516_v4 = vunpack.c.h.b16 %v16833_v43  ;;  %v6910_v46 = vsel %vm685_vm1, %v6907_v55, %v6909_v54 }
 0x286   : > { %5789 = vmatpush.bf16.msra.mxu1 %v14163_v51 }
 0x287   : > { %v4023_v11 = vadd.f32 %v4022_v63, %v3846_v48  ;;  %4460 = vmatmul.bf16.gmra.mxu0 %v4267_v19  ;;  %4493 = vmatmul.bf16.gmra.mxu1 %v4269_v61  ;;  %v16841_v19 = vrot.slane %v6909_v54, 2  ;;  %v4055_v28 = vpop.f32.mrf.mxu2  ;;  %v6979_v48 = vrot.slane %v6910_v46, 2  ;;  %v16844_v63 = vpack.c.b16 %v16817_v6, %v14564_v49 }
 0x288   : > { %v4709_v61 = vunpack.c.l.b16 %v4689_v31  ;;  %v16849_v3 = vsel %vm19182_vm0, %v4753_v17, %v16829_v12  ;;  %v16861_v9 = vpack.c.b16 %v16553_v33, %v14516_v4  ;;  %v14179_v17 = vld [vmem:[#allocation6 + $0x230] sm:$0xff]  ;;  %v4943_v4 = vrot.slane %v4867_v2, 1 }
 0x289   : > { %19229 = vst [vmem:[#allocation14_spill] sm:$0xff] %v16841_v19  ;;  %v4056_v21 = vadd.f32 %v4055_v28, %v4023_v11  ;;  %v16852_v55 = vsel %vm19060_vm2, %v6973_v24, %v6979_v48  ;;  %v16856_v52 = vsel %vm19060_vm2, %v6979_v48, %v16841_v19  ;;  %v4888_v24 = vsel %vm685_vm1, %v4887_v45, %v16586_v16  ;;  %v8134_v28 = vld [vmem:[#allocation2 + $0x38] sm:$0xf]  ;;  %vm19243_vm2 = vmmov %vm19182_vm0 }
 0x28a   : > { %19230 = vst [vmem:[#allocation18_spill] sm:$0xff] %v16844_v63  ;;  %v4085_v20 = vpop.f32.mrf.mxu3  ;;  %v7409_v31 = vshll.u32 %v16844_v63, 16  ;;  %v16872_v46 = vpack.c.b16 %v19054_v38, %v4709_v61  ;;  %5855 = vmatpush.bf16.msra.mxu3 %v14179_v17  ;;  %v4946_v45 = vrot.slane %v4888_v24, 1  ;;  %v14128_v61 = vld [vmem:[#allocation6 + $0xb0] sm:$0xff]  ;;  %v19058_v2 = vrot.slane %v16844_v63, 1 }
 0x28b   : > { %19231 = vst [vmem:[#allocation19_spill] sm:$0xff] %v16852_v55  ;;  %v16863_v27 = vadd.f32 %v4085_v20, %v4053_v15  ;;  %v16874_v15 = vrot.slane %v14258_v39, 1  ;;  %v4739_v20 = vshll.u32 %v16861_v9, 16  ;;  %v8155_v17 = vunpack.c.l.b16 %v8133_v30  ;;  %5431 = vmatpush.bf16.msra.mxu0 %v14128_v61 }
 0x28c   : > { %19232 = vst [vmem:[#allocation31_spill] sm:$0xff] %v16856_v52  ;;  %v3847_v8 = vpop.f32.mrf.mxu0  ;;  %v4024_v11 = vpop.f32.mrf.mxu1  ;;  %v16880_v38 = vrot.slane %v7409_v31, 1  ;;  %v8156_v49 = vunpack.c.l.b16 %v8134_v28  ;;  %v19236_v24 = vrot.slane %v16849_v3, 1  ;;  %v19239_v30 = vrot.slane %v16673_v37, 1  ;;  %v14162_v52 = vld [vmem:[#allocation6 + $0x1a8] sm:$0xff] }
 0x28d   : > { %v3848_v54 = vadd.f32 %v3847_v8, %v16581_v7  ;;  %19234 = vst [vmem:[#allocation32_spill] sm:$0xff] %v16874_v15  ;;  %v7417_v7 = vshll.u32 %v14258_v39, 16  ;;  %v4734_v39 = vshll.u32 %v16872_v46, 16  ;;  %v16894_v31 = vsel %vm685_vm1, %v19058_v2, %v16874_v15  ;;  %v14170_v2 = vld [vmem:[#allocation6 + $0x1e8] sm:$0xff]  ;;  %5790 = vmatpush.bf16.msra.mxu1 %v14162_v52 }
 0x28e   : > { %19235 = vst [vmem:[#allocation33_spill] sm:$0xff] %v16880_v38  ;;  %v4945_v48 = vsel %vm685_vm1, %v4943_v4, %v19236_v24  ;;  %v4948_v28 = vsel %vm685_vm1, %v4946_v45, %v19239_v30  ;;  %v4759_v4 = vshrl.u32 %v16642_v23, 16  ;;  %v16900_v51 = vpack.c.b16 %v8156_v49, %v8155_v17  ;;  %v16909_v30 = vld [vmem:[#allocation2 + $0x3c] sm:$0xff]  ;;  %5823 = vmatpush.bf16.msra.mxu2 %v14170_v2 }
 0x28f   : > { %v4025_v33 = vadd.f32 %v4024_v11, %v3848_v54  ;;  %5149 = vmatmul.bf16.gmra.mxu3 %v4957_v14  ;;  %v4057_v8 = vpop.f32.mrf.mxu2  ;;  %v8144_v54 = vld [vmem:[#allocation2 + $0x34] sm:$0x8]  ;;  %v16887_v35 = vrot.slane %v7417_v7, 1  ;;  %v7413_v14 = vshrl.u32 %v16844_v63, 16  ;;  %19238 = vst [vmem:[#allocation35_spill] sm:$0xff] %v16894_v31  ;;  %v4869_v63 = vshll.u32 %v16716_v0, 16 }
 0x290   : > { %19240 = vst [vmem:[#allocation36_spill] sm:$0xff] %v16900_v51  ;;  %v8213_v7 = vunpack.c.l.b16 %v8144_v54  ;;  %v14178_v31 = vld [vmem:[#allocation6 + $0x228] sm:$0xff]  ;;  %v4732_v45 = vshrl.u32 %v16872_v46, 16  ;;  %v4736_v17 = vrot.slane %v4734_v39, 1  ;;  %v8181_v39 = vshll.u32 %v16909_v30, 16 }
 0x291   : > { %v4058_v11 = vadd.f32 %v4057_v8, %v4025_v33  ;;  %19237 = vst [vmem:[#allocation34_spill] sm:$0xff] %v16887_v35  ;;  %v7415_v55 = vor.u32 %v7413_v14, %v16880_v38  ;;  %v16916_v14 = vrot.slane %v4739_v20, 1  ;;  %5856 = vmatpush.bf16.msra.mxu3 %v14178_v31  ;;  %v4844_v38 = vld [vmem:[%s15153_s30 + $0x98] sm:$0x3] }
 0x292   : > { %v4088_v33 = vpop.f32.mrf.mxu3  ;;  %v8214_v54 = vpack.c.b16 %v8156_v49, %v8213_v7  ;;  %v16922_v49 = vor.u32 %v4759_v4, %v16829_v12  ;;  %v4737_v2 = vor.u32 %v4736_v17, %v4732_v45  ;;  %v16925_v7 = vrot.slane %v8181_v39, 1  ;;  %v14127_v45 = vld [vmem:[#allocation6 + $0xa8] sm:$0xff]  ;;  %v14169_v17 = vld [vmem:[#allocation6 + $0x1e0] sm:$0xff] }
 0x293   : > { %v16902_v61 = vadd.f32 %v4088_v33, %v4056_v21  ;;  %v8176_v21 = vshll.u32 %v16900_v51, 16  ;;  %v16914_v33 = vsel %vm19182_vm0, %v7415_v55, %v16887_v35  ;;  %v19061_v55 = vrot.slane %v16909_v30, 1  ;;  %5432 = vmatpush.bf16.msra.mxu0 %v14127_v45  ;;  %5824 = vmatpush.bf16.msra.mxu2 %v14169_v17  ;;  %v14177_v39 = vld [vmem:[#allocation6 + $0x220] sm:$0xff]  ;;  %v7367_v45 = vld [vmem:[#allocation2 + $0x44] sm:$0xf] }
 0x294   : > { %v3850_v8 = vpop.f32.mrf.mxu0  ;;  %v4027_v19 = vpop.f32.mrf.mxu1  ;;  %5372 = vmatmul.bf16.vlgmr.msrb.gmra.mxu2 %v16872_v46  ;;  %19241 = vst [vmem:[#allocation37_spill] sm:$0xff] %v16914_v33 }
 0x295   : > { %v3851_v24 = vadd.f32 %v3850_v8, %v16633_v32  ;;  %v8174_v8 = vshrl.u32 %v16900_v51, 16  ;;  %v8178_v46 = vrot.slane %v8176_v21, 1  ;;  %5857 = vmatpush.bf16.msra.mxu3 %v14177_v39  ;;  %v14161_v39 = vld [vmem:[#allocation6 + $0x1a0] sm:$0xff]  ;;  %v7368_v51 = vld [vmem:[#allocation2 + $0x48] sm:$0x1] }
 0x296   : > { %5791 = vmatpush.bf16.msra.mxu1 %v14161_v39 }
 0x297   : > { %v4028_v32 = vadd.f32 %v4027_v19, %v3851_v24  ;;  %5162 = vmatmul.bf16.vlgmr.msrb.gmra.mxu0 %v4945_v48  ;;  %5195 = vmatmul.bf16.vlgmr.msrb.gmra.mxu1 %v4948_v28  ;;  %v4060_v34 = vpop.f32.mrf.mxu2  ;;  %v4871_v19 = vrot.slane %v4869_v63, 1  ;;  %v8215_v48 = vrot.slane %v8214_v54, 1  ;;  %v8179_v20 = vor.u32 %v8178_v46, %v8174_v8 }
 0x298   : > { %v4858_v24 = vunpack.c.l.b16 %v4844_v38  ;;  %v4742_v38 = vsel %vm19243_vm2, %v4737_v2, %v16916_v14  ;;  %v19245_v2 = vrot.slane %v16849_v3, 1  ;;  %vm19249_vm2 = vmmov %vm19182_vm0 }
 0x299   : > { %v4061_v28 = vadd.f32 %v4060_v34, %v4028_v32  ;;  %v16930_v31 = vsel %vm685_vm1, %v8215_v48, %v19061_v55  ;;  %v16934_v12 = vsel %vm19242_vm4, %v8179_v20, %v16925_v7  ;;  %v16941_v4 = vsel %vm19182_vm0, %v16922_v49, %v4871_v19  ;;  %v14126_v55 = vld [vmem:[#allocation6 + $0xa0] sm:$0xff]  ;;  %vm19253_vm4 = vmmov %vm19182_vm0 }
 0x29a   : > { %v4090_v21 = vpop.f32.mrf.mxu3  ;;  %v19244_v32 = vunpack.c.h.b16 %v16684_v26  ;;  %5433 = vmatpush.bf16.msra.mxu0 %v14126_v55 }
 0x29b   : > { %v16936_v63 = vadd.f32 %v4090_v21, %v4058_v11  ;;  %v19062_v11 = vrot.slane %v16941_v4, 1 }
 0x29c   : > { %v3852_v33 = vpop.f32.mrf.mxu0  ;;  %v4029_v34 = vpop.f32.mrf.mxu1  ;;  %v16947_v8 = vpack.c.b16 %v4858_v24, %v19244_v32  ;;  %v4873_v24 = vshrl.u32 %v16716_v0, 16  ;;  %v19246_v32 = vrot.slane %v16673_v37, 1  ;;  %v4743_v0 = vshrl.u32 %v16861_v9, 16 }
 0x29d   : > { %v3853_v52 = vadd.f32 %v3852_v33, %v16667_v22  ;;  %v14259_v22 = vld [vmem:[#allocation2 + $0x3c] sm:$0xff]  ;;  %v19066_v33 = vrot.slane %v16742_v13, 1  ;;  %v4950_v26 = vsel %vm685_vm1, %v19245_v2, %v19062_v11  ;;  %v14168_v2 = vld [vmem:[#allocation6 + $0x1d8] sm:$0xff] }
 0x29e   : > { %v14176_v11 = vld [vmem:[#allocation6 + $0x218] sm:$0xff]  ;;  %v4875_v15 = vor.u32 %v4873_v24, %v4871_v19  ;;  %5825 = vmatpush.bf16.msra.mxu2 %v14168_v2 }
 0x29f   : > { %v4030_v54 = vadd.f32 %v4029_v34, %v3853_v52  ;;  %5405 = vmatmul.bf16.vlgmr.msrb.gmra.mxu3 %v4742_v38  ;;  %v4062_v46 = vpop.f32.mrf.mxu2  ;;  %v4877_v52 = vshll.u32 %v16947_v8, 16  ;;  %v7425_v34 = vshll.u32 %v14259_v22, 16 }
 0x2a0   : > { %5858 = vmatpush.bf16.msra.mxu3 %v14176_v11  ;;  %v14160_v11 = vld [vmem:[#allocation6 + $0x198] sm:$0xff] }
 0x2a1   : > { %v4063_v48 = vadd.f32 %v4062_v46, %v4030_v54  ;;  %v4952_v46 = vsel %vm685_vm1, %v19246_v32, %v19066_v33  ;;  %v16972_v32 = vrot.slane %v4877_v52, 1  ;;  %v16974_v33 = vrot.slane %v7425_v34, 1  ;;  %5792 = vmatpush.bf16.msra.mxu1 %v14160_v11 }
 0x2a2   : > { %v4093_v20 = vpop.f32.mrf.mxu3  ;;  %v16987_v34 = vrot.slane %v14259_v22, 1 }
 0x2a3   : > { %v16958_v17 = vadd.f32 %v4093_v20, %v4061_v28  ;;  %v16970_v20 = vld [vmem:[#allocation2 + $0x44] sm:$0xff]  ;;  %v16985_v52 = vsel %vm19249_vm2, %v4875_v15, %v16972_v32  ;;  %vm19256_vm2 = vmmov %vm19182_vm0 }
 0x2a4   : > { %v3855_v21 = vpop.f32.mrf.mxu0  ;;  %v4032_v54 = vpop.f32.mrf.mxu1  ;;  %5377 = vmatmul.bf16.gmra.mxu2 %v16861_v9  ;;  %19247 = vst [vmem:[#allocation38_spill] sm:$0xff] %v16970_v20  ;;  %v8189_v19 = vshll.u32 %v16970_v20, 16 }
 0x2a5   : > { %v3856_v38 = vadd.f32 %v3855_v21, %v16707_v41  ;;  %v16968_v41 = vunpack.c.l.b16 %v7367_v45  ;;  %v7399_v21 = vunpack.c.l.b16 %v7368_v51  ;;  %19250 = vst [vmem:[#allocation40_spill] sm:$0xff] %v16987_v34 }
 0x2a7   : > { %v4033_v28 = vadd.f32 %v4032_v54, %v3856_v38  ;;  %5167 = vmatmul.bf16.gmra.mxu0 %v4950_v26  ;;  %5200 = vmatmul.bf16.gmra.mxu1 %v4952_v46  ;;  %v4065_v35 = vpop.f32.mrf.mxu2  ;;  %v16977_v6 = vpack.c.b16 %v7399_v21, %v16968_v41  ;;  %v4745_v26 = vor.u32 %v4743_v0, %v16916_v14  ;;  %v4891_v38 = vrot.slane %v16947_v8, 1 }
 0x2a8   : > { %v7429_v54 = vshrl.u32 %v14259_v22, 16 }
 0x2a9   : > { %19248 = vst [vmem:[#allocation39_spill] sm:$0xff] %v16977_v6  ;;  %v4066_v45 = vadd.f32 %v4065_v35, %v4033_v28  ;;  %v7433_v51 = vshll.u32 %v16977_v6, 16  ;;  %v8185_v35 = vshrl.u32 %v16909_v30, 16  ;;  %v19072_v28 = vrot.slane %v16977_v6, 1 }
 0x2aa   : > { %v4095_v24 = vpop.f32.mrf.mxu3  ;;  %v16990_v46 = vor.u32 %v7429_v54, %v16974_v33  ;;  %v4750_v15 = vsel %vm19253_vm4, %v4745_v26, %v16807_v53  ;;  %v17005_v22 = vsel %vm685_vm1, %v16725_v47, %v4891_v38  ;;  %v17019_v26 = vrot.slane %v8189_v19, 1 }
 0x2ab   : > { %v16993_v14 = vadd.f32 %v4095_v24, %v4063_v48  ;;  %v16996_v0 = vrot.slane %v7433_v51, 1  ;;  %v8187_v48 = vor.u32 %v8185_v35, %v16925_v7  ;;  %v17017_v53 = vsel %vm685_vm1, %v16987_v34, %v19072_v28  ;;  %v14125_v24 = vld [vmem:[#allocation6 + $0x98] sm:$0xff] }
 0x2ac   : > { %v3857_v55 = vpop.f32.mrf.mxu0  ;;  %19251 = vst [vmem:[#allocation41_spill] sm:$0xff] %v16990_v46  ;;  %v4034_v2 = vpop.f32.mrf.mxu1  ;;  %v4953_v47 = vrot.slane %v16985_v52, 1  ;;  %v19071_v54 = vrot.slane %v16970_v20, 1  ;;  %v4955_v51 = vrot.slane %v17005_v22, 1  ;;  %v19257_v52 = vrot.slane %v16909_v30, 1  ;;  %5434 = vmatpush.bf16.msra.mxu0 %v14125_v24 }
 0x2ad   : > { %v3858_v39 = vadd.f32 %v3857_v55, %v16734_v5  ;;  %19252 = vst [vmem:[#allocation42_spill] sm:$0xff] %v16996_v0  ;;  %v17011_v5 = vsel %vm19182_vm0, %v16990_v46, %v16996_v0  ;;  %v14167_v55 = vld [vmem:[#allocation6 + $0x1d0] sm:$0xff]  ;;  %v17026_v11 = vsel %vm19256_vm2, %v8187_v48, %v17019_v26  ;;  %vm19260_vm4 = vcmask 1045504  }
 0x2ae   : > { %19254 = vst [vmem:[#allocation43_spill] sm:$0xff] %v17011_v5  ;;  %v19073_v19 = vrot.slane %v17026_v11, 2  ;;  %5826 = vmatpush.bf16.msra.mxu2 %v14167_v55  ;;  %vm19263_vm0 = vmmov %vm19260_vm4 }
 0x2af   : > { %v4035_v21 = vadd.f32 %v4034_v2, %v3858_v39  ;;  %19255 = vst [vmem:[#allocation44_spill] sm:$0xff] %v17017_v53  ;;  %5410 = vmatmul.bf16.gmra.mxu3 %v4750_v15  ;;  %v4067_v7 = vpop.f32.mrf.mxu2  ;;  %v8275_v39 = vrot.slane %v16934_v12, 2  ;;  %v17035_v2 = vsel %vm685_vm1, %v19257_v52, %v19071_v54  ;;  %v8278_v15 = vrot.slane %v16930_v31, 2 }
 0x2b0   : > { %19258 = vst [vmem:[#allocation45_spill] sm:$0xff] %v17035_v2  ;;  %v19074_v22 = vrot.slane %v17035_v2, 2  ;;  %v19259_v12 = vrot.slane %v16941_v4, 1  ;;  %v19262_v31 = vrot.slane %v16742_v13, 1 }
 0x2b1   : > { %v4068_v35 = vadd.f32 %v4067_v7, %v4035_v21  ;;  %v17045_v30 = vsel %vm19260_vm4, %v8275_v39, %v19073_v19  ;;  %v14159_v19 = vld [vmem:[#allocation6 + $0x190] sm:$0xff]  ;;  %vm19267_vm4 = vmmov %vm19256_vm2 }
 0x2b2   : > { %v4098_v48 = vpop.f32.mrf.mxu3  ;;  %v4954_v7 = vsel %vm685_vm1, %v19259_v12, %v4953_v47  ;;  %19261 = vst [vmem:[#allocation46_spill] sm:$0xff] %v17045_v30  ;;  %v4956_v54 = vsel %vm685_vm1, %v19262_v31, %v4955_v51  ;;  %v17056_v4 = vsel %vm19263_vm0, %v8278_v15, %v19074_v22  ;;  %v14175_v31 = vld [vmem:[#allocation6 + $0x210] sm:$0xff]  ;;  %5793 = vmatpush.bf16.msra.mxu1 %v14159_v19  ;;  %vm19268_vm0 = vmmov %vm19256_vm2 }
 0x2b3   : > { %v17047_v52 = vadd.f32 %v4098_v48, %v4066_v45  ;;  %19264 = vst [vmem:[#allocation47_spill] sm:$0xff] %v17056_v4  ;;  %v4881_v45 = vshrl.u32 %v16947_v8, 16  ;;  %v14124_v15 = vld [vmem:[#allocation6 + $0x90] sm:$0xff]  ;;  %5859 = vmatpush.bf16.msra.mxu3 %v14175_v31 }
 0x2b4   : > { %v3860_v21 = vpop.f32.mrf.mxu0  ;;  %v4037_v55 = vpop.f32.mrf.mxu1  ;;  %5382 = vmatmul.bf16.gmra.mxu2 %v16574_v56  ;;  %5435 = vmatpush.bf16.msra.mxu0 %v14124_v15 }
 0x2b5   : > { %v3861_v24 = vadd.f32 %v3860_v21, %v16774_v40  ;;  %v4698_v40 = vld [vmem:[%s15153_s30 + $0x90] sm:$0x1]  ;;  %v17062_v13 = vor.u32 %v4881_v45, %v16972_v32  ;;  %v17070_v32 = vrot.slane %v4891_v38, 1 }
 0x2b6   : > { %v14166_v45 = vld [vmem:[#allocation6 + $0x1c8] sm:$0xff] }
 0x2b7   : > { %v4038_v12 = vadd.f32 %v4037_v55, %v3861_v24  ;;  %5172 = vmatmul.bf16.gmra.mxu0 %v4954_v7  ;;  %5205 = vmatmul.bf16.gmra.mxu1 %v4956_v54  ;;  %v4070_v39 = vpop.f32.mrf.mxu2  ;;  %v4729_v7 = vunpack.c.l.b16 %v4698_v40  ;;  %v19076_v54 = vrot.slane %v17062_v13, 1  ;;  %v17080_v40 = vld [vmem:[%s15153_s30 + $0x80] sm:$0xf]  ;;  %v4962_v8 = vsel %vm685_vm1, %v4955_v51, %v17070_v32  ;;  %v14158_v38 = vld [vmem:[#allocation6 + $0x188] sm:$0xff] }
 0x2b8   : > { %5827 = vmatpush.bf16.msra.mxu2 %v14166_v45  ;;  %5794 = vmatpush.bf16.msra.mxu1 %v14158_v38  ;;  %v14165_v45 = vld [vmem:[#allocation6 + $0x1c0] sm:$0xff] }
 0x2b9   : > { %v4071_v48 = vadd.f32 %v4070_v39, %v4038_v12  ;;  %v17073_v24 = vpack.c.b16 %v4729_v7, %v16692_v62  ;;  %v4960_v19 = vsel %vm685_vm1, %v4953_v47, %v19076_v54  ;;  %v14174_v39 = vld [vmem:[#allocation6 + $0x208] sm:$0xff]  ;;  %v14122_v38 = vld [vmem:[#allocation6 + $0x80] sm:$0xff] }
 0x2ba   : > { %v4100_v21 = vpop.f32.mrf.mxu3  ;;  %5860 = vmatpush.bf16.msra.mxu3 %v14174_v39  ;;  %v14173_v39 = vld [vmem:[#allocation6 + $0x200] sm:$0xff] }
 0x2bb   : > { %v17064_v22 = vadd.f32 %v4100_v21, %v4068_v35  ;;  %v5463_v35 = vld [vmem:[%s15153_s30 + $0x7c] sm:$0xc]  ;;  %v4763_v15 = vshll.u32 %v17073_v24, 16 }
 0x2bc   : > { %v3862_v28 = vpop.f32.mrf.mxu0  ;;  %v4039_v56 = vpop.f32.mrf.mxu1  ;;  %v5485_v47 = vunpack.c.l.b16 %v5463_v35  ;;  %5828 = vmatpush.bf16.msra.mxu2 %v14165_v45 }
 0x2bd   : > { %v19075_v56 = vunpack.c.l.b16 %v17080_v40 }
 0x2be   : > { %5861 = vmatpush.bf16.msra.mxu3 %v14173_v39  ;;  %v4699_v39 = vld [vmem:[%s15153_s30 + $0x6c] sm:$0xe] }
 0x2bf   : > { %5415 = vmatmul.bf16.gmra.mxu3 %v16849_v3  ;;  %v4072_v28 = vpop.f32.mrf.mxu2 }
 0x2c0   : > { %v17089_v28 = vrot.slane %v4763_v15, 1  ;;  %v17105_v15 = vld [vmem:[%s18995_s3] ss:$0 sm:$0xff] }
 0x2c2   : > { %v4103_v55 = vpop.f32.mrf.mxu3 }
 0x2c3   : > { %v17082_v3 = vadd.f32 %v4103_v55, %v4071_v48  ;;  %v14123_v48 = vld [vmem:[#allocation6 + $0x88] sm:$0xff]  ;;  %v17092_v55 = vld [vmem:[%s15153_s30 + $0x84] sm:$0xff] }
 0x2c4   : > { %v4441_v12 = vpop.f32.mrf.mxu0  ;;  %v4474_v21 = vpop.f32.mrf.mxu1  ;;  %5387 = vmatmul.bf16.gmra.mxu2 %v16642_v23  ;;  %5436 = vmatpush.bf16.msra.mxu0 %v14123_v48  ;;  %v17096_v23 = vpack.c.b16 %v19075_v56, %v5485_v47 }
 0x2c5   : > { %v4475_v31 = vadd.f32 %v4474_v21, %v4441_v12  ;;  %v14157_v21 = vld [vmem:[#allocation6 + $0x180] sm:$0xff] }
 0x2c6   : > { %5795 = vmatpush.bf16.msra.mxu1 %v14157_v21  ;;  %v5504_v21 = vshrl.u32 %v17096_v23, 16 }
 0x2c7   : > { %5177 = vmatmul.bf16.gmra.mxu0 %v4960_v19  ;;  %5210 = vmatmul.bf16.gmra.mxu1 %v4962_v8  ;;  %v4507_v7 = vpop.f32.mrf.mxu2 }
 0x2c8   : > { %v4508_v51 = vadd.f32 %v4507_v7, %v4475_v31  ;;  %v4766_v31 = vsel %vm19256_vm2, %v16922_v49, %v17089_v28  ;;  %5437 = vmatpush.bf16.msra.mxu0 %v14122_v38  ;;  %v5511_v49 = vshll.u32 %v17092_v55, 16  ;;  %vm19270_vm2 = vcmask 1045504  }
 0x2ca   : > { %v4105_v12 = vpop.f32.mrf.mxu3  ;;  %v4531_v19 = vadd.f32 %v4508_v51, %v16813_v59  ;;  %v5506_v59 = vshll.u32 %v17096_v23, 16  ;;  %v17110_v51 = vld [vmem:[%s15153_s30 + $0x8c] sm:$0xff]  ;;  %v5513_v2 = vrot.slane %v5511_v49, 1  ;;  %v5474_v49 = vld [vmem:[%s15153_s30 + $0x7c] sm:$0x8] }
 0x2cc   : > { %v4443_v35 = vpop.f32.mrf.mxu0  ;;  %v4476_v8 = vpop.f32.mrf.mxu1  ;;  %v4540_v47 = vadd.f32 %v17105_v15, %v4531_v19  ;;  %v4722_v19 = vpack.c.b16 %v16692_v62, %v16692_v62  ;;  %v5508_v38 = vrot.slane %v5506_v59, 1 }
 0x2cd   : > { %v4477_v7 = vadd.f32 %v4476_v8, %v4443_v35 }
 0x2ce   : > { %v4549_v48 = vmax.f32 %v4540_v47, 0.0  ;;  %v5509_v53 = vor.u32 %v5508_v38, %v5504_v21 }
 0x2cf   : > { %5420 = vmatmul.bf16.gmra.mxu3 %v4766_v31  ;;  %v4509_v12 = vpop.f32.mrf.mxu2  ;;  %v5515_v31 = vshrl.u32 %v17092_v55, 16 }
 0x2d0   : > { %v4558_v56 = vsel %vm15780_vm14, %v4549_v48, 0.0  ;;  %v4510_v54 = vadd.f32 %v4509_v12, %v4477_v7  ;;  %v5519_v48 = vshll.u32 %v17110_v51, 16  ;;  %v14230_v7 = vld [vmem:[#allocation8 + $0x178] sm:$0xff] }
 0x2d1   : > { %v4567_v45 = vpack.c.bf16 %v4558_v56, %v4558_v56  ;;  %v14190_v12 = vld [vmem:[#allocation8 + $0x38] sm:$0xff]  ;;  %6544 = vmatpush.bf16.msrb.mxu2 %v14230_v7  ;;  %v5517_v46 = vor.u32 %v5515_v31, %v5513_v2 }
 0x2d2   : > { %v17119_v47 = vpop.f32.mrf.mxu3  ;;  %v4532_v35 = vadd.f32 %v4510_v54, %v16863_v27  ;;  %6721 = vmatpush.bf16.msrb.mxu3 %v14190_v12  ;;  %v19265_v27 = vrot.slane %v17062_v13, 1  ;;  %v4776_v54 = vunpack.c.l.b16 %v4699_v39  ;;  %v5543_v12 = vunpack.c.l.b16 %v5474_v49  ;;  %v14214_v7 = vld [vmem:[#allocation8 + $0xf8] sm:$0xff] }
 0x2d3   : > { %v4577_v4 = vshrl.u32 %v4567_v45, 16  ;;  %v4580_v62 = vshll.u32 %v4567_v45, 16  ;;  %v17129_v45 = vrot.slane %v5519_v48, 1  ;;  %v5514_v48 = vsel %vm19267_vm4, %v5509_v53, %v5513_v2  ;;  %6478 = vmatpush.bf16.msrb.mxu0 %v14214_v7  ;;  %vm19271_vm4 = vmmov %vm19270_vm2 }
 0x2d4   : > { %v4446_v8 = vpop.f32.mrf.mxu0  ;;  %v4479_v56 = vpop.f32.mrf.mxu1  ;;  %v4541_v30 = vadd.f32 %v17105_v15, %v4532_v35  ;;  %5392 = vmatmul.bf16.gmra.mxu2 %v4722_v19  ;;  %v4767_v35 = vshrl.u32 %v17073_v24, 16  ;;  %v5546_v53 = vrot.slane %v17092_v55, 1 }
 0x2d5   : > { %v4480_v0 = vadd.f32 %v4479_v56, %v4446_v8  ;;  %v4579_v59 = vrot.slane %v4577_v4, 6  ;;  %v4582_v6 = vrot.slane %v4580_v62, 7  ;;  %v4675_v8 = vld [vmem:[#allocation2 + $0x50] sm:$0xe]  ;;  %v14229_v62 = vld [vmem:[#allocation8 + $0x170] sm:$0xff] }
 0x2d6   : > { %v4550_v5 = vmax.f32 %v4541_v30, 0.0  ;;  %6545 = vmatpush.bf16.msrb.mxu2 %v14229_v62 }
 0x2d7   : > { %5182 = vmatmul.bf16.gmra.mxu0 %v19265_v27  ;;  %5215 = vmatmul.bf16.gmra.mxu1 %v17070_v32  ;;  %v4583_v34 = vor.u32 %v4582_v6, %v4579_v59  ;;  %v4512_v19 = vpop.f32.mrf.mxu2  ;;  %v19266_v6 = vunpack.c.l.b16 %v16833_v43  ;;  %v4769_v27 = vor.u32 %v4767_v35, %v17089_v28  ;;  %v19269_v43 = vunpack.c.l.b16 %v17080_v40 }
 0x2d8   : > { %v4559_v4 = vsel %vm15837_vm11, %v4550_v5, 0.0  ;;  %v4513_v13 = vadd.f32 %v4512_v19, %v4480_v0  ;;  %v17144_v5 = vsel %vm19268_vm0, %v5517_v46, %v17129_v45  ;;  %v14222_v0 = vld [vmem:[#allocation8 + $0x138] sm:$0xff]  ;;  %v5605_v19 = vrot.slane %v5514_v48, 2 }
 0x2d9   : > { %v4676_v39 = vsel %vm15637_vm10, %v4583_v34, %v4675_v8  ;;  %v4568_v30 = vpack.c.bf16 %v4559_v4, %v4559_v4  ;;  %v4777_v31 = vpack.c.b16 %v19266_v6, %v4776_v54  ;;  %v5544_v54 = vpack.c.b16 %v19269_v43, %v5543_v12  ;;  %6511 = vmatpush.bf16.msrb.mxu1 %v14222_v0 }
 0x2da   : > { %4677 = vst [vmem:[#allocation2 + $0x50] sm:$0xe] %v4676_v39  ;;  %v17136_v32 = vpop.f32.mrf.mxu3  ;;  %v4533_v21 = vadd.f32 %v4513_v13, %v16902_v61  ;;  %v5606_v8 = vrot.slane %v17144_v5, 2  ;;  %v4779_v35 = vrot.slane %v16861_v9, 1  ;;  %v17154_v39 = vld [vmem:[%s15153_s30 + $0x94] sm:$0xff]  ;;  %v19085_v6 = vrot.slane %v17092_v55, 2 }
 0x2db   : > { %v4586_v56 = vshrl.u32 %v4568_v30, 16  ;;  %v4589_v59 = vshll.u32 %v4568_v30, 16  ;;  %v4778_v28 = vrot.slane %v4777_v31, 1  ;;  %v4584_v30 = vrot.slane %v4583_v34, 4  ;;  %v14187_v5 = vld [vmem:[#allocation8 + $0x20] sm:$0xff] }
 0x2dc   : > { %v4448_v38 = vpop.f32.mrf.mxu0  ;;  %v4481_v49 = vpop.f32.mrf.mxu1  ;;  %v4542_v61 = vadd.f32 %v17105_v15, %v4533_v21  ;;  %v5602_v21 = vrot.slane %v17096_v23, 2  ;;  %v5545_v7 = vrot.slane %v5544_v54, 1  ;;  %v5607_v34 = vsel %vm19270_vm2, %v5605_v19, %v5606_v8  ;;  %v14221_v54 = vld [vmem:[#allocation8 + $0x130] sm:$0xff] }
 0x2dd   : > { %v4588_v46 = vrot.slane %v4586_v56, 6  ;;  %v4591_v2 = vrot.slane %v4589_v59, 7  ;;  %v4482_v13 = vadd.f32 %v4481_v49, %v4448_v38  ;;  %v19084_v38 = vrot.slane %v17110_v51, 1  ;;  %6512 = vmatpush.bf16.msrb.mxu1 %v14221_v54 }
 0x2de   : > { %v4551_v4 = vmax.f32 %v4542_v61, 0.0  ;;  %v5523_v56 = vshrl.u32 %v17110_v51, 16  ;;  %v4780_v49 = vsel %vm685_vm1, %v4778_v28, %v4779_v35  ;;  %v14189_v61 = vld [vmem:[#allocation8 + $0x30] sm:$0xff]  ;;  %v5527_v43 = vshll.u32 %v17154_v39, 16 }
 0x2df   : > { %v4592_v40 = vor.u32 %v4591_v2, %v4588_v46  ;;  %5425 = vmatmul.bf16.gmra.mxu3 %v4769_v27  ;;  %v4514_v12 = vpop.f32.mrf.mxu2  ;;  %v14213_v46 = vld [vmem:[#allocation8 + $0xf0] sm:$0xff] }
 0x2e0   : > { %v4560_v48 = vsel %vm15884_vm15, %v4551_v4, 0.0  ;;  %v4515_v0 = vadd.f32 %v4514_v12, %v4482_v13  ;;  %v5604_v13 = vsel %vm19271_vm4, %v5602_v21, %v19085_v6  ;;  %6722 = vmatpush.bf16.msrb.mxu3 %v14189_v61  ;;  %v5525_v21 = vor.u32 %v5523_v56, %v17129_v45  ;;  %6479 = vmatpush.bf16.msrb.mxu0 %v14213_v46  ;;  %v17188_v61 = vld [vmem:[%s15153_s30 + $0x9c] sm:$0xf]  ;;  %vm19273_vm4 = vmmov %vm19270_vm2 }
 0x2e1   : > { %v4593_v31 = vsel %vm15954_vm7, %v4584_v30, %v4592_v40  ;;  %v4569_v62 = vpack.c.bf16 %v4560_v48, %v4560_v48  ;;  %v5547_v48 = vsel %vm685_vm1, %v5545_v7, %v5546_v53 }
 0x2e2   : > { %4678 = vst [vmem:[#allocation2 + $0x54] sm:$0xf] %v4593_v31  ;;  %v17167_v23 = vpop.f32.mrf.mxu3  ;;  %v4534_v59 = vadd.f32 %v4515_v0, %v16936_v63  ;;  %v17182_v0 = vsel %vm685_vm1, %v5546_v53, %v19084_v38 }
 0x2e3   : > { %v4596_v2 = vshrl.u32 %v4569_v62, 16  ;;  %v4599_v4 = vshll.u32 %v4569_v62, 16  ;;  %v17185_v62 = vrot.slane %v5527_v43, 1  ;;  %v5609_v53 = vrot.slane %v17182_v0, 2 }
 0x2e4   : > { %v4451_v27 = vpop.f32.mrf.mxu0  ;;  %v4484_v19 = vpop.f32.mrf.mxu1  ;;  %v4543_v30 = vadd.f32 %v17105_v15, %v4534_v59  ;;  %5829 = vmatmul.bf16.vlgmr.msra.gmra.mxu2 %v5607_v34  ;;  %v4594_v34 = vrot.slane %v4592_v40, 4 }
 0x2e5   : > { %v4485_v63 = vadd.f32 %v4484_v19, %v4451_v27  ;;  %v4598_v28 = vrot.slane %v4596_v2, 6  ;;  %v4601_v12 = vrot.slane %v4599_v4, 7  ;;  %v5608_v2 = vrot.slane %v5547_v48, 2  ;;  %v14228_v19 = vld [vmem:[#allocation8 + $0x168] sm:$0xff] }
 0x2e6   : > { %v4552_v31 = vmax.f32 %v4543_v30, 0.0  ;;  %v17201_v46 = vsel %vm19268_vm0, %v5525_v21, %v17185_v62  ;;  %v14220_v30 = vld [vmem:[#allocation8 + $0x128] sm:$0xff]  ;;  %6546 = vmatpush.bf16.msrb.mxu2 %v14228_v19  ;;  %vm19275_vm0 = vmmov %vm19270_vm2 }
 0x2e7   : > { %5438 = vmatmul.bf16.vlgmr.msra.gmra.mxu0 %v4780_v49  ;;  %5796 = vmatmul.bf16.vlgmr.msra.gmra.mxu1 %v5604_v13  ;;  %v4602_v59 = vor.u32 %v4601_v12, %v4598_v28  ;;  %v4517_v27 = vpop.f32.mrf.mxu2  ;;  %v5473_v49 = vld [vmem:[%s15153_s30 + $0xa0] sm:$0x7]  ;;  %v14188_v13 = vld [vmem:[#allocation8 + $0x28] sm:$0xff]  ;;  %v19086_v28 = vunpack.c.l.b16 %v17188_v61 }
 0x2e8   : > { %v4561_v7 = vsel %vm15946_vm5, %v4552_v31, 0.0  ;;  %v4518_v54 = vadd.f32 %v4517_v27, %v4485_v63  ;;  %v5501_v63 = vunpack.c.l.b16 %v5473_v49  ;;  %6723 = vmatpush.bf16.msrb.mxu3 %v14188_v13  ;;  %6513 = vmatpush.bf16.msrb.mxu1 %v14220_v30 }
 0x2e9   : > { %v4603_v4 = vsel %vm15954_vm7, %v4594_v34, %v4602_v59  ;;  %v4570_v45 = vpack.c.bf16 %v4561_v7, %v4561_v7  ;;  %v5610_v34 = vsel %vm19270_vm2, %v5608_v2, %v5609_v53  ;;  %v5613_v7 = vrot.slane %v17201_v46, 2 }
 0x2ea   : > { %4679 = vst [vmem:[#allocation2 + $0x58] sm:$0xf] %v4603_v4  ;;  %v17196_v56 = vpop.f32.mrf.mxu3  ;;  %v4535_v40 = vadd.f32 %v4518_v54, %v16958_v17  ;;  %v17211_v49 = vpack.c.b16 %v5501_v63, %v19086_v28  ;;  %v5611_v2 = vrot.slane %v17110_v51, 2  ;;  %v5531_v63 = vshrl.u32 %v17154_v39, 16 }
 0x2eb   : > { %v4606_v12 = vshrl.u32 %v4570_v45, 16  ;;  %v4609_v48 = vshll.u32 %v4570_v45, 16  ;;  %v4604_v45 = vrot.slane %v4602_v59, 4  ;;  %v5614_v59 = vsel %vm19273_vm4, %v5606_v8, %v5613_v7  ;;  %vm19279_vm4 = vmmov %vm19275_vm0 }
 0x2ec   : > { %v4453_v43 = vpop.f32.mrf.mxu0  ;;  %v4486_v31 = vpop.f32.mrf.mxu1  ;;  %v4544_v17 = vadd.f32 %v17105_v15, %v4535_v40  ;;  %6724 = vmatpush.bf16.msrb.mxu3 %v14187_v5  ;;  %vm19278_vm2 = vsmask.f32 7424 }
 0x2ed   : > { %v4608_v27 = vrot.slane %v4606_v12, 6  ;;  %v4611_v21 = vrot.slane %v4609_v48, 7  ;;  %v4487_v4 = vadd.f32 %v4486_v31, %v4453_v43  ;;  %v19088_v12 = vrot.slane %v17154_v39, 1 }
 0x2ee   : > { %v4553_v54 = vmax.f32 %v4544_v17, 0.0  ;;  %v14212_v17 = vld [vmem:[#allocation8 + $0xe8] sm:$0xff] }
 0x2ef   : > { %v4612_v38 = vor.u32 %v4611_v21, %v4608_v27  ;;  %5862 = vmatmul.bf16.vlgmr.msra.gmra.mxu3 %v5610_v34  ;;  %v4519_v6 = vpop.f32.mrf.mxu2  ;;  %v4782_v34 = vsel %vm685_vm1, %v4779_v35, %v16586_v16  ;;  %v14227_v27 = vld [vmem:[#allocation8 + $0x160] sm:$0xff]  ;;  %v5535_v21 = vshll.u32 %v17211_v49, 16  ;;  %6480 = vmatpush.bf16.msrb.mxu0 %v14212_v17  ;;  %v19276_v35 = vrot.slane %v17110_v51, 1 }
 0x2f0   : > { %v4562_v19 = vsel %vm15989_vm12, %v4553_v54, 0.0  ;;  %v4520_v13 = vadd.f32 %v4519_v6, %v4487_v4  ;;  %6547 = vmatpush.bf16.msrb.mxu2 %v14227_v27 }
 0x2f1   : > { %v4613_v30 = vsel %vm15954_vm7, %v4604_v45, %v4612_v38  ;;  %v4571_v43 = vpack.c.bf16 %v4562_v19, %v4562_v19  ;;  %v19274_v45 = vrot.slane %v17092_v55, 2  ;;  %v5533_v55 = vor.u32 %v5531_v63, %v17185_v62 }
 0x2f2   : > { %4680 = vst [vmem:[#allocation2 + $0x5c] sm:$0xf] %v4613_v30  ;;  %v17225_v48 = vpop.f32.mrf.mxu3  ;;  %v4536_v31 = vadd.f32 %v4520_v13, %v16993_v14  ;;  %v17244_v30 = vsel %vm685_vm1, %v19276_v35, %v19088_v12  ;;  %v14211_v35 = vld [vmem:[#allocation8 + $0xe0] sm:$0xff]  ;;  %v14252_v12 = vld [vmem:[#allocation8 + $0x210] sm:$0xff] }
 0x2f3   : > { %v4616_v54 = vshrl.u32 %v4571_v43, 16  ;;  %v4619_v8 = vshll.u32 %v4571_v43, 16  ;;  %v5612_v14 = vsel %vm19275_vm0, %v19274_v45, %v5611_v2  ;;  %v17247_v45 = vrot.slane %v5535_v21, 1  ;;  %6481 = vmatpush.bf16.msrb.mxu0 %v14211_v35 }
 0x2f4   : > { %v4456_v6 = vpop.f32.mrf.mxu0  ;;  %v4489_v4 = vpop.f32.mrf.mxu1  ;;  %v4545_v19 = vadd.f32 %v17105_v15, %v4536_v31  ;;  %5834 = vmatmul.bf16.gmra.mxu2 %v5614_v59  ;;  %v4614_v59 = vrot.slane %v4612_v38, 4 }
 0x2f5   : > { %v4490_v13 = vadd.f32 %v4489_v4, %v4456_v6  ;;  %v4618_v16 = vrot.slane %v4616_v54, 6  ;;  %v4621_v9 = vrot.slane %v4619_v8, 7  ;;  %v19087_v54 = vrot.slane %v17244_v30, 2 }
 0x2f6   : > { %v4554_v43 = vmax.f32 %v4545_v19, 0.0  ;;  %v17259_v38 = vsel %vm19278_vm2, %v5533_v55, %v17247_v45  ;;  %v14186_v55 = vld [vmem:[#allocation8 + $0x18] sm:$0xff]  ;;  %vm19281_vm2 = vmmov %vm19275_vm0 }
 0x2f7   : > { %5443 = vmatmul.bf16.gmra.mxu0 %v4782_v34  ;;  %5801 = vmatmul.bf16.gmra.mxu1 %v5612_v14  ;;  %v4622_v31 = vor.u32 %v4621_v9, %v4618_v16  ;;  %v4522_v6 = vpop.f32.mrf.mxu2  ;;  %v14219_v9 = vld [vmem:[#allocation8 + $0x120] sm:$0xff] }
 0x2f8   : > { %v4563_v34 = vsel %vm16054_vm3, %v4554_v43, 0.0  ;;  %v4523_v8 = vadd.f32 %v4522_v6, %v4490_v13  ;;  %v5616_v13 = vsel %vm19279_vm4, %v5609_v53, %v19087_v54  ;;  %v14226_v43 = vld [vmem:[#allocation8 + $0x158] sm:$0xff]  ;;  %v5619_v6 = vrot.slane %v17259_v38, 2  ;;  %6514 = vmatpush.bf16.msrb.mxu1 %v14219_v9  ;;  %v14225_v54 = vld [vmem:[#allocation8 + $0x150] sm:$0xff]  ;;  %6725 = vmatpush.bf16.msrb.mxu3 %v14186_v55  ;;  %vm19285_vm4 = vmmov %vm19275_vm0 }
 0x2f9   : > { %v4623_v4 = vsel %vm15954_vm7, %v4614_v59, %v4622_v31  ;;  %v4572_v27 = vpack.c.bf16 %v4563_v34, %v4563_v34  ;;  %v5617_v53 = vrot.slane %v17154_v39, 2  ;;  %6548 = vmatpush.bf16.msrb.mxu2 %v14226_v43  ;;  %v14217_v55 = vld [vmem:[#allocation8 + $0x110] sm:$0xff] }
 0x2fa   : > { %4681 = vst [vmem:[#allocation2 + $0x60] sm:$0xf] %v4623_v4  ;;  %v17254_v14 = vpop.f32.mrf.mxu3  ;;  %v4537_v62 = vadd.f32 %v4523_v8, %v17047_v52  ;;  %v14218_v4 = vld [vmem:[#allocation8 + $0x118] sm:$0xff] }
 0x2fb   : > { %v4626_v21 = vshrl.u32 %v4572_v27, 16  ;;  %v4629_v5 = vshll.u32 %v4572_v27, 16  ;;  %v4624_v27 = vrot.slane %v4622_v31, 4  ;;  %v5620_v31 = vsel %vm19275_vm0, %v5613_v7, %v5619_v6  ;;  %v14185_v7 = vld [vmem:[#allocation8 + $0x10] sm:$0xff] }
 0x2fc   : > { %v4458_v63 = vpop.f32.mrf.mxu0  ;;  %v4491_v19 = vpop.f32.mrf.mxu1  ;;  %v4546_v16 = vadd.f32 %v17105_v15, %v4537_v62  ;;  %v14210_v62 = vld [vmem:[#allocation8 + $0xd8] sm:$0xff]  ;;  %6515 = vmatpush.bf16.msrb.mxu1 %v14218_v4  ;;  %v5618_v46 = vsel %vm19281_vm2, %v5611_v2, %v5617_v53  ;;  %v5539_v2 = vshrl.u32 %v17211_v49, 16  ;;  %6726 = vmatpush.bf16.msrb.mxu3 %v14185_v7  ;;  %vm19286_vm2 = vmmov %vm19275_vm0 }
 0x2fd   : > { %v4628_v52 = vrot.slane %v4626_v21, 6  ;;  %v4631_v59 = vrot.slane %v4629_v5, 7  ;;  %v4492_v8 = vadd.f32 %v4491_v19, %v4458_v63  ;;  %6482 = vmatpush.bf16.msrb.mxu0 %v14210_v62  ;;  %6549 = vmatpush.bf16.msrb.mxu2 %v14225_v54  ;;  %v19282_v62 = vrot.slane %v17154_v39, 1 }
 0x2fe   : > { %v4555_v34 = vmax.f32 %v4546_v16, 0.0 }
 0x2ff   : > { %v4632_v28 = vor.u32 %v4631_v59, %v4628_v52  ;;  %5867 = vmatmul.bf16.gmra.mxu3 %v5616_v13  ;;  %v4524_v0 = vpop.f32.mrf.mxu2  ;;  %v5552_v13 = vrot.slane %v17211_v49, 1 }
 0x300   : > { %v4564_v21 = vsel %vm16107_vm13, %v4555_v34, 0.0  ;;  %v4525_v5 = vadd.f32 %v4524_v0, %v4492_v8  ;;  %v14209_v34 = vld [vmem:[#allocation8 + $0xd0] sm:$0xff]  ;;  %6516 = vmatpush.bf16.msrb.mxu1 %v14217_v55 }
 0x301   : > { %v4633_v63 = vsel %vm15954_vm7, %v4624_v27, %v4632_v28  ;;  %v4573_v19 = vpack.c.bf16 %v4564_v21, %v4564_v21  ;;  %v17295_v51 = vsel %vm685_vm1, %v19282_v62, %v5552_v13  ;;  %6483 = vmatpush.bf16.msrb.mxu0 %v14209_v34  ;;  %v4634_v21 = vrot.slane %v4632_v28, 4 }
 0x302   : > { %4682 = vst [vmem:[#allocation2 + $0x64] sm:$0xf] %v4633_v63  ;;  %v17279_v16 = vpop.f32.mrf.mxu3  ;;  %v4538_v9 = vadd.f32 %v4525_v5, %v17064_v22  ;;  %v5472_v22 = vld [vmem:[%s15153_s30 + $0xa0] sm:$0x3] }
 0x303   : > { %v4636_v43 = vshrl.u32 %v4573_v19, 16  ;;  %v4639_v52 = vshll.u32 %v4573_v19, 16  ;;  %v5494_v19 = vunpack.c.l.b16 %v5472_v22 }
 0x304   : > { %v4461_v35 = vpop.f32.mrf.mxu0  ;;  %v4494_v59 = vpop.f32.mrf.mxu1  ;;  %v4547_v8 = vadd.f32 %v17105_v15, %v4538_v9  ;;  %5839 = vmatmul.bf16.gmra.mxu2 %v5620_v31  ;;  %v5621_v31 = vrot.slane %v17295_v51, 2  ;;  %v17382_v51 = vld [vmem:[#allocation2 + $0x50] sm:$0xff]  }
 0x305   : > { %v4495_v27 = vadd.f32 %v4494_v59, %v4461_v35  ;;  %v4638_v4 = vrot.slane %v4636_v43, 6  ;;  %v4641_v0 = vrot.slane %v4639_v52, 7  ;;  %v17304_v52 = vor.u32 %v5539_v2, %v17247_v45 }
 0x306   : > { %v4556_v54 = vmax.f32 %v4547_v8, 0.0  ;;  %v19283_v8 = vunpack.c.l.b16 %v17188_v61  ;;  %v19284_v45 = vrot.slane %v17244_v30, 2  ;;  %v4785_v61 = vrot.slane %v17073_v24, 1  ;;  %v14216_v30 = vld [vmem:[#allocation8 + $0x108] sm:$0xff] }
 0x307   : > { %5448 = vmatmul.bf16.gmra.mxu0 %v16673_v37  ;;  %5806 = vmatmul.bf16.gmra.mxu1 %v5618_v46  ;;  %v4642_v5 = vor.u32 %v4641_v0, %v4638_v4  ;;  %v4527_v63 = vpop.f32.mrf.mxu2  ;;  %v14184_v4 = vld [vmem:[#allocation8 + $0x8] sm:$0xff] }
 0x308   : > { %v4565_v37 = vsel %vm16224_vm6, %v4556_v54, 0.0  ;;  %v4528_v9 = vadd.f32 %v4527_v63, %v4495_v27  ;;  %v17311_v22 = vpack.c.b16 %v5494_v19, %v19283_v8  ;;  %v14224_v27 = vld [vmem:[#allocation8 + $0x148] sm:$0xff]  ;;  %v5622_v0 = vsel %vm19285_vm4, %v19284_v45, %v5621_v31  ;;  %6727 = vmatpush.bf16.msrb.mxu3 %v14184_v4  ;;  %6517 = vmatpush.bf16.msrb.mxu1 %v14216_v30 }
 0x309   : > { %v4643_v35 = vsel %vm15954_vm7, %v4634_v21, %v4642_v5  ;;  %v4574_v43 = vpack.c.bf16 %v4565_v37, %v4565_v37  ;;  %v5625_v54 = vrot.slane %v17304_v52, 2  ;;  %6550 = vmatpush.bf16.msrb.mxu2 %v14224_v27  ;;  %v4644_v63 = vrot.slane %v4642_v5, 4 }
 0x30a   : > { %4683 = vst [vmem:[#allocation2 + $0x68] sm:$0xf] %v4643_v35  ;;  %v17306_v59 = vpop.f32.mrf.mxu3  ;;  %v4539_v28 = vadd.f32 %v4528_v9, %v17082_v3  ;;  %v5623_v9 = vrot.slane %v17311_v22, 2  ;;  %vm19287_vm4 = vsmask.f32 7424 }
 0x30b   : > { %v4646_v7 = vshrl.u32 %v4574_v43, 16  ;;  %v4649_v55 = vshll.u32 %v4574_v43, 16  ;;  %v5626_v5 = vsel %vm19275_vm0, %v5619_v6, %v5625_v54 }
 0x30c   : > { %v4463_v46 = vpop.f32.mrf.mxu0  ;;  %v4496_v34 = vpop.f32.mrf.mxu1  ;;  %v4548_v62 = vadd.f32 %v17105_v15, %v4539_v28  ;;  %v17324_v15 = vld [vmem:[#allocation2 + $0x4c] sm:$0xff]  ;;  %v5624_v6 = vsel %vm19286_vm2, %v5617_v53, %v5623_v9  ;;  %vm19290_vm2 = vmmov %vm19275_vm0 }
 0x30d   : > { %v4648_v2 = vrot.slane %v4646_v7, 6  ;;  %v4651_v3 = vrot.slane %v4649_v55, 7  ;;  %v4786_v55 = vsel %vm685_vm1, %v16654_v60, %v4785_v61  ;;  %v8193_v34 = vshrl.u32 %v16970_v20, 16 }
 0x30e   : > { %v4557_v21 = vmax.f32 %v4548_v62, 0.0  ;;  %v8197_v8 = vshll.u32 %v17324_v15, 16  ;;  %v14223_v62 = vld [vmem:[#allocation8 + $0x140] sm:$0xff] }
 0x30f   : > { %v4652_v19 = vor.u32 %v4651_v3, %v4648_v2  ;;  %5872 = vmatmul.bf16.gmra.mxu3 %v5622_v0  ;;  %v4529_v37 = vpop.f32.mrf.mxu2  ;;  %v14208_v0 = vld [vmem:[#allocation8 + $0xc8] sm:$0xff]  ;;  %v14183_v2 = vld [vmem:[#allocation8] sm:$0xff]  ;;  %v8195_v60 = vor.u32 %v8193_v34, %v17019_v26  ;;  %6551 = vmatpush.bf16.msrb.mxu2 %v14223_v62 }
 0x310   : > { %v4566_v35 = vsel %vm16259_vm9, %v4557_v21, 0.0  ;;  %v17348_v3 = vrot.slane %v8197_v8, 1  ;;  %6484 = vmatpush.bf16.msrb.mxu0 %v14208_v0  ;;  %6728 = vmatpush.bf16.msrb.mxu3 %v14183_v2  ;;  %v4686_v26 = vld [vmem:[#allocation2 + $0x74] sm:$0x3]  ;;  %v14215_v8 = vld [vmem:[#allocation8 + $0x100] sm:$0xff] }
 0x311   : > { %v4653_v43 = vsel %vm15954_vm7, %v4644_v63, %v4652_v19  ;;  %v4575_v28 = vpack.c.bf16 %v4566_v35, %v4566_v35  ;;  %v4654_v39 = vrot.slane %v4652_v19, 4  ;;  %v14207_v19 = vld [vmem:[#allocation8 + $0xc0] sm:$0xff]  ;;  %6518 = vmatpush.bf16.msrb.mxu1 %v14215_v8  ;;  %v6196_v0 = vld [vmem:[#allocation2 + $0x8] sm:$0xe] }
 0x312   : > { %4684 = vst [vmem:[#allocation2 + $0x6c] sm:$0xf] %v4653_v43  ;;  %v17333_v46 = vpop.f32.mrf.mxu3  ;;  %v17357_v43 = vrot.slane %v5552_v13, 2  ;;  %v17378_v2 = vld [vmem:[#allocation2 + $0x10] sm:$0xff] }
 0x313   : > { %v4656_v27 = vshrl.u32 %v4575_v28, 16  ;;  %v4659_v4 = vshll.u32 %v4575_v28, 16  ;;  %v8825_v8 = vld [vmem:[#allocation2 + $0x50] sm:$0xc]  ;;  %v6107_v22 = vshrl.u32 %v17378_v2, 16 }
 0x314   : > { %v5163_v7 = vpop.f32.mrf.mxu0  ;;  %v5196_v45 = vpop.f32.mrf.mxu1  ;;  %5844 = vmatmul.bf16.gmra.mxu2 %v5626_v5  ;;  %6485 = vmatpush.bf16.msrb.mxu0 %v14207_v19 }
 0x315   : > { %v5164_v38 = vadd.f32 %v5163_v7, %v17119_v47  ;;  %v4658_v21 = vrot.slane %v4656_v27, 6  ;;  %v4661_v63 = vrot.slane %v4659_v4, 7  ;;  %v17352_v47 = vsel %vm19287_vm4, %v8195_v60, %v17348_v3  ;;  %v17380_v60 = vld [vmem:[#allocation2 + $0x54] sm:$0xf] }
 0x316   : > { %v8283_v35 = vrot.slane %v17352_v47, 2  ;;  %v19288_v27 = vrot.slane %v17026_v11, 2 }
 0x317   : > { %v5197_v37 = vadd.f32 %v5196_v45, %v5164_v38  ;;  %5453 = vmatmul.bf16.gmra.mxu0 %v4786_v55  ;;  %5811 = vmatmul.bf16.gmra.mxu1 %v5624_v6  ;;  %v4662_v53 = vor.u32 %v4661_v63, %v4658_v21  ;;  %v5373_v30 = vpop.f32.mrf.mxu2  ;;  %v17371_v45 = vld [vmem:[#allocation2 + $0x8] sm:$0xff]   ;;  %v5628_v6 = vsel %vm19290_vm2, %v5621_v31, %v17357_v43  ;;  %v19091_v31 = vunpack.c.l.b16 %v17380_v60  ;;  %vm19298_vm2 = vmmov %vm19287_vm4 }
 0x318   : > { %v17366_v4 = vsel %vm19275_vm0, %v19288_v27, %v8283_v35  ;;  %v14528_v62 = vunpack.c.h.b16 %v17371_v45  ;;  %v14241_v21 = vld [vmem:[#allocation8 + $0x1b8] sm:$0xff] }
 0x319   : > { %v5374_v28 = vadd.f32 %v5373_v30, %v5197_v37  ;;  %v4663_v5 = vsel %vm15954_vm7, %v4654_v39, %v4662_v53  ;;  %v4664_v7 = vrot.slane %v4662_v53, 4  ;;  %19289 = vst [vmem:[#allocation20_spill] sm:$0xff] %v17366_v4  ;;  %v14249_v63 = vld [vmem:[#allocation8 + $0x1f8] sm:$0xff]  ;;  %v6206_v39 = vunpack.c.l.b16 %v6196_v0  ;;  %v8143_v53 = vld [vmem:[#allocation2 + $0x58] sm:$0x7]  ;;  %7146 = vmatpush.bf16.msra.mxu2 %v14241_v21 }
 0x31a   : > { %4685 = vst [vmem:[#allocation2 + $0x70] sm:$0xf] %v4663_v5  ;;  %v5152_v55 = vpop.f32.mrf.mxu3  ;;  %7179 = vmatpush.bf16.msra.mxu3 %v14249_v63  ;;  %v8171_v30 = vunpack.c.l.b16 %v8143_v53  ;;  %v19090_v0 = vunpack.c.h.b16 %v17382_v51  ;;  %v8865_v21 = vunpack.c.l.b16 %v8825_v8 }
 0x31b   : > { %v4687_v49 = vsel %vm15625_vm8, %v4664_v7, %v4686_v26  ;;  %v17385_v7 = vpack.c.b16 %v14528_v62, %v6206_v39  ;;  %v6103_v55 = vshll.u32 %v17378_v2, 16 }
 0x31c   : > { %v5165_v34 = vpop.f32.mrf.mxu0  ;;  %v5198_v38 = vpop.f32.mrf.mxu1  ;;  %4688 = vst [vmem:[#allocation2 + $0x74] sm:$0x3] %v4687_v49 }
 0x31d   : > { %v5166_v13 = vadd.f32 %v5165_v34, %v17136_v32  ;;  %v6201_v34 = vld [vmem:[#allocation2 + $0x8] sm:$0xc]  ;;  %v6219_v63 = vshll.u32 %v17385_v7, 16  ;;  %v17405_v52 = vrot.slane %v6103_v55, 1 }
 0x31e   : > { %v6241_v39 = vunpack.c.l.b16 %v6201_v34  ;;  %v17418_v34 = vrot.slane %v17378_v2, 1 }
 0x31f   : > { %v5199_v11 = vadd.f32 %v5198_v38, %v5166_v13  ;;  %5877 = vmatmul.bf16.gmra.mxu3 %v5628_v6  ;;  %v5375_v32 = vpop.f32.mrf.mxu2  ;;  %v14206_v13 = vld [vmem:[#allocation8 + $0xb8] sm:$0xff]  ;;  %v14240_v6 = vld [vmem:[#allocation8 + $0x1b0] sm:$0xff] }
 0x320   : > { %v14198_v38 = vld [vmem:[#allocation8 + $0x78] sm:$0xff]  ;;  %6787 = vmatpush.bf16.msra.mxu1 %v14206_v13  ;;  %7147 = vmatpush.bf16.msra.mxu2 %v14240_v6  ;;  %v14248_v6 = vld [vmem:[#allocation8 + $0x1f0] sm:$0xff] }
 0x321   : > { %v5376_v37 = vadd.f32 %v5375_v32, %v5199_v11  ;;  %v17393_v11 = vpack.c.b16 %v8171_v30, %v19091_v31  ;;  %6754 = vmatpush.bf16.msra.mxu0 %v14198_v38  ;;  %v6242_v30 = vpack.c.b16 %v14528_v62, %v6241_v39  ;;  %v6109_v38 = vor.u32 %v6107_v22, %v17405_v52 }
 0x322   : > { %v5406_v26 = vpop.f32.mrf.mxu3  ;;  %7180 = vmatpush.bf16.msra.mxu3 %v14248_v6 }
 0x323   : > { %v17388_v19 = vadd.f32 %v5406_v26, %v5374_v28  ;;  %19291 = vst [vmem:[#allocation21_spill] sm:$0xff] %v17393_v11  ;;  %v8205_v28 = vshll.u32 %v17393_v11, 16  ;;  %v14335_v26 = vld [vmem:[#allocation2 + $0x58] sm:$0xff] }
 0x324   : > { %v5168_v5 = vpop.f32.mrf.mxu0  ;;  %v5201_v49 = vpop.f32.mrf.mxu1  ;;  %5849 = vmatmul.bf16.gmra.mxu2 %v5625_v54  ;;  %v17420_v8 = vrot.slane %v14335_v26, 1  ;;  %v14830_v26 = vld [vmem:[#allocation2 + $0x20] sm:$0xff]  }
 0x325   : > { %v5169_v27 = vadd.f32 %v5168_v5, %v17167_v23  ;;  %v8201_v23 = vshrl.u32 %v17324_v15, 16  ;;  %v17408_v54 = vrot.slane %v8205_v28, 1  ;;  %v19294_v28 = vld [vmem:[#allocation25_spill] sm:$0xff]  ;;  %v6207_v22 = vunpack.c.h.b16 %v14830_v26 }
 0x327   : > { %v5202_v32 = vadd.f32 %v5201_v49, %v5169_v27  ;;  %5458 = vmatmul.bf16.gmra.mxu0 %v4785_v61  ;;  %5816 = vmatmul.bf16.gmra.mxu1 %v5623_v9  ;;  %v5378_v53 = vpop.f32.mrf.mxu2  ;;  %v8203_v24 = vor.u32 %v8201_v23, %v17348_v3  ;;  %19292 = vst [vmem:[#allocation22_spill] sm:$0xff] %v17408_v54  ;;  %v6221_v3 = vrot.slane %v6219_v63, 1  ;;  %v6217_v23 = vshrl.u32 %v17385_v7, 16 }
 0x328   : > { %v8866_v61 = vpack.c.b16 %v19090_v0, %v8865_v21  ;;  %v17431_v21 = vsel %vm685_vm1, %v17418_v34, %v19294_v28  ;;  %v6243_v63 = vrot.slane %v6242_v30, 1 }
 0x329   : > { %v5379_v15 = vadd.f32 %v5378_v53, %v5202_v32  ;;  %v17415_v9 = vsel %vm19287_vm4, %v8203_v24, %v17408_v54  ;;  %v19297_v53 = vld [vmem:[#allocation24_spill] sm:$0xff]  ;;  %vm19299_vm4 = vmmov %vm19298_vm2 }
 0x32a   : > { %19293 = vst [vmem:[#allocation48_spill] sm:$0xff] %v17415_v9  ;;  %v5408_v5 = vpop.f32.mrf.mxu3  ;;  %v19089_v27 = vrot.slane %v17415_v9, 2  ;;  %v8867_v32 = vrot.slane %v8866_v61, 1  ;;  %v17446_v24 = vsel %vm19298_vm2, %v6109_v38, %v19297_v53  ;;  %v6222_v61 = vor.u32 %v6221_v3, %v6217_v23 }
 0x32b   : > { %v17423_v49 = vadd.f32 %v5408_v5, %v5376_v37  ;;  %v6244_v30 = vsel %vm685_vm1, %v6243_v63, %v17418_v34  ;;  %v14205_v5 = vld [vmem:[#allocation8 + $0xb0] sm:$0xff]  ;;  %v19092_v38 = vrot.slane %v17446_v24, 1  ;;  %v6298_v23 = vrot.slane %v17385_v7, 1  ;;  %v19300_v63 = vld [vmem:[#allocation13_spill] sm:$0xff] }
 0x32c   : > { %v5170_v55 = vpop.f32.mrf.mxu0  ;;  %v5203_v13 = vpop.f32.mrf.mxu1  ;;  %v17438_v37 = vsel %vm19275_vm0, %v8283_v35, %v19089_v27  ;;  %v17442_v39 = vsel %vm685_vm1, %v8867_v32, %v17420_v8  ;;  %v6304_v35 = vrot.slane %v17431_v21, 1  ;;  %v6303_v6 = vrot.slane %v6244_v30, 1  ;;  %6788 = vmatpush.bf16.msra.mxu1 %v14205_v5  ;;  %v14239_v30 = vld [vmem:[#allocation8 + $0x1a8] sm:$0xff]  ;;  %vm19302_vm0 = vmmov %vm19298_vm2 }
 0x32d   : > { %v5171_v62 = vadd.f32 %v5170_v55, %v17196_v56  ;;  %19295 = vst [vmem:[#allocation25_spill] sm:$0xff] %v17438_v37  ;;  %v14197_v55 = vld [vmem:[#allocation8 + $0x70] sm:$0xff]  ;;  %v14247_v5 = vld [vmem:[#allocation8 + $0x1e8] sm:$0xff]  ;;  %v6299_v27 = vsel %vm685_vm1, %v6298_v23, %v17418_v34  ;;  %7148 = vmatpush.bf16.msra.mxu2 %v14239_v30  ;;  %v14238_v30 = vld [vmem:[#allocation8 + $0x1a0] sm:$0xff] }
 0x32e   : > { %19296 = vst [vmem:[#allocation49_spill] sm:$0xff] %v17442_v39  ;;  %6755 = vmatpush.bf16.msra.mxu0 %v14197_v55  ;;  %v14204_v55 = vld [vmem:[#allocation8 + $0xa8] sm:$0xff]  ;;  %7181 = vmatpush.bf16.msra.mxu3 %v14247_v5  ;;  %v8678_v39 = vld [vmem:[#allocation2 + $0x6c] sm:$0x1]  ;;  %vm19308_vm2 = vmmov %vm19302_vm0 }
 0x32f   : > { %v5204_v56 = vadd.f32 %v5203_v13, %v5171_v62  ;;  %5882 = vmatmul.bf16.gmra.mxu3 %v17357_v43  ;;  %v5380_v47 = vpop.f32.mrf.mxu2  ;;  %v6223_v13 = vsel %vm19299_vm4, %v6222_v61, %v17405_v52  ;;  %v17457_v43 = vpack.c.b16 %v6207_v22, %v19300_v63  ;;  %v6305_v61 = vsel %vm685_vm1, %v6303_v6, %v6304_v35  ;;  %vm19313_vm4 = vmmov %vm19302_vm0 }
 0x330   : > { %6789 = vmatpush.bf16.msra.mxu1 %v14204_v55  ;;  %v17482_v55 = vld [vmem:[#allocation2 + $0x28] sm:$0xf] }
 0x331   : > { %v5381_v62 = vadd.f32 %v5380_v47, %v5204_v56  ;;  %v6300_v47 = vrot.slane %v6223_v13, 1  ;;  %v17472_v6 = vrot.slane %v17457_v43, 1  ;;  %7149 = vmatpush.bf16.msra.mxu2 %v14238_v30  ;;  %v6229_v9 = vshrl.u32 %v17457_v43, 16 }
 0x332   : > { %v5411_v3 = vpop.f32.mrf.mxu3 }
 0x333   : > { %v17459_v53 = vadd.f32 %v5411_v3, %v5379_v15  ;;  %v6302_v15 = vsel %vm685_vm1, %v6300_v47, %v19092_v38  ;;  %v17480_v5 = vsel %vm685_vm1, %v19294_v28, %v17472_v6  ;;  %v19093_v28 = vunpack.c.l.b16 %v17482_v55  ;;  %v14195_v38 = vld [vmem:[#allocation8 + $0x60] sm:$0xff] }
 0x334   : > { %v5173_v32 = vpop.f32.mrf.mxu0  ;;  %v5206_v56 = vpop.f32.mrf.mxu1  ;;  %6552 = vmatmul.bf16.vlgmr.msrb.gmra.mxu2 %v6305_v61  ;;  %v14196_v61 = vld [vmem:[#allocation8 + $0x68] sm:$0xff] }
 0x335   : > { %v5174_v26 = vadd.f32 %v5173_v32, %v17225_v48  ;;  %v6225_v48 = vshll.u32 %v17457_v43, 16  ;;  %6756 = vmatpush.bf16.msra.mxu0 %v14196_v61 }
 0x337   : > { %v5207_v7 = vadd.f32 %v5206_v56, %v5174_v26  ;;  %6486 = vmatmul.bf16.vlgmr.msrb.gmra.mxu0 %v6299_v27  ;;  %6519 = vmatmul.bf16.vlgmr.msrb.gmra.mxu1 %v6302_v15  ;;  %v5383_v22 = vpop.f32.mrf.mxu2  ;;  %v6227_v23 = vrot.slane %v6225_v48, 1  ;;  %v6200_v26 = vld [vmem:[#allocation2 + $0x2c] sm:$0x3]  ;;  %v17484_v48 = vld [vmem:[#allocation2] sm:$0xff]  }
 0x338   : > { %v6214_v15 = vunpack.c.l.b16 %v6200_v26 }
 0x339   : > { %v5384_v13 = vadd.f32 %v5383_v22, %v5207_v7  ;;  %6757 = vmatpush.bf16.msra.mxu0 %v14195_v38 }
 0x33a   : > { %v5413_v3 = vpop.f32.mrf.mxu3  ;;  %v17496_v26 = vpack.c.b16 %v6214_v15, %v19093_v28  ;;  %v14245_v15 = vld [vmem:[#allocation8 + $0x1d8] sm:$0xff] }
 0x33b   : > { %v17474_v27 = vadd.f32 %v5413_v3, %v5381_v62  ;;  %v19301_v62 = vld [vmem:[#allocation26_spill] sm:$0xff]  ;;  %v19094_v3 = vrot.slane %v17480_v5, 1  ;;  %v14336_v28 = vld [vmem:[#allocation2 + $0x60] sm:$0xff] }
 0x33c   : > { %v5175_v32 = vpop.f32.mrf.mxu0  ;;  %v5208_v47 = vpop.f32.mrf.mxu1  ;;  %v17488_v22 = vsel %vm19302_vm0, %v19301_v62, %v6227_v23 }
 0x33d   : > { %v5176_v56 = vadd.f32 %v5175_v32, %v17254_v14  ;;  %v14246_v32 = vld [vmem:[#allocation8 + $0x1e0] sm:$0xff] }
 0x33e   : > { %7182 = vmatpush.bf16.msra.mxu3 %v14246_v32 }
 0x33f   : > { %v5209_v7 = vadd.f32 %v5208_v47, %v5176_v56  ;;  %6729 = vmatmul.bf16.vlgmr.msrb.gmra.mxu3 %v17484_v48  ;;  %v5385_v14 = vpop.f32.mrf.mxu2  ;;  %v14237_v56 = vld [vmem:[#allocation8 + $0x198] sm:$0xff] }
 0x340   : > { %7150 = vmatpush.bf16.msra.mxu2 %v14237_v56 }
 0x341   : > { %v5386_v0 = vadd.f32 %v5385_v14, %v5209_v7  ;;  %v6309_v7 = vsel %vm685_vm1, %v6304_v35, %v19094_v3  ;;  %v14203_v14 = vld [vmem:[#allocation8 + $0xa0] sm:$0xff]  ;;  %v6247_v3 = vrot.slane %v17496_v26, 1 }
 0x342   : > { %v5416_v47 = vpop.f32.mrf.mxu3  ;;  %6790 = vmatpush.bf16.msra.mxu1 %v14203_v14  ;;  %7183 = vmatpush.bf16.msra.mxu3 %v14245_v15  ;;  %v14202_v14 = vld [vmem:[#allocation8 + $0x98] sm:$0xff]  ;;  %v6231_v15 = vor.u32 %v6229_v9, %v6227_v23 }
 0x343   : > { %v17498_v30 = vadd.f32 %v5416_v47, %v5384_v13  ;;  %v19303_v13 = vrot.slane %v17488_v22, 1  ;;  %v14194_v23 = vld [vmem:[#allocation8 + $0x58] sm:$0xff] }
 0x344   : > { %v5178_v61 = vpop.f32.mrf.mxu0  ;;  %v5211_v31 = vpop.f32.mrf.mxu1  ;;  %6557 = vmatmul.bf16.gmra.mxu2 %v6309_v7  ;;  %6758 = vmatpush.bf16.msra.mxu0 %v14194_v23  ;;  %v19316_v23 = vrot.slane %v17488_v22, 1 }
 0x345   : > { %v5179_v62 = vadd.f32 %v5178_v61, %v17279_v16  ;;  %v19304_v16 = vrot.slane %v17446_v24, 1  ;;  %v6233_v61 = vshll.u32 %v17496_v26, 16 }
 0x346   : > { %6791 = vmatpush.bf16.msra.mxu1 %v14202_v14 }
 0x347   : > { %v5212_v32 = vadd.f32 %v5211_v31, %v5179_v62  ;;  %6491 = vmatmul.bf16.gmra.mxu0 %v17431_v21  ;;  %v6307_v47 = vsel %vm685_vm1, %v19304_v16, %v19303_v13  ;;  %v5388_v35 = vpop.f32.mrf.mxu2  ;;  %v8735_v31 = vshll.u32 %v14336_v28, 16  ;;  %v8677_v62 = vld [vmem:[#allocation2 + $0x68] sm:$0xff]   ;;  %v6235_v54 = vrot.slane %v6233_v61, 1 }
 0x348   : > { %6524 = vmatmul.bf16.gmra.mxu1 %v6307_v47  ;;  %v17515_v37 = vunpack.c.l.b16 %v8677_v62  ;;  %v8709_v13 = vunpack.c.l.b16 %v8678_v39  ;;  %v17528_v62 = vrot.slane %v14336_v28, 1 }
 0x349   : > { %v5389_v7 = vadd.f32 %v5388_v35, %v5212_v32  ;;  %v6248_v35 = vsel %vm685_vm1, %v17472_v6, %v6247_v3  ;;  %v17525_v43 = vrot.slane %v8735_v31, 1  ;;  %v6236_v39 = vsel %vm19308_vm2, %v6231_v15, %v6235_v54 }
 0x34a   : > { %19305 = vst [vmem:[#allocation24_spill] sm:$0xff] %v17515_v37  ;;  %v5418_v16 = vpop.f32.mrf.mxu3  ;;  %v17521_v32 = vpack.c.b16 %v8709_v13, %v17515_v37  ;;  %v6312_v9 = vrot.slane %v6248_v35, 1  ;;  %v14236_v13 = vld [vmem:[#allocation8 + $0x190] sm:$0xff] }
 0x34b   : > { %v17517_v47 = vadd.f32 %v5418_v16, %v5386_v0  ;;  %19307 = vst [vmem:[#allocation26_spill] sm:$0xff] %v17525_v43  ;;  %v8739_v0 = vshrl.u32 %v14336_v28, 16  ;;  %7151 = vmatpush.bf16.msra.mxu2 %v14236_v13 }
 0x34c   : > { %v5180_v11 = vpop.f32.mrf.mxu0  ;;  %v5213_v56 = vpop.f32.mrf.mxu1  ;;  %19306 = vst [vmem:[#allocation13_spill] sm:$0xff] %v17521_v32  ;;  %v8743_v16 = vshll.u32 %v17521_v32, 16 }
 0x34d   : > { %v5181_v38 = vadd.f32 %v5180_v11, %v17306_v59  ;;  %19309 = vst [vmem:[#allocation50_spill] sm:$0xff] %v17528_v62  ;;  %v19099_v59 = vrot.slane %v17521_v32, 1  ;;  %v17534_v31 = vor.u32 %v8739_v0, %v17525_v43  ;;  %v6199_v32 = vld [vmem:[#allocation2 + $0x2c] sm:$0x1] }
 0x34e   : > { %v17536_v14 = vrot.slane %v8743_v16, 1 }
 0x34f   : > { %v5214_v61 = vadd.f32 %v5213_v56, %v5181_v38  ;;  %6734 = vmatmul.bf16.gmra.mxu3 %v17371_v45  ;;  %v5390_v11 = vpop.f32.mrf.mxu2  ;;  %19310 = vst [vmem:[#allocation51_spill] sm:$0xff] %v17534_v31  ;;  %v17542_v28 = vsel %vm685_vm1, %v17528_v62, %v19099_v59  ;;  %v6310_v38 = vrot.slane %v6236_v39, 1 }
 0x350   : > { %19311 = vst [vmem:[#allocation52_spill] sm:$0xff] %v17536_v14  ;;  %v17547_v35 = vsel %vm19313_vm4, %v17534_v31, %v17536_v14  ;;  %vm19327_vm4 = vmmov %vm19302_vm0 }
 0x351   : > { %v5391_v4 = vadd.f32 %v5390_v11, %v5214_v61  ;;  %19312 = vst [vmem:[#allocation53_spill] sm:$0xff] %v17542_v28  ;;  %v19315_v11 = vrot.slane %v17480_v5, 1  ;;  %v6311_v13 = vsel %vm685_vm1, %v19316_v23, %v6310_v38 }
 0x352   : > { %v5421_v56 = vpop.f32.mrf.mxu3  ;;  %19314 = vst [vmem:[#allocation54_spill] sm:$0xff] %v17547_v35 }
 0x353   : > { %v17549_v61 = vadd.f32 %v5421_v56, %v5389_v7  ;;  %v6313_v59 = vsel %vm685_vm1, %v19315_v11, %v6312_v9  ;;  %v6209_v56 = vunpack.c.l.b16 %v6199_v32  ;;  %v6237_v11 = vshrl.u32 %v17496_v26, 16 }
 0x354   : > { %v5183_v15 = vpop.f32.mrf.mxu0  ;;  %v5216_v16 = vpop.f32.mrf.mxu1  ;;  %6562 = vmatmul.bf16.gmra.mxu2 %v6313_v59  ;;  %v19317_v59 = vunpack.c.l.b16 %v17482_v55  ;;  %v14244_v55 = vld [vmem:[#allocation8 + $0x1d0] sm:$0xff] }
 0x355   : > { %v5184_v0 = vadd.f32 %v5183_v15, %v17333_v46  ;;  %7184 = vmatpush.bf16.msra.mxu3 %v14244_v55  ;;  %v14192_v55 = vld [vmem:[#allocation8 + $0x48] sm:$0xff] }
 0x357   : > { %v5217_v39 = vadd.f32 %v5216_v16, %v5184_v0  ;;  %6496 = vmatmul.bf16.gmra.mxu0 %v17480_v5  ;;  %v5393_v14 = vpop.f32.mrf.mxu2  ;;  %v6212_v0 = vpack.c.b16 %v6209_v56, %v19317_v59  ;;  %v6239_v5 = vor.u32 %v6237_v11, %v6235_v54  ;;  %v6318_v16 = vrot.slane %v6247_v3, 1  ;;  %v14235_v56 = vld [vmem:[#allocation8 + $0x188] sm:$0xff] }
 0x358   : > { %6529 = vmatmul.bf16.gmra.mxu1 %v6311_v13  ;;  %v14831_v11 = vld [vmem:[#allocation2 + $0x18] sm:$0xff]  ;;  %7152 = vmatpush.bf16.msra.mxu2 %v14235_v56 }
 0x359   : > { %v5394_v7 = vadd.f32 %v5393_v14, %v5217_v39  ;;  %v6314_v23 = vrot.slane %v6212_v0, 1  ;;  %v6316_v13 = vrot.slane %v6239_v5, 1 }
 0x35a   : > { %v5423_v28 = vpop.f32.mrf.mxu3 }
 0x35b   : > { %v17559_v15 = vadd.f32 %v5423_v28, %v5391_v4  ;;  %v6319_v4 = vsel %vm685_vm1, %v6312_v9, %v6318_v16  ;;  %v6315_v26 = vsel %vm685_vm1, %v17472_v6, %v6314_v23  ;;  %v6317_v54 = vsel %vm685_vm1, %v6310_v38, %v6316_v13  ;;  %v14193_v28 = vld [vmem:[#allocation8 + $0x50] sm:$0xff]  ;;  %v14243_v9 = vld [vmem:[#allocation8 + $0x1c8] sm:$0xff] }
 0x35c   : > { %v5185_v46 = vpop.f32.mrf.mxu0  ;;  %v5218_v35 = vpop.f32.mrf.mxu1  ;;  %6759 = vmatpush.bf16.msra.mxu0 %v14193_v28  ;;  %7185 = vmatpush.bf16.msra.mxu3 %v14243_v9  ;;  %v14242_v28 = vld [vmem:[#allocation8 + $0x1c0] sm:$0xff] }
 0x35d   : > { %v14200_v46 = vld [vmem:[#allocation8 + $0x88] sm:$0xff] }
 0x35f   : > { %6739 = vmatmul.bf16.gmra.mxu3 %v17378_v2  ;;  %v5395_v22 = vpop.f32.mrf.mxu2  ;;  %v14201_v2 = vld [vmem:[#allocation8 + $0x90] sm:$0xff] }
 0x360   : > { %6792 = vmatpush.bf16.msra.mxu1 %v14201_v2  ;;  %v14234_v2 = vld [vmem:[#allocation8 + $0x180] sm:$0xff]  ;;  %6760 = vmatpush.bf16.msra.mxu0 %v14192_v55 }
 0x361   : > { %7153 = vmatpush.bf16.msra.mxu2 %v14234_v2  ;;  %7186 = vmatpush.bf16.msra.mxu3 %v14242_v28 }
 0x362   : > { %v5426_v31 = vpop.f32.mrf.mxu3 }
 0x363   : > { %v17565_v32 = vadd.f32 %v5426_v31, %v5394_v7 }
 0x364   : > { %v5439_v14 = vpop.f32.mrf.mxu0  ;;  %v5797_v39 = vpop.f32.mrf.mxu1  ;;  %6567 = vmatmul.bf16.gmra.mxu2 %v6319_v4  ;;  %6793 = vmatpush.bf16.msra.mxu1 %v14200_v46  ;;  %v14704_v46 = vld [vmem:[#allocation2] sm:$0xe] }
 0x365   : > { %v5440_v5 = vadd.f32 %v5439_v14, %v17388_v19  ;;  %v6090_v19 = vshll.u32 %v17484_v48, 16 }
 0x367   : > { %6501 = vmatmul.bf16.gmra.mxu0 %v6315_v26  ;;  %v5830_v3 = vpop.f32.mrf.mxu2  ;;  %v6820_v26 = vld [vmem:[#allocation2 + $0x10] sm:$0xc]  ;;  %v6092_v55 = vrot.slane %v6090_v19, 1  ;;  %v14307_v19 = vld [vmem:[#allocation8 + $0x178] sm:$0xff] }
 0x368   : > { %6534 = vmatmul.bf16.gmra.mxu1 %v6317_v54  ;;  %v5831_v6 = vadd.f32 %v5830_v3, %v5797_v39  ;;  %v17577_v39 = vld [vmem:[%s18995_s3] ss:$0 sm:$0xff]  ;;  %7857 = vmatpush.bf16.msrb.mxu3 %v14307_v19 }
 0x36a   : > { %v5428_v31 = vpop.f32.mrf.mxu3 }
 0x36c   : > { %v5441_v35 = vpop.f32.mrf.mxu0  ;;  %v5799_v7 = vpop.f32.mrf.mxu1 }
 0x36f   : > { %6744 = vmatmul.bf16.gmra.mxu3 %v14831_v11  ;;  %v5832_v59 = vpop.f32.mrf.mxu2  ;;  %v19318_v11 = vld [vmem:[#allocation15_spill] sm:$0xff] }
 0x370   : > { %v5833_v31 = vadd.f32 %v5832_v59, %v5799_v7  ;;  %v5442_v59 = vadd.f32 %v5441_v35, %v17423_v49  ;;  %v6868_v49 = vshll.u32 %v17596_v10, 16  ;;  %v14299_v35 = vld [vmem:[#allocation8 + $0x138] sm:$0xff] }
 0x371   : > { %7824 = vmatpush.bf16.msrb.mxu2 %v14299_v35 }
 0x372   : > { %v5863_v38 = vpop.f32.mrf.mxu3 }
 0x373   : > { %v5864_v22 = vadd.f32 %v5863_v38, %v5831_v6  ;;  %v19319_v6 = vunpack.c.l.b16 %v19318_v11  ;;  %v14191_v11 = vld [vmem:[#allocation8 + $0x40] sm:$0xff] }
 0x374   : > { %v17571_v0 = vpop.f32.mrf.mxu0  ;;  %v5802_v4 = vpop.f32.mrf.mxu1  ;;  %6572 = vmatmul.bf16.gmra.mxu2 %v6318_v16  ;;  %v6842_v16 = vunpack.c.l.b16 %v6820_v26  ;;  %v6095_v26 = vshll.u32 %v17371_v45, 16  ;;  %6761 = vmatpush.bf16.msra.mxu0 %v14191_v11  ;;  %v6872_v11 = vshrl.u32 %v17596_v10, 16 }
 0x375   : > { %v5887_v54 = vadd.f32 %v5864_v22, %v5440_v5 }
 0x376   : > { %v17585_v38 = vpack.c.b16 %v19319_v6, %v6842_v16  ;;  %v14199_v16 = vld [vmem:[#allocation8 + $0x80] sm:$0xff] }
 0x377   : > { %6506 = vmatmul.bf16.gmra.mxu0 %v6314_v23  ;;  %v5896_v3 = vadd.f32 %v17577_v39, %v5887_v54  ;;  %v5835_v56 = vpop.f32.mrf.mxu2  ;;  %v6088_v54 = vshrl.u32 %v17484_v48, 16  ;;  %6794 = vmatpush.bf16.msra.mxu1 %v14199_v16  ;;  %v19320_v16 = vrot.slane %v17596_v10, 2 }
 0x378   : > { %6539 = vmatmul.bf16.gmra.mxu1 %v6316_v13  ;;  %v14703_v13 = vld [vmem:[#allocation2] sm:$0xf0]  ;;  %v6863_v48 = vshll.u32 %v17585_v38, 16 }
 0x379   : > { %v5905_v23 = vmax.f32 %v5896_v3, 0.0  ;;  %v6078_v3 = vpack.c.b16 %v19300_v63, %v19300_v63  ;;  %v14705_v6 = vor.u32 %v14704_v46, %v14703_v13  ;;  %v17604_v13 = vld [vmem:[#allocation2 + $0x20] sm:$0xff]  ;;  %v6093_v62 = vor.u32 %v6092_v55, %v6088_v54 }
 0x37a   : > { %v5865_v14 = vpop.f32.mrf.mxu3  ;;  %v6876_v46 = vshll.u32 %v17604_v13, 16  ;;  %v6865_v55 = vrot.slane %v6863_v48, 1  ;;  %v6861_v48 = vshrl.u32 %v17585_v38, 16 }
 0x37b   : > { %v5914_v7 = vsel %vm15780_vm14, %v5905_v23, 0.0  ;;  %v5866_v5 = vadd.f32 %v5865_v14, %v5833_v31  ;;  %v6960_v14 = vrot.slane %v17585_v38, 2  ;;  %v6134_v43 = vrot.slane %v14705_v6, 1 }
 0x37c   : > { %v17581_v9 = vpop.f32.mrf.mxu0  ;;  %v17590_v22 = vpop.f32.mrf.mxu1  ;;  %v5923_v2 = vpack.c.bf16 %v5914_v7, %v5914_v7  ;;  %vm19321_vm14 = vcmask 1045504   ;;  %v5445_v6 = vadd.f32 %v17571_v0, %v17459_v53  ;;  %v14291_v0 = vld [vmem:[#allocation8 + $0xf8] sm:$0xff] }
 0x37d   : > { %v5888_v28 = vadd.f32 %v5866_v5, %v5442_v59  ;;  %v5836_v59 = vadd.f32 %v5835_v56, %v5802_v4  ;;  %v17602_v5 = vrot.slane %v6095_v26, 1  ;;  %v6870_v4 = vrot.slane %v6868_v49, 1  ;;  %7791 = vmatpush.bf16.msrb.mxu1 %v14291_v0  ;;  %v14290_v0 = vld [vmem:[#allocation8 + $0xf0] sm:$0xff]  ;;  %vm19326_vm2 = vmmov %vm19321_vm14 }
 0x37e   : > { %v5933_v31 = vshrl.u32 %v5923_v2, 16  ;;  %v5936_v23 = vshll.u32 %v5923_v2, 16  ;;  %v6962_v54 = vsel %vm19321_vm14, %v6960_v14, %v19320_v16 }
 0x37f   : > { %v5897_v7 = vadd.f32 %v17577_v39, %v5888_v28  ;;  %6749 = vmatmul.bf16.gmra.mxu3 %v6078_v3  ;;  %v5837_v63 = vpop.f32.mrf.mxu2  ;;  %v6135_v28 = vrot.slane %v17371_v45, 1  ;;  %v6098_v14 = vsel %vm19302_vm0, %v6093_v62, %v17602_v5  ;;  %v6874_v53 = vor.u32 %v6872_v11, %v6870_v4 }
 0x380   : > { %v5935_v20 = vrot.slane %v5933_v31, 6  ;;  %v5938_v2 = vrot.slane %v5936_v23, 7  ;;  %v6031_v31 = vld [vmem:[#allocation2 + $0x74] sm:$0xe]  ;;  %v5838_v16 = vadd.f32 %v5837_v63, %v17590_v22  ;;  %v5447_v63 = vadd.f32 %v17581_v9, %v17474_v27 }
 0x381   : > { %v5906_v37 = vmax.f32 %v5897_v7, 0.0  ;;  %v6969_v27 = vrot.slane %v17604_v13, 2  ;;  %7792 = vmatpush.bf16.msrb.mxu1 %v14290_v0  ;;  %v6138_v29 = vsel %vm685_vm1, %v6135_v28, %v17418_v34 }
 0x382   : > { %v5939_v56 = vor.u32 %v5938_v2, %v5935_v20  ;;  %v5868_v26 = vpop.f32.mrf.mxu3  ;;  %v17619_v20 = vrot.slane %v6876_v46, 1  ;;  %v14298_v46 = vld [vmem:[#allocation8 + $0x130] sm:$0xff] }
 0x383   : > { %v5915_v35 = vsel %vm15837_vm11, %v5906_v37, 0.0  ;;  %v5869_v49 = vadd.f32 %v5868_v26, %v5836_v59  ;;  %v6136_v37 = vsel %vm685_vm1, %v6134_v43, %v6135_v28  ;;  %v14257_v59 = vld [vmem:[#allocation8 + $0x238] sm:$0xff]  ;;  %v6866_v26 = vor.u32 %v6865_v55, %v6861_v48  ;;  %7825 = vmatpush.bf16.msrb.mxu2 %v14298_v46  ;;  %vm19323_vm11 = vmmov %vm19302_vm0 }
 0x384   : > { %v17609_v3 = vpop.f32.mrf.mxu0  ;;  %v5807_v23 = vpop.f32.mrf.mxu1  ;;  %v6032_v19 = vsel %vm15637_vm10, %v5939_v56, %v6031_v31  ;;  %v5924_v7 = vpack.c.bf16 %v5915_v35, %v5915_v35  ;;  %7154 = vmatmul.bf16.vlgmr.msra.gmra.mxu2 %v6962_v54  ;;  %vm19322_vm10 = vmmov %vm19302_vm0  ;;  %7212 = vmatpush.bf16.msrb.mxu0 %v14257_v59  ;;  %v14256_v59 = vld [vmem:[#allocation8 + $0x230] sm:$0xff] }
 0x385   : > { %6033 = vst [vmem:[#allocation2 + $0x74] sm:$0xe] %v6032_v19  ;;  %v5889_v50 = vadd.f32 %v5869_v49, %v5445_v6  ;;  %v17633_v38 = vsel %vm19322_vm10, %v6874_v53, %v17619_v20  ;;  %v6871_v35 = vsel %vm19323_vm11, %v6866_v26, %v6870_v4  ;;  %v5940_v6 = vrot.slane %v5939_v56, 4  ;;  %v14306_v53 = vld [vmem:[#allocation8 + $0x170] sm:$0xff] }
 0x386   : > { %v5942_v57 = vshrl.u32 %v5924_v7, 16  ;;  %v5945_v2 = vshll.u32 %v5924_v7, 16  ;;  %v6964_v19 = vrot.slane %v17633_v38, 2  ;;  %v6963_v4 = vrot.slane %v6871_v35, 2  ;;  %7858 = vmatpush.bf16.msrb.mxu3 %v14306_v53 }
 0x387   : > { %6762 = vmatmul.bf16.vlgmr.msra.gmra.mxu0 %v6098_v14  ;;  %v5898_v62 = vadd.f32 %v17577_v39, %v5889_v50  ;;  %v5840_v54 = vpop.f32.mrf.mxu2 }
 0x388   : > { %6795 = vmatmul.bf16.vlgmr.msra.gmra.mxu1 %v6136_v37  ;;  %v5944_v43 = vrot.slane %v5942_v57, 6  ;;  %v5947_v11 = vrot.slane %v5945_v2, 7  ;;  %v5841_v2 = vadd.f32 %v5840_v54, %v5807_v23  ;;  %7213 = vmatpush.bf16.msrb.mxu0 %v14256_v59  ;;  %v19325_v23 = vrot.slane %v17596_v10, 2 }
 0x389   : > { %v5907_v31 = vmax.f32 %v5898_v62, 0.0  ;;  %v6099_v62 = vshrl.u32 %v17371_v45, 16 }
 0x38a   : > { %v5948_v49 = vor.u32 %v5947_v11, %v5944_v43  ;;  %v5870_v55 = vpop.f32.mrf.mxu3  ;;  %v6970_v54 = vsel %vm19326_vm2, %v19325_v23, %v6969_v27 }
 0x38b   : > { %v5916_v22 = vsel %vm15884_vm15, %v5907_v31, 0.0  ;;  %v5871_v14 = vadd.f32 %v5870_v55, %v5838_v16  ;;  %vm19324_vm15 = vmmov %vm19321_vm14  ;;  %v17651_v16 = vld [vmem:[#allocation2 + $0x28] sm:$0xff] }
 0x38c   : > { %v17637_v7 = vpop.f32.mrf.mxu0  ;;  %v5809_v48 = vpop.f32.mrf.mxu1  ;;  %v5949_v50 = vsel %vm15954_vm7, %v5940_v6, %v5948_v49  ;;  %v5925_v37 = vpack.c.bf16 %v5916_v22, %v5916_v22  ;;  %v6965_v42 = vsel %vm19324_vm15, %v6963_v4, %v6964_v19  ;;  %v6884_v43 = vshll.u32 %v17651_v16, 16  ;;  %vm19330_vm14 = vmmov %vm19326_vm2 }
 0x38d   : > { %6034 = vst [vmem:[#allocation2 + $0x78] sm:$0xf] %v5949_v50  ;;  %v5890_v56 = vadd.f32 %v5871_v14, %v5447_v63  ;;  %v6101_v6 = vor.u32 %v6099_v62, %v17602_v5  ;;  %v5950_v55 = vrot.slane %v5948_v49, 4  ;;  %v6880_v50 = vshrl.u32 %v17604_v13, 16  ;;  %v6829_v13 = vld [vmem:[#allocation2 + $0x34] sm:$0x3] }
 0x38e   : > { %v5952_v46 = vshrl.u32 %v5925_v37, 16  ;;  %v5955_v57 = vshll.u32 %v5925_v37, 16  ;;  %v5450_v4 = vadd.f32 %v17609_v3, %v17498_v30  ;;  %v14297_v3 = vld [vmem:[#allocation8 + $0x128] sm:$0xff] }
 0x38f   : > { %v5899_v9 = vadd.f32 %v17577_v39, %v5890_v56  ;;  %7187 = vmatmul.bf16.vlgmr.msra.gmra.mxu3 %v6965_v42  ;;  %v5842_v26 = vpop.f32.mrf.mxu2  ;;  %v17667_v56 = vrot.slane %v6884_v43, 1  ;;  %v6106_v10 = vsel %vm19327_vm4, %v6101_v6, %v17405_v52  ;;  %v6882_v30 = vor.u32 %v6880_v50, %v17619_v20  ;;  %7826 = vmatpush.bf16.msrb.mxu2 %v14297_v3  ;;  %v14255_v50 = vld [vmem:[#allocation8 + $0x228] sm:$0xff] }
 0x390   : > { %v5954_v11 = vrot.slane %v5952_v46, 6  ;;  %v5957_v31 = vrot.slane %v5955_v57, 7  ;;  %v14305_v46 = vld [vmem:[#allocation8 + $0x168] sm:$0xff]  ;;  %v5843_v52 = vadd.f32 %v5842_v26, %v5809_v48  ;;  %v5452_v26 = vadd.f32 %v17637_v7, %v17517_v47  ;;  %7214 = vmatpush.bf16.msrb.mxu0 %v14255_v50  ;;  %v14303_v50 = vld [vmem:[#allocation8 + $0x158] sm:$0xff] }
 0x391   : > { %v5908_v35 = vmax.f32 %v5899_v9, 0.0  ;;  %v14289_v57 = vld [vmem:[#allocation8 + $0xe8] sm:$0xff]  ;;  %7859 = vmatpush.bf16.msrb.mxu3 %v14305_v46  ;;  %v6975_v47 = vrot.slane %v17651_v16, 2 }
 0x392   : > { %v5958_v22 = vor.u32 %v5957_v31, %v5954_v11  ;;  %v5873_v63 = vpop.f32.mrf.mxu3  ;;  %7793 = vmatpush.bf16.msrb.mxu1 %v14289_v57 }
 0x393   : > { %v5917_v37 = vsel %vm15946_vm5, %v5908_v35, 0.0  ;;  %v5874_v5 = vadd.f32 %v5873_v63, %v5841_v2  ;;  %vm19328_vm5 = vmmov %vm19302_vm0 }
 0x394   : > { %v17655_v14 = vpop.f32.mrf.mxu0  ;;  %v5812_v49 = vpop.f32.mrf.mxu1  ;;  %v5959_v53 = vsel %vm15954_vm7, %v5950_v55, %v5958_v22  ;;  %v5926_v0 = vpack.c.bf16 %v5917_v37, %v5917_v37  ;;  %7159 = vmatmul.bf16.gmra.mxu2 %v6970_v54  ;;  %v17681_v62 = vsel %vm19328_vm5, %v6882_v30, %v17667_v56  ;;  %v5960_v20 = vrot.slane %v5958_v22, 4  ;;  %v14296_v37 = vld [vmem:[#allocation8 + $0x120] sm:$0xff] }
 0x395   : > { %6035 = vst [vmem:[#allocation2 + $0x7c] sm:$0xf] %v5959_v53  ;;  %v5891_v59 = vadd.f32 %v5874_v5, %v5450_v4  ;;  %v6971_v35 = vrot.slane %v17681_v62, 2  ;;  %v14304_v4 = vld [vmem:[#allocation8 + $0x160] sm:$0xff]  ;;  %7827 = vmatpush.bf16.msrb.mxu2 %v14296_v37  ;;  %v14287_v37 = vld [vmem:[#allocation8 + $0xd8] sm:$0xff]  ;;  %vm7294_vm5 = vcmask 1044480  }
 0x396   : > { %v5962_v42 = vshrl.u32 %v5926_v0, 16  ;;  %v5965_v9 = vshll.u32 %v5926_v0, 16  ;;  %7860 = vmatpush.bf16.msrb.mxu3 %v14304_v4 }
 0x397   : > { %6767 = vmatmul.bf16.gmra.mxu0 %v6106_v10  ;;  %v5900_v2 = vadd.f32 %v17577_v39, %v5891_v59  ;;  %v5845_v43 = vpop.f32.mrf.mxu2  ;;  %v6892_v59 = vshll.u32 %v16805_v36, 16 }
 0x398   : > { %6800 = vmatmul.bf16.gmra.mxu1 %v6138_v29  ;;  %v5964_v45 = vrot.slane %v5962_v42, 6  ;;  %v5967_v34 = vrot.slane %v5965_v9, 7  ;;  %v5846_v0 = vadd.f32 %v5845_v43, %v5812_v49  ;;  %v6888_v49 = vshrl.u32 %v17651_v16, 16 }
 0x399   : > { %v5909_v28 = vmax.f32 %v5900_v2, 0.0  ;;  %v5455_v2 = vadd.f32 %v17655_v14, %v17549_v61 }
 0x39a   : > { %v5968_v11 = vor.u32 %v5967_v34, %v5964_v45  ;;  %v5875_v31 = vpop.f32.mrf.mxu3  ;;  %v17712_v45 = vrot.slane %v6892_v59, 1  ;;  %v6890_v17 = vor.u32 %v6888_v49, %v17667_v56  ;;  %7861 = vmatpush.bf16.msrb.mxu3 %v14303_v50  ;;  %v14286_v49 = vld [vmem:[#allocation8 + $0xd0] sm:$0xff] }
 0x39b   : > { %v5918_v48 = vsel %vm15989_vm12, %v5909_v28, 0.0  ;;  %v5876_v55 = vadd.f32 %v5875_v31, %v5843_v52  ;;  %vm19329_vm12 = vmmov %vm19326_vm2 }
 0x39c   : > { %v17684_v6 = vpop.f32.mrf.mxu0  ;;  %v5814_v63 = vpop.f32.mrf.mxu1  ;;  %v5969_v23 = vsel %vm15954_vm7, %v5960_v20, %v5968_v11  ;;  %v5927_v54 = vpack.c.bf16 %v5918_v48, %v5918_v48  ;;  %v6972_v40 = vsel %vm19329_vm12, %v6964_v19, %v6971_v35  ;;  %v5970_v46 = vrot.slane %v5968_v11, 4 }
 0x39d   : > { %6036 = vst [vmem:[#allocation2 + $0x80] sm:$0xf] %v5969_v23  ;;  %v5892_v22 = vadd.f32 %v5876_v55, %v5452_v26  ;;  %v6976_v19 = vsel %vm19330_vm14, %v6969_v27, %v6975_v47  ;;  %v14288_v26 = vld [vmem:[#allocation8 + $0xe0] sm:$0xff]  ;;  %v14295_v23 = vld [vmem:[#allocation8 + $0x118] sm:$0xff]  ;;  %v5457_v59 = vadd.f32 %v17684_v6, %v17559_v15  ;;  %v14293_v15 = vld [vmem:[#allocation8 + $0x108] sm:$0xff] }
 0x39e   : > { %v5972_v5 = vshrl.u32 %v5927_v54, 16  ;;  %v5975_v53 = vshll.u32 %v5927_v54, 16  ;;  %v14254_v55 = vld [vmem:[#allocation8 + $0x220] sm:$0xff]  ;;  %v6851_v54 = vunpack.c.l.b16 %v6829_v13  ;;  %7794 = vmatpush.bf16.msrb.mxu1 %v14288_v26  ;;  %7828 = vmatpush.bf16.msrb.mxu2 %v14295_v23  ;;  %v14301_v6 = vld [vmem:[#allocation8 + $0x148] sm:$0xff] }
 0x39f   : > { %v5901_v7 = vadd.f32 %v17577_v39, %v5892_v22  ;;  %7192 = vmatmul.bf16.gmra.mxu3 %v6972_v40  ;;  %v5847_v10 = vpop.f32.mrf.mxu2  ;;  %7215 = vmatpush.bf16.msrb.mxu0 %v14254_v55 }
 0x3a0   : > { %v5974_v29 = vrot.slane %v5972_v5, 6  ;;  %v5977_v30 = vrot.slane %v5975_v53, 7  ;;  %v5848_v14 = vadd.f32 %v5847_v10, %v5814_v63 }
 0x3a1   : > { %v5910_v3 = vmax.f32 %v5901_v7, 0.0  ;;  %v14294_v7 = vld [vmem:[#allocation8 + $0x110] sm:$0xff] }
 0x3a2   : > { %v5978_v57 = vor.u32 %v5977_v30, %v5974_v29  ;;  %v5878_v38 = vpop.f32.mrf.mxu3  ;;  %7795 = vmatpush.bf16.msrb.mxu1 %v14287_v37  ;;  %7829 = vmatpush.bf16.msrb.mxu2 %v14294_v7  ;;  %v6896_v37 = vshrl.u32 %v16805_v36, 16 }
 0x3a3   : > { %v5919_v9 = vsel %vm16054_vm3, %v5910_v3, 0.0  ;;  %v5879_v52 = vadd.f32 %v5878_v38, %v5846_v0  ;;  %vm19331_vm3 = vmmov %vm19302_vm0  ;;  %v14302_v0 = vld [vmem:[#allocation8 + $0x150] sm:$0xff]  ;;  %v19332_v3 = vunpack.c.l.b16 %v16793_v25 }
 0x3a4   : > { %v17700_v42 = vpop.f32.mrf.mxu0  ;;  %v5817_v43 = vpop.f32.mrf.mxu1  ;;  %v5979_v34 = vsel %vm15954_vm7, %v5970_v46, %v5978_v57  ;;  %v5928_v28 = vpack.c.bf16 %v5919_v9, %v5919_v9  ;;  %7164 = vmatmul.bf16.gmra.mxu2 %v6976_v19  ;;  %v17722_v31 = vsel %vm19331_vm3, %v6890_v17, %v17712_v45  ;;  %v5980_v4 = vrot.slane %v5978_v57, 4  ;;  %7862 = vmatpush.bf16.msrb.mxu3 %v14302_v0  ;;  %vm19334_vm0 = vmmov %vm19326_vm2 }
 0x3a5   : > { %6037 = vst [vmem:[#allocation2 + $0x84] sm:$0xf] %v5979_v34  ;;  %v5893_v27 = vadd.f32 %v5879_v52, %v5455_v2  ;;  %v6977_v53 = vrot.slane %v17722_v31, 2  ;;  %v17731_v46 = vpack.c.b16 %v6851_v54, %v19332_v3  ;;  %v14251_v54 = vld [vmem:[#allocation8 + $0x208] sm:$0xff]  ;;  %vm19351_vm10 = vmmov %vm19331_vm3 }
 0x3a6   : > { %v5982_v20 = vshrl.u32 %v5928_v28, 16  ;;  %v5985_v11 = vshll.u32 %v5928_v28, 16  ;;  %7796 = vmatpush.bf16.msrb.mxu1 %v14286_v49  ;;  %7830 = vmatpush.bf16.msrb.mxu2 %v14293_v15  ;;  %v6042_v31 = vld [vmem:[#allocation2 + $0x98] sm:$0x3]  ;;  %vm19358_vm11 = vmmov %vm19331_vm3 }
 0x3a7   : > { %6772 = vmatmul.bf16.gmra.mxu0 %v17446_v24  ;;  %v5902_v61 = vadd.f32 %v17577_v39, %v5893_v27  ;;  %v5850_v48 = vpop.f32.mrf.mxu2  ;;  %v6981_v13 = vrot.slane %v17731_v46, 2  ;;  %vm19360_vm15 = vmmov %vm19334_vm0 }
 0x3a8   : > { %6805 = vmatmul.bf16.gmra.mxu1 %v17431_v21  ;;  %v5984_v22 = vrot.slane %v5982_v20, 6  ;;  %v5987_v24 = vrot.slane %v5985_v11, 7  ;;  %v14253_v21 = vld [vmem:[#allocation8 + $0x218] sm:$0xff]  ;;  %v5851_v34 = vadd.f32 %v5850_v48, %v5817_v43  ;;  %v14285_v11 = vld [vmem:[#allocation8 + $0xc8] sm:$0xff]  ;;  %7863 = vmatpush.bf16.msrb.mxu3 %v14301_v6  ;;  %v5460_v43 = vadd.f32 %v17700_v42, %v17565_v32  ;;  %vm19364_vm4 = vmmov %vm19334_vm0 }
 0x3a9   : > { %v5911_v56 = vmax.f32 %v5902_v61, 0.0  ;;  %7216 = vmatpush.bf16.msrb.mxu0 %v14253_v21  ;;  %v6982_v23 = vsel %vm19334_vm0, %v6975_v47, %v6981_v13  ;;  %v19335_v42 = vld [vmem:[#allocation28_spill] sm:$0xff]  ;;  %v17757_v47 = vor.u32 %v6896_v37, %v17712_v45  ;;  %vm19368_vm12 = vmmov %vm19334_vm0 }
 0x3aa   : > { %v5988_v5 = vor.u32 %v5987_v24, %v5984_v22  ;;  %v5880_v63 = vpop.f32.mrf.mxu3  ;;  %v14292_v22 = vld [vmem:[#allocation8 + $0x100] sm:$0xff]  ;;  %7797 = vmatpush.bf16.msrb.mxu1 %v14285_v11  ;;  %vm19376_vm14 = vmmov %vm19331_vm3 }
 0x3ab   : > { %v5920_v10 = vsel %vm16107_vm13, %v5911_v56, 0.0  ;;  %v5881_v29 = vadd.f32 %v5880_v63, %v5848_v14  ;;  %vm19333_vm13 = vmmov %vm19326_vm2  ;;  %v14300_v24 = vld [vmem:[#allocation8 + $0x140] sm:$0xff]  ;;  %7831 = vmatpush.bf16.msrb.mxu2 %v14292_v22 }
 0x3ac   : > { %v5461_v40 = vpop.f32.mrf.mxu0  ;;  %v5819_v30 = vpop.f32.mrf.mxu1  ;;  %v5989_v57 = vsel %vm15954_vm7, %v5980_v4, %v5988_v5  ;;  %v5929_v38 = vpack.c.bf16 %v5920_v10, %v5920_v10  ;;  %v6978_v25 = vsel %vm19333_vm13, %v6971_v35, %v6977_v53  ;;  %v5990_v62 = vrot.slane %v5988_v5, 4  ;;  %v19336_v4 = vld [vmem:[#allocation29_spill] sm:$0xff]  ;;  %7864 = vmatpush.bf16.msrb.mxu3 %v14300_v24  ;;  %vm19363_vm2 = vmmov %vm19334_vm0 }
 0x3ad   : > { %6038 = vst [vmem:[#allocation2 + $0x88] sm:$0xf] %v5989_v57  ;;  %v5894_v19 = vadd.f32 %v5881_v29, %v5457_v59  ;;  %7217 = vmatpush.bf16.msrb.mxu0 %v14252_v12  ;;  %v6983_v30 = vrot.slane %v17757_v47, 2  ;;  %v7510_v57 = vld [vmem:[#allocation2 + $0x2c] sm:$0xe]  ;;  %vm19384_vm13 = vmmov %vm19334_vm0 }
 0x3ae   : > { %v5992_v9 = vshrl.u32 %v5929_v38, 16  ;;  %v5995_v2 = vshll.u32 %v5929_v38, 16 }
 0x3af   : > { %v5903_v52 = vadd.f32 %v17577_v39, %v5894_v19  ;;  %7197 = vmatmul.bf16.gmra.mxu3 %v6978_v25  ;;  %v5852_v28 = vpop.f32.mrf.mxu2  ;;  %v14284_v19 = vld [vmem:[#allocation8 + $0xc0] sm:$0xff] }
 0x3b0   : > { %v5994_v27 = vrot.slane %v5992_v9, 6  ;;  %v5997_v17 = vrot.slane %v5995_v2, 7  ;;  %7798 = vmatpush.bf16.msrb.mxu1 %v14284_v19  ;;  %v7520_v2 = vunpack.c.l.b16 %v7510_v57  ;;  %v14283_v28 = vld [vmem:[#allocation8 + $0xb8] sm:$0xff] }
 0x3b1   : > { %v5912_v20 = vmax.f32 %v5903_v52, 0.0  ;;  %7218 = vmatpush.bf16.msrb.mxu0 %v14251_v54  ;;  %v19338_v52 = vld [vmem:[#allocation16_spill] sm:$0xff]  ;;  %8100 = vmatpush.bf16.msra.mxu2 %v14283_v28  ;;  %v19340_v54 = vld [vmem:[#allocation27_spill] sm:$0xff] }
 0x3b2   : > { %v5998_v61 = vor.u32 %v5997_v17, %v5994_v27  ;;  %v5883_v35 = vpop.f32.mrf.mxu3  ;;  %v14318_v27 = vld [vmem:[#allocation8 + $0x1b8] sm:$0xff]  ;;  %v14274_v28 = vld [vmem:[#allocation8 + $0x70] sm:$0xff] }
 0x3b3   : > { %v5921_v26 = vsel %vm16224_vm6, %v5912_v20, 0.0  ;;  %v5884_v48 = vadd.f32 %v5883_v35, %v5851_v34  ;;  %vm19337_vm6 = vmmov %vm19334_vm0  ;;  %v17771_v34 = vpack.c.b16 %v19338_v52, %v7520_v2  ;;  %8458 = vmatpush.bf16.msra.mxu3 %v14318_v27  ;;  %v9982_v35 = vld [vmem:[#allocation2 + $0x78] sm:$0xf]  ;;  %v14266_v27 = vld [vmem:[#allocation8 + $0x30] sm:$0xff] }
 0x3b4   : > { %v6487_v14 = vpop.f32.mrf.mxu0  ;;  %v6520_v55 = vpop.f32.mrf.mxu1  ;;  %v5999_v50 = vsel %vm15954_vm7, %v5990_v62, %v5998_v61  ;;  %v5930_v56 = vpack.c.bf16 %v5921_v26, %v5921_v26  ;;  %7169 = vmatmul.bf16.gmra.mxu2 %v6982_v23  ;;  %v6000_v10 = vrot.slane %v5998_v61, 4  ;;  %v6984_v58 = vsel %vm19337_vm6, %v6977_v53, %v6983_v30  ;;  %v19339_v62 = vld [vmem:[#allocation23_spill] sm:$0xff]  ;;  %vm19386_vm0 = vmmov %vm19331_vm3 }
 0x3b5   : > { %v6521_v44 = vadd.f32 %v6520_v55, %v6487_v14  ;;  %6039 = vst [vmem:[#allocation2 + $0x8c] sm:$0xf] %v5999_v50  ;;  %v5895_v32 = vadd.f32 %v5884_v48, %v5460_v43  ;;  %v6123_v61 = vshrl.u32 %v19339_v62, 16  ;;  %v10135_v48 = vld [vmem:[#allocation2 + $0x74] sm:$0xc]  ;;  %v7533_v24 = vshll.u32 %v17771_v34, 16  ;;  %vm19388_vm6 = vmmov %vm19363_vm2 }
 0x3b6   : > { %v6002_v21 = vshrl.u32 %v5930_v56, 16  ;;  %v6005_v16 = vshll.u32 %v5930_v56, 16  ;;  %v14275_v50 = vld [vmem:[#allocation8 + $0x78] sm:$0xff]  ;;  %v7531_v18 = vshrl.u32 %v17771_v34, 16  ;;  %v7611_v47 = vrot.slane %v17771_v34, 1 }
 0x3b7   : > { %6777 = vmatmul.bf16.gmra.mxu0 %v19335_v42  ;;  %v5904_v5 = vadd.f32 %v17577_v39, %v5895_v32  ;;  %v6553_v63 = vpop.f32.mrf.mxu2  ;;  %v14250_v39 = vld [vmem:[#allocation8 + $0x200] sm:$0xff]  ;;  %v6125_v22 = vor.u32 %v6123_v61, %v19340_v54  ;;  %v14267_v56 = vld [vmem:[#allocation8 + $0x38] sm:$0xff]  ;;  %8067 = vmatpush.bf16.msra.mxu1 %v14275_v50 }
 0x3b8   : > { %6810 = vmatmul.bf16.gmra.mxu1 %v19336_v4  ;;  %v6004_v40 = vrot.slane %v6002_v21, 6  ;;  %v6007_v36 = vrot.slane %v6005_v16, 7  ;;  %v6554_v7 = vadd.f32 %v6553_v63, %v6521_v44  ;;  %7219 = vmatpush.bf16.msrb.mxu0 %v14250_v39  ;;  %v14282_v44 = vld [vmem:[#allocation8 + $0xb0] sm:$0xff]  ;;  %v17782_v21 = vunpack.c.l.b16 %v9982_v35  ;;  %v17788_v63 = vld [vmem:[#allocation2 + $0x34] sm:$0xff]  ;;  %v19347_v34 = vld [vmem:[#allocation40_spill] sm:$0xff] }
 0x3b9   : > { %v5913_v0 = vmax.f32 %v5904_v5, 0.0  ;;  %v19341_v4 = vrot.slane %v19339_v62, 1  ;;  %v10175_v5 = vunpack.c.l.b16 %v10135_v48  ;;  %v7421_v46 = vshrl.u32 %v17788_v63, 16  ;;  %8101 = vmatpush.bf16.msra.mxu2 %v14282_v44  ;;  %v14317_v39 = vld [vmem:[#allocation8 + $0x1b0] sm:$0xff]  ;;  %v14273_v48 = vld [vmem:[#allocation8 + $0x68] sm:$0xff] }
 0x3ba   : > { %v6008_v59 = vor.u32 %v6007_v36, %v6004_v40  ;;  %v5885_v29 = vpop.f32.mrf.mxu3  ;;  %8459 = vmatpush.bf16.msra.mxu3 %v14317_v39 }
 0x3bb   : > { %v5922_v45 = vsel %vm16259_vm9, %v5913_v0, 0.0  ;;  %v10176_v36 = vpack.c.b16 %v17782_v21, %v10175_v5  ;;  %8068 = vmatpush.bf16.msra.mxu1 %v14274_v28  ;;  %vm19349_vm9 = vmmov %vm19331_vm3 }
 0x3bc   : > { %v6489_v3 = vpop.f32.mrf.mxu0  ;;  %v6522_v38 = vpop.f32.mrf.mxu1  ;;  %v6009_v49 = vsel %vm15954_vm7, %v6000_v10, %v6008_v59  ;;  %v5931_v12 = vpack.c.bf16 %v5922_v45, %v5922_v45  ;;  %v6010_v14 = vrot.slane %v6008_v59, 4  ;;  %8034 = vmatpush.bf16.msra.mxu0 %v14267_v56  ;;  %v17794_v10 = vld [vmem:[#allocation2 + $0x48] sm:$0xff]  }
 0x3bd   : > { %v6523_v9 = vadd.f32 %v6522_v38, %v6489_v3  ;;  %6040 = vst [vmem:[#allocation2 + $0x90] sm:$0xf] %v6009_v49  ;;  %v14412_v3 = vld [vmem:[#allocation2 + $0x7c] sm:$0xff]  ;;  %v10177_v2 = vrot.slane %v10176_v36, 1  ;;  %v14280_v36 = vld [vmem:[#allocation8 + $0xa0] sm:$0xff] }
 0x3be   : > { %v6012_v25 = vshrl.u32 %v5931_v12, 16  ;;  %v6015_v15 = vshll.u32 %v5931_v12, 16  ;;  %v14567_v12 = vunpack.c.l.b16 %v17794_v10 }
 0x3bf   : > { %7202 = vmatmul.bf16.gmra.mxu3 %v6984_v58  ;;  %v6555_v6 = vpop.f32.mrf.mxu2  ;;  %8069 = vmatpush.bf16.msra.mxu1 %v14273_v48 }
 0x3c0   : > { %v6014_v17 = vrot.slane %v6012_v25, 6  ;;  %v6017_v20 = vrot.slane %v6015_v15, 7  ;;  %v6556_v11 = vadd.f32 %v6555_v6, %v6523_v9  ;;  %v17803_v9 = vrot.slane %v14412_v3, 1  ;;  %v7515_v15 = vld [vmem:[#allocation2 + $0x2c] sm:$0xc]  ;;  %8035 = vmatpush.bf16.msra.mxu0 %v14266_v27 }
 0x3c1   : > { %v7555_v62 = vunpack.c.l.b16 %v7515_v15 }
 0x3c2   : > { %v6018_v26 = vor.u32 %v6017_v20, %v6014_v17  ;;  %v6730_v43 = vpop.f32.mrf.mxu3  ;;  %v17809_v58 = vsel %vm685_vm1, %v10177_v2, %v17803_v9  ;;  %v17815_v20 = vpack.c.b16 %v14567_v12, %v16968_v41 }
 0x3c3   : > { %v17774_v55 = vadd.f32 %v6730_v43, %v6554_v7  ;;  %v19342_v7 = vld [vmem:[#allocation34_spill] sm:$0xff] }
 0x3c4   : > { %v6492_v53 = vpop.f32.mrf.mxu0  ;;  %v6019_v37 = vsel %vm15954_vm7, %v6010_v14, %v6018_v26  ;;  %v6020_v32 = vrot.slane %v6018_v26, 4  ;;  %7174 = vmatmul.bf16.gmra.mxu2 %v6981_v13  ;;  %v7535_v13 = vrot.slane %v7533_v24, 1  ;;  %v7423_v0 = vor.u32 %v7421_v46, %v19342_v7  ;;  %vm19344_vm7 = vmmov %vm19331_vm3  ;;  %v14281_v43 = vld [vmem:[#allocation8 + $0xa8] sm:$0xff]  ;;  %v19346_v24 = vld [vmem:[#allocation32_spill] sm:$0xff] }
 0x3c5   : > { %v6525_v23 = vpop.f32.mrf.mxu1  ;;  %6041 = vst [vmem:[#allocation2 + $0x94] sm:$0xf] %v6019_v37  ;;  %v7539_v54 = vshll.u32 %v17815_v20, 16  ;;  %v7612_v50 = vsel %vm685_vm1, %v7611_v47, %v19346_v24  ;;  %8102 = vmatpush.bf16.msra.mxu2 %v14281_v43  ;;  %v17829_v56 = vsel %vm685_vm1, %v19346_v24, %v19347_v34  ;;  %v14314_v47 = vld [vmem:[#allocation8 + $0x198] sm:$0xff] }
 0x3c6   : > { %v6526_v42 = vadd.f32 %v6525_v23, %v6492_v53  ;;  %v6043_v16 = vsel %vm15625_vm8, %v6020_v32, %v6042_v31  ;;  %vm19343_vm8 = vmmov %vm19331_vm3  ;;  %v7536_v19 = vor.u32 %v7535_v13, %v7531_v18  ;;  %v7556_v31 = vpack.c.b16 %v19338_v52, %v7555_v62  ;;  %v14316_v53 = vld [vmem:[#allocation8 + $0x1a8] sm:$0xff]  ;;  %v19348_v18 = vld [vmem:[#allocation41_spill] sm:$0xff] }
 0x3c7   : > { %6782 = vmatmul.bf16.gmra.mxu0 %v6125_v22  ;;  %6044 = vst [vmem:[#allocation2 + $0x98] sm:$0x3] %v6043_v16  ;;  %v6558_v1 = vpop.f32.mrf.mxu2  ;;  %v17800_v38 = vsel %vm19343_vm8, %v7423_v0, %v16974_v33  ;;  %v19345_v22 = vld [vmem:[#allocation30_spill] sm:$0xff]  ;;  %8460 = vmatpush.bf16.msra.mxu3 %v14316_v53  ;;  %v7541_v32 = vrot.slane %v7539_v54, 1  ;;  %v7514_v16 = vld [vmem:[#allocation2 + $0x50] sm:$0x3]  ;;  %vm19390_vm8 = vmmov %vm19386_vm0 }
 0x3c8   : > { %6815 = vmatmul.bf16.gmra.mxu1 %v19341_v4  ;;  %v6559_v40 = vadd.f32 %v6558_v1, %v6526_v42  ;;  %v7537_v25 = vsel %vm19344_vm7, %v7536_v19, %v19342_v7  ;;  %v7614_v6 = vrot.slane %v17800_v38, 1  ;;  %v7557_v52 = vrot.slane %v7556_v31, 1  ;;  %v14264_v62 = vld [vmem:[#allocation8 + $0x20] sm:$0xff]  ;;  %vm19394_vm7 = vmmov %vm19363_vm2 }
 0x3c9   : > { %v7617_v5 = vrot.slane %v17829_v56, 1  ;;  %8103 = vmatpush.bf16.msra.mxu2 %v14280_v36  ;;  %v7543_v53 = vshrl.u32 %v17815_v20, 16 }
 0x3ca   : > { %v6732_v59 = vpop.f32.mrf.mxu3  ;;  %v7558_v42 = vsel %vm685_vm1, %v7557_v52, %v19346_v24  ;;  %v14271_v52 = vld [vmem:[#allocation8 + $0x58] sm:$0xff] }
 0x3cb   : > { %v17796_v57 = vadd.f32 %v6732_v59, %v6556_v11  ;;  %v7613_v11 = vrot.slane %v7537_v25, 1  ;;  %v7616_v7 = vrot.slane %v7558_v42, 1  ;;  %v17838_v59 = vsel %vm19349_vm9, %v19348_v18, %v7541_v32  ;;  %vm19395_vm9 = vmmov %vm19363_vm2 }
 0x3cc   : > { %v6494_v29 = vpop.f32.mrf.mxu0  ;;  %v7619_v39 = vrot.slane %v17838_v59, 1 }
 0x3cd   : > { %v6527_v45 = vpop.f32.mrf.mxu1  ;;  %v7618_v3 = vsel %vm685_vm1, %v7616_v7, %v7617_v5  ;;  %v14263_v7 = vld [vmem:[#allocation8 + $0x18] sm:$0xff] }
 0x3ce   : > { %v6528_v49 = vadd.f32 %v6527_v45, %v6494_v29  ;;  %v7528_v29 = vunpack.c.l.b16 %v7514_v16  ;;  %v14568_v45 = vunpack.c.h.b16 %v17794_v10  ;;  %v7620_v27 = vsel %vm685_vm1, %v7614_v6, %v7619_v39 }
 0x3cf   : > { %7207 = vmatmul.bf16.gmra.mxu3 %v6983_v30  ;;  %v6560_v33 = vpop.f32.mrf.mxu2  ;;  %v7615_v30 = vsel %vm685_vm1, %v7613_v11, %v7614_v6  ;;  %v14272_v11 = vld [vmem:[#allocation8 + $0x60] sm:$0xff] }
 0x3d0   : > { %v6561_v17 = vadd.f32 %v6560_v33, %v6528_v49  ;;  %v14315_v49 = vld [vmem:[#allocation8 + $0x1a0] sm:$0xff]  ;;  %v17845_v2 = vpack.c.b16 %v7528_v29, %v14568_v45  ;;  %8070 = vmatpush.bf16.msra.mxu1 %v14272_v11  ;;  %v14262_v11 = vld [vmem:[#allocation8 + $0x10] sm:$0xff] }
 0x3d1   : > { %8461 = vmatpush.bf16.msra.mxu3 %v14315_v49 }
 0x3d2   : > { %v6735_v61 = vpop.f32.mrf.mxu3 }
 0x3d3   : > { %v17817_v14 = vadd.f32 %v6735_v61, %v6559_v40  ;;  %v14265_v40 = vld [vmem:[#allocation8 + $0x28] sm:$0xff]  ;;  %v14279_v61 = vld [vmem:[#allocation8 + $0x98] sm:$0xff] }
 0x3d4   : > { %v6497_v35 = vpop.f32.mrf.mxu0  ;;  %7832 = vmatmul.bf16.vlgmr.msrb.gmra.mxu2 %v7615_v30  ;;  %8036 = vmatpush.bf16.msra.mxu0 %v14265_v40  ;;  %v19350_v30 = vld [vmem:[#allocation17_spill] sm:$0xff] }
 0x3d5   : > { %v6530_v26 = vpop.f32.mrf.mxu1  ;;  %8104 = vmatpush.bf16.msra.mxu2 %v14279_v61  ;;  %8462 = vmatpush.bf16.msra.mxu3 %v14314_v47  ;;  %v19352_v61 = vld [vmem:[#allocation19_spill] sm:$0xff] }
 0x3d6   : > { %v6531_v23 = vadd.f32 %v6530_v26, %v6497_v35  ;;  %v7547_v26 = vshll.u32 %v17845_v2, 16  ;;  %8071 = vmatpush.bf16.msra.mxu1 %v14271_v52  ;;  %v14277_v52 = vld [vmem:[#allocation8 + $0x88] sm:$0xff] }
 0x3d7   : > { %7220 = vmatmul.bf16.vlgmr.msrb.gmra.mxu0 %v19345_v22  ;;  %v6563_v44 = vpop.f32.mrf.mxu2 }
 0x3d8   : > { %7799 = vmatmul.bf16.vlgmr.msrb.gmra.mxu1 %v7612_v50  ;;  %v6564_v37 = vadd.f32 %v6563_v44, %v6531_v23  ;;  %8037 = vmatpush.bf16.msra.mxu0 %v14264_v62  ;;  %v7549_v48 = vrot.slane %v7547_v26, 1  ;;  %v9987_v23 = vld [vmem:[#allocation2 + $0x8c] sm:$0xf]  ;;  %v7545_v50 = vor.u32 %v7543_v53, %v7541_v32  ;;  %v9988_v44 = vld [vmem:[#allocation2 + $0x90] sm:$0x1] }
 0x3d9   : > { %v17865_v16 = vunpack.c.l.b16 %v9987_v23 }
 0x3da   : > { %v6737_v4 = vpop.f32.mrf.mxu3 }
 0x3db   : > { %v17834_v46 = vadd.f32 %v6737_v4, %v6561_v17  ;;  %v17851_v17 = vrot.slane %v17815_v20, 1  ;;  %v10019_v4 = vunpack.c.l.b16 %v9988_v44 }
 0x3dc   : > { %v6499_v1 = vpop.f32.mrf.mxu0  ;;  %8038 = vmatpush.bf16.msra.mxu0 %v14263_v7 }
 0x3dd   : > { %v6532_v13 = vpop.f32.mrf.mxu1  ;;  %v17859_v6 = vsel %vm685_vm1, %v19347_v34, %v17851_v17  ;;  %v14413_v34 = vld [vmem:[#allocation2 + $0x84] sm:$0xff]  ;;  %v17869_v20 = vpack.c.b16 %v10019_v4, %v17865_v16 }
 0x3de   : > { %v6533_v0 = vadd.f32 %v6532_v13, %v6499_v1  ;;  %v7621_v22 = vrot.slane %v17859_v6, 1  ;;  %v7550_v13 = vsel %vm19351_vm10, %v7545_v50, %v7549_v48  ;;  %v17872_v18 = vrot.slane %v14413_v34, 1  ;;  %vm19397_vm10 = vmmov %vm19386_vm0 }
 0x3df   : > { %7865 = vmatmul.bf16.vlgmr.msrb.gmra.mxu3 %v7618_v3  ;;  %v6565_v19 = vpop.f32.mrf.mxu2  ;;  %v7623_v36 = vrot.slane %v7550_v13, 1  ;;  %v10075_v59 = vrot.slane %v17869_v20, 1 }
 0x3e0   : > { %v6566_v12 = vadd.f32 %v6565_v19, %v6533_v0  ;;  %v7622_v40 = vsel %vm685_vm1, %v7617_v5, %v7621_v22  ;;  %v14278_v0 = vld [vmem:[#allocation8 + $0x90] sm:$0xff]  ;;  %8039 = vmatpush.bf16.msra.mxu0 %v14262_v11  ;;  %v14268_v11 = vld [vmem:[#allocation8 + $0x40] sm:$0xff] }
 0x3e1   : > { %8105 = vmatpush.bf16.msra.mxu2 %v14278_v0  ;;  %v17879_v3 = vsel %vm685_vm1, %v17872_v18, %v10075_v59  ;;  %v14276_v0 = vld [vmem:[#allocation8 + $0x80] sm:$0xff] }
 0x3e2   : > { %v6740_v25 = vpop.f32.mrf.mxu3 }
 0x3e3   : > { %v17847_v33 = vadd.f32 %v6740_v25, %v6564_v37  ;;  %v7624_v25 = vsel %vm685_vm1, %v7619_v39, %v7623_v36 }
 0x3e4   : > { %v6502_v15 = vpop.f32.mrf.mxu0  ;;  %7837 = vmatmul.bf16.gmra.mxu2 %v7620_v27  ;;  %v14270_v27 = vld [vmem:[#allocation8 + $0x50] sm:$0xff] }
 0x3e5   : > { %v6535_v28 = vpop.f32.mrf.mxu1  ;;  %8072 = vmatpush.bf16.msra.mxu1 %v14270_v27  ;;  %8106 = vmatpush.bf16.msra.mxu2 %v14277_v52  ;;  %v14326_v52 = vld [vmem:[#allocation8 + $0x1f8] sm:$0xff] }
 0x3e6   : > { %v6536_v35 = vadd.f32 %v6535_v28, %v6502_v15  ;;  %v7561_v15 = vrot.slane %v17845_v2, 1  ;;  %v14313_v28 = vld [vmem:[#allocation8 + $0x190] sm:$0xff] }
 0x3e7   : > { %7225 = vmatmul.bf16.gmra.mxu0 %v19350_v30  ;;  %v6568_v31 = vpop.f32.mrf.mxu2  ;;  %8463 = vmatpush.bf16.msra.mxu3 %v14313_v28 }
 0x3e8   : > { %7804 = vmatmul.bf16.gmra.mxu1 %v17829_v56  ;;  %v6569_v43 = vadd.f32 %v6568_v31, %v6536_v35  ;;  %v7513_v35 = vld [vmem:[#allocation2 + $0x50] sm:$0x1]  ;;  %v7562_v26 = vsel %vm685_vm1, %v17851_v17, %v7561_v15  ;;  %v7551_v31 = vshrl.u32 %v17845_v2, 16  ;;  %v14269_v2 = vld [vmem:[#allocation8 + $0x48] sm:$0xff] }
 0x3e9   : > { %v7523_v30 = vunpack.c.l.b16 %v7513_v35  ;;  %v7625_v53 = vrot.slane %v7562_v26, 1  ;;  %8073 = vmatpush.bf16.msra.mxu1 %v14269_v2  ;;  %8107 = vmatpush.bf16.msra.mxu2 %v14276_v0  ;;  %v14368_v26 = vld [vmem:[#allocation8 + $0xf8] sm:$0xff] }
 0x3ea   : > { %v6742_v54 = vpop.f32.mrf.mxu3  ;;  %v7553_v50 = vor.u32 %v7551_v31, %v7549_v48 }
 0x3eb   : > { %v17863_v37 = vadd.f32 %v6742_v54, %v6566_v12  ;;  %v7526_v44 = vpack.c.b16 %v7523_v30, %v14568_v45  ;;  %v14261_v45 = vld [vmem:[#allocation8 + $0x8] sm:$0xff]  ;;  %v7359_v30 = vld [vmem:[#allocation2 + $0x24] sm:$0xf] }
 0x3ec   : > { %v6504_v24 = vpop.f32.mrf.mxu0  ;;  %v7629_v4 = vrot.slane %v7553_v50, 1  ;;  %8040 = vmatpush.bf16.msra.mxu0 %v14261_v45  ;;  %v14334_v50 = vld [vmem:[#allocation8 + $0x238] sm:$0xff]  ;;  %v14375_v45 = vld [vmem:[#allocation8 + $0x130] sm:$0xff] }
 0x3ed   : > { %v6537_v42 = vpop.f32.mrf.mxu1  ;;  %8074 = vmatpush.bf16.msra.mxu1 %v14268_v11  ;;  %9101 = vmatpush.bf16.msrb.mxu2 %v14368_v26  ;;  %v19355_v26 = vld [vmem:[#allocation18_spill] sm:$0xff] }
 0x3ee   : > { %v6538_v1 = vadd.f32 %v6537_v42, %v6504_v24  ;;  %v7626_v42 = vsel %vm685_vm1, %v7621_v22, %v7625_v53  ;;  %v7630_v10 = vsel %vm685_vm1, %v7623_v36, %v7629_v4 }
 0x3ef   : > { %7870 = vmatmul.bf16.gmra.mxu3 %v7622_v40  ;;  %v6570_v32 = vpop.f32.mrf.mxu2 }
 0x3f0   : > { %v6571_v29 = vadd.f32 %v6570_v32, %v6538_v1  ;;  %v7627_v1 = vrot.slane %v7526_v44, 1  ;;  %v19354_v44 = vld [vmem:[#allocation14_spill] sm:$0xff] }
 0x3f1   : > { %8524 = vmatpush.bf16.msrb.mxu1 %v14334_v50  ;;  %v14838_v50 = vld [vmem:[#allocation2 + $0x3c] sm:$0xff] }
 0x3f2   : > { %v6745_v19 = vpop.f32.mrf.mxu3 }
 0x3f3   : > { %v17881_v49 = vadd.f32 %v6745_v19, %v6569_v43  ;;  %v19353_v19 = vld [vmem:[#allocation31_spill] sm:$0xff] }
 0x3f4   : > { %v6507_v5 = vpop.f32.mrf.mxu0  ;;  %7842 = vmatmul.bf16.gmra.mxu2 %v7624_v25  ;;  %v7631_v25 = vrot.slane %v7561_v15, 1 }
 0x3f5   : > { %v6540_v12 = vpop.f32.mrf.mxu1 }
 0x3f6   : > { %v6541_v62 = vadd.f32 %v6540_v12, %v6507_v5  ;;  %v7628_v5 = vsel %vm685_vm1, %v17851_v17, %v7627_v1  ;;  %v7632_v35 = vsel %vm685_vm1, %v7625_v53, %v7631_v25  ;;  %v14367_v53 = vld [vmem:[#allocation8 + $0xf0] sm:$0xff] }
 0x3f7   : > { %7230 = vmatmul.bf16.gmra.mxu0 %v19352_v61  ;;  %v6573_v47 = vpop.f32.mrf.mxu2  ;;  %9102 = vmatpush.bf16.msrb.mxu2 %v14367_v53 }
 0x3f8   : > { %7809 = vmatmul.bf16.gmra.mxu1 %v17859_v6  ;;  %v6574_v39 = vadd.f32 %v6573_v47, %v6541_v62  ;;  %v14312_v6 = vld [vmem:[#allocation8 + $0x188] sm:$0xff]  ;;  %v14260_v62 = vld [vmem:[#allocation8] sm:$0xff]  ;;  %v14376_v47 = vld [vmem:[#allocation8 + $0x138] sm:$0xff] }
 0x3f9   : > { %8464 = vmatpush.bf16.msra.mxu3 %v14312_v6  ;;  %8041 = vmatpush.bf16.msra.mxu0 %v14260_v62 }
 0x3fa   : > { %v6747_v43 = vpop.f32.mrf.mxu3 }
 0x3fb   : > { %v17890_v54 = vadd.f32 %v6747_v43, %v6571_v29  ;;  %v14311_v29 = vld [vmem:[#allocation8 + $0x180] sm:$0xff] }
 0x3fc   : > { %v6509_v23 = vpop.f32.mrf.mxu0 }
 0x3fd   : > { %v6542_v24 = vpop.f32.mrf.mxu1  ;;  %8465 = vmatpush.bf16.msra.mxu3 %v14311_v29  ;;  %v14837_v23 = vld [vmem:[#allocation2 + $0x28] sm:$0xff]   ;;  %8491 = vmatpush.bf16.msrb.mxu0 %v14326_v52  ;;  %v8273_v52 = vrot.slane %v14838_v50, 2 }
 0x3fe   : > { %v14563_v24 = vunpack.c.l.b16 %v14837_v23  ;;  %v14322_v50 = vld [vmem:[#allocation8 + $0x1d8] sm:$0xff] }
 0x3ff   : > { %7875 = vmatmul.bf16.gmra.mxu3 %v7626_v42  ;;  %v6575_v34 = vpop.f32.mrf.mxu2  ;;  %v7379_v42 = vunpack.c.l.b16 %v7359_v30  ;;  %v14332_v30 = vld [vmem:[#allocation8 + $0x228] sm:$0xff] }
 0x401   : > { %9134 = vmatpush.bf16.msrb.mxu3 %v14376_v47  ;;  %v7388_v2 = vpack.c.b16 %v14563_v24, %v7379_v42  ;;  %v19356_v47 = vrot.slane %v19355_v26, 1 }
 0x402   : > { %v6750_v13 = vpop.f32.mrf.mxu3 }
 0x403   : > { %v17895_v32 = vadd.f32 %v6750_v13, %v6574_v39  ;;  %v7369_v13 = vld [vmem:[#allocation2 + $0x24] sm:$0xe] }
 0x404   : > { %v6763_v40 = vpop.f32.mrf.mxu0  ;;  %7847 = vmatmul.bf16.gmra.mxu2 %v7630_v10  ;;  %v7404_v10 = vshll.u32 %v7388_v2, 16 }
 0x405   : > { %v6764_v48 = vadd.f32 %v6763_v40, %v17774_v55  ;;  %v6796_v7 = vpop.f32.mrf.mxu1  ;;  %9135 = vmatpush.bf16.msrb.mxu3 %v14375_v45 }
 0x407   : > { %v17899_v22 = vadd.f32 %v6796_v7, %v6764_v48  ;;  %7235 = vmatmul.bf16.gmra.mxu0 %v19353_v19  ;;  %v7155_v12 = vpop.f32.mrf.mxu2  ;;  %v7406_v19 = vrot.slane %v7404_v10, 1 }
 0x408   : > { %7814 = vmatmul.bf16.gmra.mxu1 %v7628_v5  ;;  %v14333_v5 = vld [vmem:[#allocation8 + $0x230] sm:$0xff] }
 0x409   : > { %8525 = vmatpush.bf16.msrb.mxu1 %v14333_v5 }
 0x40a   : > { %v6752_v55 = vpop.f32.mrf.mxu3 }
 0x40b   : > { %v7402_v55 = vshrl.u32 %v7388_v2, 16 }
 0x40c   : > { %v6765_v28 = vpop.f32.mrf.mxu0 }
 0x40d   : > { %v6766_v36 = vadd.f32 %v6765_v28, %v17796_v57  ;;  %v6798_v27 = vpop.f32.mrf.mxu1  ;;  %8526 = vmatpush.bf16.msrb.mxu1 %v14332_v30 }
 0x40f   : > { %v17905_v61 = vadd.f32 %v6798_v27, %v6766_v36  ;;  %7880 = vmatmul.bf16.gmra.mxu3 %v7632_v35  ;;  %v17908_v17 = vpop.f32.mrf.mxu2  ;;  %v7407_v35 = vor.u32 %v7406_v19, %v7402_v55  ;;  %v14323_v55 = vld [vmem:[#allocation8 + $0x1e0] sm:$0xff] }
 0x412   : > { %v7188_v15 = vpop.f32.mrf.mxu3 }
 0x413   : > { %v17910_v57 = vadd.f32 %v7188_v15, %v7155_v12  ;;  %v14325_v12 = vld [vmem:[#allocation8 + $0x1f0] sm:$0xff]  ;;  %v14366_v15 = vld [vmem:[#allocation8 + $0xe8] sm:$0xff] }
 0x414   : > { %v6768_v39 = vpop.f32.mrf.mxu0  ;;  %7852 = vmatmul.bf16.gmra.mxu2 %v7629_v4  ;;  %v7446_v4 = vunpack.c.l.b16 %v7369_v13  ;;  %8492 = vmatpush.bf16.msrb.mxu0 %v14325_v12  ;;  %v14365_v13 = vld [vmem:[#allocation8 + $0xe0] sm:$0xff] }
 0x415   : > { %v6769_v31 = vadd.f32 %v6768_v39, %v17817_v14  ;;  %v6801_v43 = vpop.f32.mrf.mxu1  ;;  %v14374_v39 = vld [vmem:[#allocation8 + $0x128] sm:$0xff]  ;;  %9103 = vmatpush.bf16.msrb.mxu2 %v14366_v15  ;;  %v14331_v12 = vld [vmem:[#allocation8 + $0x220] sm:$0xff] }
 0x416   : > { %v7447_v29 = vpack.c.b16 %v14563_v24, %v7446_v4  ;;  %9136 = vmatpush.bf16.msrb.mxu3 %v14374_v39  ;;  %v14373_v4 = vld [vmem:[#allocation8 + $0x120] sm:$0xff]  ;;  %8527 = vmatpush.bf16.msrb.mxu1 %v14331_v12 }
 0x417   : > { %v17913_v6 = vadd.f32 %v6801_v43, %v6769_v31  ;;  %7240 = vmatmul.bf16.gmra.mxu0 %v19354_v44  ;;  %v7160_v34 = vpop.f32.mrf.mxu2  ;;  %v19357_v43 = vld [vmem:[#allocation33_spill] sm:$0xff] }
 0x418   : > { %7819 = vmatmul.bf16.gmra.mxu1 %v7627_v1  ;;  %v7448_v28 = vrot.slane %v7447_v29, 1  ;;  %v7412_v23 = vsel %vm19358_vm11, %v7407_v35, %v19357_v43  ;;  %v14330_v43 = vld [vmem:[#allocation8 + $0x218] sm:$0xff]  ;;  %vm19398_vm11 = vmmov %vm19386_vm0 }
 0x419   : > { %9104 = vmatpush.bf16.msrb.mxu2 %v14365_v13 }
 0x41a   : > { %v17916_v14 = vpop.f32.mrf.mxu3  ;;  %9137 = vmatpush.bf16.msrb.mxu3 %v14373_v4  ;;  %8528 = vmatpush.bf16.msrb.mxu1 %v14330_v43  ;;  %v14321_v4 = vld [vmem:[#allocation8 + $0x1d0] sm:$0xff]  ;;  %v14320_v43 = vld [vmem:[#allocation8 + $0x1c8] sm:$0xff] }
 0x41c   : > { %v6770_v40 = vpop.f32.mrf.mxu0 }
 0x41d   : > { %v6771_v48 = vadd.f32 %v6770_v40, %v17834_v46  ;;  %v6803_v7 = vpop.f32.mrf.mxu1  ;;  %v19359_v40 = vld [vmem:[#allocation36_spill] sm:$0xff] }
 0x41f   : > { %v17919_v0 = vadd.f32 %v6803_v7, %v6771_v48  ;;  %7885 = vmatmul.bf16.gmra.mxu3 %v7631_v25  ;;  %v17921_v1 = vpop.f32.mrf.mxu2  ;;  %v7450_v25 = vsel %vm685_vm1, %v7448_v28, %v19356_v47  ;;  %v14364_v28 = vld [vmem:[#allocation8 + $0xd8] sm:$0xff] }
 0x420   : > { %9105 = vmatpush.bf16.msrb.mxu2 %v14364_v28  ;;  %v14328_v28 = vld [vmem:[#allocation8 + $0x208] sm:$0xff] }
 0x422   : > { %v7193_v36 = vpop.f32.mrf.mxu3 }
 0x423   : > { %v17923_v27 = vadd.f32 %v7193_v36, %v7160_v34  ;;  %v14324_v34 = vld [vmem:[#allocation8 + $0x1e8] sm:$0xff]  ;;  %v19361_v36 = vld [vmem:[#allocation35_spill] sm:$0xff] }
 0x424   : > { %v6773_v46 = vpop.f32.mrf.mxu0  ;;  %8108 = vmatmul.bf16.vlgmr.msra.gmra.mxu2 %v7450_v25  ;;  %8493 = vmatpush.bf16.msrb.mxu0 %v14324_v34 }
 0x425   : > { %v6774_v11 = vadd.f32 %v6773_v46, %v17847_v33  ;;  %v6806_v62 = vpop.f32.mrf.mxu1  ;;  %v14372_v46 = vld [vmem:[#allocation8 + $0x118] sm:$0xff] }
 0x426   : > { %9138 = vmatpush.bf16.msrb.mxu3 %v14372_v46  ;;  %v7265_v46 = vld [vmem:[%s15153_s30 + $0xc] sm:$0xf] }
 0x427   : > { %v17929_v31 = vadd.f32 %v6806_v62, %v6774_v11  ;;  %8042 = vmatmul.bf16.vlgmr.msra.gmra.mxu0 %v7388_v2  ;;  %v7165_v33 = vpop.f32.mrf.mxu2  ;;  %v8272_v2 = vrot.slane %v19359_v40, 2  ;;  %v19362_v62 = vld [vmem:[#allocation37_spill] sm:$0xff]  ;;  %v14371_v40 = vld [vmem:[#allocation8 + $0x110] sm:$0xff] }
 0x428   : > { %8075 = vmatmul.bf16.vlgmr.msra.gmra.mxu1 %v7412_v23  ;;  %8494 = vmatpush.bf16.msrb.mxu0 %v14323_v55  ;;  %v8142_v55 = vld [vmem:[#allocation2 + $0x58] sm:$0x3] }
 0x429   : > { %v8274_v7 = vsel %vm19360_vm15, %v8272_v2, %v8273_v52  ;;  %vm19403_vm15 = vmmov %vm19386_vm0 }
 0x42a   : > { %v17933_v24 = vpop.f32.mrf.mxu3  ;;  %9139 = vmatpush.bf16.msrb.mxu3 %v14371_v40  ;;  %v17993_v40 = vld [vmem:[%s18995_s3 + $0x1] ss:$0 sm:$0xff] }
 0x42c   : > { %v6775_v53 = vpop.f32.mrf.mxu0  ;;  %8495 = vmatpush.bf16.msrb.mxu0 %v14322_v50  ;;  %v7275_v50 = vunpack.c.l.bf16 %v7265_v46 }
 0x42d   : > { %v6776_v44 = vadd.f32 %v6775_v53, %v17863_v37  ;;  %v6808_v42 = vpop.f32.mrf.mxu1  ;;  %v14363_v53 = vld [vmem:[#allocation8 + $0xd0] sm:$0xff] }
 0x42e   : > { %9106 = vmatpush.bf16.msrb.mxu2 %v14363_v53 }
 0x42f   : > { %v17937_v48 = vadd.f32 %v6808_v42, %v6776_v44  ;;  %8466 = vmatmul.bf16.vlgmr.msra.gmra.mxu3 %v8274_v7  ;;  %v17940_v10 = vpop.f32.mrf.mxu2  ;;  %v14329_v7 = vld [vmem:[#allocation8 + $0x210] sm:$0xff] }
 0x430   : > { %8529 = vmatpush.bf16.msrb.mxu1 %v14329_v7  ;;  %8496 = vmatpush.bf16.msrb.mxu0 %v14321_v4  ;;  %v14361_v4 = vld [vmem:[#allocation8 + $0xc0] sm:$0xff] }
 0x432   : > { %v7198_v45 = vpop.f32.mrf.mxu3 }
 0x433   : > { %v17942_v19 = vadd.f32 %v7198_v45, %v7165_v33  ;;  %v17970_v45 = vld [vmem:[#allocation2 + $0x4c] sm:$0xff] }
 0x434   : > { %v6778_v29 = vpop.f32.mrf.mxu0  ;;  %8113 = vmatmul.bf16.gmra.mxu2 %v19361_v36  ;;  %v7264_v36 = vld [vmem:[%s15153_s30 + $0x8] sm:$0xe]  ;;  %8530 = vmatpush.bf16.msrb.mxu1 %v14328_v28 }
 0x435   : > { %v6779_v37 = vadd.f32 %v6778_v29, %v17881_v49  ;;  %v6811_v5 = vpop.f32.mrf.mxu1  ;;  %v14839_v49 = vld [vmem:[#allocation2 + $0x44] sm:$0xff]  ;;  %8497 = vmatpush.bf16.msrb.mxu0 %v14320_v43 }
 0x436   : > { %v8281_v25 = vrot.slane %v14839_v49, 2  ;;  %v8164_v49 = vunpack.c.l.b16 %v8142_v55 }
 0x437   : > { %v17946_v11 = vadd.f32 %v6811_v5, %v6779_v37  ;;  %8047 = vmatmul.bf16.gmra.mxu0 %v19355_v26  ;;  %v7170_v35 = vpop.f32.mrf.mxu2  ;;  %v14370_v5 = vld [vmem:[#allocation8 + $0x108] sm:$0xff] }
 0x438   : > { %8080 = vmatmul.bf16.gmra.mxu1 %v19362_v62  ;;  %v8282_v26 = vsel %vm19363_vm2, %v8273_v52, %v8281_v25  ;;  %9140 = vmatpush.bf16.msrb.mxu3 %v14370_v5  ;;  %v7191_v5 = vadd.f32 %v17916_v14, %v17908_v17  ;;  %vm19405_vm2 = vmmov %vm19386_vm0 }
 0x43a   : > { %v17950_v47 = vpop.f32.mrf.mxu3 }
 0x43c   : > { %v6780_v15 = vpop.f32.mrf.mxu0 }
 0x43d   : > { %v6781_v39 = vadd.f32 %v6780_v15, %v17890_v54  ;;  %v6813_v30 = vpop.f32.mrf.mxu1 }
 0x43f   : > { %v17953_v23 = vadd.f32 %v6813_v30, %v6781_v39  ;;  %8471 = vmatmul.bf16.gmra.mxu3 %v8282_v26  ;;  %v17956_v33 = vpop.f32.mrf.mxu2  ;;  %v17980_v30 = vld [vmem:[%s15153_s30 + $0x10] sm:$0xff]   ;;  %v7274_v26 = vunpack.c.l.bf16 %v7264_v36 }
 0x442   : > { %v7203_v44 = vpop.f32.mrf.mxu3 }
 0x443   : > { %v17958_v34 = vadd.f32 %v7203_v44, %v7170_v35  ;;  %v14841_v44 = vld [vmem:[#allocation2 + $0x3c] sm:$0xff] }
 0x444   : > { %v6783_v42 = vpop.f32.mrf.mxu0  ;;  %8118 = vmatmul.bf16.gmra.mxu2 %v17829_v56  ;;  %v8287_v56 = vrot.slane %v17970_v45, 2 }
 0x445   : > { %v6784_v54 = vadd.f32 %v6783_v42, %v17895_v32  ;;  %v6816_v13 = vpop.f32.mrf.mxu1  ;;  %v19366_v42 = vld [vmem:[#allocation43_spill] sm:$0xff] }
 0x447   : > { %v17962_v2 = vadd.f32 %v6816_v13, %v6784_v54  ;;  %8052 = vmatmul.bf16.gmra.mxu0 %v17788_v63  ;;  %v17966_v52 = vpop.f32.mrf.mxu2  ;;  %v14362_v63 = vld [vmem:[#allocation8 + $0xc8] sm:$0xff]  ;;  %v19367_v54 = vunpack.c.l.b16 %v17380_v60 }
 0x448   : > { %8085 = vmatmul.bf16.gmra.mxu1 %v17800_v38  ;;  %9107 = vmatpush.bf16.msrb.mxu2 %v14362_v63  ;;  %v8288_v38 = vsel %vm19364_vm4, %v8281_v25, %v8287_v56  ;;  %v19365_v25 = vld [vmem:[#allocation44_spill] sm:$0xff] }
 0x449   : > { %v17987_v13 = vpack.c.b16 %v8164_v49, %v19367_v54  ;;  %v14319_v49 = vld [vmem:[#allocation8 + $0x1c0] sm:$0xff] }
 0x44a   : > { %v17968_v32 = vpop.f32.mrf.mxu3  ;;  %8498 = vmatpush.bf16.msrb.mxu0 %v14319_v49  ;;  %v8820_v49 = vld [vmem:[#allocation2 + $0x50] sm:$0xe] }
 0x44c   : > { %v6785_v29 = vpop.f32.mrf.mxu0  ;;  %9108 = vmatpush.bf16.msrb.mxu2 %v14361_v4 }
 0x44d   : > { %v6818_v37 = vpop.f32.mrf.mxu1  ;;  %v14369_v29 = vld [vmem:[#allocation8 + $0x100] sm:$0xff] }
 0x44e   : > { %v7296_v37 = vrot.slane %v7275_v50, 3  ;;  %9141 = vmatpush.bf16.msrb.mxu3 %v14369_v29 }
 0x44f   : > { %8476 = vmatmul.bf16.gmra.mxu3 %v8288_v38  ;;  %v7177_v12 = vpop.f32.mrf.mxu2  ;;  %v8293_v38 = vrot.slane %v17987_v13, 2 }
 0x451   : > { %v8294_v14 = vsel %vm19368_vm12, %v8287_v56, %v8293_v38  ;;  %v7392_v56 = vpack.c.b16 %v16968_v41, %v16968_v41  ;;  %vm19406_vm12 = vmmov %vm19364_vm4 }
 0x452   : > { %v17976_v62 = vpop.f32.mrf.mxu3 }
 0x454   : > { %v7221_v35 = vpop.f32.mrf.mxu0  ;;  %8123 = vmatmul.bf16.gmra.mxu2 %v19365_v25  ;;  %v14352_v25 = vld [vmem:[#allocation8 + $0x78] sm:$0xff] }
 0x455   : > { %v7222_v15 = vadd.f32 %v7221_v35, %v17910_v57  ;;  %v7800_v39 = vpop.f32.mrf.mxu1  ;;  %v14531_v57 = vunpack.c.l.bf16 %v17980_v30  ;;  %v14327_v35 = vld [vmem:[#allocation8 + $0x200] sm:$0xff]  ;;  %9377 = vmatpush.bf16.msra.mxu2 %v14352_v25 }
 0x456   : > { %8531 = vmatpush.bf16.msrb.mxu1 %v14327_v35 }
 0x457   : > { %v7245_v53 = vadd.f32 %v7222_v15, %v17899_v22  ;;  %8057 = vmatmul.bf16.gmra.mxu0 %v14841_v44  ;;  %v7833_v7 = vpop.f32.mrf.mxu2  ;;  %v7295_v22 = vrot.slane %v7274_v26, 3  ;;  %v17998_v55 = vrot.slane %v14531_v57, 3  ;;  %v19369_v57 = vld [vmem:[#allocation39_spill] sm:$0xff] }
 0x458   : > { %8090 = vmatmul.bf16.gmra.mxu1 %v19366_v42  ;;  %v7834_v63 = vadd.f32 %v7833_v7, %v7800_v39  ;;  %v7437_v7 = vshrl.u32 %v19369_v57, 16 }
 0x459   : > { %v7255_v28 = vadd.f32 %v17993_v40, %v7245_v53  ;;  %v7297_v15 = vsel %vm7294_vm5, %v7295_v22, %v7296_v37  ;;  %v7299_v39 = vsel %vm7294_vm5, %v7296_v37, %v17998_v55  ;;  %v14360_v53 = vld [vmem:[#allocation8 + $0xb8] sm:$0xff] }
 0x45a   : > { %v7210_v60 = vpop.f32.mrf.mxu3  ;;  %9410 = vmatpush.bf16.msra.mxu3 %v14360_v53  ;;  %v19372_v53 = vunpack.c.h.b16 %v17382_v51 }
 0x45b   : > { %v7323_v43 = vadd.f32 %v7297_v15, %v7255_v28  ;;  %v18017_v60 = vld [vmem:[%s15153_s30 + $0x18] sm:$0xff]   ;;  %v19370_v28 = vld [vmem:[#allocation42_spill] sm:$0xff] }
 0x45c   : > { %v7223_v12 = vpop.f32.mrf.mxu0  ;;  %v14344_v15 = vld [vmem:[#allocation8 + $0x38] sm:$0xff] }
 0x45d   : > { %v7224_v36 = vadd.f32 %v7223_v12, %v7191_v5  ;;  %v7802_v46 = vpop.f32.mrf.mxu1  ;;  %v7332_v4 = vmax.f32 %v7323_v43, 0.0  ;;  %v14532_v12 = vunpack.c.h.bf16 %v17980_v30  ;;  %v14384_v30 = vld [vmem:[#allocation8 + $0x178] sm:$0xff]  ;;  %v8830_v43 = vunpack.c.l.b16 %v8820_v49  ;;  %9344 = vmatpush.bf16.msra.mxu1 %v14344_v15 }
 0x45e   : > { %9167 = vmatpush.bf16.msra.mxu0 %v14384_v30 }
 0x45f   : > { %v7246_v17 = vadd.f32 %v7224_v36, %v17905_v61  ;;  %8481 = vmatmul.bf16.gmra.mxu3 %v8294_v14  ;;  %v7835_v50 = vpop.f32.mrf.mxu2  ;;  %v7439_v36 = vor.u32 %v7437_v7, %v19370_v28  ;;  %v7300_v14 = vrot.slane %v14532_v12, 3  ;;  %v14359_v7 = vld [vmem:[#allocation8 + $0xb0] sm:$0xff] }
 0x460   : > { %v7836_v44 = vadd.f32 %v7835_v50, %v7802_v46  ;;  %v19371_v46 = vrot.slane %v19369_v57, 1  ;;  %9411 = vmatpush.bf16.msra.mxu3 %v14359_v7  ;;  %v14343_v28 = vld [vmem:[#allocation8 + $0x30] sm:$0xff]  ;;  %v14843_v7 = vld [vmem:[#allocation2 + $0x68] sm:$0xff]  }
 0x461   : > { %v7256_v26 = vadd.f32 %v17993_v40, %v7246_v17  ;;  %v14351_v17 = vld [vmem:[#allocation8 + $0x70] sm:$0xff]  ;;  %9345 = vmatpush.bf16.msra.mxu1 %v14343_v28 }
 0x462   : > { %v7866_v42 = vpop.f32.mrf.mxu3  ;;  %9378 = vmatpush.bf16.msra.mxu2 %v14351_v17 }
 0x463   : > { %v7324_v61 = vadd.f32 %v7299_v39, %v7256_v26  ;;  %v18013_v29 = vadd.f32 %v7866_v42, %v7834_v63  ;;  %v14535_v63 = vunpack.c.l.bf16 %v18017_v60  ;;  %v7196_v26 = vadd.f32 %v17933_v24, %v17921_v1 }
 0x464   : > { %v7226_v54 = vpop.f32.mrf.mxu0  ;;  %8128 = vmatmul.bf16.gmra.mxu2 %v19371_v46  ;;  %v7301_v1 = vsel %vm7294_vm5, %v17998_v55, %v7300_v14  ;;  %v14383_v55 = vld [vmem:[#allocation8 + $0x170] sm:$0xff] }
 0x465   : > { %v7333_v22 = vmax.f32 %v7324_v61, 0.0  ;;  %v7227_v37 = vadd.f32 %v7226_v54, %v17923_v27  ;;  %v7805_v5 = vpop.f32.mrf.mxu1  ;;  %v18030_v25 = vrot.slane %v14535_v63, 3  ;;  %v8834_v61 = vpack.c.b16 %v19372_v53, %v8830_v43  ;;  %9168 = vmatpush.bf16.msra.mxu0 %v14383_v55  ;;  %v18057_v43 = vld [vmem:[%s15153_s30 + $0x20] sm:$0xff]  }
 0x467   : > { %v14544_v35 = vpack.c.bf16 %v7333_v22, %v7332_v4  ;;  %v7247_v41 = vadd.f32 %v7227_v37, %v17913_v6  ;;  %8062 = vmatmul.bf16.gmra.mxu0 %v7392_v56  ;;  %v7838_v27 = vpop.f32.mrf.mxu2  ;;  %v18040_v4 = vld [vmem:[#allocation2 + $0x58] sm:$0xff]  ;;  %v7303_v51 = vsel %vm7294_vm5, %v7300_v14, %v18030_v25 }
 0x468   : > { %8095 = vmatmul.bf16.gmra.mxu1 %v7439_v36  ;;  %v7839_v39 = vadd.f32 %v7838_v27, %v7805_v5  ;;  %v8727_v22 = vshll.u32 %v18040_v4, 16  ;;  %v8731_v13 = vshrl.u32 %v18040_v4, 16 }
 0x469   : > { %14545 = vst [vmem:[%s18025_s20] sm:$0xff] %v14544_v35   ;;  %v7257_v54 = vadd.f32 %v17993_v40, %v7247_v41 }
 0x46a   : > { %v7868_v6 = vpop.f32.mrf.mxu3  ;;  %v18048_v35 = vrot.slane %v8727_v22, 1 }
 0x46b   : > { %v18034_v42 = vadd.f32 %v7868_v6, %v7836_v44  ;;  %v8843_v44 = vshll.u32 %v8834_v61, 16  ;;  %v7325_v37 = vadd.f32 %v7301_v1, %v7257_v54  ;;  %v14536_v6 = vunpack.c.h.bf16 %v18017_v60  ;;  %v19373_v54 = vld [vmem:[#allocation46_spill] sm:$0xff] }
 0x46c   : > { %v7228_v50 = vpop.f32.mrf.mxu0  ;;  %v8831_v1 = vunpack.c.h.b16 %v14843_v7 }
 0x46d   : > { %v7229_v56 = vadd.f32 %v7228_v50, %v7196_v26  ;;  %v7807_v57 = vpop.f32.mrf.mxu1  ;;  %v7334_v27 = vmax.f32 %v7325_v37, 0.0  ;;  %v14350_v26 = vld [vmem:[#allocation8 + $0x68] sm:$0xff]  ;;  %v7304_v37 = vrot.slane %v14536_v6, 3 }
 0x46e   : > { %9379 = vmatpush.bf16.msra.mxu2 %v14350_v26  ;;  %v19378_v6 = vld [vmem:[#allocation38_spill] sm:$0xff] }
 0x46f   : > { %v7248_v24 = vadd.f32 %v7229_v56, %v17919_v0  ;;  %8486 = vmatmul.bf16.gmra.mxu3 %v8293_v38  ;;  %v7840_v12 = vpop.f32.mrf.mxu2  ;;  %v8921_v0 = vrot.slane %v8834_v61, 1  ;;  %v8845_v38 = vrot.slane %v8843_v44, 1  ;;  %v8733_v56 = vor.u32 %v8731_v13, %v18048_v35  ;;  %v14342_v44 = vld [vmem:[#allocation8 + $0x28] sm:$0xff] }
 0x470   : > { %v7841_v36 = vadd.f32 %v7840_v12, %v7807_v57  ;;  %v19374_v57 = vld [vmem:[#allocation47_spill] sm:$0xff]  ;;  %9346 = vmatpush.bf16.msra.mxu1 %v14342_v44 }
 0x471   : > { %v7258_v5 = vadd.f32 %v17993_v40, %v7248_v24  ;;  %v8922_v63 = vsel %vm685_vm1, %v8921_v0, %v17420_v8  ;;  %v19375_v24 = vld [vmem:[#allocation26_spill] sm:$0xff] }
 0x472   : > { %v7871_v41 = vpop.f32.mrf.mxu3  ;;  %v18068_v60 = vsel %vm19376_vm14, %v8733_v56, %v19375_v24  ;;  %vm19407_vm14 = vmmov %vm19364_vm4 }
 0x473   : > { %v7326_v46 = vadd.f32 %v7303_v51, %v7258_v5  ;;  %v18053_v15 = vadd.f32 %v7871_v41, %v7839_v39  ;;  %v8841_v39 = vshrl.u32 %v8834_v61, 16  ;;  %v7201_v61 = vadd.f32 %v17950_v47, %v17940_v10 }
 0x474   : > { %v7231_v49 = vpop.f32.mrf.mxu0  ;;  %9109 = vmatmul.bf16.vlgmr.msrb.gmra.mxu2 %v8922_v63  ;;  %v8924_v55 = vrot.slane %v18068_v60, 1  ;;  %v8220_v41 = vrot.slane %v17970_v45, 1 }
 0x475   : > { %v7335_v30 = vmax.f32 %v7326_v46, 0.0  ;;  %v7232_v17 = vadd.f32 %v7231_v49, %v17942_v19  ;;  %v7810_v14 = vpop.f32.mrf.mxu1  ;;  %v14539_v19 = vunpack.c.l.bf16 %v18057_v43  ;;  %v8846_v22 = vor.u32 %v8845_v38, %v8841_v39  ;;  %v19377_v49 = vld [vmem:[#allocation24_spill] sm:$0xff]  ;;  %v14349_v39 = vld [vmem:[#allocation8 + $0x60] sm:$0xff] }
 0x476   : > { %v18079_v63 = vpack.c.b16 %v8831_v1, %v19377_v49  ;;  %9380 = vmatpush.bf16.msra.mxu2 %v14349_v39 }
 0x477   : > { %v14549_v50 = vpack.c.bf16 %v7335_v30, %v7334_v27  ;;  %v7249_v53 = vadd.f32 %v7232_v17, %v17929_v31  ;;  %8499 = vmatmul.bf16.vlgmr.msrb.gmra.mxu0 %v19373_v54  ;;  %v7843_v51 = vpop.f32.mrf.mxu2  ;;  %v14358_v31 = vld [vmem:[#allocation8 + $0xa8] sm:$0xff]  ;;  %v8847_v12 = vsel %vm19331_vm3, %v8846_v22, %v18048_v35  ;;  %v18075_v46 = vrot.slane %v14539_v19, 3  ;;  %vm19408_vm3 = vmmov %vm19386_vm0 }
 0x478   : > { %8532 = vmatmul.bf16.vlgmr.msrb.gmra.mxu1 %v19374_v57  ;;  %v7844_v5 = vadd.f32 %v7843_v51, %v7810_v14  ;;  %9412 = vmatpush.bf16.msra.mxu3 %v14358_v31  ;;  %v14382_v27 = vld [vmem:[#allocation8 + $0x168] sm:$0xff]  ;;  %v7305_v30 = vsel %vm7294_vm5, %v18030_v25, %v7304_v37  ;;  %v8923_v17 = vrot.slane %v8847_v12, 1  ;;  %v8849_v25 = vshll.u32 %v18079_v63, 16  ;;  %v14357_v57 = vld [vmem:[#allocation8 + $0xa0] sm:$0xff] }
 0x479   : > { %14709 = vst [vmem:[%s18025_s20 + $0x8] sm:$0xff] %v14549_v50   ;;  %v7259_v10 = vadd.f32 %v17993_v40, %v7249_v53  ;;  %9169 = vmatpush.bf16.msra.mxu0 %v14382_v27  ;;  %v19379_v50 = vrot.slane %v19378_v6, 1  ;;  %v19380_v51 = vld [vmem:[#allocation50_spill] sm:$0xff]  ;;  %v14381_v27 = vld [vmem:[#allocation8 + $0x160] sm:$0xff]  ;;  %v19381_v6 = vld [vmem:[#allocation20_spill] sm:$0xff] }
 0x47a   : > { %v7873_v28 = vpop.f32.mrf.mxu3  ;;  %v8925_v26 = vsel %vm685_vm1, %v8923_v17, %v8924_v55  ;;  %v18105_v31 = vsel %vm685_vm1, %v17420_v8, %v19380_v51  ;;  %v18107_v44 = vrot.slane %v8849_v25, 1  ;;  %v14540_v17 = vunpack.c.h.bf16 %v18057_v43  ;;  %v18122_v25 = vld [vmem:[#allocation2 + $0x70] sm:$0xf] }
 0x47b   : > { %v18081_v13 = vadd.f32 %v7873_v28, %v7841_v36  ;;  %v7307_v36 = vsel %vm7294_vm5, %v7304_v37, %v18075_v46  ;;  %v18097_v53 = vsel %vm685_vm1, %v19379_v50, %v8220_v41  ;;  %v7327_v54 = vadd.f32 %v7305_v30, %v7259_v10  ;;  %v7272_v37 = vld [vmem:[%s15153_s30 + $0x28] sm:$0xf]  ;;  %v14348_v30 = vld [vmem:[#allocation8 + $0x58] sm:$0xff] }
 0x47c   : > { %v7233_v0 = vpop.f32.mrf.mxu0  ;;  %v8285_v1 = vrot.slane %v18097_v53, 2  ;;  %9413 = vmatpush.bf16.msra.mxu3 %v14357_v57  ;;  %9381 = vmatpush.bf16.msra.mxu2 %v14348_v30  ;;  %v7308_v39 = vrot.slane %v14540_v17, 3 }
 0x47d   : > { %v7234_v47 = vadd.f32 %v7233_v0, %v7201_v61  ;;  %v7812_v38 = vpop.f32.mrf.mxu1  ;;  %v8824_v61 = vld [vmem:[#allocation2 + $0x74] sm:$0x3]  ;;  %v7336_v12 = vmax.f32 %v7327_v54, 0.0  ;;  %v7282_v54 = vunpack.c.l.bf16 %v7272_v37  ;;  %9170 = vmatpush.bf16.msra.mxu0 %v14381_v27  ;;  %v14340_v27 = vld [vmem:[#allocation8 + $0x18] sm:$0xff] }
 0x47e   : > { %v8838_v43 = vunpack.c.l.b16 %v8824_v61 }
 0x47f   : > { %v7250_v14 = vadd.f32 %v7234_v47, %v17937_v48  ;;  %9142 = vmatmul.bf16.vlgmr.msrb.gmra.mxu3 %v8925_v26  ;;  %v7845_v56 = vpop.f32.mrf.mxu2 }
 0x480   : > { %v7846_v19 = vadd.f32 %v7845_v56, %v7812_v38  ;;  %v14341_v38 = vld [vmem:[#allocation8 + $0x20] sm:$0xff] }
 0x481   : > { %v7260_v48 = vadd.f32 %v17993_v40, %v7250_v14  ;;  %v14356_v14 = vld [vmem:[#allocation8 + $0x98] sm:$0xff]  ;;  %9347 = vmatpush.bf16.msra.mxu1 %v14341_v38 }
 0x482   : > { %v7876_v24 = vpop.f32.mrf.mxu3  ;;  %9414 = vmatpush.bf16.msra.mxu3 %v14356_v14 }
 0x483   : > { %v7328_v7 = vadd.f32 %v7307_v36, %v7260_v48  ;;  %v18110_v28 = vadd.f32 %v7876_v24, %v7844_v5  ;;  %v19382_v5 = vld [vmem:[#allocation45_spill] sm:$0xff]  ;;  %v19385_v48 = vld [vmem:[#allocation51_spill] sm:$0xff]  ;;  %v7206_v24 = vadd.f32 %v17968_v32, %v17956_v33  ;;  %v7309_v33 = vsel %vm7294_vm5, %v18075_v46, %v7308_v39 }
 0x484   : > { %v7236_v22 = vpop.f32.mrf.mxu0  ;;  %9114 = vmatmul.bf16.gmra.mxu2 %v18105_v31  ;;  %v19383_v50 = vrot.slane %v19382_v5, 2 }
 0x485   : > { %v7337_v0 = vmax.f32 %v7328_v7, 0.0  ;;  %v7237_v10 = vadd.f32 %v7236_v22, %v17958_v34  ;;  %v7815_v47 = vpop.f32.mrf.mxu1  ;;  %v8832_v7 = vunpack.c.l.b16 %v18122_v25  ;;  %v19387_v22 = vld [vmem:[#allocation21_spill] sm:$0xff]  ;;  %9348 = vmatpush.bf16.msra.mxu1 %v14340_v27  ;;  %v8853_v27 = vshrl.u32 %v18079_v63, 16 }
 0x486   : > { %v8286_v34 = vsel %vm19384_vm13, %v19383_v50, %v8285_v1  ;;  %v8222_v37 = vrot.slane %v19387_v22, 1  ;;  %vm19409_vm13 = vmmov %vm19364_vm4 }
 0x487   : > { %v14554_v26 = vpack.c.bf16 %v7337_v0, %v7336_v12  ;;  %v7251_v36 = vadd.f32 %v7237_v10, %v17946_v11  ;;  %8504 = vmatmul.bf16.gmra.mxu0 %v19381_v6  ;;  %v18128_v11 = vsel %vm19386_vm0, %v19385_v48, %v18107_v44  ;;  %v7848_v56 = vpop.f32.mrf.mxu2  ;;  %v7310_v10 = vrot.slane %v7282_v54, 3  ;;  %v14347_v54 = vld [vmem:[#allocation8 + $0x50] sm:$0xff]  ;;  %vm19410_vm0 = vmmov %vm19364_vm4 }
 0x488   : > { %8537 = vmatmul.bf16.gmra.mxu1 %v8286_v34  ;;  %v7849_v57 = vadd.f32 %v7848_v56, %v7815_v47  ;;  %v8929_v12 = vrot.slane %v18128_v11, 1  ;;  %v18137_v38 = vpack.c.b16 %v8838_v43, %v8832_v7  ;;  %v18151_v6 = vsel %vm685_vm1, %v8220_v41, %v8222_v37  ;;  %v14380_v34 = vld [vmem:[#allocation8 + $0x158] sm:$0xff]  ;;  %9382 = vmatpush.bf16.msra.mxu2 %v14347_v54 }
 0x489   : > { %14710 = vst [vmem:[%s18025_s20 + $0x10] sm:$0xff] %v14554_v26   ;;  %v7261_v47 = vadd.f32 %v17993_v40, %v7251_v36  ;;  %v7273_v26 = vld [vmem:[%s15153_s30 + $0x2c] sm:$0x3]  ;;  %v7311_v46 = vsel %vm7294_vm5, %v7308_v39, %v7310_v10  ;;  %v8291_v48 = vrot.slane %v18151_v6, 2  ;;  %v7209_v56 = vadd.f32 %v17976_v62, %v17966_v52  ;;  %9171 = vmatpush.bf16.msra.mxu0 %v14380_v34 }
 0x48a   : > { %v7878_v61 = vpop.f32.mrf.mxu3  ;;  %v8930_v36 = vsel %vm685_vm1, %v8924_v55, %v8929_v12  ;;  %v7283_v5 = vunpack.c.l.bf16 %v7273_v26  ;;  %v14379_v26 = vld [vmem:[#allocation8 + $0x150] sm:$0xff]  ;;  %v8297_v25 = vrot.slane %v8222_v37, 2 }
 0x48b   : > { %v18139_v30 = vadd.f32 %v7878_v61, %v7846_v19  ;;  %v18154_v19 = vrot.slane %v18079_v63, 1  ;;  %v7329_v50 = vadd.f32 %v7309_v33, %v7261_v47  ;;  %v8823_v63 = vld [vmem:[#allocation2 + $0x74] sm:$0x1] }
 0x48c   : > { %v7238_v0 = vpop.f32.mrf.mxu0  ;;  %v7312_v61 = vrot.slane %v7283_v5, 3 }
 0x48d   : > { %v7239_v17 = vadd.f32 %v7238_v0, %v7206_v24  ;;  %v7817_v14 = vpop.f32.mrf.mxu1  ;;  %v18170_v0 = vsel %vm685_vm1, %v19380_v51, %v18154_v19  ;;  %v7338_v33 = vmax.f32 %v7329_v50, 0.0  ;;  %v8292_v51 = vsel %vm19388_vm6, %v8285_v1, %v8291_v48  ;;  %9172 = vmatpush.bf16.msra.mxu0 %v14379_v26  ;;  %vm19411_vm6 = vmmov %vm19410_vm0 }
 0x48e   : > { %v7313_v50 = vsel %vm7294_vm5, %v7310_v10, %v7312_v61  ;;  %v14354_v10 = vld [vmem:[#allocation8 + $0x88] sm:$0xff] }
 0x48f   : > { %v7252_v32 = vadd.f32 %v7239_v17, %v17953_v23  ;;  %v8857_v23 = vshll.u32 %v18137_v38, 16  ;;  %9147 = vmatmul.bf16.gmra.mxu3 %v8930_v36  ;;  %v7850_v41 = vpop.f32.mrf.mxu2  ;;  %v14355_v17 = vld [vmem:[#allocation8 + $0x90] sm:$0xff] }
 0x490   : > { %v7851_v43 = vadd.f32 %v7850_v41, %v7817_v14  ;;  %v14339_v14 = vld [vmem:[#allocation8 + $0x10] sm:$0xff]  ;;  %9415 = vmatpush.bf16.msra.mxu3 %v14355_v17  ;;  %v8833_v41 = vunpack.c.l.b16 %v8823_v63 }
 0x491   : > { %v7262_v45 = vadd.f32 %v17993_v40, %v7252_v32  ;;  %v18173_v47 = vrot.slane %v8857_v23, 1  ;;  %v19389_v23 = vld [vmem:[#allocation25_spill] sm:$0xff]  ;;  %9349 = vmatpush.bf16.msra.mxu1 %v14339_v14  ;;  %v19391_v14 = vld [vmem:[#allocation22_spill] sm:$0xff] }
 0x492   : > { %v7881_v55 = vpop.f32.mrf.mxu3  ;;  %v8836_v17 = vpack.c.b16 %v8833_v41, %v8832_v7  ;;  %v8298_v41 = vsel %vm19395_vm9, %v8291_v48, %v8297_v25  ;;  %vm19414_vm9 = vmmov %vm19410_vm0 }
 0x493   : > { %v7330_v24 = vadd.f32 %v7311_v46, %v7262_v45  ;;  %v18175_v52 = vadd.f32 %v7881_v55, %v7849_v57  ;;  %v8855_v57 = vor.u32 %v8853_v27, %v18107_v44  ;;  %v8209_v44 = vshrl.u32 %v19387_v22, 16  ;;  %v14346_v55 = vld [vmem:[#allocation8 + $0x48] sm:$0xff] }
 0x494   : > { %v7241_v39 = vpop.f32.mrf.mxu0  ;;  %9119 = vmatmul.bf16.gmra.mxu2 %v18170_v0  ;;  %9416 = vmatpush.bf16.msra.mxu3 %v14354_v10  ;;  %v8861_v22 = vshrl.u32 %v18137_v38, 16  ;;  %v14377_v10 = vld [vmem:[#allocation8 + $0x140] sm:$0xff] }
 0x495   : > { %v7339_v62 = vmax.f32 %v7330_v24, 0.0  ;;  %v7242_v32 = vadd.f32 %v7241_v39, %v7209_v56  ;;  %v7820_v36 = vpop.f32.mrf.mxu1  ;;  %v8860_v1 = vsel %vm19390_vm8, %v8855_v57, %v18173_v47  ;;  %v18197_v26 = vor.u32 %v8209_v44, %v19391_v14  ;;  %9383 = vmatpush.bf16.msra.mxu2 %v14346_v55  ;;  %v14337_v55 = vld [vmem:[#allocation8] sm:$0xff]  ;;  %v14445_v14 = vld [vmem:[#allocation8 + $0xf8] sm:$0xff]  ;;  %vm19412_vm8 = vmmov %vm19405_vm2 }
 0x496   : > { %v8933_v56 = vrot.slane %v8860_v1, 1 }
 0x497   : > { %v14559_v46 = vpack.c.bf16 %v7339_v62, %v7338_v33  ;;  %v7253_v5 = vadd.f32 %v7242_v32, %v17962_v2  ;;  %8509 = vmatmul.bf16.gmra.mxu0 %v19389_v23  ;;  %v7853_v45 = vpop.f32.mrf.mxu2  ;;  %v14353_v23 = vld [vmem:[#allocation8 + $0x80] sm:$0xff] }
 0x498   : > { %8542 = vmatmul.bf16.gmra.mxu1 %v8292_v51  ;;  %v7854_v34 = vadd.f32 %v7853_v45, %v7820_v36  ;;  %v8934_v62 = vsel %vm685_vm1, %v8929_v12, %v8933_v56  ;;  %v14338_v36 = vld [vmem:[#allocation8 + $0x8] sm:$0xff]  ;;  %v8295_v51 = vrot.slane %v18197_v26, 2  ;;  %9417 = vmatpush.bf16.msra.mxu3 %v14353_v23 }
 0x499   : > { %14711 = vst [vmem:[%s18025_s20 + $0x18] sm:$0xff] %v14559_v46   ;;  %v7263_v53 = vadd.f32 %v17993_v40, %v7253_v5  ;;  %9350 = vmatpush.bf16.msra.mxu1 %v14338_v36  ;;  %v14378_v46 = vld [vmem:[#allocation8 + $0x148] sm:$0xff]  ;;  %v14345_v5 = vld [vmem:[#allocation8 + $0x40] sm:$0xff]  ;;  %v14395_v36 = vld [vmem:[#allocation8 + $0x1b8] sm:$0xff] }
 0x49a   : > { %v7883_v2 = vpop.f32.mrf.mxu3  ;;  %9173 = vmatpush.bf16.msra.mxu0 %v14378_v46  ;;  %9384 = vmatpush.bf16.msra.mxu2 %v14345_v5  ;;  %v14722_v46 = vld [vmem:[#allocation2 + $0x48] sm:$0xff]  }
 0x49b   : > { %v7331_v54 = vadd.f32 %v7313_v50, %v7263_v53  ;;  %v18192_v39 = vadd.f32 %v7883_v2, %v7851_v43  ;;  %v8937_v43 = vrot.slane %v8836_v17, 1  ;;  %v19392_v53 = vld [vmem:[#allocation48_spill] sm:$0xff] }
 0x49c   : > { %v7243_v24 = vpop.f32.mrf.mxu0  ;;  %v19393_v1 = vrot.slane %v19392_v53, 2  ;;  %10411 = vmatpush.bf16.msrb.mxu3 %v14445_v14  ;;  %v14444_v53 = vld [vmem:[#allocation8 + $0xf0] sm:$0xff]  ;;  %v14401_v14 = vld [vmem:[#allocation8 + $0x1e8] sm:$0xff] }
 0x49d   : > { %v7340_v61 = vmax.f32 %v7331_v54, 0.0  ;;  %v7822_v27 = vpop.f32.mrf.mxu1  ;;  %v8938_v50 = vsel %vm685_vm1, %v18154_v19, %v8937_v43  ;;  %9351 = vmatpush.bf16.msra.mxu1 %v14337_v55 }
 0x49e   : > { %v8296_v45 = vsel %vm19394_vm7, %v19393_v1, %v8295_v51  ;;  %9174 = vmatpush.bf16.msra.mxu0 %v14377_v10  ;;  %vm19413_vm7 = vmmov %vm19410_vm0 }
 0x49f   : > { %v7349_v33 = vpack.c.bf16 %v7340_v61, %v7340_v61  ;;  %9152 = vmatmul.bf16.gmra.mxu3 %v8934_v62  ;;  %v7855_v32 = vpop.f32.mrf.mxu2 }
 0x4a0   : > { %v14403_v32 = vld [vmem:[#allocation8 + $0x1f8] sm:$0xff]  ;;  %10412 = vmatpush.bf16.msrb.mxu3 %v14444_v53  ;;  %v14408_v53 = vld [vmem:[#allocation8 + $0x220] sm:$0xff] }
 0x4a1   : > { %7358 = vst [vmem:[%s18025_s20 + $0x20] sm:$0xf] %v7349_v33  ;;  %9801 = vmatpush.bf16.msrb.mxu1 %v14403_v32 }
 0x4a2   : > { %v7886_v7 = vpop.f32.mrf.mxu3  ;;  %9768 = vmatpush.bf16.msrb.mxu0 %v14395_v36  ;;  %v14724_v36 = vld [vmem:[#allocation2 + $0x48] sm:$0xf0] }
 0x4a3   : > { %v18206_v57 = vadd.f32 %v7886_v7, %v7854_v34 }
 0x4a4   : > { %v8043_v63 = vpop.f32.mrf.mxu0  ;;  %9124 = vmatmul.bf16.gmra.mxu2 %v8938_v50 }
 0x4a5   : > { %v8044_v11 = vadd.f32 %v8043_v63, %v18013_v29  ;;  %v8076_v12 = vpop.f32.mrf.mxu1  ;;  %v8863_v29 = vor.u32 %v8861_v22, %v18173_v47  ;;  %v14411_v47 = vld [vmem:[#allocation8 + $0x238] sm:$0xff] }
 0x4a6   : > { %9834 = vmatpush.bf16.msrb.mxu2 %v14411_v47 }
 0x4a7   : > { %v8077_v37 = vadd.f32 %v8076_v12, %v8044_v11  ;;  %8514 = vmatmul.bf16.gmra.mxu0 %v8296_v45  ;;  %v8109_v34 = vpop.f32.mrf.mxu2  ;;  %v8939_v24 = vrot.slane %v8863_v29, 1  ;;  %v8714_v11 = vshll.u32 %v14722_v46, 16  ;;  %v18233_v45 = vld [vmem:[#allocation2 + $0x50] sm:$0xff]   ;;  %v14402_v29 = vld [vmem:[#allocation8 + $0x1f0] sm:$0xff] }
 0x4a8   : > { %8547 = vmatmul.bf16.gmra.mxu1 %v8298_v41 }
 0x4a9   : > { %v18219_v54 = vadd.f32 %v8109_v34, %v8077_v37  ;;  %v8940_v48 = vsel %vm685_vm1, %v8933_v56, %v8939_v24  ;;  %v8712_v37 = vshrl.u32 %v14722_v46, 16  ;;  %v14394_v34 = vld [vmem:[#allocation8 + $0x1b0] sm:$0xff]  ;;  %9802 = vmatpush.bf16.msrb.mxu1 %v14402_v29  ;;  %v8931_v29 = vrot.slane %v18170_v0, 1 }
 0x4aa   : > { %v7888_v2 = vpop.f32.mrf.mxu3  ;;  %9769 = vmatpush.bf16.msrb.mxu0 %v14394_v34 }
 0x4ab   : > { %v8927_v2 = vrot.slane %v18105_v31, 1 }
 0x4ac   : > { %v8045_v44 = vpop.f32.mrf.mxu0 }
 0x4ad   : > { %v8046_v61 = vadd.f32 %v8045_v44, %v18034_v42  ;;  %v8078_v27 = vpop.f32.mrf.mxu1  ;;  %v14410_v42 = vld [vmem:[#allocation8 + $0x230] sm:$0xff]  ;;  %9803 = vmatpush.bf16.msrb.mxu1 %v14401_v14  ;;  %v8932_v14 = vsel %vm685_vm1, %v8927_v2, %v8931_v29 }
 0x4ae   : > { %9835 = vmatpush.bf16.msrb.mxu2 %v14410_v42  ;;  %v14725_v42 = vld [vmem:[#allocation2 + $0x48] sm:$0xe] }
 0x4af   : > { %v8079_v6 = vadd.f32 %v8078_v27, %v8046_v61  ;;  %9157 = vmatmul.bf16.gmra.mxu3 %v8940_v48  ;;  %v8111_v17 = vpop.f32.mrf.mxu2  ;;  %v19396_v61 = vld [vmem:[#allocation49_spill] sm:$0xff]  ;;  %v14443_v48 = vld [vmem:[#allocation8 + $0xe8] sm:$0xff] }
 0x4b0   : > { %v8926_v27 = vrot.slane %v19396_v61, 1  ;;  %10413 = vmatpush.bf16.msrb.mxu3 %v14443_v48  ;;  %v14400_v61 = vld [vmem:[#allocation8 + $0x1e0] sm:$0xff] }
 0x4b1   : > { %v18223_v26 = vadd.f32 %v8111_v17, %v8079_v6  ;;  %v14409_v6 = vld [vmem:[#allocation8 + $0x228] sm:$0xff]  ;;  %9804 = vmatpush.bf16.msrb.mxu1 %v14400_v61 }
 0x4b2   : > { %v18225_v33 = vpop.f32.mrf.mxu3  ;;  %9836 = vmatpush.bf16.msrb.mxu2 %v14409_v6  ;;  %v14407_v6 = vld [vmem:[#allocation8 + $0x218] sm:$0xff]  ;;  %v14714_v61 = vld [vmem:[%s15153_s30 + $0x30] sm:$0xff]  }
 0x4b4   : > { %v8048_v62 = vpop.f32.mrf.mxu0  ;;  %9129 = vmatmul.bf16.gmra.mxu2 %v8937_v43  ;;  %v8719_v43 = vshll.u32 %v18233_v45, 16 }
 0x4b5   : > { %v8049_v7 = vadd.f32 %v8048_v62, %v18053_v15  ;;  %v8081_v63 = vpop.f32.mrf.mxu1  ;;  %v8928_v62 = vsel %vm685_vm1, %v8926_v27, %v8927_v2  ;;  %v14392_v27 = vld [vmem:[#allocation8 + $0x1a0] sm:$0xff] }
 0x4b6   : > { %v8721_v41 = vrot.slane %v8719_v43, 1  ;;  %9837 = vmatpush.bf16.msrb.mxu2 %v14408_v53  ;;  %v14399_v53 = vld [vmem:[#allocation8 + $0x1d8] sm:$0xff] }
 0x4b7   : > { %v8082_v56 = vadd.f32 %v8081_v63, %v8049_v7  ;;  %8519 = vmatmul.bf16.gmra.mxu0 %v8295_v51  ;;  %v8114_v5 = vpop.f32.mrf.mxu2  ;;  %v14726_v63 = vor.u32 %v14725_v42, %v14724_v36  ;;  %9805 = vmatpush.bf16.msrb.mxu1 %v14399_v53 }
 0x4b8   : > { %8552 = vmatmul.bf16.gmra.mxu1 %v8297_v25  ;;  %v8716_v25 = vrot.slane %v8714_v11, 1 }
 0x4b9   : > { %v18228_v23 = vadd.f32 %v8114_v5, %v8082_v56  ;;  %v8759_v5 = vrot.slane %v18233_v45, 1  ;;  %v8758_v43 = vrot.slane %v14726_v63, 1 }
 0x4ba   : > { %v18230_v12 = vpop.f32.mrf.mxu3  ;;  %v8717_v55 = vor.u32 %v8716_v25, %v8712_v37  ;;  %v14442_v37 = vld [vmem:[#allocation8 + $0xe0] sm:$0xff]  ;;  %9838 = vmatpush.bf16.msrb.mxu2 %v14407_v6  ;;  %v14571_v6 = vunpack.c.l.bf16 %v14714_v61 }
 0x4bb   : > { %10414 = vmatpush.bf16.msrb.mxu3 %v14442_v37 }
 0x4bc   : > { %v8050_v50 = vpop.f32.mrf.mxu0  ;;  %v8722_v47 = vsel %vm19397_vm10, %v8717_v55, %v8721_v41  ;;  %vm19415_vm10 = vmmov %vm19410_vm0 }
 0x4bd   : > { %v8051_v1 = vadd.f32 %v8050_v50, %v18081_v13  ;;  %v8083_v15 = vpop.f32.mrf.mxu1  ;;  %v14393_v50 = vld [vmem:[#allocation8 + $0x1a8] sm:$0xff] }
 0x4be   : > { %9770 = vmatpush.bf16.msrb.mxu0 %v14393_v50 }
 0x4bf   : > { %v8084_v51 = vadd.f32 %v8083_v15, %v8051_v1  ;;  %9162 = vmatmul.bf16.gmra.mxu3 %v8939_v24  ;;  %v8116_v22 = vpop.f32.mrf.mxu2 }
 0x4c1   : > { %v18237_v44 = vadd.f32 %v8116_v22, %v8084_v51  ;;  %v8760_v51 = vsel %vm685_vm1, %v8758_v43, %v8759_v5  ;;  %v8723_v22 = vshrl.u32 %v18233_v45, 16 }
 0x4c2   : > { %v18239_v13 = vpop.f32.mrf.mxu3  ;;  %9771 = vmatpush.bf16.msrb.mxu0 %v14392_v27 }
 0x4c3   : > { %v8725_v55 = vor.u32 %v8723_v22, %v8721_v41 }
 0x4c4   : > { %v8053_v10 = vpop.f32.mrf.mxu0  ;;  %9385 = vmatmul.bf16.vlgmr.msra.gmra.mxu2 %v8722_v47  ;;  %v14441_v47 = vld [vmem:[#allocation8 + $0xd8] sm:$0xff] }
 0x4c5   : > { %v8054_v24 = vadd.f32 %v8053_v10, %v18110_v28  ;;  %v8086_v17 = vpop.f32.mrf.mxu1  ;;  %10415 = vmatpush.bf16.msrb.mxu3 %v14441_v47 }
 0x4c7   : > { %v8087_v32 = vadd.f32 %v8086_v17, %v8054_v24  ;;  %9175 = vmatmul.bf16.vlgmr.msra.gmra.mxu0 %v8928_v62  ;;  %v8119_v7 = vpop.f32.mrf.mxu2  ;;  %v8730_v17 = vsel %vm19398_vm11, %v8725_v55, %v18048_v35  ;;  %vm19416_vm11 = vmmov %vm19410_vm0 }
 0x4c8   : > { %9352 = vmatmul.bf16.vlgmr.msra.gmra.mxu1 %v14722_v46 }
 0x4c9   : > { %v18245_v56 = vadd.f32 %v8119_v7, %v8087_v32 }
 0x4ca   : > { %v18247_v28 = vpop.f32.mrf.mxu3 }
 0x4cc   : > { %v8055_v11 = vpop.f32.mrf.mxu0 }
 0x4cd   : > { %v8056_v1 = vadd.f32 %v8055_v11, %v18139_v30  ;;  %v8088_v15 = vpop.f32.mrf.mxu1 }
 0x4cf   : > { %v8089_v46 = vadd.f32 %v8088_v15, %v8056_v1  ;;  %9418 = vmatmul.bf16.vlgmr.msra.gmra.mxu3 %v8760_v51  ;;  %v8121_v25 = vpop.f32.mrf.mxu2  ;;  %v14406_v1 = vld [vmem:[#allocation8 + $0x210] sm:$0xff] }
 0x4d0   : > { %9839 = vmatpush.bf16.msrb.mxu2 %v14406_v1 }
 0x4d1   : > { %v18254_v34 = vadd.f32 %v8121_v25, %v8089_v46  ;;  %v14390_v25 = vld [vmem:[#allocation8 + $0x190] sm:$0xff] }
 0x4d2   : > { %v18256_v10 = vpop.f32.mrf.mxu3 }
 0x4d4   : > { %v8058_v30 = vpop.f32.mrf.mxu0  ;;  %9390 = vmatmul.bf16.gmra.mxu2 %v8730_v17  ;;  %v14397_v17 = vld [vmem:[#allocation8 + $0x1c8] sm:$0xff] }
 0x4d5   : > { %v8059_v48 = vadd.f32 %v8058_v30, %v18175_v52  ;;  %v8091_v24 = vpop.f32.mrf.mxu1  ;;  %v8871_v52 = vrot.slane %v18137_v38, 1  ;;  %v14391_v38 = vld [vmem:[#allocation8 + $0x198] sm:$0xff]  ;;  %v8575_v30 = vld [vmem:[%s15153_s30 + $0x2c] sm:$0xe] }
 0x4d6   : > { %9772 = vmatpush.bf16.msrb.mxu0 %v14391_v38 }
 0x4d7   : > { %v8092_v0 = vadd.f32 %v8091_v24, %v8059_v48  ;;  %9180 = vmatmul.bf16.gmra.mxu0 %v8932_v14  ;;  %v8124_v41 = vpop.f32.mrf.mxu2  ;;  %v8872_v7 = vsel %vm685_vm1, %v18154_v19, %v8871_v52  ;;  %v14440_v19 = vld [vmem:[#allocation8 + $0xd0] sm:$0xff]  ;;  %v8585_v48 = vunpack.c.l.bf16 %v8575_v30  ;;  %v14439_v24 = vld [vmem:[#allocation8 + $0xc8] sm:$0xff]  ;;  %v19400_v30 = vld [vmem:[#allocation53_spill] sm:$0xff] }
 0x4d8   : > { %9357 = vmatmul.bf16.gmra.mxu1 %v18233_v45  ;;  %v8762_v45 = vsel %vm685_vm1, %v8759_v5, %v17420_v8  ;;  %v8935_v50 = vrot.slane %v8872_v7, 1  ;;  %v14398_v5 = vld [vmem:[#allocation8 + $0x1d0] sm:$0xff]  ;;  %10416 = vmatpush.bf16.msrb.mxu3 %v14440_v19  ;;  %v14404_v7 = vld [vmem:[#allocation8 + $0x200] sm:$0xff] }
 0x4d9   : > { %v18263_v62 = vadd.f32 %v8124_v41, %v8092_v0  ;;  %9806 = vmatpush.bf16.msrb.mxu1 %v14398_v5 }
 0x4da   : > { %v18266_v32 = vpop.f32.mrf.mxu3  ;;  %v8936_v51 = vsel %vm685_vm1, %v8931_v29, %v8935_v50  ;;  %9773 = vmatpush.bf16.msrb.mxu0 %v14390_v25 }
 0x4dc   : > { %v8060_v35 = vpop.f32.mrf.mxu0  ;;  %10417 = vmatpush.bf16.msrb.mxu3 %v14439_v24  ;;  %v18310_v24 = vld [vmem:[#allocation2 + $0x60] sm:$0xff] }
 0x4dd   : > { %v8061_v36 = vadd.f32 %v8060_v35, %v18192_v39  ;;  %v8093_v2 = vpop.f32.mrf.mxu1  ;;  %9807 = vmatpush.bf16.msrb.mxu1 %v14397_v17  ;;  %v14389_v35 = vld [vmem:[#allocation8 + $0x188] sm:$0xff] }
 0x4de   : > { %9774 = vmatpush.bf16.msrb.mxu0 %v14389_v35 }
 0x4df   : > { %v8094_v42 = vadd.f32 %v8093_v2, %v8061_v36  ;;  %9423 = vmatmul.bf16.gmra.mxu3 %v8762_v45  ;;  %v8126_v63 = vpop.f32.mrf.mxu2  ;;  %v8605_v36 = vrot.slane %v8585_v48, 3  ;;  %v18293_v2 = vrot.slane %v14571_v6, 3  ;;  %v14438_v45 = vld [vmem:[#allocation8 + $0xc0] sm:$0xff] }
 0x4e0   : > { %10418 = vmatpush.bf16.msrb.mxu3 %v14438_v45  ;;  %v19401_v6 = vld [vmem:[#allocation13_spill] sm:$0xff] }
 0x4e1   : > { %v18273_v11 = vadd.f32 %v8126_v63, %v8094_v42  ;;  %v19399_v42 = vld [vmem:[#allocation54_spill] sm:$0xff]  ;;  %v14845_v63 = vld [vmem:[#allocation2 + $0x60] sm:$0xff]  ;;  %v8607_v38 = vsel %vm7294_vm5, %v8605_v36, %v18293_v2  ;;  %v8747_v48 = vshrl.u32 %v19401_v6, 16 }
 0x4e2   : > { %v18275_v15 = vpop.f32.mrf.mxu3 }
 0x4e4   : > { %v8063_v43 = vpop.f32.mrf.mxu0  ;;  %9395 = vmatmul.bf16.gmra.mxu2 %v18068_v60  ;;  %v14405_v60 = vld [vmem:[#allocation8 + $0x208] sm:$0xff] }
 0x4e5   : > { %v8064_v39 = vadd.f32 %v8063_v43, %v18206_v57  ;;  %v8096_v46 = vpop.f32.mrf.mxu1  ;;  %9840 = vmatpush.bf16.msrb.mxu2 %v14405_v60 }
 0x4e7   : > { %v8097_v8 = vadd.f32 %v8096_v46, %v8064_v39  ;;  %9185 = vmatmul.bf16.gmra.mxu0 %v8936_v51  ;;  %v8129_v22 = vpop.f32.mrf.mxu2  ;;  %v14396_v51 = vld [vmem:[#allocation8 + $0x1c0] sm:$0xff] }
 0x4e8   : > { %9362 = vmatmul.bf16.gmra.mxu1 %v18040_v4  ;;  %v18288_v4 = vrot.slane %v8871_v52, 1 }
 0x4e9   : > { %v18281_v57 = vadd.f32 %v8129_v22, %v8097_v8  ;;  %9841 = vmatpush.bf16.msrb.mxu2 %v14404_v7  ;;  %v9444_v8 = vld [vmem:[#allocation2 + $0x5c] sm:$0xf]  ;;  %9808 = vmatpush.bf16.msrb.mxu1 %v14396_v51  ;;  %v9443_v22 = vld [vmem:[#allocation2 + $0x58] sm:$0xc] }
 0x4ea   : > { %v18283_v37 = vpop.f32.mrf.mxu3  ;;  %v9465_v17 = vunpack.c.l.b16 %v9443_v22 }
 0x4ec   : > { %v8065_v29 = vpop.f32.mrf.mxu0 }
 0x4ed   : > { %v8098_v55 = vpop.f32.mrf.mxu1  ;;  %v14572_v29 = vunpack.c.h.bf16 %v14714_v61 }
 0x4ee   : > { %v9466_v55 = vunpack.c.l.b16 %v9444_v8 }
 0x4ef   : > { %9428 = vmatmul.bf16.gmra.mxu3 %v18105_v31  ;;  %v8131_v27 = vpop.f32.mrf.mxu2  ;;  %v8942_v31 = vsel %vm685_vm1, %v8935_v50, %v18288_v4  ;;  %v8608_v61 = vrot.slane %v14572_v29, 3 }
 0x4f2   : > { %v18290_v47 = vpop.f32.mrf.mxu3 }
 0x4f4   : > { %v8500_v14 = vpop.f32.mrf.mxu0  ;;  %9400 = vmatmul.bf16.gmra.mxu2 %v19399_v42 }
 0x4f5   : > { %v8501_v0 = vadd.f32 %v8500_v14, %v18225_v33  ;;  %v8533_v41 = vpop.f32.mrf.mxu1  ;;  %v14388_v14 = vld [vmem:[#allocation8 + $0x180] sm:$0xff] }
 0x4f6   : > { %9775 = vmatpush.bf16.msrb.mxu0 %v14388_v14 }
 0x4f7   : > { %v8534_v52 = vadd.f32 %v8533_v41, %v8501_v0  ;;  %9190 = vmatmul.bf16.gmra.mxu0 %v8942_v31  ;;  %v9110_v53 = vpop.f32.mrf.mxu2  ;;  %v14421_v0 = vld [vmem:[#allocation8 + $0x38] sm:$0xff] }
 0x4f8   : > { %9367 = vmatmul.bf16.gmra.mxu1 %v14845_v63  ;;  %v14429_v41 = vld [vmem:[#allocation8 + $0x78] sm:$0xff]  ;;  %10654 = vmatpush.bf16.msra.mxu2 %v14421_v0  ;;  %v9526_v0 = vrot.slane %v18310_v24, 1 }
 0x4f9   : > { %v8557_v33 = vadd.f32 %v8534_v52, %v18219_v54  ;;  %v18304_v54 = vld [vmem:[%s15153_s30 + $0x38] sm:$0xff]   ;;  %v18314_v52 = vpack.c.b16 %v9466_v55, %v9465_v17  ;;  %10687 = vmatpush.bf16.msra.mxu3 %v14429_v41 }
 0x4fa   : > { %v8489_v1 = vpop.f32.mrf.mxu3  ;;  %v19402_v31 = vld [vmem:[#allocation52_spill] sm:$0xff] }
 0x4fb   : > { %v8566_v50 = vadd.f32 %v17993_v40, %v8557_v33  ;;  %v8749_v42 = vor.u32 %v8747_v48, %v19402_v31  ;;  %v9454_v33 = vld [vmem:[#allocation2 + $0x58] sm:$0x8]  ;;  %v9491_v1 = vshll.u32 %v18310_v24, 16  ;;  %v9486_v51 = vshll.u32 %v18314_v52, 16 }
 0x4fc   : > { %v8502_v43 = vpop.f32.mrf.mxu0  ;;  %v9484_v31 = vshrl.u32 %v18314_v52, 16 }
 0x4fd   : > { %v8633_v39 = vadd.f32 %v8607_v38, %v8566_v50  ;;  %v8503_v46 = vadd.f32 %v8502_v43, %v18230_v12  ;;  %v8535_v19 = vpop.f32.mrf.mxu1  ;;  %v14575_v12 = vunpack.c.l.bf16 %v18304_v54  ;;  %v8702_v50 = vpack.c.b16 %v19377_v49, %v19377_v49 }
 0x4fe   : > { %v8609_v49 = vsel %vm7294_vm5, %v18293_v2, %v8608_v61  ;;  %v9493_v29 = vrot.slane %v9491_v1, 1  ;;  %v9488_v17 = vrot.slane %v9486_v51, 1 }
 0x4ff   : > { %v8642_v5 = vmax.f32 %v8633_v39, 0.0  ;;  %v8536_v25 = vadd.f32 %v8535_v19, %v8503_v46  ;;  %9433 = vmatmul.bf16.gmra.mxu3 %v19400_v30  ;;  %v9112_v27 = vpop.f32.mrf.mxu2  ;;  %v18321_v38 = vrot.slane %v14575_v12, 3  ;;  %v14461_v39 = vld [vmem:[#allocation8 + $0x178] sm:$0xff]  ;;  %v14420_v19 = vld [vmem:[#allocation8 + $0x30] sm:$0xff] }
 0x500   : > { %v14453_v46 = vld [vmem:[#allocation8 + $0x138] sm:$0xff]  ;;  %10477 = vmatpush.bf16.msra.mxu1 %v14461_v39  ;;  %10655 = vmatpush.bf16.msra.mxu2 %v14420_v19  ;;  %v19404_v19 = vrot.slane %v19401_v6, 1 }
 0x501   : > { %v8651_v60 = vpack.c.bf16 %v8642_v5, %v8642_v5  ;;  %v8558_v40 = vadd.f32 %v8536_v25, %v18223_v26  ;;  %v18316_v26 = vld [vmem:[#allocation2 + $0x68] sm:$0xff]  ;;  %v9523_v5 = vunpack.c.l.b16 %v9454_v33  ;;  %10444 = vmatpush.bf16.msra.mxu0 %v14453_v46 }
 0x502   : > { %v9143_v35 = vpop.f32.mrf.mxu3  ;;  %v9499_v8 = vshll.u32 %v18316_v26, 16  ;;  %v9528_v30 = vrot.slane %v18316_v26, 1 }
 0x503   : > { %8660 = vst [vmem:[%s18025_s20 + $0x24] sm:$0xf] %v8651_v60  ;;  %v18318_v7 = vadd.f32 %v9143_v35, %v9110_v53  ;;  %v18329_v53 = vld [vmem:[%s18995_s3 + $0x1] ss:$0 sm:$0xff]  ;;  %v9524_v60 = vpack.c.b16 %v9466_v55, %v9523_v5 }
 0x504   : > { %v8505_v36 = vpop.f32.mrf.mxu0  ;;  %9405 = vmatmul.bf16.gmra.mxu2 %v8749_v42  ;;  %v18343_v14 = vrot.slane %v9499_v8, 1 }
 0x505   : > { %v8506_v45 = vadd.f32 %v8505_v36, %v18239_v13  ;;  %v8538_v63 = vpop.f32.mrf.mxu1  ;;  %v8567_v13 = vadd.f32 %v18329_v53, %v8558_v40  ;;  %v14428_v36 = vld [vmem:[#allocation8 + $0x70] sm:$0xff] }
 0x506   : > { %10688 = vmatpush.bf16.msra.mxu3 %v14428_v36  ;;  %v14419_v36 = vld [vmem:[#allocation8 + $0x28] sm:$0xff] }
 0x507   : > { %v8539_v43 = vadd.f32 %v8538_v63, %v8506_v45  ;;  %9195 = vmatmul.bf16.gmra.mxu0 %v18288_v4  ;;  %v9115_v22 = vpop.f32.mrf.mxu2  ;;  %v8611_v4 = vsel %vm7294_vm5, %v8608_v61, %v18321_v38  ;;  %v8634_v2 = vadd.f32 %v8609_v49, %v8567_v13  ;;  %v9525_v45 = vrot.slane %v9524_v60, 1  ;;  %10656 = vmatpush.bf16.msra.mxu2 %v14419_v36 }
 0x508   : > { %9372 = vmatmul.bf16.gmra.mxu1 %v8702_v50  ;;  %v18353_v63 = vsel %vm685_vm1, %v9526_v0, %v9528_v30  ;;  %v9489_v13 = vor.u32 %v9488_v17, %v9484_v31  ;;  %v18374_v17 = vld [vmem:[#allocation2 + $0x70] sm:$0xff] }
 0x509   : > { %v8559_v25 = vadd.f32 %v8539_v43, %v18228_v23  ;;  %v9495_v23 = vshrl.u32 %v18310_v24, 16  ;;  %v8643_v33 = vmax.f32 %v8634_v2, 0.0  ;;  %v9527_v39 = vsel %vm685_vm1, %v9525_v45, %v9526_v0  ;;  %v14460_v2 = vld [vmem:[#allocation8 + $0x170] sm:$0xff]  ;;  %v14427_v45 = vld [vmem:[#allocation8 + $0x68] sm:$0xff] }
 0x50a   : > { %v9145_v12 = vpop.f32.mrf.mxu3  ;;  %v9589_v8 = vrot.slane %v18353_v63, 2  ;;  %v9588_v60 = vrot.slane %v9527_v39, 2  ;;  %10478 = vmatpush.bf16.msra.mxu1 %v14460_v2  ;;  %10689 = vmatpush.bf16.msra.mxu3 %v14427_v45  ;;  %v9503_v2 = vshrl.u32 %v18316_v26, 16 }
 0x50b   : > { %v8568_v40 = vadd.f32 %v18329_v53, %v8559_v25  ;;  %v18346_v41 = vadd.f32 %v9145_v12, %v9112_v27  ;;  %v9497_v42 = vor.u32 %v9495_v23, %v9493_v29  ;;  %v18356_v27 = vld [vmem:[%s15153_s30 + $0x40] sm:$0xff]   ;;  %v9494_v25 = vsel %vm19405_vm2, %v9489_v13, %v9493_v29  ;;  %vm19418_vm2 = vmmov %vm19410_vm0 }
 0x50c   : > { %v8507_v48 = vpop.f32.mrf.mxu0  ;;  %v14579_v5 = vunpack.c.l.bf16 %v18356_v27  ;;  %v9590_v29 = vsel %vm19364_vm4, %v9588_v60, %v9589_v8  ;;  %vm19419_vm4 = vmmov %vm19408_vm3 }
 0x50d   : > { %v8635_v35 = vadd.f32 %v8611_v4, %v8568_v40  ;;  %v8508_v55 = vadd.f32 %v8507_v48, %v18247_v28  ;;  %v8540_v61 = vpop.f32.mrf.mxu1  ;;  %v14576_v28 = vunpack.c.h.bf16 %v18304_v54  ;;  %v18361_v43 = vsel %vm19403_vm15, %v9497_v42, %v18343_v14  ;;  %v14452_v40 = vld [vmem:[#allocation8 + $0x130] sm:$0xff]  ;;  %vm19417_vm15 = vmmov %vm19410_vm0 }
 0x50e   : > { %v9583_v54 = vrot.slane %v18310_v24, 2  ;;  %v9586_v4 = vrot.slane %v18361_v43, 2  ;;  %10445 = vmatpush.bf16.msra.mxu0 %v14452_v40  ;;  %v18382_v31 = vrot.slane %v14579_v5, 3 }
 0x50f   : > { %v8644_v50 = vmax.f32 %v8635_v35, 0.0  ;;  %v8541_v1 = vadd.f32 %v8540_v61, %v8508_v55  ;;  %9438 = vmatmul.bf16.gmra.mxu3 %v19404_v19  ;;  %v9117_v51 = vpop.f32.mrf.mxu2  ;;  %v8612_v6 = vrot.slane %v14576_v28, 3  ;;  %v9585_v55 = vrot.slane %v9494_v25, 2  ;;  %v10130_v61 = vld [vmem:[#allocation2 + $0x74] sm:$0xe] }
 0x510   : > { %v9507_v28 = vshll.u32 %v18374_v17, 16 }
 0x511   : > { %v14588_v46 = vpack.c.bf16 %v8644_v50, %v8643_v33  ;;  %v8560_v49 = vadd.f32 %v8541_v1, %v18237_v44  ;;  %v9582_v44 = vrot.slane %v18314_v52, 2  ;;  %v9587_v42 = vsel %vm19407_vm14, %v9585_v55, %v9586_v4  ;;  %v14459_v33 = vld [vmem:[#allocation8 + $0x168] sm:$0xff]  ;;  %vm19421_vm14 = vmmov %vm19408_vm3 }
 0x512   : > { %v9148_v12 = vpop.f32.mrf.mxu3  ;;  %v8613_v50 = vsel %vm7294_vm5, %v18321_v38, %v8612_v6  ;;  %v10140_v1 = vunpack.c.l.b16 %v10130_v61  ;;  %10479 = vmatpush.bf16.msra.mxu1 %v14459_v33  ;;  %v9505_v55 = vor.u32 %v9503_v2, %v18343_v14  ;;  %v14580_v14 = vunpack.c.h.bf16 %v18356_v27 }
 0x513   : > { %14718 = vst [vmem:[%s18025_s20 + $0x28] sm:$0xff] %v14588_v46   ;;  %v18376_v23 = vadd.f32 %v9148_v12, %v9115_v22  ;;  %v9584_v52 = vsel %vm19406_vm12, %v9582_v44, %v9583_v54  ;;  %v8569_v22 = vadd.f32 %v18329_v53, %v8560_v49  ;;  %v8615_v46 = vsel %vm7294_vm5, %v8612_v6, %v18382_v31  ;;  %v14451_v44 = vld [vmem:[#allocation8 + $0x128] sm:$0xff]  ;;  %vm19420_vm12 = vmmov %vm19408_vm3 }
 0x514   : > { %v8510_v48 = vpop.f32.mrf.mxu0  ;;  %9842 = vmatmul.bf16.vlgmr.msrb.gmra.mxu2 %v9590_v29  ;;  %v18398_v19 = vpack.c.b16 %v17782_v21, %v10140_v1  ;;  %v9530_v49 = vrot.slane %v18374_v17, 1  ;;  %10446 = vmatpush.bf16.msra.mxu0 %v14451_v44  ;;  %v14458_v44 = vld [vmem:[#allocation8 + $0x160] sm:$0xff] }
 0x515   : > { %v8511_v0 = vadd.f32 %v8510_v48, %v18256_v10  ;;  %v8543_v35 = vpop.f32.mrf.mxu1  ;;  %v8636_v5 = vadd.f32 %v8613_v50, %v8569_v22 }
 0x516   : > { %v18415_v29 = vsel %vm685_vm1, %v9528_v30, %v9530_v49  ;;  %10480 = vmatpush.bf16.msra.mxu1 %v14458_v44 }
 0x517   : > { %v8544_v10 = vadd.f32 %v8543_v35, %v8511_v0  ;;  %9776 = vmatmul.bf16.vlgmr.msrb.gmra.mxu0 %v9584_v52  ;;  %v9120_v39 = vpop.f32.mrf.mxu2  ;;  %v9453_v0 = vld [vmem:[#allocation2 + $0x7c] sm:$0x7]  ;;  %v10231_v35 = vrot.slane %v18398_v19, 1  ;;  %v8645_v61 = vmax.f32 %v8636_v5, 0.0  ;;  %v18418_v52 = vld [vmem:[%s15153_s30 + $0x48] sm:$0xff]   ;;  %v9595_v50 = vrot.slane %v18415_v29, 2 }
 0x518   : > { %9809 = vmatmul.bf16.vlgmr.msrb.gmra.mxu1 %v9587_v42  ;;  %v9481_v30 = vunpack.c.l.b16 %v9453_v0  ;;  %v14583_v1 = vunpack.c.l.bf16 %v18418_v52  ;;  %v14426_v5 = vld [vmem:[#allocation8 + $0x60] sm:$0xff] }
 0x519   : > { %v8561_v13 = vadd.f32 %v8544_v10, %v18245_v56  ;;  %v18403_v56 = vrot.slane %v9507_v28, 1  ;;  %v10232_v22 = vsel %vm685_vm1, %v10231_v35, %v17803_v9  ;;  %v9591_v28 = vrot.slane %v18316_v26, 2  ;;  %10690 = vmatpush.bf16.msra.mxu3 %v14426_v5  ;;  %v14450_v0 = vld [vmem:[#allocation8 + $0x120] sm:$0xff]  ;;  %v14417_v35 = vld [vmem:[#allocation8 + $0x18] sm:$0xff] }
 0x51a   : > { %v9150_v25 = vpop.f32.mrf.mxu3  ;;  %10447 = vmatpush.bf16.msra.mxu0 %v14450_v0 }
 0x51b   : > { %v8570_v38 = vadd.f32 %v18329_v53, %v8561_v13  ;;  %v18405_v40 = vadd.f32 %v9150_v25, %v9117_v51  ;;  %v18427_v10 = vsel %vm19408_vm3, %v9505_v55, %v18403_v56  ;;  %v8616_v25 = vrot.slane %v14580_v14, 3 }
 0x51c   : > { %v8512_v60 = vpop.f32.mrf.mxu0  ;;  %v9593_v27 = vrot.slane %v18427_v10, 2  ;;  %v18448_v55 = vrot.slane %v14583_v1, 3  ;;  %v14457_v1 = vld [vmem:[#allocation8 + $0x158] sm:$0xff] }
 0x51d   : > { %v8637_v12 = vadd.f32 %v8615_v46, %v8570_v38  ;;  %v8513_v6 = vadd.f32 %v8512_v60, %v18266_v32  ;;  %v8545_v48 = vpop.f32.mrf.mxu1  ;;  %v18420_v32 = vld [vmem:[#allocation2 + $0x78] sm:$0xf]  ;;  %v14418_v46 = vld [vmem:[#allocation8 + $0x20] sm:$0xff]  ;;  %10481 = vmatpush.bf16.msra.mxu1 %v14457_v1  ;;  %v14456_v1 = vld [vmem:[#allocation8 + $0x150] sm:$0xff] }
 0x51e   : > { %v9473_v13 = vunpack.c.l.b16 %v18420_v32  ;;  %10657 = vmatpush.bf16.msra.mxu2 %v14418_v46 }
 0x51f   : > { %v8646_v51 = vmax.f32 %v8637_v12, 0.0  ;;  %v8546_v36 = vadd.f32 %v8545_v48, %v8513_v6  ;;  %10419 = vmatmul.bf16.vlgmr.msrb.gmra.mxu3 %v10232_v22  ;;  %v9122_v33 = vpop.f32.mrf.mxu2  ;;  %v9596_v48 = vsel %vm19409_vm13, %v9589_v8, %v9595_v50  ;;  %v9594_v8 = vsel %vm19411_vm6, %v9586_v4, %v9593_v27  ;;  %vm19422_vm13 = vmmov %vm19408_vm3 }
 0x520   : > { %v8619_v22 = vsel %vm7294_vm5, %v8616_v25, %v18448_v55 }
 0x521   : > { %v14593_v42 = vpack.c.bf16 %v8646_v51, %v8645_v61  ;;  %v8562_v45 = vadd.f32 %v8546_v36, %v18254_v34  ;;  %v18438_v34 = vpack.c.b16 %v9481_v30, %v9473_v13  ;;  %v8617_v51 = vsel %vm7294_vm5, %v18382_v31, %v8616_v25  ;;  %10482 = vmatpush.bf16.msra.mxu1 %v14456_v1 }
 0x522   : > { %v9153_v38 = vpop.f32.mrf.mxu3  ;;  %10658 = vmatpush.bf16.msra.mxu2 %v14417_v35 }
 0x523   : > { %14719 = vst [vmem:[%s18025_s20 + $0x30] sm:$0xff] %v14593_v42   ;;  %v18440_v2 = vadd.f32 %v9153_v38, %v9120_v39  ;;  %v14425_v39 = vld [vmem:[#allocation8 + $0x58] sm:$0xff]  ;;  %v8571_v61 = vadd.f32 %v18329_v53, %v8562_v45  ;;  %v9515_v24 = vshll.u32 %v18438_v34, 16  ;;  %v9532_v43 = vrot.slane %v18438_v34, 1 }
 0x524   : > { %v8515_v60 = vpop.f32.mrf.mxu0  ;;  %9847 = vmatmul.bf16.gmra.mxu2 %v9596_v48  ;;  %10691 = vmatpush.bf16.msra.mxu3 %v14425_v39  ;;  %v9511_v42 = vshrl.u32 %v18374_v17, 16  ;;  %v18497_v39 = vld [vmem:[#allocation2 + $0x90] sm:$0xff]  }
 0x525   : > { %v8516_v12 = vadd.f32 %v8515_v60, %v18275_v15  ;;  %v8548_v6 = vpop.f32.mrf.mxu1  ;;  %v9592_v15 = vsel %vm19410_vm0, %v9583_v54, %v9591_v28  ;;  %v8638_v14 = vadd.f32 %v8617_v51, %v8571_v61  ;;  %v18470_v45 = vrot.slane %v9515_v24, 1  ;;  %v14449_v61 = vld [vmem:[#allocation8 + $0x118] sm:$0xff]  ;;  %vm19423_vm0 = vmmov %vm19408_vm3 }
 0x526   : > { %v9513_v25 = vor.u32 %v9511_v42, %v18403_v56  ;;  %v18481_v60 = vsel %vm685_vm1, %v9530_v49, %v9532_v43  ;;  %v14584_v56 = vunpack.c.h.bf16 %v18418_v52  ;;  %v9597_v51 = vrot.slane %v18374_v17, 2  ;;  %10448 = vmatpush.bf16.msra.mxu0 %v14449_v61  ;;  %v14424_v42 = vld [vmem:[#allocation8 + $0x50] sm:$0xff]  ;;  %vm19424_vm6 = vmmov %vm19423_vm0 }
 0x527   : > { %v8549_v63 = vadd.f32 %v8548_v6, %v8516_v12  ;;  %9781 = vmatmul.bf16.gmra.mxu0 %v9592_v15  ;;  %v9125_v36 = vpop.f32.mrf.mxu2  ;;  %v8647_v12 = vmax.f32 %v8638_v14, 0.0  ;;  %v9601_v15 = vrot.slane %v18481_v60, 2  ;;  %v9607_v32 = vrot.slane %v9532_v43, 2  ;;  %v14447_v43 = vld [vmem:[#allocation8 + $0x108] sm:$0xff] }
 0x528   : > { %9814 = vmatmul.bf16.gmra.mxu1 %v9594_v8  ;;  %v18492_v44 = vsel %vm19412_vm8, %v9513_v25, %v18470_v45  ;;  %10692 = vmatpush.bf16.msra.mxu3 %v14424_v42  ;;  %vm19425_vm8 = vmmov %vm19423_vm0 }
 0x529   : > { %v8563_v54 = vadd.f32 %v8549_v63, %v18263_v62  ;;  %v14416_v63 = vld [vmem:[#allocation8 + $0x10] sm:$0xff]  ;;  %v9599_v52 = vrot.slane %v18492_v44, 2  ;;  %v14454_v44 = vld [vmem:[#allocation8 + $0x140] sm:$0xff] }
 0x52a   : > { %v9155_v30 = vpop.f32.mrf.mxu3  ;;  %10659 = vmatpush.bf16.msra.mxu2 %v14416_v63  ;;  %v9519_v63 = vshrl.u32 %v18438_v34, 16  ;;  %v9608_v34 = vsel %vm19416_vm11, %v9601_v15, %v9607_v32  ;;  %vm19429_vm11 = vmmov %vm19423_vm0 }
 0x52b   : > { %v8572_v4 = vadd.f32 %v18329_v53, %v8563_v54  ;;  %v18472_v62 = vadd.f32 %v9155_v30, %v9122_v33  ;;  %v8584_v33 = vld [vmem:[%s15153_s30 + $0x50] sm:$0x3]  ;;  %v8620_v54 = vrot.slane %v14584_v56, 3  ;;  %v9600_v29 = vsel %vm19415_vm10, %v9593_v27, %v9599_v52  ;;  %vm19428_vm10 = vmmov %vm19418_vm2 }
 0x52c   : > { %v8517_v31 = vpop.f32.mrf.mxu0  ;;  %v8594_v8 = vunpack.c.l.bf16 %v8584_v33 }
 0x52d   : > { %v8639_v46 = vadd.f32 %v8619_v22, %v8572_v4  ;;  %v8518_v5 = vadd.f32 %v8517_v31, %v18283_v37  ;;  %v8550_v38 = vpop.f32.mrf.mxu1  ;;  %v18487_v37 = vsel %vm685_vm1, %v17803_v9, %v17872_v18  ;;  %v9602_v31 = vsel %vm19413_vm7, %v9595_v50, %v9601_v15  ;;  %v9452_v50 = vld [vmem:[#allocation2 + $0x7c] sm:$0x3]  ;;  %vm19426_vm7 = vmmov %vm19423_vm0 }
 0x52e   : > { %v8621_v25 = vsel %vm7294_vm5, %v18448_v55, %v8620_v54 }
 0x52f   : > { %v8648_v6 = vmax.f32 %v8639_v46, 0.0  ;;  %v8551_v48 = vadd.f32 %v8550_v38, %v8518_v5  ;;  %10424 = vmatmul.bf16.gmra.mxu3 %v18487_v37  ;;  %v9127_v35 = vpop.f32.mrf.mxu2  ;;  %v14448_v46 = vld [vmem:[#allocation8 + $0x110] sm:$0xff]  ;;  %v8622_v5 = vrot.slane %v8594_v8, 3  ;;  %v14423_v8 = vld [vmem:[#allocation8 + $0x48] sm:$0xff] }
 0x530   : > { %10449 = vmatpush.bf16.msra.mxu0 %v14448_v46  ;;  %10693 = vmatpush.bf16.msra.mxu3 %v14423_v8 }
 0x531   : > { %v14598_v0 = vpack.c.bf16 %v8648_v6, %v8647_v12  ;;  %v8564_v49 = vadd.f32 %v8551_v48, %v18273_v11  ;;  %v14651_v11 = vunpack.c.l.b16 %v18497_v39  ;;  %v8623_v6 = vsel %vm7294_vm5, %v8620_v54, %v8622_v5 }
 0x532   : > { %v9158_v24 = vpop.f32.mrf.mxu3  ;;  %v9474_v48 = vunpack.c.l.b16 %v9452_v50  ;;  %v14652_v50 = vunpack.c.h.b16 %v18497_v39  ;;  %v14484_v39 = vld [vmem:[#allocation8 + $0x218] sm:$0xff] }
 0x533   : > { %14720 = vst [vmem:[%s18025_s20 + $0x38] sm:$0xff] %v14598_v0   ;;  %v18503_v14 = vadd.f32 %v9158_v24, %v9125_v36  ;;  %v9598_v36 = vsel %vm19414_vm9, %v9591_v28, %v9597_v51  ;;  %v18525_v26 = vpack.c.b16 %v14651_v11, %v17865_v16  ;;  %vm19427_vm9 = vmmov %vm19418_vm2 }
 0x534   : > { %v8520_v22 = vpop.f32.mrf.mxu0  ;;  %9852 = vmatmul.bf16.gmra.mxu2 %v9602_v31  ;;  %v18538_v24 = vpack.c.b16 %v9474_v48, %v9473_v13  ;;  %v10133_v13 = vld [vmem:[#allocation2 + $0x98] sm:$0x1]  ;;  %10450 = vmatpush.bf16.msra.mxu0 %v14447_v43 }
 0x535   : > { %v8521_v4 = vadd.f32 %v8520_v22, %v18290_v47  ;;  %v8553_v30 = vpop.f32.mrf.mxu1  ;;  %v8573_v47 = vadd.f32 %v18329_v53, %v8564_v49  ;;  %v18531_v56 = vrot.slane %v18525_v26, 1  ;;  %v18541_v22 = vor.u32 %v9519_v63, %v18470_v45 }
 0x536   : > { %v9603_v31 = vrot.slane %v18538_v24, 2  ;;  %v10143_v46 = vunpack.c.l.b16 %v10133_v13 }
 0x537   : > { %v8554_v38 = vadd.f32 %v8553_v30, %v8521_v4  ;;  %9786 = vmatmul.bf16.gmra.mxu0 %v9598_v36  ;;  %v9130_v12 = vpop.f32.mrf.mxu2  ;;  %v8640_v10 = vadd.f32 %v8621_v25, %v8573_v47  ;;  %v14455_v30 = vld [vmem:[#allocation8 + $0x148] sm:$0xff]  ;;  %v9605_v45 = vrot.slane %v18541_v22, 2  ;;  %v14414_v47 = vld [vmem:[#allocation8] sm:$0xff]  ;;  %v14472_v22 = vld [vmem:[#allocation8 + $0x1b8] sm:$0xff] }
 0x538   : > { %9819 = vmatmul.bf16.gmra.mxu1 %v9600_v29  ;;  %v9604_v29 = vsel %vm19417_vm15, %v9597_v51, %v9603_v31  ;;  %v18569_v60 = vpack.c.b16 %v10143_v46, %v14652_v50  ;;  %vm19430_vm15 = vmmov %vm19418_vm2 }
 0x539   : > { %v8565_v28 = vadd.f32 %v8554_v38, %v18281_v57  ;;  %v14415_v57 = vld [vmem:[#allocation8 + $0x8] sm:$0xff]  ;;  %v8649_v54 = vmax.f32 %v8640_v10, 0.0  ;;  %10483 = vmatpush.bf16.msra.mxu1 %v14455_v30  ;;  %v14422_v38 = vld [vmem:[#allocation8 + $0x40] sm:$0xff]  ;;  %v18581_v30 = vld [vmem:[#allocation2 + $0x84] sm:$0xff] }
 0x53a   : > { %v9160_v33 = vpop.f32.mrf.mxu3  ;;  %10660 = vmatpush.bf16.msra.mxu2 %v14415_v57  ;;  %10694 = vmatpush.bf16.msra.mxu3 %v14422_v38  ;;  %v14446_v10 = vld [vmem:[#allocation8 + $0x100] sm:$0xff] }
 0x53b   : > { %v8574_v27 = vadd.f32 %v18329_v53, %v8565_v28  ;;  %v18533_v0 = vadd.f32 %v9160_v33, %v9127_v35  ;;  %v18546_v35 = vsel %vm685_vm1, %v17872_v18, %v18531_v56  ;;  %v10247_v28 = vrot.slane %v18569_v60, 1  ;;  %10451 = vmatpush.bf16.msra.mxu0 %v14446_v10  ;;  %v9979_v60 = vld [vmem:[#allocation2 + $0x6c] sm:$0xf]  ;;  %v14471_v10 = vld [vmem:[#allocation8 + $0x1b0] sm:$0xff] }
 0x53c   : > { %v8522_v55 = vpop.f32.mrf.mxu0 }
 0x53d   : > { %v8641_v49 = vadd.f32 %v8623_v6, %v8574_v27  ;;  %v8555_v61 = vpop.f32.mrf.mxu1  ;;  %10484 = vmatpush.bf16.msra.mxu1 %v14454_v44  ;;  %v10248_v27 = vsel %vm685_vm1, %v18531_v56, %v10247_v28  ;;  %v14480_v55 = vld [vmem:[#allocation8 + $0x1f8] sm:$0xff] }
 0x53e   : > { %10661 = vmatpush.bf16.msra.mxu2 %v14414_v47 }
 0x53f   : > { %v8650_v53 = vmax.f32 %v8641_v49, 0.0  ;;  %10429 = vmatmul.bf16.gmra.mxu3 %v18546_v35  ;;  %v9132_v4 = vpop.f32.mrf.mxu2  ;;  %v14488_v49 = vld [vmem:[#allocation8 + $0x238] sm:$0xff] }
 0x540   : > { %11144 = vmatpush.bf16.msrb.mxu3 %v14488_v49  ;;  %v14479_v4 = vld [vmem:[#allocation8 + $0x1f0] sm:$0xff]  ;;  %v10237_v49 = vrot.slane %v18487_v37, 1 }
 0x541   : > { %v14603_v11 = vpack.c.bf16 %v8650_v53, %v8649_v54  ;;  %v18578_v54 = vld [vmem:[#allocation2 + $0x7c] sm:$0xff]  ;;  %11078 = vmatpush.bf16.msrb.mxu1 %v14472_v22  ;;  %v10236_v22 = vrot.slane %v17809_v58, 1 }
 0x542   : > { %v9163_v42 = vpop.f32.mrf.mxu3  ;;  %11111 = vmatpush.bf16.msrb.mxu2 %v14480_v55  ;;  %v10037_v53 = vshll.u32 %v18578_v54, 16 }
 0x543   : > { %14721 = vst [vmem:[%s18025_s20 + $0x40] sm:$0xff] %v14603_v11   ;;  %v18554_v18 = vadd.f32 %v9163_v42, %v9130_v12  ;;  %v14437_v11 = vld [vmem:[#allocation8 + $0xb8] sm:$0xff]  ;;  %v10045_v42 = vshll.u32 %v18581_v30, 16 }
 0x544   : > { %v9176_v1 = vpop.f32.mrf.mxu0  ;;  %9857 = vmatmul.bf16.gmra.mxu2 %v9608_v34  ;;  %10720 = vmatpush.bf16.msrb.mxu0 %v14437_v11  ;;  %v18585_v46 = vrot.slane %v10037_v53, 1  ;;  %v14478_v11 = vld [vmem:[#allocation8 + $0x1e8] sm:$0xff] }
 0x545   : > { %v9177_v5 = vadd.f32 %v9176_v1, %v18318_v7  ;;  %v9353_v36 = vpop.f32.mrf.mxu1  ;;  %v9606_v7 = vsel %vm19418_vm2, %v9599_v52, %v9605_v45  ;;  %v10153_v1 = vshll.u32 %v18398_v19, 16  ;;  %v18588_v34 = vrot.slane %v10045_v42, 1  ;;  %11079 = vmatpush.bf16.msrb.mxu1 %v14471_v10 }
 0x546   : > { %11112 = vmatpush.bf16.msrb.mxu2 %v14479_v4  ;;  %v14486_v4 = vld [vmem:[#allocation8 + $0x228] sm:$0xff] }
 0x547   : > { %v9354_v25 = vadd.f32 %v9353_v36, %v9177_v5  ;;  %9791 = vmatmul.bf16.gmra.mxu0 %v9604_v29  ;;  %v9386_v15 = vpop.f32.mrf.mxu2  ;;  %v10041_v36 = vshrl.u32 %v18578_v54, 16 }
 0x548   : > { %9824 = vmatmul.bf16.gmra.mxu1 %v9606_v7  ;;  %v10151_v7 = vshrl.u32 %v18398_v19, 16 }
 0x549   : > { %v9387_v17 = vadd.f32 %v9386_v15, %v9354_v25  ;;  %v10043_v25 = vor.u32 %v10041_v36, %v18585_v46  ;;  %v14487_v15 = vld [vmem:[#allocation8 + $0x230] sm:$0xff] }
 0x54a   : > { %v9165_v51 = vpop.f32.mrf.mxu3  ;;  %11145 = vmatpush.bf16.msrb.mxu3 %v14487_v15  ;;  %11113 = vmatpush.bf16.msrb.mxu2 %v14478_v11 }
 0x54c   : > { %v9178_v12 = vpop.f32.mrf.mxu0 }
 0x54d   : > { %v9179_v6 = vadd.f32 %v9178_v12, %v18346_v41  ;;  %v9355_v48 = vpop.f32.mrf.mxu1  ;;  %v18600_v12 = vsel %vm19419_vm4, %v10043_v25, %v18588_v34  ;;  %vm19431_vm4 = vmmov %vm19418_vm2 }
 0x54e   : > { %11146 = vmatpush.bf16.msrb.mxu3 %v14486_v4 }
 0x54f   : > { %v9356_v52 = vadd.f32 %v9355_v48, %v9179_v6  ;;  %10434 = vmatmul.bf16.gmra.mxu3 %v10248_v27  ;;  %v9388_v33 = vpop.f32.mrf.mxu2  ;;  %v9999_v48 = vunpack.c.l.b16 %v9979_v60  ;;  %v10234_v27 = vrot.slane %v18600_v12, 1 }
 0x551   : > { %v9389_v61 = vadd.f32 %v9388_v33, %v9356_v52  ;;  %v14436_v52 = vld [vmem:[#allocation8 + $0xb0] sm:$0xff] }
 0x552   : > { %v9419_v63 = vpop.f32.mrf.mxu3  ;;  %10721 = vmatpush.bf16.msrb.mxu0 %v14436_v52 }
 0x553   : > { %v18575_v8 = vadd.f32 %v9419_v63, %v9387_v17 }
 0x554   : > { %v9181_v57 = vpop.f32.mrf.mxu0  ;;  %9862 = vmatmul.bf16.gmra.mxu2 %v9607_v32  ;;  %v10155_v32 = vrot.slane %v10153_v1, 1 }
 0x555   : > { %v9182_v41 = vadd.f32 %v9181_v57, %v18376_v23  ;;  %v9358_v24 = vpop.f32.mrf.mxu1 }
 0x556   : > { %v10156_v6 = vor.u32 %v10155_v32, %v10151_v7 }
 0x557   : > { %v9359_v13 = vadd.f32 %v9358_v24, %v9182_v41  ;;  %9796 = vmatmul.bf16.gmra.mxu0 %v9603_v31  ;;  %v9391_v23 = vpop.f32.mrf.mxu2  ;;  %v18590_v31 = vld [vmem:[#allocation2 + $0x70] sm:$0xff]  }
 0x558   : > { %9829 = vmatmul.bf16.gmra.mxu1 %v9605_v45  ;;  %v14647_v17 = vunpack.c.l.b16 %v18590_v31  ;;  %v14648_v33 = vunpack.c.h.b16 %v18590_v31 }
 0x559   : > { %v9392_v5 = vadd.f32 %v9391_v23, %v9359_v13  ;;  %v14470_v13 = vld [vmem:[#allocation8 + $0x1a8] sm:$0xff] }
 0x55a   : > { %v9421_v43 = vpop.f32.mrf.mxu3  ;;  %v10008_v55 = vpack.c.b16 %v14647_v17, %v9999_v48  ;;  %v18610_v57 = vpack.c.b16 %v17782_v21, %v14648_v33  ;;  %v10238_v21 = vsel %vm685_vm1, %v10236_v22, %v10237_v49  ;;  %11080 = vmatpush.bf16.msrb.mxu1 %v14470_v13 }
 0x55b   : > { %v18592_v38 = vadd.f32 %v9421_v43, %v9389_v61  ;;  %v10049_v43 = vshrl.u32 %v18581_v30, 16 }
 0x55c   : > { %v9183_v47 = vpop.f32.mrf.mxu0  ;;  %v10024_v1 = vshll.u32 %v10008_v55, 16  ;;  %v10029_v58 = vshll.u32 %v18610_v57, 16  ;;  %v10022_v25 = vshrl.u32 %v10008_v55, 16 }
 0x55d   : > { %v9184_v29 = vadd.f32 %v9183_v47, %v18405_v40  ;;  %v9360_v45 = vpop.f32.mrf.mxu1  ;;  %v10157_v40 = vsel %vm19420_vm12, %v10156_v6, %v18585_v46  ;;  %v18629_v48 = vor.u32 %v10049_v43, %v18588_v34  ;;  %vm19432_vm12 = vmmov %vm19423_vm0 }
 0x55e   : > { %v10233_v63 = vrot.slane %v10157_v40, 1  ;;  %v10026_v36 = vrot.slane %v10024_v1, 1  ;;  %v10031_v7 = vrot.slane %v10029_v58, 1  ;;  %v14477_v40 = vld [vmem:[#allocation8 + $0x1e0] sm:$0xff] }
 0x55f   : > { %v9361_v51 = vadd.f32 %v9360_v45, %v9184_v29  ;;  %10439 = vmatmul.bf16.gmra.mxu3 %v10247_v28  ;;  %v9393_v44 = vpop.f32.mrf.mxu2  ;;  %v10134_v29 = vld [vmem:[#allocation2 + $0x98] sm:$0x3]  ;;  %11114 = vmatpush.bf16.msrb.mxu2 %v14477_v40  ;;  %v14434_v1 = vld [vmem:[#allocation8 + $0xa0] sm:$0xff] }
 0x560   : > { %v10235_v42 = vsel %vm685_vm1, %v10233_v63, %v10234_v27  ;;  %v10027_v10 = vor.u32 %v10026_v36, %v10022_v25  ;;  %v10148_v52 = vunpack.c.l.b16 %v10134_v29  ;;  %v10241_v63 = vrot.slane %v18546_v35, 1 }
 0x561   : > { %v9394_v19 = vadd.f32 %v9393_v44, %v9361_v51  ;;  %v14435_v44 = vld [vmem:[#allocation8 + $0xa8] sm:$0xff]  ;;  %v10033_v29 = vshrl.u32 %v18610_v57, 16 }
 0x562   : > { %v9424_v61 = vpop.f32.mrf.mxu3  ;;  %10722 = vmatpush.bf16.msrb.mxu0 %v14435_v44 }
 0x563   : > { %v18612_v41 = vadd.f32 %v9424_v61, %v9392_v5  ;;  %v10035_v44 = vor.u32 %v10033_v29, %v10031_v7  ;;  %v14481_v29 = vld [vmem:[#allocation8 + $0x200] sm:$0xff] }
 0x564   : > { %v9186_v28 = vpop.f32.mrf.mxu0  ;;  %10662 = vmatmul.bf16.vlgmr.msra.gmra.mxu2 %v10008_v55 }
 0x565   : > { %v9187_v24 = vadd.f32 %v9186_v28, %v18440_v2  ;;  %v9363_v53 = vpop.f32.mrf.mxu1  ;;  %v10159_v2 = vshll.u32 %v18525_v26, 16 }
 0x566   : > { %10723 = vmatpush.bf16.msrb.mxu0 %v14434_v1 }
 0x567   : > { %v9364_v23 = vadd.f32 %v9363_v53, %v9187_v24  ;;  %10452 = vmatmul.bf16.vlgmr.msra.gmra.mxu0 %v10235_v42  ;;  %v9396_v5 = vpop.f32.mrf.mxu2  ;;  %v10161_v47 = vrot.slane %v10159_v2, 1  ;;  %v18640_v24 = vpack.c.b16 %v10148_v52, %v14652_v50  ;;  %v14469_v42 = vld [vmem:[#allocation8 + $0x1a0] sm:$0xff]  ;;  %v10242_v2 = vsel %vm685_vm1, %v10237_v49, %v10241_v63  ;;  %v14468_v49 = vld [vmem:[#allocation8 + $0x198] sm:$0xff] }
 0x568   : > { %10485 = vmatmul.bf16.vlgmr.msra.gmra.mxu1 %v10238_v21 }
 0x569   : > { %v9397_v32 = vadd.f32 %v9396_v5, %v9364_v23  ;;  %v18633_v61 = vsel %vm19421_vm14, %v18629_v48, %v10161_v47  ;;  %v14476_v23 = vld [vmem:[#allocation8 + $0x1d8] sm:$0xff]  ;;  %11081 = vmatpush.bf16.msrb.mxu1 %v14469_v42  ;;  %v10163_v5 = vshrl.u32 %v18525_v26, 16  ;;  %v10181_v25 = vrot.slane %v18640_v24, 1  ;;  %vm19433_vm14 = vmmov %vm19418_vm2 }
 0x56a   : > { %v9426_v45 = vpop.f32.mrf.mxu3  ;;  %v10239_v34 = vrot.slane %v18633_v61, 1  ;;  %11115 = vmatpush.bf16.msrb.mxu2 %v14476_v23  ;;  %v14475_v61 = vld [vmem:[#allocation8 + $0x1d0] sm:$0xff] }
 0x56b   : > { %v18625_v15 = vadd.f32 %v9426_v45, %v9394_v19  ;;  %v10032_v19 = vsel %vm19408_vm3, %v10027_v10, %v10031_v7  ;;  %v10165_v36 = vor.u32 %v10163_v5, %v10161_v47  ;;  %v10040_v47 = vsel %vm19423_vm0, %v10035_v44, %v18585_v46  ;;  %v9885_v44 = vld [vmem:[%s15153_s30 + $0x50] sm:$0xe]  ;;  %vm19434_vm3 = vmmov %vm19418_vm2 }
 0x56c   : > { %v9188_v60 = vpop.f32.mrf.mxu0  ;;  %v10240_v21 = vsel %vm685_vm1, %v10234_v27, %v10239_v34  ;;  %v10182_v10 = vsel %vm685_vm1, %v18531_v56, %v10181_v25 }
 0x56d   : > { %v9189_v51 = vadd.f32 %v9188_v60, %v18472_v62  ;;  %v9365_v6 = vpop.f32.mrf.mxu1  ;;  %v14485_v62 = vld [vmem:[#allocation8 + $0x220] sm:$0xff]  ;;  %11082 = vmatpush.bf16.msrb.mxu1 %v14468_v49 }
 0x56e   : > { %11147 = vmatpush.bf16.msrb.mxu3 %v14485_v62  ;;  %v10245_v62 = vrot.slane %v10182_v10, 1  ;;  %11116 = vmatpush.bf16.msrb.mxu2 %v14475_v61  ;;  %v18695_v10 = vld [vmem:[%s15153_s30 + $0x58] sm:$0xff]  }
 0x56f   : > { %v9366_v33 = vadd.f32 %v9365_v6, %v9189_v51  ;;  %10695 = vmatmul.bf16.vlgmr.msra.gmra.mxu3 %v10032_v19  ;;  %v9398_v55 = vpop.f32.mrf.mxu2 }
 0x570   : > { %v10246_v1 = vsel %vm685_vm1, %v10241_v63, %v10245_v62  ;;  %v14466_v63 = vld [vmem:[#allocation8 + $0x188] sm:$0xff] }
 0x571   : > { %v9399_v28 = vadd.f32 %v9398_v55, %v9366_v33  ;;  %v14433_v33 = vld [vmem:[#allocation8 + $0x98] sm:$0xff] }
 0x572   : > { %v9429_v53 = vpop.f32.mrf.mxu3  ;;  %11148 = vmatpush.bf16.msrb.mxu3 %v14484_v39  ;;  %10724 = vmatpush.bf16.msrb.mxu0 %v14433_v33 }
 0x573   : > { %v18642_v11 = vadd.f32 %v9429_v53, %v9397_v32  ;;  %v14467_v53 = vld [vmem:[#allocation8 + $0x190] sm:$0xff] }
 0x574   : > { %v9191_v22 = vpop.f32.mrf.mxu0  ;;  %10667 = vmatmul.bf16.gmra.mxu2 %v18610_v57  ;;  %11083 = vmatpush.bf16.msrb.mxu1 %v14467_v53 }
 0x575   : > { %v9192_v4 = vadd.f32 %v9191_v22, %v18503_v14  ;;  %v9368_v13 = vpop.f32.mrf.mxu1  ;;  %v10167_v14 = vshll.u32 %v18640_v24, 16  ;;  %v14432_v22 = vld [vmem:[#allocation8 + $0x90] sm:$0xff] }
 0x576   : > { %10725 = vmatpush.bf16.msrb.mxu0 %v14432_v22  ;;  %v14465_v22 = vld [vmem:[#allocation8 + $0x180] sm:$0xff] }
 0x577   : > { %v9369_v50 = vadd.f32 %v9368_v13, %v9192_v4  ;;  %10457 = vmatmul.bf16.gmra.mxu0 %v10240_v21  ;;  %v9401_v58 = vpop.f32.mrf.mxu2  ;;  %v10169_v32 = vrot.slane %v10167_v14, 1  ;;  %v14474_v14 = vld [vmem:[#allocation8 + $0x1c8] sm:$0xff] }
 0x578   : > { %10490 = vmatmul.bf16.gmra.mxu1 %v10242_v2  ;;  %11117 = vmatpush.bf16.msrb.mxu2 %v14474_v14  ;;  %v18721_v14 = vld [vmem:[#allocation2 + $0x8c] sm:$0xff] }
 0x579   : > { %v9402_v27 = vadd.f32 %v9401_v58, %v9369_v50  ;;  %v10170_v40 = vsel %vm19422_vm13, %v10165_v36, %v10169_v32  ;;  %v14482_v58 = vld [vmem:[#allocation8 + $0x208] sm:$0xff]  ;;  %11084 = vmatpush.bf16.msrb.mxu1 %v14466_v63  ;;  %vm19435_vm13 = vmmov %vm19418_vm2 }
 0x57a   : > { %v9431_v43 = vpop.f32.mrf.mxu3  ;;  %v10243_v55 = vrot.slane %v10170_v40, 1 }
 0x57b   : > { %v18658_v60 = vadd.f32 %v9431_v43, %v9399_v28  ;;  %v14483_v28 = vld [vmem:[#allocation8 + $0x210] sm:$0xff]  ;;  %v14431_v43 = vld [vmem:[#allocation8 + $0x88] sm:$0xff] }
 0x57c   : > { %v9193_v45 = vpop.f32.mrf.mxu0  ;;  %v10244_v56 = vsel %vm685_vm1, %v10239_v34, %v10243_v55  ;;  %11149 = vmatpush.bf16.msrb.mxu3 %v14483_v28  ;;  %10726 = vmatpush.bf16.msrb.mxu0 %v14431_v43 }
 0x57d   : > { %v9194_v51 = vadd.f32 %v9193_v45, %v18533_v0  ;;  %v9370_v6 = vpop.f32.mrf.mxu1  ;;  %11085 = vmatpush.bf16.msrb.mxu1 %v14465_v22  ;;  %v10057_v22 = vshrl.u32 %v17869_v20, 16 }
 0x57f   : > { %v9371_v26 = vadd.f32 %v9370_v6, %v9194_v51  ;;  %10700 = vmatmul.bf16.gmra.mxu3 %v10040_v47  ;;  %v9403_v52 = vpop.f32.mrf.mxu2  ;;  %v10053_v6 = vshll.u32 %v17869_v20, 16 }
 0x580   : > { %11150 = vmatpush.bf16.msrb.mxu3 %v14482_v58 }
 0x581   : > { %v9404_v19 = vadd.f32 %v9403_v52, %v9371_v26  ;;  %v9886_v26 = vld [vmem:[%s15153_s30 + $0x54] sm:$0xf]  ;;  %v18697_v52 = vld [vmem:[#allocation2 + $0x80] sm:$0xf] }
 0x582   : > { %v9434_v0 = vpop.f32.mrf.mxu3  ;;  %v9896_v33 = vunpack.c.l.bf16 %v9886_v26  ;;  %v10776_v28 = vunpack.c.l.b16 %v18697_v52  ;;  %v10838_v52 = vrot.slane %v18721_v14, 1 }
 0x583   : > { %v18666_v4 = vadd.f32 %v9434_v0, %v9402_v27  ;;  %v18681_v27 = vrot.slane %v10181_v25, 1 }
 0x584   : > { %v9196_v7 = vpop.f32.mrf.mxu0  ;;  %10672 = vmatmul.bf16.gmra.mxu2 %v18578_v54  ;;  %11151 = vmatpush.bf16.msrb.mxu3 %v14481_v29 }
 0x585   : > { %v9197_v46 = vadd.f32 %v9196_v7, %v18554_v18  ;;  %v9373_v13 = vpop.f32.mrf.mxu1  ;;  %v10171_v18 = vshrl.u32 %v18640_v24, 16  ;;  %v10252_v25 = vsel %vm685_vm1, %v10245_v62, %v18681_v27  ;;  %v10753_v62 = vld [vmem:[#allocation2 + $0x7c] sm:$0xc]  ;;  %v14615_v7 = vunpack.c.l.bf16 %v18695_v10 }
 0x587   : > { %v9374_v42 = vadd.f32 %v9373_v13, %v9197_v46  ;;  %10462 = vmatmul.bf16.gmra.mxu0 %v10244_v56  ;;  %v9406_v23 = vpop.f32.mrf.mxu2  ;;  %v18677_v54 = vor.u32 %v10171_v18, %v10169_v32  ;;  %v14473_v32 = vld [vmem:[#allocation8 + $0x1c0] sm:$0xff]  ;;  %v9916_v56 = vrot.slane %v9896_v33, 3  ;;  %v18718_v18 = vld [vmem:[%s18995_s3 + $0x1] ss:$0 sm:$0xff] }
 0x588   : > { %10495 = vmatmul.bf16.gmra.mxu1 %v10246_v1  ;;  %11118 = vmatpush.bf16.msrb.mxu2 %v14473_v32  ;;  %v14430_v46 = vld [vmem:[#allocation8 + $0x80] sm:$0xff] }
 0x589   : > { %v9407_v21 = vadd.f32 %v9406_v23, %v9374_v42  ;;  %v10249_v5 = vrot.slane %v18677_v54, 1  ;;  %v10775_v42 = vunpack.c.l.b16 %v10753_v62  ;;  %10727 = vmatpush.bf16.msrb.mxu0 %v14430_v46  ;;  %v14616_v54 = vunpack.c.h.bf16 %v18695_v10 }
 0x58a   : > { %v9436_v39 = vpop.f32.mrf.mxu3 }
 0x58b   : > { %v18675_v2 = vadd.f32 %v9436_v39, %v9404_v19  ;;  %v18699_v19 = vrot.slane %v10053_v6, 1 }
 0x58c   : > { %v9198_v50 = vpop.f32.mrf.mxu0 }
 0x58d   : > { %v9375_v34 = vpop.f32.mrf.mxu1  ;;  %v10056_v1 = vsel %vm19424_vm6, %v18629_v48, %v18699_v19  ;;  %v18709_v50 = vrot.slane %v14615_v7, 3 }
 0x58f   : > { %10705 = vmatmul.bf16.gmra.mxu3 %v18600_v12  ;;  %v9408_v35 = vpop.f32.mrf.mxu2  ;;  %v10250_v12 = vsel %vm685_vm1, %v10243_v55, %v10249_v5  ;;  %v9919_v32 = vsel %vm7294_vm5, %v9916_v56, %v18709_v50 }
 0x592   : > { %v9439_v36 = vpop.f32.mrf.mxu3 }
 0x593   : > { %v18683_v45 = vadd.f32 %v9439_v36, %v9407_v21  ;;  %v18707_v21 = vld [vmem:[#allocation2 + $0x84] sm:$0xff] }
 0x594   : > { %v9777_v24 = vpop.f32.mrf.mxu0  ;;  %10677 = vmatmul.bf16.gmra.mxu2 %v18581_v30  ;;  %v9895_v30 = vunpack.c.l.bf16 %v9885_v44  ;;  %v10801_v43 = vshll.u32 %v18707_v21, 16 }
 0x595   : > { %v9810_v49 = vpop.f32.mrf.mxu1 }
 0x596   : > { %v9811_v51 = vadd.f32 %v9810_v49, %v9777_v24  ;;  %v9915_v13 = vrot.slane %v9895_v30, 3  ;;  %v10012_v24 = vpack.c.b16 %v17865_v16, %v17865_v16  ;;  %v10803_v6 = vrot.slane %v10801_v43, 1 }
 0x597   : > { %10467 = vmatmul.bf16.gmra.mxu0 %v10250_v12  ;;  %v9843_v40 = vpop.f32.mrf.mxu2 }
 0x598   : > { %10500 = vmatmul.bf16.gmra.mxu1 %v10252_v25  ;;  %v9844_v47 = vadd.f32 %v9843_v40, %v9811_v51  ;;  %v9917_v58 = vsel %vm7294_vm5, %v9915_v13, %v9916_v56  ;;  %v10809_v51 = vshll.u32 %v18721_v14, 16  ;;  %v10805_v40 = vshrl.u32 %v18707_v21, 16 }
 0x59a   : > { %v9441_v61 = vpop.f32.mrf.mxu3  ;;  %v9867_v53 = vadd.f32 %v9844_v47, %v18575_v8  ;;  %v18713_v8 = vpack.c.b16 %v10776_v28, %v10775_v42 }
 0x59b   : > { %v18740_v61 = vld [vmem:[%s15153_s30 + $0x60] sm:$0xff]  }
 0x59c   : > { %v9779_v55 = vpop.f32.mrf.mxu0  ;;  %v9876_v48 = vadd.f32 %v18718_v18, %v9867_v53  ;;  %v10796_v49 = vshll.u32 %v18713_v8, 16  ;;  %v10794_v7 = vshrl.u32 %v18713_v8, 16  ;;  %v10807_v53 = vor.u32 %v10805_v40, %v10803_v6 }
 0x59d   : > { %v9812_v0 = vpop.f32.mrf.mxu1  ;;  %v14619_v13 = vunpack.c.l.bf16 %v18740_v61 }
 0x59e   : > { %v9813_v23 = vadd.f32 %v9812_v0, %v9779_v55  ;;  %v9943_v12 = vadd.f32 %v9917_v58, %v9876_v48  ;;  %v10798_v26 = vrot.slane %v10796_v49, 1  ;;  %v18742_v55 = vrot.slane %v10809_v51, 1 }
 0x59f   : > { %10710 = vmatmul.bf16.gmra.mxu3 %v10056_v1  ;;  %v9845_v39 = vpop.f32.mrf.mxu2  ;;  %v9920_v48 = vrot.slane %v14616_v54, 3  ;;  %v10069_v49 = vrot.slane %v18610_v57, 1 }
 0x5a0   : > { %v9846_v34 = vadd.f32 %v9845_v39, %v9813_v23  ;;  %v9952_v47 = vmax.f32 %v9943_v12, 0.0  ;;  %v10799_v1 = vor.u32 %v10798_v26, %v10794_v7  ;;  %v18754_v10 = vsel %vm19425_vm8, %v10807_v53, %v18742_v55  ;;  %v10764_v23 = vld [vmem:[#allocation2 + $0x7c] sm:$0x8] }
 0x5a1   : > { %v10059_v39 = vor.u32 %v10057_v22, %v18699_v19  ;;  %v10833_v43 = vunpack.c.l.b16 %v10764_v23  ;;  %v18765_v19 = vld [vmem:[#allocation2 + $0x94] sm:$0xff]  ;;  %v9921_v31 = vsel %vm7294_vm5, %v18709_v50, %v9920_v48  ;;  %v10813_v22 = vshrl.u32 %v18721_v14, 16 }
 0x5a2   : > { %v18724_v35 = vpop.f32.mrf.mxu3  ;;  %v9868_v63 = vadd.f32 %v9846_v34, %v18592_v38  ;;  %v14620_v23 = vunpack.c.h.bf16 %v18740_v61 }
 0x5a4   : > { %v9782_v36 = vpop.f32.mrf.mxu0  ;;  %v9877_v25 = vadd.f32 %v18718_v18, %v9868_v63  ;;  %10682 = vmatmul.bf16.gmra.mxu2 %v10012_v24  ;;  %v10804_v63 = vsel %vm19426_vm7, %v10799_v1, %v10803_v6  ;;  %v18760_v24 = vrot.slane %v14619_v13, 3 }
 0x5a5   : > { %v9815_v29 = vpop.f32.mrf.mxu1  ;;  %v10895_v12 = vrot.slane %v10804_v63, 2 }
 0x5a6   : > { %v9944_v38 = vadd.f32 %v9919_v32, %v9877_v25  ;;  %v9816_v16 = vadd.f32 %v9815_v29, %v9782_v36  ;;  %v10834_v25 = vpack.c.b16 %v10776_v28, %v10833_v43  ;;  %v9923_v26 = vsel %vm7294_vm5, %v9920_v48, %v18760_v24  ;;  %v10763_v48 = vld [vmem:[#allocation2 + $0xa0] sm:$0x7] }
 0x5a7   : > { %10472 = vmatmul.bf16.gmra.mxu0 %v10249_v5  ;;  %v9848_v44 = vpop.f32.mrf.mxu2  ;;  %v9989_v5 = vld [vmem:[#allocation2 + $0x6c] sm:$0xe]  ;;  %v10815_v43 = vor.u32 %v10813_v22, %v18742_v55 }
 0x5a8   : > { %10505 = vmatmul.bf16.gmra.mxu1 %v18681_v27  ;;  %v9953_v30 = vmax.f32 %v9944_v38, 0.0  ;;  %v9849_v33 = vadd.f32 %v9848_v44, %v9816_v16  ;;  %v10066_v42 = vunpack.c.l.b16 %v9989_v5  ;;  %v10892_v44 = vrot.slane %v18713_v8, 2 }
 0x5a9   : > { %v10817_v8 = vshll.u32 %v18765_v19, 16  ;;  %v10835_v54 = vrot.slane %v10834_v25, 1 }
 0x5aa   : > { %v14628_v62 = vpack.c.bf16 %v9953_v30, %v9952_v47  ;;  %v18745_v0 = vpop.f32.mrf.mxu3  ;;  %v9869_v56 = vadd.f32 %v9849_v33, %v18612_v41  ;;  %v10067_v58 = vpack.c.b16 %v14647_v17, %v10066_v42  ;;  %v10896_v41 = vrot.slane %v18754_v10, 2  ;;  %v18799_v42 = vld [vmem:[%s15153_s30 + $0x68] sm:$0xff]  }
 0x5ab   : > { %v10893_v17 = vrot.slane %v18707_v21, 2  ;;  %v10836_v47 = vrot.slane %v18707_v21, 1  ;;  %v10819_v1 = vrot.slane %v10817_v8, 1 }
 0x5ac   : > { %v9784_v27 = vpop.f32.mrf.mxu0  ;;  %14730 = vst [vmem:[%s18025_s20 + $0x48] sm:$0xff] %v14628_v62   ;;  %v9878_v32 = vadd.f32 %v18718_v18, %v9869_v56  ;;  %v10068_v6 = vrot.slane %v10067_v58, 1  ;;  %v10897_v50 = vsel %vm19427_vm9, %v10895_v12, %v10896_v41 }
 0x5ad   : > { %v9817_v46 = vpop.f32.mrf.mxu1  ;;  %v10894_v33 = vsel %vm19428_vm10, %v10892_v44, %v10893_v17  ;;  %v18795_v7 = vsel %vm685_vm1, %v10836_v47, %v10838_v52  ;;  %v18812_v61 = vsel %vm19429_vm11, %v10815_v43, %v10819_v1 }
 0x5ae   : > { %v9818_v34 = vadd.f32 %v9817_v46, %v9784_v27  ;;  %v9945_v28 = vadd.f32 %v9921_v31, %v9878_v32  ;;  %v10837_v27 = vsel %vm685_vm1, %v10835_v54, %v10836_v47  ;;  %v10899_v63 = vrot.slane %v18795_v7, 2 }
 0x5af   : > { %10715 = vmatmul.bf16.gmra.mxu3 %v10059_v39  ;;  %v9850_v36 = vpop.f32.mrf.mxu2  ;;  %v18802_v39 = vld [vmem:[#allocation2 + $0x9c] sm:$0xf]  ;;  %v10898_v32 = vrot.slane %v10837_v27, 2  ;;  %v14623_v31 = vunpack.c.l.bf16 %v18799_v42  ;;  %v10840_v27 = vrot.slane %v18765_v19, 1 }
 0x5b0   : > { %v9851_v29 = vadd.f32 %v9850_v36, %v9818_v34  ;;  %v9954_v46 = vmax.f32 %v9945_v28, 0.0  ;;  %v10783_v25 = vunpack.c.l.b16 %v18802_v39 }
 0x5b1   : > { %v9926_v55 = vrot.slane %v14623_v31, 3  ;;  %v18846_v57 = vsel %vm685_vm1, %v10838_v52, %v10840_v27 }
 0x5b2   : > { %v18772_v51 = vpop.f32.mrf.mxu3  ;;  %v9870_v38 = vadd.f32 %v9851_v29, %v18625_v15  ;;  %v10070_v15 = vsel %vm685_vm1, %v10068_v6, %v10069_v49  ;;  %v10900_v6 = vsel %vm19430_vm15, %v10898_v32, %v10899_v63  ;;  %v10905_v43 = vrot.slane %v18846_v57, 2 }
 0x5b4   : > { %v9787_v16 = vpop.f32.mrf.mxu0  ;;  %v9879_v30 = vadd.f32 %v18718_v18, %v9870_v38  ;;  %11119 = vmatmul.bf16.vlgmr.msrb.gmra.mxu2 %v10897_v50  ;;  %v10791_v38 = vunpack.c.l.b16 %v10763_v48  ;;  %v9893_v48 = vld [vmem:[%s15153_s30 + $0x70] sm:$0xf] }
 0x5b5   : > { %v9820_v40 = vpop.f32.mrf.mxu1 }
 0x5b6   : > { %v9946_v5 = vadd.f32 %v9923_v26, %v9879_v30  ;;  %v9821_v62 = vadd.f32 %v9820_v40, %v9787_v16  ;;  %v9924_v16 = vrot.slane %v14620_v23, 3  ;;  %v10903_v40 = vrot.slane %v18812_v61, 2 }
 0x5b7   : > { %10728 = vmatmul.bf16.vlgmr.msrb.gmra.mxu0 %v10070_v15  ;;  %v9853_v53 = vpop.f32.mrf.mxu2  ;;  %v10901_v30 = vrot.slane %v18721_v14, 2 }
 0x5b8   : > { %11086 = vmatmul.bf16.vlgmr.msrb.gmra.mxu1 %v10894_v33  ;;  %v9955_v13 = vmax.f32 %v9946_v5, 0.0  ;;  %v9854_v56 = vadd.f32 %v9853_v53, %v9821_v62  ;;  %v9925_v28 = vsel %vm7294_vm5, %v18760_v24, %v9924_v16  ;;  %v9927_v54 = vsel %vm7294_vm5, %v9924_v16, %v9926_v55 }
 0x5b9   : > { %v10904_v62 = vsel %vm19418_vm2, %v10896_v41, %v10903_v40  ;;  %v10072_v24 = vsel %vm685_vm1, %v10069_v49, %v17803_v9  ;;  %v10902_v10 = vsel %vm19431_vm4, %v10893_v17, %v10901_v30  ;;  %v10821_v41 = vshrl.u32 %v18765_v19, 16 }
 0x5ba   : > { %v14633_v34 = vpack.c.bf16 %v9955_v13, %v9954_v46  ;;  %v18804_v58 = vpop.f32.mrf.mxu3  ;;  %v9871_v12 = vadd.f32 %v9854_v56, %v18642_v11  ;;  %v18820_v11 = vpack.c.b16 %v10791_v38, %v10783_v25  ;;  %v14624_v17 = vunpack.c.h.bf16 %v18799_v42 }
 0x5bb   : > { %v10823_v49 = vor.u32 %v10821_v41, %v10819_v1 }
 0x5bc   : > { %v9789_v36 = vpop.f32.mrf.mxu0  ;;  %14731 = vst [vmem:[%s18025_s20 + $0x50] sm:$0xff] %v14633_v34   ;;  %v9880_v50 = vadd.f32 %v18718_v18, %v9871_v12  ;;  %v9928_v31 = vrot.slane %v14624_v17, 3  ;;  %v10906_v12 = vsel %vm19433_vm14, %v10899_v63, %v10905_v43  ;;  %v10829_v41 = vshrl.u32 %v18820_v11, 16 }
 0x5bd   : > { %v9822_v29 = vpop.f32.mrf.mxu1 }
 0x5be   : > { %v9823_v44 = vadd.f32 %v9822_v29, %v9789_v36  ;;  %v9947_v7 = vadd.f32 %v9925_v28, %v9880_v50  ;;  %v9903_v29 = vunpack.c.l.bf16 %v9893_v48  ;;  %v9929_v50 = vsel %vm7294_vm5, %v9926_v55, %v9928_v31 }
 0x5bf   : > { %11152 = vmatmul.bf16.vlgmr.msrb.gmra.mxu3 %v10900_v6  ;;  %v9855_v26 = vpop.f32.mrf.mxu2 }
 0x5c0   : > { %v9856_v47 = vadd.f32 %v9855_v26, %v9823_v44  ;;  %v9956_v13 = vmax.f32 %v9947_v7, 0.0  ;;  %v9930_v38 = vrot.slane %v9903_v29, 3  ;;  %v9894_v26 = vld [vmem:[%s15153_s30 + $0x74] sm:$0x3] }
 0x5c2   : > { %v18825_v15 = vpop.f32.mrf.mxu3  ;;  %v9872_v8 = vadd.f32 %v9856_v47, %v18658_v60  ;;  %v10825_v60 = vshll.u32 %v18820_v11, 16  ;;  %v9931_v63 = vsel %vm7294_vm5, %v9928_v31, %v9930_v38 }
 0x5c4   : > { %v9792_v33 = vpop.f32.mrf.mxu0  ;;  %v9881_v53 = vadd.f32 %v18718_v18, %v9872_v8  ;;  %11124 = vmatmul.bf16.gmra.mxu2 %v10904_v62  ;;  %v10827_v21 = vrot.slane %v10825_v60, 1  ;;  %v9904_v62 = vunpack.c.l.bf16 %v9894_v26 }
 0x5c5   : > { %v9825_v5 = vpop.f32.mrf.mxu1 }
 0x5c6   : > { %v9948_v22 = vadd.f32 %v9927_v54, %v9881_v53  ;;  %v9826_v46 = vadd.f32 %v9825_v5, %v9792_v33  ;;  %v18856_v1 = vsel %vm19432_vm12, %v10823_v49, %v10827_v21  ;;  %v10842_v5 = vrot.slane %v18820_v11, 1 }
 0x5c7   : > { %10733 = vmatmul.bf16.gmra.mxu0 %v10072_v24  ;;  %v9858_v9 = vpop.f32.mrf.mxu2  ;;  %v10909_v16 = vrot.slane %v18856_v1, 2 }
 0x5c8   : > { %11091 = vmatmul.bf16.gmra.mxu1 %v10902_v10  ;;  %v9957_v56 = vmax.f32 %v9948_v22, 0.0  ;;  %v9859_v23 = vadd.f32 %v9858_v9, %v9826_v46  ;;  %v10843_v60 = vsel %vm685_vm1, %v10840_v27, %v10842_v5  ;;  %v10831_v27 = vor.u32 %v10829_v41, %v10827_v21  ;;  %vm19436_vm1 = vmmov %vm19418_vm2 }
 0x5c9   : > { %v10910_v54 = vsel %vm19434_vm3, %v10903_v40, %v10909_v16  ;;  %v9932_v40 = vrot.slane %v9904_v62, 3  ;;  %vm19437_vm0 = vmmov %vm19436_vm1 }
 0x5ca   : > { %v14638_v34 = vpack.c.bf16 %v9957_v56, %v9956_v13  ;;  %v18850_v36 = vpop.f32.mrf.mxu3  ;;  %v9873_v52 = vadd.f32 %v9859_v23, %v18666_v4  ;;  %v10907_v4 = vrot.slane %v18765_v19, 2  ;;  %v10915_v29 = vrot.slane %v10831_v27, 2  ;;  %vm19438_vm6 = vmmov %vm19437_vm0 }
 0x5cb   : > { %v9933_v23 = vsel %vm7294_vm5, %v9930_v38, %v9932_v40  ;;  %vm19439_vm8 = vmmov %vm19437_vm0 }
 0x5cc   : > { %v9794_v14 = vpop.f32.mrf.mxu0  ;;  %14732 = vst [vmem:[%s18025_s20 + $0x58] sm:$0xff] %v14638_v34   ;;  %v9882_v6 = vadd.f32 %v18718_v18, %v9873_v52  ;;  %v10908_v19 = vsel %vm19435_vm13, %v10901_v30, %v10907_v4 }
 0x5cd   : > { %v9827_v32 = vpop.f32.mrf.mxu1 }
 0x5ce   : > { %v9828_v61 = vadd.f32 %v9827_v32, %v9794_v14  ;;  %v9949_v7 = vadd.f32 %v9929_v50, %v9882_v6 }
 0x5cf   : > { %11157 = vmatmul.bf16.gmra.mxu3 %v10906_v12  ;;  %v9860_v42 = vpop.f32.mrf.mxu2 }
 0x5d0   : > { %v9861_v44 = vadd.f32 %v9860_v42, %v9828_v61  ;;  %v9958_v22 = vmax.f32 %v9949_v7, 0.0  ;;  %v10916_v42 = vsel %vm19437_vm0, %v10909_v16, %v10915_v29 }
 0x5d2   : > { %v18864_v47 = vpop.f32.mrf.mxu3  ;;  %v9874_v28 = vadd.f32 %v9861_v44, %v18675_v2  ;;  %v10762_v2 = vld [vmem:[#allocation2 + $0xa0] sm:$0x3]  ;;  %v10917_v44 = vrot.slane %v10842_v5, 2 }
 0x5d3   : > { %v10784_v9 = vunpack.c.l.b16 %v10762_v2 }
 0x5d4   : > { %v9797_v8 = vpop.f32.mrf.mxu0  ;;  %v9883_v53 = vadd.f32 %v18718_v18, %v9874_v28  ;;  %11129 = vmatmul.bf16.gmra.mxu2 %v10910_v54 }
 0x5d5   : > { %v9830_v33 = vpop.f32.mrf.mxu1  ;;  %v10789_v11 = vpack.c.b16 %v10784_v9, %v10783_v25 }
 0x5d6   : > { %v9950_v55 = vadd.f32 %v9931_v63, %v9883_v53  ;;  %v9831_v24 = vadd.f32 %v9830_v33, %v9797_v8 }
 0x5d7   : > { %10738 = vmatmul.bf16.gmra.mxu0 %v18487_v37  ;;  %v9863_v10 = vpop.f32.mrf.mxu2  ;;  %v10911_v37 = vrot.slane %v10843_v60, 2 }
 0x5d8   : > { %11096 = vmatmul.bf16.gmra.mxu1 %v10908_v19  ;;  %v9959_v46 = vmax.f32 %v9950_v55, 0.0  ;;  %v9864_v57 = vadd.f32 %v9863_v10, %v9831_v24 }
 0x5d9   : > { %v10912_v34 = vsel %vm19436_vm1, %v10905_v43, %v10911_v37  ;;  %v10918_v8 = vsel %vm19439_vm8, %v10911_v37, %v10917_v44 }
 0x5da   : > { %v14643_v49 = vpack.c.bf16 %v9959_v46, %v9958_v22  ;;  %v18875_v13 = vpop.f32.mrf.mxu3  ;;  %v9875_v30 = vadd.f32 %v9864_v57, %v18683_v45  ;;  %v10913_v45 = vrot.slane %v10789_v11, 2 }
 0x5dc   : > { %v9799_v56 = vpop.f32.mrf.mxu0  ;;  %14733 = vst [vmem:[%s18025_s20 + $0x60] sm:$0xff] %v14643_v49   ;;  %v9884_v17 = vadd.f32 %v18718_v18, %v9875_v30  ;;  %v10914_v25 = vsel %vm19438_vm6, %v10907_v4, %v10913_v45 }
 0x5dd   : > { %v9832_v48 = vpop.f32.mrf.mxu1 }
 0x5de   : > { %v9951_v14 = vadd.f32 %v9933_v23, %v9884_v17 }
 0x5df   : > { %11162 = vmatmul.bf16.gmra.mxu3 %v10912_v34  ;;  %v9865_v32 = vpop.f32.mrf.mxu2 }
 0x5e0   : > { %v9960_v52 = vmax.f32 %v9951_v14, 0.0 }
 0x5e2   : > { %v9969_v1 = vpack.c.bf16 %v9960_v52, %v9960_v52  ;;  %v18884_v31 = vpop.f32.mrf.mxu3 }
 0x5e4   : > { %v10453_v12 = vpop.f32.mrf.mxu0  ;;  %9978 = vst [vmem:[%s18025_s20 + $0x68] sm:$0xf] %v9969_v1  ;;  %11134 = vmatmul.bf16.gmra.mxu2 %v10916_v42 }
 0x5e5   : > { %v10454_v21 = vadd.f32 %v10453_v12, %v18724_v35  ;;  %v10486_v61 = vpop.f32.mrf.mxu1 }
 0x5e7   : > { %v10487_v39 = vadd.f32 %v10486_v61, %v10454_v21  ;;  %10743 = vmatmul.bf16.gmra.mxu0 %v17879_v3  ;;  %v10663_v43 = vpop.f32.mrf.mxu2 }
 0x5e8   : > { %11101 = vmatmul.bf16.gmra.mxu1 %v10914_v25 }
 0x5e9   : > { %v10664_v38 = vadd.f32 %v10663_v43, %v10487_v39 }
 0x5ea   : > { %v10442_v6 = vpop.f32.mrf.mxu3 }
 0x5ec   : > { %v10455_v26 = vpop.f32.mrf.mxu0 }
 0x5ed   : > { %v10456_v50 = vadd.f32 %v10455_v26, %v18745_v0  ;;  %v10488_v28 = vpop.f32.mrf.mxu1 }
 0x5ef   : > { %v10489_v35 = vadd.f32 %v10488_v28, %v10456_v50  ;;  %11167 = vmatmul.bf16.gmra.mxu3 %v10918_v8  ;;  %v10665_v16 = vpop.f32.mrf.mxu2 }
 0x5f1   : > { %v10666_v63 = vadd.f32 %v10665_v16, %v10489_v35 }
 0x5f2   : > { %v10696_v33 = vpop.f32.mrf.mxu3 }
 0x5f3   : > { %v18893_v3 = vadd.f32 %v10696_v33, %v10664_v38 }
 0x5f4   : > { %v10458_v54 = vpop.f32.mrf.mxu0  ;;  %11139 = vmatmul.bf16.gmra.mxu2 %v10915_v29 }
 0x5f5   : > { %v10459_v4 = vadd.f32 %v10458_v54, %v18772_v51  ;;  %v10491_v62 = vpop.f32.mrf.mxu1 }
 0x5f7   : > { %v10492_v7 = vadd.f32 %v10491_v62, %v10459_v4  ;;  %10748 = vmatmul.bf16.gmra.mxu0 %v10075_v59  ;;  %v10668_v0 = vpop.f32.mrf.mxu2 }
 0x5f8   : > { %11106 = vmatmul.bf16.gmra.mxu1 %v10913_v45 }
 0x5f9   : > { %v10669_v5 = vadd.f32 %v10668_v0, %v10492_v7  ;;  %v11195_v0 = vld [vmem:[%s15153_s30 + $0x74] sm:$0xe] }
 0x5fa   : > { %v10698_v53 = vpop.f32.mrf.mxu3 }
 0x5fb   : > { %v18898_v55 = vadd.f32 %v10698_v53, %v10666_v63 }
 0x5fc   : > { %v10460_v19 = vpop.f32.mrf.mxu0 }
 0x5fd   : > { %v10461_v24 = vadd.f32 %v10460_v19, %v18804_v58  ;;  %v10493_v2 = vpop.f32.mrf.mxu1 }
 0x5ff   : > { %v10494_v60 = vadd.f32 %v10493_v2, %v10461_v24  ;;  %11172 = vmatmul.bf16.gmra.mxu3 %v10917_v44  ;;  %v10670_v10 = vpop.f32.mrf.mxu2  ;;  %v11205_v24 = vunpack.c.l.bf16 %v11195_v0 }
 0x601   : > { %v10671_v51 = vadd.f32 %v10670_v10, %v10494_v60 }
 0x602   : > { %v10701_v40 = vpop.f32.mrf.mxu3 }
 0x603   : > { %v18901_v22 = vadd.f32 %v10701_v40, %v10669_v5  ;;  %v14736_v5 = vld [vmem:[%s15153_s30 + $0x78] sm:$0xff]  }
 0x604   : > { %v10463_v41 = vpop.f32.mrf.mxu0  ;;  %v14655_v19 = vunpack.c.l.bf16 %v14736_v5 }
 0x605   : > { %v10464_v20 = vadd.f32 %v10463_v41, %v18825_v15  ;;  %v10496_v59 = vpop.f32.mrf.mxu1 }
 0x606   : > { %v11226_v40 = vrot.slane %v14655_v19, 3 }
 0x607   : > { %v10497_v46 = vadd.f32 %v10496_v59, %v10464_v20  ;;  %v10673_v57 = vpop.f32.mrf.mxu2 }
 0x609   : > { %v10674_v9 = vadd.f32 %v10673_v57, %v10497_v46 }
 0x60a   : > { %v10703_v49 = vpop.f32.mrf.mxu3 }
 0x60b   : > { %v18904_v30 = vadd.f32 %v10703_v49, %v10671_v51  ;;  %v11225_v51 = vrot.slane %v11205_v24, 3 }
 0x60c   : > { %v10465_v37 = vpop.f32.mrf.mxu0 }
 0x60d   : > { %v10466_v58 = vadd.f32 %v10465_v37, %v18850_v36  ;;  %v10498_v56 = vpop.f32.mrf.mxu1 }
 0x60f   : > { %v10499_v23 = vadd.f32 %v10498_v56, %v10466_v58  ;;  %v10675_v48 = vpop.f32.mrf.mxu2 }
 0x611   : > { %v10676_v27 = vadd.f32 %v10675_v48, %v10499_v23 }
 0x612   : > { %v10706_v17 = vpop.f32.mrf.mxu3 }
 0x613   : > { %v18907_v34 = vadd.f32 %v10706_v17, %v10674_v9  ;;  %v11227_v9 = vsel %vm7294_vm5, %v11225_v51, %v11226_v40 }
 0x614   : > { %v10468_v11 = vpop.f32.mrf.mxu0 }
 0x615   : > { %v10469_v15 = vadd.f32 %v10468_v11, %v18864_v47  ;;  %v10501_v14 = vpop.f32.mrf.mxu1  ;;  %v14737_v11 = vld [vmem:[%s15153_s30 + $0x80] sm:$0xff]  }
 0x617   : > { %v10502_v32 = vadd.f32 %v10501_v14, %v10469_v15  ;;  %v10678_v29 = vpop.f32.mrf.mxu2  ;;  %v14656_v14 = vunpack.c.h.bf16 %v14736_v5 }
 0x619   : > { %v10679_v52 = vadd.f32 %v10678_v29, %v10502_v32  ;;  %v14659_v29 = vunpack.c.l.bf16 %v14737_v11 }
 0x61a   : > { %v10708_v45 = vpop.f32.mrf.mxu3 }
 0x61b   : > { %v18910_v12 = vadd.f32 %v10708_v45, %v10676_v27 }
 0x61c   : > { %v10470_v1 = vpop.f32.mrf.mxu0 }
 0x61d   : > { %v10471_v36 = vadd.f32 %v10470_v1, %v18875_v13  ;;  %v10503_v21 = vpop.f32.mrf.mxu1 }
 0x61f   : > { %v10504_v61 = vadd.f32 %v10503_v21, %v10471_v36  ;;  %v10680_v42 = vpop.f32.mrf.mxu2  ;;  %v11228_v36 = vrot.slane %v14656_v14, 3 }
 0x621   : > { %v10681_v39 = vadd.f32 %v10680_v42, %v10504_v61  ;;  %v11230_v61 = vrot.slane %v14659_v29, 3 }
 0x622   : > { %v10711_v25 = vpop.f32.mrf.mxu3 }
 0x623   : > { %v18913_v38 = vadd.f32 %v10711_v25, %v10679_v52 }
 0x624   : > { %v10473_v43 = vpop.f32.mrf.mxu0 }
 0x625   : > { %v10474_v47 = vadd.f32 %v10473_v43, %v18884_v31  ;;  %v10506_v6 = vpop.f32.mrf.mxu1 }
 0x627   : > { %v10507_v44 = vadd.f32 %v10506_v6, %v10474_v47  ;;  %v10683_v26 = vpop.f32.mrf.mxu2  ;;  %v11229_v6 = vsel %vm7294_vm5, %v11226_v40, %v11228_v36 }
 0x629   : > { %v10684_v50 = vadd.f32 %v10683_v26, %v10507_v44 }
 0x62a   : > { %v10713_v28 = vpop.f32.mrf.mxu3 }
 0x62b   : > { %v18916_v8 = vadd.f32 %v10713_v28, %v10681_v39 }
 0x62c   : > { %v10475_v35 = vpop.f32.mrf.mxu0 }
 0x62d   : > { %v10508_v13 = vpop.f32.mrf.mxu1 }
 0x62f   : > { %v10685_v16 = vpop.f32.mrf.mxu2 }
 0x632   : > { %v10716_v63 = vpop.f32.mrf.mxu3 }
 0x633   : > { %v18918_v54 = vadd.f32 %v10716_v63, %v10684_v50 }
 0x634   : > { %v10729_v33 = vpop.f32.mrf.mxu0 }
 0x635   : > { %v11087_v4 = vpop.f32.mrf.mxu1  ;;  %v10730_v20 = vadd.f32 %v10729_v33, %v18893_v3 }
 0x637   : > { %v11120_v62 = vpop.f32.mrf.mxu2 }
 0x638   : > { %v11121_v2 = vadd.f32 %v11120_v62, %v11087_v4  ;;  %v14738_v62 = vld [vmem:[%s15153_s30 + $0x88] sm:$0xff]  }
 0x63a   : > { %v10718_v7 = vpop.f32.mrf.mxu3 }
 0x63c   : > { %v10731_v31 = vpop.f32.mrf.mxu0 }
 0x63d   : > { %v11089_v53 = vpop.f32.mrf.mxu1  ;;  %v10732_v3 = vadd.f32 %v10731_v31, %v18898_v55  ;;  %v11231_v55 = vsel %vm7294_vm5, %v11228_v36, %v11230_v61  ;;  %v14660_v31 = vunpack.c.h.bf16 %v14737_v11 }
 0x63f   : > { %v11122_v60 = vpop.f32.mrf.mxu2 }
 0x640   : > { %v11123_v37 = vadd.f32 %v11122_v60, %v11089_v53  ;;  %v14663_v53 = vunpack.c.l.bf16 %v14738_v62  ;;  %v11232_v60 = vrot.slane %v14660_v31, 3 }
 0x642   : > { %v11153_v10 = vpop.f32.mrf.mxu3  ;;  %v11234_v51 = vrot.slane %v14663_v53, 3 }
 0x643   : > { %v11154_v59 = vadd.f32 %v11153_v10, %v11121_v2 }
 0x644   : > { %v10734_v41 = vpop.f32.mrf.mxu0 }
 0x645   : > { %v11092_v46 = vpop.f32.mrf.mxu1  ;;  %v11177_v57 = vadd.f32 %v11154_v59, %v10730_v20  ;;  %v10735_v25 = vadd.f32 %v10734_v41, %v18901_v22 }
 0x647   : > { %v11186_v49 = vadd.f32 %v18718_v18, %v11177_v57  ;;  %v11125_v58 = vpop.f32.mrf.mxu2  ;;  %v11233_v57 = vsel %vm7294_vm5, %v11230_v61, %v11232_v60 }
 0x648   : > { %v11126_v45 = vadd.f32 %v11125_v58, %v11092_v46 }
 0x649   : > { %v11253_v56 = vadd.f32 %v11227_v9, %v11186_v49 }
 0x64a   : > { %v11155_v23 = vpop.f32.mrf.mxu3 }
 0x64b   : > { %v11262_v27 = vmax.f32 %v11253_v56, 0.0  ;;  %v11156_v17 = vadd.f32 %v11155_v23, %v11123_v37 }
 0x64c   : > { %v10736_v48 = vpop.f32.mrf.mxu0 }
 0x64d   : > { %v11094_v15 = vpop.f32.mrf.mxu1  ;;  %v11271_v32 = vpack.c.bf16 %v11262_v27, %v11262_v27  ;;  %v11178_v52 = vadd.f32 %v11156_v17, %v10732_v3  ;;  %v10737_v5 = vadd.f32 %v10736_v48, %v18904_v30  ;;  %v11235_v30 = vsel %vm7294_vm5, %v11232_v60, %v11234_v51 }
 0x64f   : > { %11280 = vst [vmem:[%s18025_s20 + $0x6c] sm:$0xf] %v11271_v32  ;;  %v11127_v1 = vpop.f32.mrf.mxu2  ;;  %v11187_v39 = vadd.f32 %v18718_v18, %v11178_v52  ;;  %v14664_v32 = vunpack.c.h.bf16 %v14738_v62 }
 0x650   : > { %v11128_v28 = vadd.f32 %v11127_v1, %v11094_v15  ;;  %v14739_v15 = vld [vmem:[%s15153_s30 + $0x90] sm:$0xff]  }
 0x651   : > { %v11254_v26 = vadd.f32 %v11229_v6, %v11187_v39  ;;  %v14667_v52 = vunpack.c.l.bf16 %v14739_v15 }
 0x652   : > { %v11158_v21 = vpop.f32.mrf.mxu3 }
 0x653   : > { %v11159_v43 = vadd.f32 %v11158_v21, %v11126_v45  ;;  %v11263_v33 = vmax.f32 %v11254_v26, 0.0  ;;  %v11236_v21 = vrot.slane %v14664_v32, 3 }
 0x654   : > { %v10739_v42 = vpop.f32.mrf.mxu0 }
 0x655   : > { %v11097_v47 = vpop.f32.mrf.mxu1  ;;  %v11179_v44 = vadd.f32 %v11159_v43, %v10735_v25  ;;  %v10740_v20 = vadd.f32 %v10739_v42, %v18907_v34  ;;  %v11238_v42 = vrot.slane %v14667_v52, 3 }
 0x657   : > { %v11188_v50 = vadd.f32 %v18718_v18, %v11179_v44  ;;  %v11130_v35 = vpop.f32.mrf.mxu2  ;;  %v11237_v44 = vsel %vm7294_vm5, %v11234_v51, %v11236_v21 }
 0x658   : > { %v11131_v24 = vadd.f32 %v11130_v35, %v11097_v47 }
 0x659   : > { %v11255_v13 = vadd.f32 %v11231_v55, %v11188_v50 }
 0x65a   : > { %v11160_v16 = vpop.f32.mrf.mxu3 }
 0x65b   : > { %v11264_v4 = vmax.f32 %v11255_v13, 0.0  ;;  %v11161_v22 = vadd.f32 %v11160_v16, %v11128_v28 }
 0x65c   : > { %v10741_v63 = vpop.f32.mrf.mxu0 }
 0x65d   : > { %v11099_v7 = vpop.f32.mrf.mxu1  ;;  %v14672_v0 = vpack.c.bf16 %v11264_v4, %v11263_v33  ;;  %v11180_v19 = vadd.f32 %v11161_v22, %v10737_v5  ;;  %v10742_v29 = vadd.f32 %v10741_v63, %v18910_v12  ;;  %v11239_v12 = vsel %vm7294_vm5, %v11236_v21, %v11238_v42  ;;  %v11204_v22 = vld [vmem:[%s15153_s30 + $0x98] sm:$0x3]  ;;  %s14748_s30 = smul.u32 144, %s15065_s19  ;;  %s11290_s19 = scalar_lea.sflag [#allocation5], %s15149_s6 }
 0x65e   : > { %v11214_v5 = vunpack.c.l.bf16 %v11204_v22 }
 0x65f   : > { %14740 = vst [vmem:[%s18025_s20 + $0x70] sm:$0xff] %v14672_v0   ;;  %v11132_v2 = vpop.f32.mrf.mxu2  ;;  %v11189_v41 = vadd.f32 %v18718_v18, %v11180_v19  ;;  %s11301_s5 = scalar_lea.hbm %s18996_s4, %s14748_s30 }
 0x660   : > { %v11133_v58 = vadd.f32 %v11132_v2, %v11099_v7  ;;  %v14668_v7 = vunpack.c.h.bf16 %v14739_v15  ;;  %s11304_s9 = sshll.u32 %s11301_s5, 4  ;;  %s11305_s9 = int_to_ptr.hbm [resolvable:$true] %s11304_s9 }
 0x661   : > { %v11256_v49 = vadd.f32 %v11233_v57, %v11189_v41  ;;  %s14954_s11 = sshra.s32 %s11305_s9, 4  ;;  %s14955_s11 = int_to_ptr.hbm [resolvable:$true] %s14954_s11 }
 0x662   : > { %v11163_v10 = vpop.f32.mrf.mxu3  ;;  %v11240_v2 = vrot.slane %v14668_v7, 3  ;;  %s14956_s12 = scalar_lea.hbm %s14955_s11, 144  ;;  %p14961_p11 = scmp.lt.s32.totalorder %s14955_s11, %s18996_s4 }
 0x663   : > { %v11164_v59 = vadd.f32 %v11163_v10, %v11131_v24  ;;  %v11265_v17 = vmax.f32 %v11256_v49, 0.0  ;;  %v11242_v10 = vrot.slane %v11214_v5, 3  ;;  %p14957_p1 = scmp.ne.s32.totalorder %s14955_s11, %s14956_s12  ;;  %p14962_p9 = scmp.lt.s32.totalorder %s14960_s24, %s14956_s12 }
 0x664   : > { %v10744_v40 = vpop.f32.mrf.mxu0 }
 0x665   : > { %v11102_v46 = vpop.f32.mrf.mxu1  ;;  %v11181_v9 = vadd.f32 %v11164_v59, %v10740_v20  ;;  %v10745_v43 = vadd.f32 %v10744_v40, %v18913_v38  ;;  %v11241_v20 = vsel %vm7294_vm5, %v11238_v42, %v11240_v2  ;;  %v11243_v59 = vsel %vm7294_vm5, %v11240_v2, %v11242_v10  ;;  %p14958_p4 = pnand %p14957_p1, %p15116_p3  ;;  %p14963_p2 = por %p14962_p9, %p14961_p11 }
 0x667   : > { %v11190_v37 = vadd.f32 %v18718_v18, %v11181_v9  ;;  %v11135_v56 = vpop.f32.mrf.mxu2  ;;  %p14959_p8 = pneg %p14958_p4 }
 0x668   : > { %v11136_v1 = vadd.f32 %v11135_v56, %v11102_v46 }
 0x669   : > { %v11257_v23 = vadd.f32 %v11235_v30, %v11190_v37  ;;  %p14964_p10 = pnand %p14963_p2, %p14959_p8 }
 0x66a   : > { %v11165_v48 = vpop.f32.mrf.mxu3 }
 0x66b   : > { %v11266_v11 = vmax.f32 %v11257_v23, 0.0  ;;  %v11166_v34 = vadd.f32 %v11165_v48, %v11133_v58 }
 0x66c   : > { %v10746_v27 = vpop.f32.mrf.mxu0 }
 0x66d   : > { %v11104_v14 = vpop.f32.mrf.mxu1  ;;  %v14677_v3 = vpack.c.bf16 %v11266_v11, %v11265_v17  ;;  %v11182_v45 = vadd.f32 %v11166_v34, %v10742_v29  ;;  %v10747_v0 = vadd.f32 %v10746_v27, %v18916_v8 }
 0x66f   : > { %14741 = vst [vmem:[%s18025_s20 + $0x78] sm:$0xff] %v14677_v3   ;;  %v11137_v36 = vpop.f32.mrf.mxu2  ;;  %v11191_v25 = vadd.f32 %v18718_v18, %v11182_v45 }
 0x670   : > { %v11138_v28 = vadd.f32 %v11137_v36, %v11104_v14 }
 0x671   : > { %v11258_v26 = vadd.f32 %v11237_v44, %v11191_v25 }
 0x672   : > { %v11168_v61 = vpop.f32.mrf.mxu3 }
 0x673   : > { %v11169_v47 = vadd.f32 %v11168_v61, %v11136_v1  ;;  %v11267_v33 = vmax.f32 %v11258_v26, 0.0 }
 0x674   : > { %v10749_v39 = vpop.f32.mrf.mxu0 }
 0x675   : > { %v11107_v6 = vpop.f32.mrf.mxu1  ;;  %v11183_v55 = vadd.f32 %v11169_v47, %v10745_v43  ;;  %v10750_v40 = vadd.f32 %v10749_v39, %v18918_v54 }
 0x677   : > { %v11192_v50 = vadd.f32 %v18718_v18, %v11183_v55  ;;  %v11140_v35 = vpop.f32.mrf.mxu2 }
 0x678   : > { %v11141_v19 = vadd.f32 %v11140_v35, %v11107_v6 }
 0x679   : > { %v11259_v13 = vadd.f32 %v11239_v12, %v11192_v50 }
 0x67a   : > { %v11170_v16 = vpop.f32.mrf.mxu3 }
 0x67b   : > { %v11268_v4 = vmax.f32 %v11259_v13, 0.0  ;;  %v11171_v38 = vadd.f32 %v11170_v16, %v11138_v28 }
 0x67c   : > { %v10751_v63 = vpop.f32.mrf.mxu0 }
 0x67d   : > { %v11109_v62 = vpop.f32.mrf.mxu1  ;;  %v14682_v31 = vpack.c.bf16 %v11268_v4, %v11267_v33  ;;  %v11184_v53 = vadd.f32 %v11171_v38, %v10747_v0 }
 0x67f   : > { %14742 = vst [vmem:[%s18025_s20 + $0x80] sm:$0xff] %v14682_v31   ;;  %v11142_v24 = vpop.f32.mrf.mxu2  ;;  %v11193_v51 = vadd.f32 %v18718_v18, %v11184_v53 }
 0x681   : > { %v11260_v46 = vadd.f32 %v11241_v20, %v11193_v51 }
 0x682   : > { %v11173_v60 = vpop.f32.mrf.mxu3 }
 0x683   : > { %v11174_v41 = vadd.f32 %v11173_v60, %v11141_v19  ;;  %v11269_v30 = vmax.f32 %v11260_v46, 0.0 }
 0x685   : > { %v11185_v8 = vadd.f32 %v11174_v41, %v10750_v40 }
 0x687   : > { %v11194_v57 = vadd.f32 %v18718_v18, %v11185_v8 }
 0x689   : > { %v11261_v9 = vadd.f32 %v11243_v59, %v11194_v57 }
 0x68a   : > { %v11175_v54 = vpop.f32.mrf.mxu3 }
 0x68b   : > { %v11270_v49 = vmax.f32 %v11261_v9, 0.0 }
 0x68d   : > { %v14687_v37 = vpack.c.bf16 %v11270_v49, %v11269_v30 }
 0x68f   : > { %14743 = vst [vmem:[%s18025_s20 + $0x88] sm:$0xff] %v14687_v37  }
 0x690   : > { %14967 = shalt.err (!%p14964_p10)
}
 0x691   : > { %s15017_s6 = smov 64   ;;  %s15018_s20 = smov 4  }
 0x692   : > { %14759 = dma.vmem_to_hbm [thread:$0]  (%p15116_p3), %s11303_s8, 2304, %s11305_s9, %s11290_s19, %s15017_s6, %s15017_s6, %s15018_s20  }
 0x693 PF: > { %s11319_s29 = sand.u32 1, %s14998_s15   ;;  %p19440_p12 = scmp.ge.s32.totalorder %s15010_s18, 2 }
 0x694   : > { %s11320_s21 = scalar_lea.sflag [#allocation5], %s11319_s29 }
 0x695   : > { %p14773_p13 = pnand %p19440_p12, %p15079_p6 }
 0x697   : > { %p14774_p0 = pneg %p14773_p13 }
 0x699   : > { %14993 = dma.done.wait (%p14774_p0), %s11320_s21, 2304  }
 0x69a   : > { %14995 = vsyncadd (%p14774_p0), %s11320_s21, 4294964992  ;;  %p18_p5 = scmp.ge.s32.totalorder %s15106_s10, 4   ;;  %s19441_s15 = smov %s15002_s16 }
 0x69b   : > { %s19442_s16 = smov %s15006_s17  ;;  %s19443_s17 = smov %s15122_s14 }
 0x69c   : > { %s19444_s18 = smov %s15106_s10  ;;  %20 = sbr.rel (!%p18_p5) target bundleno = 6 (0x6), region = 93 }
 0x6a1   :  { %11326 = vsyncpa [#allocation4], 1 }
 0x6a2   :  { %11328 = vsyncpa [#allocation4 + $0x1], 1 }
 0x6a3   :  { %11329 = vsyncpa [#allocation7], 1 }
 0x6a4   :  { %11330 = vsyncpa [#allocation5], 1 }
 0x6a5   :  { %11332 = vsyncpa [#allocation5 + $0x1], 1 }

</bundles_post_ra>
